<compile_context>
chip_gen: v5e
topology: v5e:2x2
jax: 0.10.0
libtpu: 0.0.40
codegen_flags: <defaults>
</compile_context>

<pallas_src>
import functools
import math

import jax
import jax.numpy as jnp
from jax import lax
from jax.experimental import pallas as pl
from jax.experimental.pallas import tpu as pltpu

CFG = dict(
    nfeats=313,
    nb_code=128,
    code_dim=128,
    output_emb_width=128,
    down_t=2,
    stride_t=2,
    width=128,
    depth=2,
    dilation_growth_rate=3,
)

BODY_DIM = 4 + 21 * 3 + 22 * 3   # 133
HAND_DIM = 30 * 3 + 30 * 3       # 180
CIN_PAD = 256                    # lane-dense pad for the 133/180-wide stream channels


# ----------------------------- Pallas kernels -----------------------------

def _conv_kernel(x_ref, w_ref, b_ref, o_ref, *, k_taps, dilation, t_out, out_relu):
    """1-D conv (already time-padded input) as k_taps accumulated MXU matmuls."""
    acc = None
    for k in range(k_taps):
        off = k * dilation
        tap = x_ref[0, 0, off:off + t_out, :]                   # (t_out, Cin) bf16
        d = jnp.dot(tap, w_ref[0, k], preferred_element_type=jnp.float32)
        acc = d if acc is None else acc + d
    acc = acc + b_ref[0]                                        # f32 bias
    if out_relu:
        acc = jnp.maximum(acc, 0.0)
    o_ref[0, 0] = acc.astype(o_ref.dtype)


def _resblock_kernel(x_ref, w1_ref, b1_ref, w2_ref, b2_ref, o_ref, *, dil, t_out):
    """Fused ResConv1DBlock: relu -> conv(k3,dil) -> relu -> conv(k1) -> +x."""
    acc = None
    for k in range(3):
        tap = jnp.maximum(x_ref[0, 0, k * dil:k * dil + t_out, :], 0)
        d = jnp.dot(tap, w1_ref[0, k], preferred_element_type=jnp.float32)
        acc = d if acc is None else acc + d
    h = jnp.maximum(acc + b1_ref[0], 0.0).astype(jnp.bfloat16)
    acc2 = jnp.dot(h, w2_ref[0, 0], preferred_element_type=jnp.float32) + b2_ref[0]
    x_res = x_ref[0, 0, dil:dil + t_out, :].astype(jnp.float32)
    o_ref[0, 0] = (x_res + acc2).astype(o_ref.dtype)


def _vq_kernel(x_ref, cb_ref, c2_ref, xd_ref, ppl_ref, counts_ref, *,
               rows_per_tile, m_valid):
    m = pl.program_id(1)

    @pl.when(m == 0)
    def _():
        counts_ref[...] = jnp.zeros_like(counts_ref)

    x = x_ref[0]                                                # (tm, D) f32
    cb = cb_ref[0]                                              # (Nc, D) f32
    nc = cb.shape[0]
    x2 = jnp.sum(x * x, axis=-1, keepdims=True)                 # (tm, 1)
    xc = lax.dot_general(x, cb, (((1,), (1,)), ((), ())),
                         preferred_element_type=jnp.float32)    # (tm, Nc)
    dist = x2 - 2.0 * xc + c2_ref[0]                            # (tm, Nc)
    # argmin (first occurrence) via min-reductions only.
    min_d = jnp.min(dist, axis=-1, keepdims=True)
    iota = lax.broadcasted_iota(jnp.int32, dist.shape, 1)
    idx = jnp.min(jnp.where(dist <= min_d, iota, nc), axis=-1, keepdims=True)
    onehot = (iota == idx).astype(jnp.float32)                  # (tm, Nc)
    xd_ref[0] = jnp.dot(onehot, cb, preferred_element_type=jnp.float32)

    row = m * rows_per_tile + lax.broadcasted_iota(jnp.int32, dist.shape, 0)
    valid = (row < m_valid).astype(jnp.float32)                 # mask padded rows
    counts_ref[...] += jnp.sum(onehot * valid, axis=0, keepdims=True)

    @pl.when(m == pl.num_programs(1) - 1)
    def _():
        prob = counts_ref[...] / float(m_valid)
        ppl_ref[0] = jnp.exp(-jnp.sum(prob * jnp.log(prob + 1e-7),
                                      axis=-1, keepdims=True))


# ----------------------------- layer wrappers ------------------------------

def _conv_call(x, w, b, *, k_taps, dilation=1, out_relu=False):
    """x: (S, N, Tp, Cin) bf16 (time already padded); w: (S, K, Cin, Cout) bf16."""
    S, N, Tp, Cin = x.shape
    Cout = w.shape[-1]
    t_out = Tp - dilation * (k_taps - 1)
    return pl.pallas_call(
        functools.partial(_conv_kernel, k_taps=k_taps, dilation=dilation,
                          t_out=t_out, out_relu=out_relu),
        out_shape=jax.ShapeDtypeStruct((S, N, t_out, Cout), jnp.bfloat16),
        grid=(S, N),
        in_specs=[
            pl.BlockSpec((1, 1, Tp, Cin), lambda s, n: (s, n, 0, 0)),
            pl.BlockSpec((1, k_taps, Cin, Cout), lambda s, n: (s, 0, 0, 0)),
            pl.BlockSpec((1, 1, Cout), lambda s, n: (s, 0, 0)),
        ],
        out_specs=pl.BlockSpec((1, 1, t_out, Cout), lambda s, n: (s, n, 0, 0)),
        compiler_params=pltpu.CompilerParams(
            dimension_semantics=("parallel", "parallel")),
    )(x, w, b)


def conv_layer(x, p, *, k_taps, pad, dilation=1, out_relu=False):
    # TODO(synk): the time-dim jnp.pad could be folded into an in-kernel halo read
    # (and the full-time block replaced by halo tiling) for long sequences.
    if pad:
        x = jnp.pad(x, ((0, 0), (0, 0), (pad, pad), (0, 0)))
    return _conv_call(x, p["w"], p["b"], k_taps=k_taps, dilation=dilation,
                      out_relu=out_relu)


def strided_conv_layer(x, p):
    # torch Conv1d(k=4, stride=2, pad=1) == k=2 stride-1 conv on the free
    # time-pair reshape of pad(x,1,1); weights were pre-fused in pack_params.
    S, N, T, C = x.shape
    xp = jnp.pad(x, ((0, 0), (0, 0), (1, 1), (0, 0)))
    xr = xp.reshape(S, N, (T + 2) // 2, 2 * C)
    return _conv_call(xr, p["w"], p["b"], k_taps=2)


def upsample_conv_layer(x, p):
    # torch Upsample(x2, nearest) + Conv1d(k=3, pad=1) fused into one polyphase
    # conv with doubled Cout; the (T, 2*C) -> (2T, C) reshape is contiguous/free.
    S, N, T, C = x.shape
    xp = jnp.pad(x, ((0, 0), (0, 0), (1, 1), (0, 0)))
    y = _conv_call(xp, p["w"], p["b"], k_taps=3)                # (S, N, T, 2*Cout)
    cout = p["w"].shape[-1] // 2
    return y.reshape(S, N, 2 * T, cout)


def res_layer(x, p, dil):
    S, N, T, C = x.shape
    xp = jnp.pad(x, ((0, 0), (0, 0), (dil, dil), (0, 0)))
    return pl.pallas_call(
        functools.partial(_resblock_kernel, dil=dil, t_out=T),
        out_shape=jax.ShapeDtypeStruct((S, N, T, C), jnp.bfloat16),
        grid=(S, N),
        in_specs=[
            pl.BlockSpec((1, 1, T + 2 * dil, C), lambda s, n: (s, n, 0, 0)),
            pl.BlockSpec((1, 3, C, C), lambda s, n: (s, 0, 0, 0)),
            pl.BlockSpec((1, 1, C), lambda s, n: (s, 0, 0)),
            pl.BlockSpec((1, 1, C, C), lambda s, n: (s, 0, 0, 0)),
            pl.BlockSpec((1, 1, C), lambda s, n: (s, 0, 0)),
        ],
        out_specs=pl.BlockSpec((1, 1, T, C), lambda s, n: (s, n, 0, 0)),
        compiler_params=pltpu.CompilerParams(
            dimension_semantics=("parallel", "parallel")),
    )(xp, p["w1"], p["b1"], p["w2"], p["b2"])


def vq_quantize(x, codebooks, codebook_sq):
    """x: (S, M, D) f32 -> dequantized (S, M, D) f32 and per-stream perplexity (S,)."""
    S, M, D = x.shape
    Nc = codebooks.shape[1]
    tm = 512
    if M <= tm:
        tm = max(8, ((M + 7) // 8) * 8)
    Mp = ((M + tm - 1) // tm) * tm
    xp = jnp.pad(x, ((0, 0), (0, Mp - M), (0, 0)))
    xd, ppl = pl.pallas_call(
        functools.partial(_vq_kernel, rows_per_tile=tm, m_valid=M),
        out_shape=(jax.ShapeDtypeStruct((S, Mp, D), jnp.float32),
                   jax.ShapeDtypeStruct((S, 1, 1), jnp.float32)),
        grid=(S, Mp // tm),
        in_specs=[
            pl.BlockSpec((1, tm, D), lambda s, m: (s, m, 0)),
            pl.BlockSpec((1, Nc, D), lambda s, m: (s, 0, 0)),
            pl.BlockSpec((1, 1, Nc), lambda s, m: (s, 0, 0)),
        ],
        out_specs=(pl.BlockSpec((1, tm, D), lambda s, m: (s, m, 0)),
                   pl.BlockSpec((1, 1, 1), lambda s, m: (s, 0, 0))),
        scratch_shapes=[pltpu.VMEM((1, Nc), jnp.float32)],
        compiler_params=pltpu.CompilerParams(
            dimension_semantics=("parallel", "arbitrary")),
    )(xp, codebooks, codebook_sq)
    return xd[:, :M], ppl[:, 0, 0]


# ------------------------------ parameters --------------------------------

def _conv_init(key, cin, cout, k):
    s = 1.0 / math.sqrt(cin * k)
    kw, kb = jax.random.split(key)
    return {"w": jax.random.uniform(kw, (k, cin, cout), jnp.float32, -s, s),
            "b": jax.random.uniform(kb, (cout,), jnp.float32, -s, s)}


def _res_init(key, width):
    k1, k2 = jax.random.split(key)
    return {"conv1": _conv_init(k1, width, width, 3),
            "conv2": _conv_init(k2, width, width, 1)}


def init_encoder(key, cin, cfg):
    keys = iter(jax.random.split(key, 2 + cfg["down_t"] * (1 + cfg["depth"])))
    p = {"conv_in": _conv_init(next(keys), cin, cfg["width"], 3), "down": []}
    filt = cfg["stride_t"] * 2
    for _ in range(cfg["down_t"]):
        blk = {"conv": _conv_init(next(keys), cfg["width"], cfg["width"], filt),
               "res": [_res_init(next(keys), cfg["width"])
                       for _ in range(cfg["depth"])]}
        p["down"].append(blk)
    p["conv_out"] = _conv_init(next(keys), cfg["width"], cfg["output_emb_width"], 3)
    return p


def init_decoder(key, cout, cfg):
    keys = iter(jax.random.split(key, 3 + cfg["down_t"] * (1 + cfg["depth"])))
    p = {"conv_in": _conv_init(next(keys), cfg["output_emb_width"], cfg["width"], 3),
         "up": []}
    for _ in range(cfg["down_t"]):
        blk = {"res": [_res_init(next(keys), cfg["width"])
                       for _ in range(cfg["depth"])],
               "conv": _conv_init(next(keys), cfg["width"], cfg["width"], 3)}
        p["up"].append(blk)
    p["conv_mid"] = _conv_init(next(keys), cfg["width"], cfg["width"], 3)
    p["conv_out"] = _conv_init(next(keys), cfg["width"], cout, 3)
    return p


def init_params(key, cfg):
    # TODO(synk): QuantizeEMAReset inits its codebook to zeros until training;
    # a small random codebook keeps eval-mode quantization non-degenerate.
    k = jax.random.split(key, 6)
    return {
        "body_enc": init_encoder(k[0], BODY_DIM, cfg),
        "hand_enc": init_encoder(k[1], HAND_DIM, cfg),
        "body_dec": init_decoder(k[2], BODY_DIM, cfg),
        "hand_dec": init_decoder(k[3], HAND_DIM, cfg),
        "body_codebook": 0.02 * jax.random.normal(
            k[4], (cfg["nb_code"], cfg["code_dim"]), jnp.float32),
        "hand_codebook": 0.02 * jax.random.normal(
            k[5], (cfg["nb_code"], cfg["code_dim"]), jnp.float32),
    }


# Stack body/hand weights along a stream axis (bf16), zero-pad narrow channel
# counts to lane-dense widths, and pre-fuse the strided / upsample convs.

def _stack_conv(bp, hp, *, cin_pad=None, cout_pad=None):
    def prep(p):
        w, b = p["w"], p["b"]
        _, cin, cout = w.shape
        if cin_pad is not None and cin_pad > cin:
            w = jnp.pad(w, ((0, 0), (0, cin_pad - cin), (0, 0)))
        if cout_pad is not None and cout_pad > cout:
            w = jnp.pad(w, ((0, 0), (0, 0), (0, cout_pad - cout)))
            b = jnp.pad(b, (0, cout_pad - cout))
        return w, b
    wb, bb = prep(bp)
    wh, bh = prep(hp)
    return {"w": jnp.stack([wb, wh], 0).astype(jnp.bfloat16),
            "b": jnp.stack([bb, bh], 0)[:, None, :].astype(jnp.float32)}


def _fuse_strided(p):
    # Conv1d(k=4, s=2, p=1) on x  ==  Conv1d(k=2, s=1) on pad(x,1,1) reshaped to
    # (T/2+1, 2*Cin); tap j weight = [w[2j]; w[2j+1]] stacked on Cin.
    w = p["w"]                                      # (4, Cin, Cout)
    w0 = jnp.concatenate([w[0], w[1]], axis=0)
    w1 = jnp.concatenate([w[2], w[3]], axis=0)
    return {"w": jnp.stack([w0, w1], 0), "b": p["b"]}


def _fuse_upsample_conv(p):
    # Upsample(x2, nearest) + Conv1d(k=3, p=1)  ==  polyphase Conv1d(k=3) on
    # pad(x,1,1) with doubled Cout (even | odd output phases).
    w, b = p["w"], p["b"]                           # (3, Cin, Cout), (Cout,)
    cin, cout = w.shape[1], w.shape[2]
    z = jnp.zeros((cin, cout), w.dtype)
    w0 = jnp.concatenate([w[0], z], axis=1)
    w1 = jnp.concatenate([w[1] + w[2], w[0] + w[1]], axis=1)
    w2 = jnp.concatenate([z, w[2]], axis=1)
    return {"w": jnp.stack([w0, w1, w2], 0),
            "b": jnp.concatenate([b, b], axis=0)}


def _stack_res(bp, hp):
    return {
        "w1": jnp.stack([bp["conv1"]["w"], hp["conv1"]["w"]], 0).astype(jnp.bfloat16),
        "b1": jnp.stack([bp["conv1"]["b"], hp["conv1"]["b"]], 0)[:, None, :]
              .astype(jnp.float32),
        "w2": jnp.stack([bp["conv2"]["w"], hp["conv2"]["w"]], 0).astype(jnp.bfloat16),
        "b2": jnp.stack([bp["conv2"]["b"], hp["conv2"]["b"]], 0)[:, None, :]
              .astype(jnp.float32),
    }


def pack_params(raw, cfg):
    be, he = raw["body_enc"], raw["hand_enc"]
    bd, hd = raw["body_dec"], raw["hand_dec"]
    cb = jnp.stack([raw["body_codebook"], raw["hand_codebook"]], 0).astype(jnp.float32)
    return {
        "enc_in": _stack_conv(be["conv_in"], he["conv_in"], cin_pad=CIN_PAD),
        "enc_down": [
            {"conv": _stack_conv(_fuse_strided(be["down"][i]["conv"]),
                                 _fuse_strided(he["down"][i]["conv"])),
             "res": [_stack_res(be["down"][i]["res"][j], he["down"][i]["res"][j])
                     for j in range(cfg["depth"])]}
            for i in range(cfg["down_t"])],
        "enc_out": _stack_conv(be["conv_out"], he["conv_out"]),
        "dec_in": _stack_conv(bd["conv_in"], hd["conv_in"]),
        "dec_up": [
            {"res": [_stack_res(bd["up"][i]["res"][j], hd["up"][i]["res"][j])
                     for j in range(cfg["depth"])],
             "upconv": _stack_conv(_fuse_upsample_conv(bd["up"][i]["conv"]),
                                   _fuse_upsample_conv(hd["up"][i]["conv"]))}
            for i in range(cfg["down_t"])],
        "dec_mid": _stack_conv(bd["conv_mid"], hd["conv_mid"]),
        "dec_out": _stack_conv(bd["conv_out"], hd["conv_out"], cout_pad=CIN_PAD),
        "codebooks": cb,
        "codebook_sq": jnp.sum(cb * cb, axis=-1)[:, None, :],
    }


# ------------------------------ model forward ------------------------------

def _dilations(cfg):
    # Resnet1D(reverse_dilation=True): largest dilation first.
    return [cfg["dilation_growth_rate"] ** d for d in range(cfg["depth"])][::-1]


def dual_human_vqvae_forward(packed, x, cfg=CFG):
    """x: (N, T, 313) float32 (same layout the torch module sees before `preprocess`)."""
    N, T, F = x.shape
    assert F == cfg["nfeats"] == 313
    assert T % (cfg["stride_t"] ** cfg["down_t"]) == 0
    b0, b1, b2 = 4 + 21 * 3, 4 + 51 * 3, 4 + 51 * 3 + 22 * 3     # 67, 157, 223
    body = jnp.concatenate([x[..., :b0], x[..., b1:b2]], axis=-1)   # (N, T, 133)
    hand = jnp.concatenate([x[..., b0:b1], x[..., b2:]], axis=-1)   # (N, T, 180)
    xin = jnp.stack([
        jnp.pad(body, ((0, 0), (0, 0), (0, CIN_PAD - BODY_DIM))),
        jnp.pad(hand, ((0, 0), (0, 0), (0, CIN_PAD - HAND_DIM)))],
        axis=0).astype(jnp.bfloat16)                                # (2, N, T, 256)

    dils = _dilations(cfg)

    # --- encoders (body & hand share every kernel launch via the stream axis) ---
    h = conv_layer(xin, packed["enc_in"], k_taps=3, pad=1, out_relu=True)
    for blk in packed["enc_down"]:
        h = strided_conv_layer(h, blk["conv"])
        for rp, d in zip(blk["res"], dils):
            h = res_layer(h, rp, d)
    h = conv_layer(h, packed["enc_out"], k_taps=3, pad=1)           # (2, N, Te, D)

    S, _, Te, D = h.shape
    enc = h.astype(jnp.float32).reshape(S, N * Te, D)
    xd, ppl = vq_quantize(enc, packed["codebooks"], packed["codebook_sq"])

    # straight-through x + (x_d - x).detach() equals x_d in value -> feed x_d.
    g = xd.astype(jnp.bfloat16).reshape(S, N, Te, D)

    # --- decoders ---
    g = conv_layer(g, packed["dec_in"], k_taps=3, pad=1, out_relu=True)
    for blk in packed["dec_up"]:
        for rp, d in zip(blk["res"], dils):
            g = res_layer(g, rp, d)
        g = upsample_conv_layer(g, blk["upconv"])
    g = conv_layer(g, packed["dec_mid"], k_taps=3, pad=1, out_relu=True)
    g = conv_layer(g, packed["dec_out"], k_taps=3, pad=1)           # (2, N, T, 256)

    dec = g.astype(jnp.float32)
    x_out = jnp.concatenate([dec[0, ..., :BODY_DIM], dec[1, ..., :HAND_DIM]], axis=-1)

    # TODO(synk): the dual quantizer variant returns the (commit_x, commit_x_d)
    # pair (the MSE commit loss is formed by the caller), mirrored here.
    return x_out, (enc[0], xd[0]), (enc[1], xd[1]), ppl[0], ppl[1]


# ---------------------------------- main -----------------------------------

if __name__ == "__main__":
    raw_params = init_params(jax.random.PRNGKey(0), CFG)
    packed = pack_params(raw_params, CFG)

    key = jax.random.PRNGKey(0)
    N, T = 2, 16
    x = jax.random.normal(key, (N, T, CFG["nfeats"]), jnp.float32)

    fwd = jax.jit(dual_human_vqvae_forward)
    out = fwd(packed, x)
    jax.block_until_ready(out)

    x_out, (bcx, bcxd), (hcx, hcxd), bppl, hppl = out
    Te = T // (CFG["stride_t"] ** CFG["down_t"])
    assert x_out.shape == (N, T, CFG["nfeats"])
    assert bcx.shape == bcxd.shape == (N * Te, CFG["code_dim"])
    assert hcx.shape == hcxd.shape == (N * Te, CFG["code_dim"])
    assert bppl.shape == () and hppl.shape == ()
    print("KERNEL_OK")
</pallas_src>

<mosaic_0001>
module attributes {stable_mosaic.version = 11 : i64} {
  func.func @_conv_kernel(%arg0: i32, %arg1: i32, %arg2: memref<1x1x18x256xbf16, #tpu.memory_space<vmem>>, %arg3: memref<1x3x256x128xbf16, #tpu.memory_space<vmem>>, %arg4: memref<1x1x128xf32, #tpu.memory_space<vmem>>, %arg5: memref<1x1x16x128xbf16, #tpu.memory_space<vmem>>) attributes {dimension_semantics = [#tpu.dimension_semantics<parallel>, #tpu.dimension_semantics<parallel>], iteration_bounds = array<i64: 2, 2>, scalar_prefetch = 0 : i64, scratch_operands = 0 : i64, tpu.core_type = #tpu.core_type<tc>, window_params = [{transform_indices = @transform_0, window_bounds = array<i64: 1, 1, 18, 256>}, {transform_indices = @transform_1, window_bounds = array<i64: 1, 3, 256, 128>}, {transform_indices = @transform_2, window_bounds = array<i64: 1, 1, 128>}, {transform_indices = @transform_3, window_bounds = array<i64: 1, 1, 16, 128>}]} {
    %c0 = arith.constant 0 : index
    %c0_0 = arith.constant 0 : index
    %c0_1 = arith.constant 0 : index
    %c0_2 = arith.constant 0 : index
    %0 = vector.load %arg2[%c0, %c0_0, %c0_1, %c0_2] : memref<1x1x18x256xbf16, #tpu.memory_space<vmem>>, vector<1x1x16x256xbf16>
    %1 = vector.shape_cast %0 : vector<1x1x16x256xbf16> to vector<16x256xbf16>
    %c0_3 = arith.constant 0 : index
    %c0_4 = arith.constant 0 : index
    %c0_5 = arith.constant 0 : index
    %c0_6 = arith.constant 0 : index
    %2 = vector.load %arg3[%c0_3, %c0_4, %c0_5, %c0_6] : memref<1x3x256x128xbf16, #tpu.memory_space<vmem>>, vector<1x1x256x128xbf16>
    %3 = vector.shape_cast %2 : vector<1x1x256x128xbf16> to vector<256x128xbf16>
    %cst = arith.constant dense<0.000000e+00> : vector<16x128xf32>
    %4 = tpu.matmul %1, %3, %cst {dimension_numbers = #tpu.dot_dimension_numbers<[1], [0], [0], [1], [0, 0, 1, 1], [], []>} : vector<16x256xbf16>, vector<256x128xbf16>, vector<16x128xf32> -> vector<16x128xf32>
    %c0_7 = arith.constant 0 : index
    %c0_8 = arith.constant 0 : index
    %c1 = arith.constant 1 : index
    %c0_9 = arith.constant 0 : index
    %5 = vector.load %arg2[%c0_7, %c0_8, %c1, %c0_9] : memref<1x1x18x256xbf16, #tpu.memory_space<vmem>>, vector<1x1x16x256xbf16>
    %6 = vector.shape_cast %5 : vector<1x1x16x256xbf16> to vector<16x256xbf16>
    %c0_10 = arith.constant 0 : index
    %c1_11 = arith.constant 1 : index
    %c0_12 = arith.constant 0 : index
    %c0_13 = arith.constant 0 : index
    %7 = vector.load %arg3[%c0_10, %c1_11, %c0_12, %c0_13] : memref<1x3x256x128xbf16, #tpu.memory_space<vmem>>, vector<1x1x256x128xbf16>
    %8 = vector.shape_cast %7 : vector<1x1x256x128xbf16> to vector<256x128xbf16>
    %cst_14 = arith.constant dense<0.000000e+00> : vector<16x128xf32>
    %9 = tpu.matmul %6, %8, %cst_14 {dimension_numbers = #tpu.dot_dimension_numbers<[1], [0], [0], [1], [0, 0, 1, 1], [], []>} : vector<16x256xbf16>, vector<256x128xbf16>, vector<16x128xf32> -> vector<16x128xf32>
    %10 = arith.addf %4, %9 : vector<16x128xf32>
    %c0_15 = arith.constant 0 : index
    %c0_16 = arith.constant 0 : index
    %c2 = arith.constant 2 : index
    %c0_17 = arith.constant 0 : index
    %11 = vector.load %arg2[%c0_15, %c0_16, %c2, %c0_17] : memref<1x1x18x256xbf16, #tpu.memory_space<vmem>>, vector<1x1x16x256xbf16>
    %12 = vector.shape_cast %11 : vector<1x1x16x256xbf16> to vector<16x256xbf16>
    %c0_18 = arith.constant 0 : index
    %c2_19 = arith.constant 2 : index
    %c0_20 = arith.constant 0 : index
    %c0_21 = arith.constant 0 : index
    %13 = vector.load %arg3[%c0_18, %c2_19, %c0_20, %c0_21] : memref<1x3x256x128xbf16, #tpu.memory_space<vmem>>, vector<1x1x256x128xbf16>
    %14 = vector.shape_cast %13 : vector<1x1x256x128xbf16> to vector<256x128xbf16>
    %cst_22 = arith.constant dense<0.000000e+00> : vector<16x128xf32>
    %15 = tpu.matmul %12, %14, %cst_22 {dimension_numbers = #tpu.dot_dimension_numbers<[1], [0], [0], [1], [0, 0, 1, 1], [], []>} : vector<16x256xbf16>, vector<256x128xbf16>, vector<16x128xf32> -> vector<16x128xf32>
    %16 = arith.addf %10, %15 : vector<16x128xf32>
    %c0_23 = arith.constant 0 : index
    %c0_24 = arith.constant 0 : index
    %c0_25 = arith.constant 0 : index
    %17 = vector.load %arg4[%c0_23, %c0_24, %c0_25] : memref<1x1x128xf32, #tpu.memory_space<vmem>>, vector<1x1x128xf32>
    %18 = vector.shape_cast %17 : vector<1x1x128xf32> to vector<1x128xf32>
    %19 = vector.broadcast %18 : vector<1x128xf32> to vector<16x128xf32>
    %20 = arith.addf %16, %19 : vector<16x128xf32>
    %cst_26 = arith.constant 0.000000e+00 : f32
    %21 = vector.broadcast %cst_26 : f32 to vector<16x128xf32>
    %22 = arith.maximumf %20, %21 : vector<16x128xf32>
    %23 = arith.truncf %22 : vector<16x128xf32> to vector<16x128xbf16>
    %c0_27 = arith.constant 0 : index
    %c0_28 = arith.constant 0 : index
    %c0_29 = arith.constant 0 : index
    %c0_30 = arith.constant 0 : index
    %24 = vector.load %arg5[%c0_27, %c0_28, %c0_29, %c0_30] : memref<1x1x16x128xbf16, #tpu.memory_space<vmem>>, vector<1x1x16x128xbf16>
    %25 = vector.shape_cast %24 : vector<1x1x16x128xbf16> to vector<16x128xbf16>
    %26 = vector.shape_cast %23 : vector<16x128xbf16> to vector<1x1x16x128xbf16>
    tpu.vector_store %arg5[%c0_27, %c0_28, %c0_29, %c0_30], %26 {strides = array<i32>} : memref<1x1x16x128xbf16, #tpu.memory_space<vmem>>, vector<1x1x16x128xbf16>,
    return
  }
  func.func @transform_0(%arg0: i32, %arg1: i32) -> (i32, i32, i32, i32) {
    %c0_i32 = arith.constant 0 : i32
    %c0_i32_0 = arith.constant 0 : i32
    %c0_i32_1 = arith.constant 0 : i32
    return %arg0, %arg1, %c0_i32, %c0_i32_0 : i32, i32, i32, i32
  }
  func.func @transform_1(%arg0: i32, %arg1: i32) -> (i32, i32, i32, i32) {
    %c0_i32 = arith.constant 0 : i32
    %c0_i32_0 = arith.constant 0 : i32
    %c0_i32_1 = arith.constant 0 : i32
    %c0_i32_2 = arith.constant 0 : i32
    return %arg0, %c0_i32, %c0_i32_0, %c0_i32_1 : i32, i32, i32, i32
  }
  func.func @transform_2(%arg0: i32, %arg1: i32) -> (i32, i32, i32) {
    %c0_i32 = arith.constant 0 : i32
    %c0_i32_0 = arith.constant 0 : i32
    %c0_i32_1 = arith.constant 0 : i32
    return %arg0, %c0_i32, %c0_i32_0 : i32, i32, i32
  }
  func.func @transform_3(%arg0: i32, %arg1: i32) -> (i32, i32, i32, i32) {
    %c0_i32 = arith.constant 0 : i32
    %c0_i32_0 = arith.constant 0 : i32
    %c0_i32_1 = arith.constant 0 : i32
    return %arg0, %arg1, %c0_i32, %c0_i32_0 : i32, i32, i32, i32
  }
}

module attributes {stable_mosaic.version = 11 : i64} {
  func.func @_conv_kernel(%arg0: i32, %arg1: i32, %arg2: memref<1x1x9x256xbf16, #tpu.memory_space<vmem>>, %arg3: memref<1x2x256x128xbf16, #tpu.memory_space<vmem>>, %arg4: memref<1x1x128xf32, #tpu.memory_space<vmem>>, %arg5: memref<1x1x8x128xbf16, #tpu.memory_space<vmem>>) attributes {dimension_semantics = [#tpu.dimension_semantics<parallel>, #tpu.dimension_semantics<parallel>], iteration_bounds = array<i64: 2, 2>, scalar_prefetch = 0 : i64, scratch_operands = 0 : i64, tpu.core_type = #tpu.core_type<tc>, window_params = [{transform_indices = @transform_0, window_bounds = array<i64: 1, 1, 9, 256>}, {transform_indices = @transform_1, window_bounds = array<i64: 1, 2, 256, 128>}, {transform_indices = @transform_2, window_bounds = array<i64: 1, 1, 128>}, {transform_indices = @transform_3, window_bounds = array<i64: 1, 1, 8, 128>}]} {
    %c0 = arith.constant 0 : index
    %c0_0 = arith.constant 0 : index
    %c0_1 = arith.constant 0 : index
    %c0_2 = arith.constant 0 : index
    %0 = vector.load %arg2[%c0, %c0_0, %c0_1, %c0_2] : memref<1x1x9x256xbf16, #tpu.memory_space<vmem>>, vector<1x1x8x256xbf16>
    %1 = vector.shape_cast %0 : vector<1x1x8x256xbf16> to vector<8x256xbf16>
    %c0_3 = arith.constant 0 : index
    %c0_4 = arith.constant 0 : index
    %c0_5 = arith.constant 0 : index
    %c0_6 = arith.constant 0 : index
    %2 = vector.load %arg3[%c0_3, %c0_4, %c0_5, %c0_6] : memref<1x2x256x128xbf16, #tpu.memory_space<vmem>>, vector<1x1x256x128xbf16>
    %3 = vector.shape_cast %2 : vector<1x1x256x128xbf16> to vector<256x128xbf16>
    %cst = arith.constant dense<0.000000e+00> : vector<8x128xf32>
    %4 = tpu.matmul %1, %3, %cst {dimension_numbers = #tpu.dot_dimension_numbers<[1], [0], [0], [1], [0, 0, 1, 1], [], []>} : vector<8x256xbf16>, vector<256x128xbf16>, vector<8x128xf32> -> vector<8x128xf32>
    %c0_7 = arith.constant 0 : index
    %c0_8 = arith.constant 0 : index
    %c1 = arith.constant 1 : index
    %c0_9 = arith.constant 0 : index
    %5 = vector.load %arg2[%c0_7, %c0_8, %c1, %c0_9] : memref<1x1x9x256xbf16, #tpu.memory_space<vmem>>, vector<1x1x8x256xbf16>
    %6 = vector.shape_cast %5 : vector<1x1x8x256xbf16> to vector<8x256xbf16>
    %c0_10 = arith.constant 0 : index
    %c1_11 = arith.constant 1 : index
    %c0_12 = arith.constant 0 : index
    %c0_13 = arith.constant 0 : index
    %7 = vector.load %arg3[%c0_10, %c1_11, %c0_12, %c0_13] : memref<1x2x256x128xbf16, #tpu.memory_space<vmem>>, vector<1x1x256x128xbf16>
    %8 = vector.shape_cast %7 : vector<1x1x256x128xbf16> to vector<256x128xbf16>
    %cst_14 = arith.constant dense<0.000000e+00> : vector<8x128xf32>
    %9 = tpu.matmul %6, %8, %cst_14 {dimension_numbers = #tpu.dot_dimension_numbers<[1], [0], [0], [1], [0, 0, 1, 1], [], []>} : vector<8x256xbf16>, vector<256x128xbf16>, vector<8x128xf32> -> vector<8x128xf32>
    %10 = arith.addf %4, %9 : vector<8x128xf32>
    %c0_15 = arith.constant 0 : index
    %c0_16 = arith.constant 0 : index
    %c0_17 = arith.constant 0 : index
    %11 = vector.load %arg4[%c0_15, %c0_16, %c0_17] : memref<1x1x128xf32, #tpu.memory_space<vmem>>, vector<1x1x128xf32>
    %12 = vector.shape_cast %11 : vector<1x1x128xf32> to vector<1x128xf32>
    %13 = vector.broadcast %12 : vector<1x128xf32> to vector<8x128xf32>
    %14 = arith.addf %10, %13 : vector<8x128xf32>
    %15 = arith.truncf %14 : vector<8x128xf32> to vector<8x128xbf16>
    %c0_18 = arith.constant 0 : index
    %c0_19 = arith.constant 0 : index
    %c0_20 = arith.constant 0 : index
    %c0_21 = arith.constant 0 : index
    %16 = vector.load %arg5[%c0_18, %c0_19, %c0_20, %c0_21] : memref<1x1x8x128xbf16, #tpu.memory_space<vmem>>, vector<1x1x8x128xbf16>
    %17 = vector.shape_cast %16 : vector<1x1x8x128xbf16> to vector<8x128xbf16>
    %18 = vector.shape_cast %15 : vector<8x128xbf16> to vector<1x1x8x128xbf16>
    tpu.vector_store %arg5[%c0_18, %c0_19, %c0_20, %c0_21], %18 {strides = array<i32>} : memref<1x1x8x128xbf16, #tpu.memory_space<vmem>>, vector<1x1x8x128xbf16>,
    return
  }
  func.func @transform_0(%arg0: i32, %arg1: i32) -> (i32, i32, i32, i32) {
    %c0_i32 = arith.constant 0 : i32
    %c0_i32_0 = arith.constant 0 : i32
    %c0_i32_1 = arith.constant 0 : i32
    return %arg0, %arg1, %c0_i32, %c0_i32_0 : i32, i32, i32, i32
  }
  func.func @transform_1(%arg0: i32, %arg1: i32) -> (i32, i32, i32, i32) {
    %c0_i32 = arith.constant 0 : i32
    %c0_i32_0 = arith.constant 0 : i32
    %c0_i32_1 = arith.constant 0 : i32
    %c0_i32_2 = arith.constant 0 : i32
    return %arg0, %c0_i32, %c0_i32_0, %c0_i32_1 : i32, i32, i32, i32
  }
  func.func @transform_2(%arg0: i32, %arg1: i32) -> (i32, i32, i32) {
    %c0_i32 = arith.constant 0 : i32
    %c0_i32_0 = arith.constant 0 : i32
    %c0_i32_1 = arith.constant 0 : i32
    return %arg0, %c0_i32, %c0_i32_0 : i32, i32, i32
  }
  func.func @transform_3(%arg0: i32, %arg1: i32) -> (i32, i32, i32, i32) {
    %c0_i32 = arith.constant 0 : i32
    %c0_i32_0 = arith.constant 0 : i32
    %c0_i32_1 = arith.constant 0 : i32
    return %arg0, %arg1, %c0_i32, %c0_i32_0 : i32, i32, i32, i32
  }
}

module attributes {stable_mosaic.version = 11 : i64} {
  func.func @_resblock_kernel(%arg0: i32, %arg1: i32, %arg2: memref<1x1x14x128xbf16, #tpu.memory_space<vmem>>, %arg3: memref<1x3x128x128xbf16, #tpu.memory_space<vmem>>, %arg4: memref<1x1x128xf32, #tpu.memory_space<vmem>>, %arg5: memref<1x1x128x128xbf16, #tpu.memory_space<vmem>>, %arg6: memref<1x1x128xf32, #tpu.memory_space<vmem>>, %arg7: memref<1x1x8x128xbf16, #tpu.memory_space<vmem>>) attributes {dimension_semantics = [#tpu.dimension_semantics<parallel>, #tpu.dimension_semantics<parallel>], iteration_bounds = array<i64: 2, 2>, scalar_prefetch = 0 : i64, scratch_operands = 0 : i64, tpu.core_type = #tpu.core_type<tc>, window_params = [{transform_indices = @transform_0, window_bounds = array<i64: 1, 1, 14, 128>}, {transform_indices = @transform_1, window_bounds = array<i64: 1, 3, 128, 128>}, {transform_indices = @transform_2, window_bounds = array<i64: 1, 1, 128>}, {transform_indices = @transform_3, window_bounds = array<i64: 1, 1, 128, 128>}, {transform_indices = @transform_4, window_bounds = array<i64: 1, 1, 128>}, {transform_indices = @transform_5, window_bounds = array<i64: 1, 1, 8, 128>}]} {
    %c0 = arith.constant 0 : index
    %c0_0 = arith.constant 0 : index
    %c0_1 = arith.constant 0 : index
    %c0_2 = arith.constant 0 : index
    %0 = vector.load %arg2[%c0, %c0_0, %c0_1, %c0_2] : memref<1x1x14x128xbf16, #tpu.memory_space<vmem>>, vector<1x1x8x128xbf16>
    %1 = vector.shape_cast %0 : vector<1x1x8x128xbf16> to vector<8x128xbf16>
    %cst = arith.constant 0.000000e+00 : bf16
    %2 = vector.broadcast %cst : bf16 to vector<8x128xbf16>
    %3 = arith.maximumf %1, %2 : vector<8x128xbf16>
    %c0_3 = arith.constant 0 : index
    %c0_4 = arith.constant 0 : index
    %c0_5 = arith.constant 0 : index
    %c0_6 = arith.constant 0 : index
    %4 = vector.load %arg3[%c0_3, %c0_4, %c0_5, %c0_6] : memref<1x3x128x128xbf16, #tpu.memory_space<vmem>>, vector<1x1x128x128xbf16>
    %5 = vector.shape_cast %4 : vector<1x1x128x128xbf16> to vector<128x128xbf16>
    %cst_7 = arith.constant dense<0.000000e+00> : vector<8x128xf32>
    %6 = tpu.matmul %3, %5, %cst_7 {dimension_numbers = #tpu.dot_dimension_numbers<[1], [0], [0], [1], [0, 0, 1, 1], [], []>} : vector<8x128xbf16>, vector<128x128xbf16>, vector<8x128xf32> -> vector<8x128xf32>
    %c0_8 = arith.constant 0 : index
    %c0_9 = arith.constant 0 : index
    %c3 = arith.constant 3 : index
    %c0_10 = arith.constant 0 : index
    %7 = vector.load %arg2[%c0_8, %c0_9, %c3, %c0_10] : memref<1x1x14x128xbf16, #tpu.memory_space<vmem>>, vector<1x1x8x128xbf16>
    %8 = vector.shape_cast %7 : vector<1x1x8x128xbf16> to vector<8x128xbf16>
    %cst_11 = arith.constant 0.000000e+00 : bf16
    %9 = vector.broadcast %cst_11 : bf16 to vector<8x128xbf16>
    %10 = arith.maximumf %8, %9 : vector<8x128xbf16>
    %c0_12 = arith.constant 0 : index
    %c1 = arith.constant 1 : index
    %c0_13 = arith.constant 0 : index
    %c0_14 = arith.constant 0 : index
    %11 = vector.load %arg3[%c0_12, %c1, %c0_13, %c0_14] : memref<1x3x128x128xbf16, #tpu.memory_space<vmem>>, vector<1x1x128x128xbf16>
    %12 = vector.shape_cast %11 : vector<1x1x128x128xbf16> to vector<128x128xbf16>
    %cst_15 = arith.constant dense<0.000000e+00> : vector<8x128xf32>
    %13 = tpu.matmul %10, %12, %cst_15 {dimension_numbers = #tpu.dot_dimension_numbers<[1], [0], [0], [1], [0, 0, 1, 1], [], []>} : vector<8x128xbf16>, vector<128x128xbf16>, vector<8x128xf32> -> vector<8x128xf32>
    %14 = arith.addf %6, %13 : vector<8x128xf32>
    %c0_16 = arith.constant 0 : index
    %c0_17 = arith.constant 0 : index
    %c6 = arith.constant 6 : index
    %c0_18 = arith.constant 0 : index
    %15 = vector.load %arg2[%c0_16, %c0_17, %c6, %c0_18] : memref<1x1x14x128xbf16, #tpu.memory_space<vmem>>, vector<1x1x8x128xbf16>
    %16 = vector.shape_cast %15 : vector<1x1x8x128xbf16> to vector<8x128xbf16>
    %cst_19 = arith.constant 0.000000e+00 : bf16
    %17 = vector.broadcast %cst_19 : bf16 to vector<8x128xbf16>
    %18 = arith.maximumf %16, %17 : vector<8x128xbf16>
    %c0_20 = arith.constant 0 : index
    %c2 = arith.constant 2 : index
    %c0_21 = arith.constant 0 : index
    %c0_22 = arith.constant 0 : index
    %19 = vector.load %arg3[%c0_20, %c2, %c0_21, %c0_22] : memref<1x3x128x128xbf16, #tpu.memory_space<vmem>>, vector<1x1x128x128xbf16>
    %20 = vector.shape_cast %19 : vector<1x1x128x128xbf16> to vector<128x128xbf16>
    %cst_23 = arith.constant dense<0.000000e+00> : vector<8x128xf32>
    %21 = tpu.matmul %18, %20, %cst_23 {dimension_numbers = #tpu.dot_dimension_numbers<[1], [0], [0], [1], [0, 0, 1, 1], [], []>} : vector<8x128xbf16>, vector<128x128xbf16>, vector<8x128xf32> -> vector<8x128xf32>
    %22 = arith.addf %14, %21 : vector<8x128xf32>
    %c0_24 = arith.constant 0 : index
    %c0_25 = arith.constant 0 : index
    %c0_26 = arith.constant 0 : index
    %23 = vector.load %arg4[%c0_24, %c0_25, %c0_26] : memref<1x1x128xf32, #tpu.memory_space<vmem>>, vector<1x1x128xf32>
    %24 = vector.shape_cast %23 : vector<1x1x128xf32> to vector<1x128xf32>
    %25 = vector.broadcast %24 : vector<1x128xf32> to vector<8x128xf32>
    %26 = arith.addf %22, %25 : vector<8x128xf32>
    %cst_27 = arith.constant 0.000000e+00 : f32
    %27 = vector.broadcast %cst_27 : f32 to vector<8x128xf32>
    %28 = arith.maximumf %26, %27 : vector<8x128xf32>
    %29 = arith.truncf %28 : vector<8x128xf32> to vector<8x128xbf16>
    %c0_28 = arith.constant 0 : index
    %c0_29 = arith.constant 0 : index
    %c0_30 = arith.constant 0 : index
    %c0_31 = arith.constant 0 : index
    %30 = vector.load %arg5[%c0_28, %c0_29, %c0_30, %c0_31] : memref<1x1x128x128xbf16, #tpu.memory_space<vmem>>, vector<1x1x128x128xbf16>
    %31 = vector.shape_cast %30 : vector<1x1x128x128xbf16> to vector<128x128xbf16>
    %cst_32 = arith.constant dense<0.000000e+00> : vector<8x128xf32>
    %32 = tpu.matmul %29, %31, %cst_32 {dimension_numbers = #tpu.dot_dimension_numbers<[1], [0], [0], [1], [0, 0, 1, 1], [], []>} : vector<8x128xbf16>, vector<128x128xbf16>, vector<8x128xf32> -> vector<8x128xf32>
    %c0_33 = arith.constant 0 : index
    %c0_34 = arith.constant 0 : index
    %c0_35 = arith.constant 0 : index
    %33 = vector.load %arg6[%c0_33, %c0_34, %c0_35] : memref<1x1x128xf32, #tpu.memory_space<vmem>>, vector<1x1x128xf32>
    %34 = vector.shape_cast %33 : vector<1x1x128xf32> to vector<1x128xf32>
    %35 = vector.broadcast %34 : vector<1x128xf32> to vector<8x128xf32>
    %36 = arith.addf %32, %35 : vector<8x128xf32>
    %c0_36 = arith.constant 0 : index
    %c0_37 = arith.constant 0 : index
    %c3_38 = arith.constant 3 : index
    %c0_39 = arith.constant 0 : index
    %37 = vector.load %arg2[%c0_36, %c0_37, %c3_38, %c0_39] : memref<1x1x14x128xbf16, #tpu.memory_space<vmem>>, vector<1x1x8x128xbf16>
    %38 = vector.shape_cast %37 : vector<1x1x8x128xbf16> to vector<8x128xbf16>
    %39 = arith.extf %38 : vector<8x128xbf16> to vector<8x128xf32>
    %40 = arith.addf %39, %36 : vector<8x128xf32>
    %41 = arith.truncf %40 : vector<8x128xf32> to vector<8x128xbf16>
    %c0_40 = arith.constant 0 : index
    %c0_41 = arith.constant 0 : index
    %c0_42 = arith.constant 0 : index
    %c0_43 = arith.constant 0 : index
    %42 = vector.load %arg7[%c0_40, %c0_41, %c0_42, %c0_43] : memref<1x1x8x128xbf16, #tpu.memory_space<vmem>>, vector<1x1x8x128xbf16>
    %43 = vector.shape_cast %42 : vector<1x1x8x128xbf16> to vector<8x128xbf16>
    %44 = vector.shape_cast %41 : vector<8x128xbf16> to vector<1x1x8x128xbf16>
    tpu.vector_store %arg7[%c0_40, %c0_41, %c0_42, %c0_43], %44 {strides = array<i32>} : memref<1x1x8x128xbf16, #tpu.memory_space<vmem>>, vector<1x1x8x128xbf16>,
    return
  }
  func.func @transform_0(%arg0: i32, %arg1: i32) -> (i32, i32, i32, i32) {
    %c0_i32 = arith.constant 0 : i32
    %c0_i32_0 = arith.constant 0 : i32
    %c0_i32_1 = arith.constant 0 : i32
    return %arg0, %arg1, %c0_i32, %c0_i32_0 : i32, i32, i32, i32
  }
  func.func @transform_1(%arg0: i32, %arg1: i32) -> (i32, i32, i32, i32) {
    %c0_i32 = arith.constant 0 : i32
    %c0_i32_0 = arith.constant 0 : i32
    %c0_i32_1 = arith.constant 0 : i32
    %c0_i32_2 = arith.constant 0 : i32
    return %arg0, %c0_i32, %c0_i32_0, %c0_i32_1 : i32, i32, i32, i32
  }
  func.func @transform_2(%arg0: i32, %arg1: i32) -> (i32, i32, i32) {
    %c0_i32 = arith.constant 0 : i32
    %c0_i32_0 = arith.constant 0 : i32
    %c0_i32_1 = arith.constant 0 : i32
    return %arg0, %c0_i32, %c0_i32_0 : i32, i32, i32
  }
  func.func @transform_3(%arg0: i32, %arg1: i32) -> (i32, i32, i32, i32) {
    %c0_i32 = arith.constant 0 : i32
    %c0_i32_0 = arith.constant 0 : i32
    %c0_i32_1 = arith.constant 0 : i32
    %c0_i32_2 = arith.constant 0 : i32
    return %arg0, %c0_i32, %c0_i32_0, %c0_i32_1 : i32, i32, i32, i32
  }
  func.func @transform_4(%arg0: i32, %arg1: i32) -> (i32, i32, i32) {
    %c0_i32 = arith.constant 0 : i32
    %c0_i32_0 = arith.constant 0 : i32
    %c0_i32_1 = arith.constant 0 : i32
    return %arg0, %c0_i32, %c0_i32_0 : i32, i32, i32
  }
  func.func @transform_5(%arg0: i32, %arg1: i32) -> (i32, i32, i32, i32) {
    %c0_i32 = arith.constant 0 : i32
    %c0_i32_0 = arith.constant 0 : i32
    %c0_i32_1 = arith.constant 0 : i32
    return %arg0, %arg1, %c0_i32, %c0_i32_0 : i32, i32, i32, i32
  }
}

module attributes {stable_mosaic.version = 11 : i64} {
  func.func @_resblock_kernel(%arg0: i32, %arg1: i32, %arg2: memref<1x1x10x128xbf16, #tpu.memory_space<vmem>>, %arg3: memref<1x3x128x128xbf16, #tpu.memory_space<vmem>>, %arg4: memref<1x1x128xf32, #tpu.memory_space<vmem>>, %arg5: memref<1x1x128x128xbf16, #tpu.memory_space<vmem>>, %arg6: memref<1x1x128xf32, #tpu.memory_space<vmem>>, %arg7: memref<1x1x8x128xbf16, #tpu.memory_space<vmem>>) attributes {dimension_semantics = [#tpu.dimension_semantics<parallel>, #tpu.dimension_semantics<parallel>], iteration_bounds = array<i64: 2, 2>, scalar_prefetch = 0 : i64, scratch_operands = 0 : i64, tpu.core_type = #tpu.core_type<tc>, window_params = [{transform_indices = @transform_0, window_bounds = array<i64: 1, 1, 10, 128>}, {transform_indices = @transform_1, window_bounds = array<i64: 1, 3, 128, 128>}, {transform_indices = @transform_2, window_bounds = array<i64: 1, 1, 128>}, {transform_indices = @transform_3, window_bounds = array<i64: 1, 1, 128, 128>}, {transform_indices = @transform_4, window_bounds = array<i64: 1, 1, 128>}, {transform_indices = @transform_5, window_bounds = array<i64: 1, 1, 8, 128>}]} {
    %c0 = arith.constant 0 : index
    %c0_0 = arith.constant 0 : index
    %c0_1 = arith.constant 0 : index
    %c0_2 = arith.constant 0 : index
    %0 = vector.load %arg2[%c0, %c0_0, %c0_1, %c0_2] : memref<1x1x10x128xbf16, #tpu.memory_space<vmem>>, vector<1x1x8x128xbf16>
    %1 = vector.shape_cast %0 : vector<1x1x8x128xbf16> to vector<8x128xbf16>
    %cst = arith.constant 0.000000e+00 : bf16
    %2 = vector.broadcast %cst : bf16 to vector<8x128xbf16>
    %3 = arith.maximumf %1, %2 : vector<8x128xbf16>
    %c0_3 = arith.constant 0 : index
    %c0_4 = arith.constant 0 : index
    %c0_5 = arith.constant 0 : index
    %c0_6 = arith.constant 0 : index
    %4 = vector.load %arg3[%c0_3, %c0_4, %c0_5, %c0_6] : memref<1x3x128x128xbf16, #tpu.memory_space<vmem>>, vector<1x1x128x128xbf16>
    %5 = vector.shape_cast %4 : vector<1x1x128x128xbf16> to vector<128x128xbf16>
    %cst_7 = arith.constant dense<0.000000e+00> : vector<8x128xf32>
    %6 = tpu.matmul %3, %5, %cst_7 {dimension_numbers = #tpu.dot_dimension_numbers<[1], [0], [0], [1], [0, 0, 1, 1], [], []>} : vector<8x128xbf16>, vector<128x128xbf16>, vector<8x128xf32> -> vector<8x128xf32>
    %c0_8 = arith.constant 0 : index
    %c0_9 = arith.constant 0 : index
    %c1 = arith.constant 1 : index
    %c0_10 = arith.constant 0 : index
    %7 = vector.load %arg2[%c0_8, %c0_9, %c1, %c0_10] : memref<1x1x10x128xbf16, #tpu.memory_space<vmem>>, vector<1x1x8x128xbf16>
    %8 = vector.shape_cast %7 : vector<1x1x8x128xbf16> to vector<8x128xbf16>
    %cst_11 = arith.constant 0.000000e+00 : bf16
    %9 = vector.broadcast %cst_11 : bf16 to vector<8x128xbf16>
    %10 = arith.maximumf %8, %9 : vector<8x128xbf16>
    %c0_12 = arith.constant 0 : index
    %c1_13 = arith.constant 1 : index
    %c0_14 = arith.constant 0 : index
    %c0_15 = arith.constant 0 : index
    %11 = vector.load %arg3[%c0_12, %c1_13, %c0_14, %c0_15] : memref<1x3x128x128xbf16, #tpu.memory_space<vmem>>, vector<1x1x128x128xbf16>
    %12 = vector.shape_cast %11 : vector<1x1x128x128xbf16> to vector<128x128xbf16>
    %cst_16 = arith.constant dense<0.000000e+00> : vector<8x128xf32>
    %13 = tpu.matmul %10, %12, %cst_16 {dimension_numbers = #tpu.dot_dimension_numbers<[1], [0], [0], [1], [0, 0, 1, 1], [], []>} : vector<8x128xbf16>, vector<128x128xbf16>, vector<8x128xf32> -> vector<8x128xf32>
    %14 = arith.addf %6, %13 : vector<8x128xf32>
    %c0_17 = arith.constant 0 : index
    %c0_18 = arith.constant 0 : index
    %c2 = arith.constant 2 : index
    %c0_19 = arith.constant 0 : index
    %15 = vector.load %arg2[%c0_17, %c0_18, %c2, %c0_19] : memref<1x1x10x128xbf16, #tpu.memory_space<vmem>>, vector<1x1x8x128xbf16>
    %16 = vector.shape_cast %15 : vector<1x1x8x128xbf16> to vector<8x128xbf16>
    %cst_20 = arith.constant 0.000000e+00 : bf16
    %17 = vector.broadcast %cst_20 : bf16 to vector<8x128xbf16>
    %18 = arith.maximumf %16, %17 : vector<8x128xbf16>
    %c0_21 = arith.constant 0 : index
    %c2_22 = arith.constant 2 : index
    %c0_23 = arith.constant 0 : index
    %c0_24 = arith.constant 0 : index
    %19 = vector.load %arg3[%c0_21, %c2_22, %c0_23, %c0_24] : memref<1x3x128x128xbf16, #tpu.memory_space<vmem>>, vector<1x1x128x128xbf16>
    %20 = vector.shape_cast %19 : vector<1x1x128x128xbf16> to vector<128x128xbf16>
    %cst_25 = arith.constant dense<0.000000e+00> : vector<8x128xf32>
    %21 = tpu.matmul %18, %20, %cst_25 {dimension_numbers = #tpu.dot_dimension_numbers<[1], [0], [0], [1], [0, 0, 1, 1], [], []>} : vector<8x128xbf16>, vector<128x128xbf16>, vector<8x128xf32> -> vector<8x128xf32>
    %22 = arith.addf %14, %21 : vector<8x128xf32>
    %c0_26 = arith.constant 0 : index
    %c0_27 = arith.constant 0 : index
    %c0_28 = arith.constant 0 : index
    %23 = vector.load %arg4[%c0_26, %c0_27, %c0_28] : memref<1x1x128xf32, #tpu.memory_space<vmem>>, vector<1x1x128xf32>
    %24 = vector.shape_cast %23 : vector<1x1x128xf32> to vector<1x128xf32>
    %25 = vector.broadcast %24 : vector<1x128xf32> to vector<8x128xf32>
    %26 = arith.addf %22, %25 : vector<8x128xf32>
    %cst_29 = arith.constant 0.000000e+00 : f32
    %27 = vector.broadcast %cst_29 : f32 to vector<8x128xf32>
    %28 = arith.maximumf %26, %27 : vector<8x128xf32>
    %29 = arith.truncf %28 : vector<8x128xf32> to vector<8x128xbf16>
    %c0_30 = arith.constant 0 : index
    %c0_31 = arith.constant 0 : index
    %c0_32 = arith.constant 0 : index
    %c0_33 = arith.constant 0 : index
    %30 = vector.load %arg5[%c0_30, %c0_31, %c0_32, %c0_33] : memref<1x1x128x128xbf16, #tpu.memory_space<vmem>>, vector<1x1x128x128xbf16>
    %31 = vector.shape_cast %30 : vector<1x1x128x128xbf16> to vector<128x128xbf16>
    %cst_34 = arith.constant dense<0.000000e+00> : vector<8x128xf32>
    %32 = tpu.matmul %29, %31, %cst_34 {dimension_numbers = #tpu.dot_dimension_numbers<[1], [0], [0], [1], [0, 0, 1, 1], [], []>} : vector<8x128xbf16>, vector<128x128xbf16>, vector<8x128xf32> -> vector<8x128xf32>
    %c0_35 = arith.constant 0 : index
    %c0_36 = arith.constant 0 : index
    %c0_37 = arith.constant 0 : index
    %33 = vector.load %arg6[%c0_35, %c0_36, %c0_37] : memref<1x1x128xf32, #tpu.memory_space<vmem>>, vector<1x1x128xf32>
    %34 = vector.shape_cast %33 : vector<1x1x128xf32> to vector<1x128xf32>
    %35 = vector.broadcast %34 : vector<1x128xf32> to vector<8x128xf32>
    %36 = arith.addf %32, %35 : vector<8x128xf32>
    %c0_38 = arith.constant 0 : index
    %c0_39 = arith.constant 0 : index
    %c1_40 = arith.constant 1 : index
    %c0_41 = arith.constant 0 : index
    %37 = vector.load %arg2[%c0_38, %c0_39, %c1_40, %c0_41] : memref<1x1x10x128xbf16, #tpu.memory_space<vmem>>, vector<1x1x8x128xbf16>
    %38 = vector.shape_cast %37 : vector<1x1x8x128xbf16> to vector<8x128xbf16>
    %39 = arith.extf %38 : vector<8x128xbf16> to vector<8x128xf32>
    %40 = arith.addf %39, %36 : vector<8x128xf32>
    %41 = arith.truncf %40 : vector<8x128xf32> to vector<8x128xbf16>
    %c0_42 = arith.constant 0 : index
    %c0_43 = arith.constant 0 : index
    %c0_44 = arith.constant 0 : index
    %c0_45 = arith.constant 0 : index
    %42 = vector.load %arg7[%c0_42, %c0_43, %c0_44, %c0_45] : memref<1x1x8x128xbf16, #tpu.memory_space<vmem>>, vector<1x1x8x128xbf16>
    %43 = vector.shape_cast %42 : vector<1x1x8x128xbf16> to vector<8x128xbf16>
    %44 = vector.shape_cast %41 : vector<8x128xbf16> to vector<1x1x8x128xbf16>
    tpu.vector_store %arg7[%c0_42, %c0_43, %c0_44, %c0_45], %44 {strides = array<i32>} : memref<1x1x8x128xbf16, #tpu.memory_space<vmem>>, vector<1x1x8x128xbf16>,
    return
  }
  func.func @transform_0(%arg0: i32, %arg1: i32) -> (i32, i32, i32, i32) {
    %c0_i32 = arith.constant 0 : i32
    %c0_i32_0 = arith.constant 0 : i32
    %c0_i32_1 = arith.constant 0 : i32
    return %arg0, %arg1, %c0_i32, %c0_i32_0 : i32, i32, i32, i32
  }
  func.func @transform_1(%arg0: i32, %arg1: i32) -> (i32, i32, i32, i32) {
    %c0_i32 = arith.constant 0 : i32
    %c0_i32_0 = arith.constant 0 : i32
    %c0_i32_1 = arith.constant 0 : i32
    %c0_i32_2 = arith.constant 0 : i32
    return %arg0, %c0_i32, %c0_i32_0, %c0_i32_1 : i32, i32, i32, i32
  }
  func.func @transform_2(%arg0: i32, %arg1: i32) -> (i32, i32, i32) {
    %c0_i32 = arith.constant 0 : i32
    %c0_i32_0 = arith.constant 0 : i32
    %c0_i32_1 = arith.constant 0 : i32
    return %arg0, %c0_i32, %c0_i32_0 : i32, i32, i32
  }
  func.func @transform_3(%arg0: i32, %arg1: i32) -> (i32, i32, i32, i32) {
    %c0_i32 = arith.constant 0 : i32
    %c0_i32_0 = arith.constant 0 : i32
    %c0_i32_1 = arith.constant 0 : i32
    %c0_i32_2 = arith.constant 0 : i32
    return %arg0, %c0_i32, %c0_i32_0, %c0_i32_1 : i32, i32, i32, i32
  }
  func.func @transform_4(%arg0: i32, %arg1: i32) -> (i32, i32, i32) {
    %c0_i32 = arith.constant 0 : i32
    %c0_i32_0 = arith.constant 0 : i32
    %c0_i32_1 = arith.constant 0 : i32
    return %arg0, %c0_i32, %c0_i32_0 : i32, i32, i32
  }
  func.func @transform_5(%arg0: i32, %arg1: i32) -> (i32, i32, i32, i32) {
    %c0_i32 = arith.constant 0 : i32
    %c0_i32_0 = arith.constant 0 : i32
    %c0_i32_1 = arith.constant 0 : i32
    return %arg0, %arg1, %c0_i32, %c0_i32_0 : i32, i32, i32, i32
  }
}

module attributes {stable_mosaic.version = 11 : i64} {
  func.func @_conv_kernel(%arg0: i32, %arg1: i32, %arg2: memref<1x1x5x256xbf16, #tpu.memory_space<vmem>>, %arg3: memref<1x2x256x128xbf16, #tpu.memory_space<vmem>>, %arg4: memref<1x1x128xf32, #tpu.memory_space<vmem>>, %arg5: memref<1x1x4x128xbf16, #tpu.memory_space<vmem>>) attributes {dimension_semantics = [#tpu.dimension_semantics<parallel>, #tpu.dimension_semantics<parallel>], iteration_bounds = array<i64: 2, 2>, scalar_prefetch = 0 : i64, scratch_operands = 0 : i64, tpu.core_type = #tpu.core_type<tc>, window_params = [{transform_indices = @transform_0, window_bounds = array<i64: 1, 1, 5, 256>}, {transform_indices = @transform_1, window_bounds = array<i64: 1, 2, 256, 128>}, {transform_indices = @transform_2, window_bounds = array<i64: 1, 1, 128>}, {transform_indices = @transform_3, window_bounds = array<i64: 1, 1, 4, 128>}]} {
    %c0 = arith.constant 0 : index
    %c0_0 = arith.constant 0 : index
    %c0_1 = arith.constant 0 : index
    %c0_2 = arith.constant 0 : index
    %0 = vector.load %arg2[%c0, %c0_0, %c0_1, %c0_2] : memref<1x1x5x256xbf16, #tpu.memory_space<vmem>>, vector<1x1x4x256xbf16>
    %1 = vector.shape_cast %0 : vector<1x1x4x256xbf16> to vector<4x256xbf16>
    %c0_3 = arith.constant 0 : index
    %c0_4 = arith.constant 0 : index
    %c0_5 = arith.constant 0 : index
    %c0_6 = arith.constant 0 : index
    %2 = vector.load %arg3[%c0_3, %c0_4, %c0_5, %c0_6] : memref<1x2x256x128xbf16, #tpu.memory_space<vmem>>, vector<1x1x256x128xbf16>
    %3 = vector.shape_cast %2 : vector<1x1x256x128xbf16> to vector<256x128xbf16>
    %cst = arith.constant dense<0.000000e+00> : vector<4x128xf32>
    %4 = tpu.matmul %1, %3, %cst {dimension_numbers = #tpu.dot_dimension_numbers<[1], [0], [0], [1], [0, 0, 1, 1], [], []>} : vector<4x256xbf16>, vector<256x128xbf16>, vector<4x128xf32> -> vector<4x128xf32>
    %c0_7 = arith.constant 0 : index
    %c0_8 = arith.constant 0 : index
    %c1 = arith.constant 1 : index
    %c0_9 = arith.constant 0 : index
    %5 = vector.load %arg2[%c0_7, %c0_8, %c1, %c0_9] : memref<1x1x5x256xbf16, #tpu.memory_space<vmem>>, vector<1x1x4x256xbf16>
    %6 = vector.shape_cast %5 : vector<1x1x4x256xbf16> to vector<4x256xbf16>
    %c0_10 = arith.constant 0 : index
    %c1_11 = arith.constant 1 : index
    %c0_12 = arith.constant 0 : index
    %c0_13 = arith.constant 0 : index
    %7 = vector.load %arg3[%c0_10, %c1_11, %c0_12, %c0_13] : memref<1x2x256x128xbf16, #tpu.memory_space<vmem>>, vector<1x1x256x128xbf16>
    %8 = vector.shape_cast %7 : vector<1x1x256x128xbf16> to vector<256x128xbf16>
    %cst_14 = arith.constant dense<0.000000e+00> : vector<4x128xf32>
    %9 = tpu.matmul %6, %8, %cst_14 {dimension_numbers = #tpu.dot_dimension_numbers<[1], [0], [0], [1], [0, 0, 1, 1], [], []>} : vector<4x256xbf16>, vector<256x128xbf16>, vector<4x128xf32> -> vector<4x128xf32>
    %10 = arith.addf %4, %9 : vector<4x128xf32>
    %c0_15 = arith.constant 0 : index
    %c0_16 = arith.constant 0 : index
    %c0_17 = arith.constant 0 : index
    %11 = vector.load %arg4[%c0_15, %c0_16, %c0_17] : memref<1x1x128xf32, #tpu.memory_space<vmem>>, vector<1x1x128xf32>
    %12 = vector.shape_cast %11 : vector<1x1x128xf32> to vector<1x128xf32>
    %13 = vector.broadcast %12 : vector<1x128xf32> to vector<4x128xf32>
    %14 = arith.addf %10, %13 : vector<4x128xf32>
    %15 = arith.truncf %14 : vector<4x128xf32> to vector<4x128xbf16>
    %c0_18 = arith.constant 0 : index
    %c0_19 = arith.constant 0 : index
    %c0_20 = arith.constant 0 : index
    %c0_21 = arith.constant 0 : index
    %16 = vector.load %arg5[%c0_18, %c0_19, %c0_20, %c0_21] : memref<1x1x4x128xbf16, #tpu.memory_space<vmem>>, vector<1x1x4x128xbf16>
    %17 = vector.shape_cast %16 : vector<1x1x4x128xbf16> to vector<4x128xbf16>
    %18 = vector.shape_cast %15 : vector<4x128xbf16> to vector<1x1x4x128xbf16>
    tpu.vector_store %arg5[%c0_18, %c0_19, %c0_20, %c0_21], %18 {strides = array<i32>} : memref<1x1x4x128xbf16, #tpu.memory_space<vmem>>, vector<1x1x4x128xbf16>,
    return
  }
  func.func @transform_0(%arg0: i32, %arg1: i32) -> (i32, i32, i32, i32) {
    %c0_i32 = arith.constant 0 : i32
    %c0_i32_0 = arith.constant 0 : i32
    %c0_i32_1 = arith.constant 0 : i32
    return %arg0, %arg1, %c0_i32, %c0_i32_0 : i32, i32, i32, i32
  }
  func.func @transform_1(%arg0: i32, %arg1: i32) -> (i32, i32, i32, i32) {
    %c0_i32 = arith.constant 0 : i32
    %c0_i32_0 = arith.constant 0 : i32
    %c0_i32_1 = arith.constant 0 : i32
    %c0_i32_2 = arith.constant 0 : i32
    return %arg0, %c0_i32, %c0_i32_0, %c0_i32_1 : i32, i32, i32, i32
  }
  func.func @transform_2(%arg0: i32, %arg1: i32) -> (i32, i32, i32) {
    %c0_i32 = arith.constant 0 : i32
    %c0_i32_0 = arith.constant 0 : i32
    %c0_i32_1 = arith.constant 0 : i32
    return %arg0, %c0_i32, %c0_i32_0 : i32, i32, i32
  }
  func.func @transform_3(%arg0: i32, %arg1: i32) -> (i32, i32, i32, i32) {
    %c0_i32 = arith.constant 0 : i32
    %c0_i32_0 = arith.constant 0 : i32
    %c0_i32_1 = arith.constant 0 : i32
    return %arg0, %arg1, %c0_i32, %c0_i32_0 : i32, i32, i32, i32
  }
}

module attributes {stable_mosaic.version = 11 : i64} {
  func.func @_conv_kernel(%arg0: i32, %arg1: i32, %arg2: memref<1x1x6x128xbf16, #tpu.memory_space<vmem>>, %arg3: memref<1x3x128x128xbf16, #tpu.memory_space<vmem>>, %arg4: memref<1x1x128xf32, #tpu.memory_space<vmem>>, %arg5: memref<1x1x4x128xbf16, #tpu.memory_space<vmem>>) attributes {dimension_semantics = [#tpu.dimension_semantics<parallel>, #tpu.dimension_semantics<parallel>], iteration_bounds = array<i64: 2, 2>, scalar_prefetch = 0 : i64, scratch_operands = 0 : i64, tpu.core_type = #tpu.core_type<tc>, window_params = [{transform_indices = @transform_0, window_bounds = array<i64: 1, 1, 6, 128>}, {transform_indices = @transform_1, window_bounds = array<i64: 1, 3, 128, 128>}, {transform_indices = @transform_2, window_bounds = array<i64: 1, 1, 128>}, {transform_indices = @transform_3, window_bounds = array<i64: 1, 1, 4, 128>}]} {
    %c0 = arith.constant 0 : index
    %c0_0 = arith.constant 0 : index
    %c0_1 = arith.constant 0 : index
    %c0_2 = arith.constant 0 : index
    %0 = vector.load %arg2[%c0, %c0_0, %c0_1, %c0_2] : memref<1x1x6x128xbf16, #tpu.memory_space<vmem>>, vector<1x1x4x128xbf16>
    %1 = vector.shape_cast %0 : vector<1x1x4x128xbf16> to vector<4x128xbf16>
    %c0_3 = arith.constant 0 : index
    %c0_4 = arith.constant 0 : index
    %c0_5 = arith.constant 0 : index
    %c0_6 = arith.constant 0 : index
    %2 = vector.load %arg3[%c0_3, %c0_4, %c0_5, %c0_6] : memref<1x3x128x128xbf16, #tpu.memory_space<vmem>>, vector<1x1x128x128xbf16>
    %3 = vector.shape_cast %2 : vector<1x1x128x128xbf16> to vector<128x128xbf16>
    %cst = arith.constant dense<0.000000e+00> : vector<4x128xf32>
    %4 = tpu.matmul %1, %3, %cst {dimension_numbers = #tpu.dot_dimension_numbers<[1], [0], [0], [1], [0, 0, 1, 1], [], []>} : vector<4x128xbf16>, vector<128x128xbf16>, vector<4x128xf32> -> vector<4x128xf32>
    %c0_7 = arith.constant 0 : index
    %c0_8 = arith.constant 0 : index
    %c1 = arith.constant 1 : index
    %c0_9 = arith.constant 0 : index
    %5 = vector.load %arg2[%c0_7, %c0_8, %c1, %c0_9] : memref<1x1x6x128xbf16, #tpu.memory_space<vmem>>, vector<1x1x4x128xbf16>
    %6 = vector.shape_cast %5 : vector<1x1x4x128xbf16> to vector<4x128xbf16>
    %c0_10 = arith.constant 0 : index
    %c1_11 = arith.constant 1 : index
    %c0_12 = arith.constant 0 : index
    %c0_13 = arith.constant 0 : index
    %7 = vector.load %arg3[%c0_10, %c1_11, %c0_12, %c0_13] : memref<1x3x128x128xbf16, #tpu.memory_space<vmem>>, vector<1x1x128x128xbf16>
    %8 = vector.shape_cast %7 : vector<1x1x128x128xbf16> to vector<128x128xbf16>
    %cst_14 = arith.constant dense<0.000000e+00> : vector<4x128xf32>
    %9 = tpu.matmul %6, %8, %cst_14 {dimension_numbers = #tpu.dot_dimension_numbers<[1], [0], [0], [1], [0, 0, 1, 1], [], []>} : vector<4x128xbf16>, vector<128x128xbf16>, vector<4x128xf32> -> vector<4x128xf32>
    %10 = arith.addf %4, %9 : vector<4x128xf32>
    %c0_15 = arith.constant 0 : index
    %c0_16 = arith.constant 0 : index
    %c2 = arith.constant 2 : index
    %c0_17 = arith.constant 0 : index
    %11 = vector.load %arg2[%c0_15, %c0_16, %c2, %c0_17] : memref<1x1x6x128xbf16, #tpu.memory_space<vmem>>, vector<1x1x4x128xbf16>
    %12 = vector.shape_cast %11 : vector<1x1x4x128xbf16> to vector<4x128xbf16>
    %c0_18 = arith.constant 0 : index
    %c2_19 = arith.constant 2 : index
    %c0_20 = arith.constant 0 : index
    %c0_21 = arith.constant 0 : index
    %13 = vector.load %arg3[%c0_18, %c2_19, %c0_20, %c0_21] : memref<1x3x128x128xbf16, #tpu.memory_space<vmem>>, vector<1x1x128x128xbf16>
    %14 = vector.shape_cast %13 : vector<1x1x128x128xbf16> to vector<128x128xbf16>
    %cst_22 = arith.constant dense<0.000000e+00> : vector<4x128xf32>
    %15 = tpu.matmul %12, %14, %cst_22 {dimension_numbers = #tpu.dot_dimension_numbers<[1], [0], [0], [1], [0, 0, 1, 1], [], []>} : vector<4x128xbf16>, vector<128x128xbf16>, vector<4x128xf32> -> vector<4x128xf32>
    %16 = arith.addf %10, %15 : vector<4x128xf32>
    %c0_23 = arith.constant 0 : index
    %c0_24 = arith.constant 0 : index
    %c0_25 = arith.constant 0 : index
    %17 = vector.load %arg4[%c0_23, %c0_24, %c0_25] : memref<1x1x128xf32, #tpu.memory_space<vmem>>, vector<1x1x128xf32>
    %18 = vector.shape_cast %17 : vector<1x1x128xf32> to vector<1x128xf32>
    %19 = vector.broadcast %18 : vector<1x128xf32> to vector<4x128xf32>
    %20 = arith.addf %16, %19 : vector<4x128xf32>
    %21 = arith.truncf %20 : vector<4x128xf32> to vector<4x128xbf16>
    %c0_26 = arith.constant 0 : index
    %c0_27 = arith.constant 0 : index
    %c0_28 = arith.constant 0 : index
    %c0_29 = arith.constant 0 : index
    %22 = vector.load %arg5[%c0_26, %c0_27, %c0_28, %c0_29] : memref<1x1x4x128xbf16, #tpu.memory_space<vmem>>, vector<1x1x4x128xbf16>
    %23 = vector.shape_cast %22 : vector<1x1x4x128xbf16> to vector<4x128xbf16>
    %24 = vector.shape_cast %21 : vector<4x128xbf16> to vector<1x1x4x128xbf16>
    tpu.vector_store %arg5[%c0_26, %c0_27, %c0_28, %c0_29], %24 {strides = array<i32>} : memref<1x1x4x128xbf16, #tpu.memory_space<vmem>>, vector<1x1x4x128xbf16>,
    return
  }
  func.func @transform_0(%arg0: i32, %arg1: i32) -> (i32, i32, i32, i32) {
    %c0_i32 = arith.constant 0 : i32
    %c0_i32_0 = arith.constant 0 : i32
    %c0_i32_1 = arith.constant 0 : i32
    return %arg0, %arg1, %c0_i32, %c0_i32_0 : i32, i32, i32, i32
  }
  func.func @transform_1(%arg0: i32, %arg1: i32) -> (i32, i32, i32, i32) {
    %c0_i32 = arith.constant 0 : i32
    %c0_i32_0 = arith.constant 0 : i32
    %c0_i32_1 = arith.constant 0 : i32
    %c0_i32_2 = arith.constant 0 : i32
    return %arg0, %c0_i32, %c0_i32_0, %c0_i32_1 : i32, i32, i32, i32
  }
  func.func @transform_2(%arg0: i32, %arg1: i32) -> (i32, i32, i32) {
    %c0_i32 = arith.constant 0 : i32
    %c0_i32_0 = arith.constant 0 : i32
    %c0_i32_1 = arith.constant 0 : i32
    return %arg0, %c0_i32, %c0_i32_0 : i32, i32, i32
  }
  func.func @transform_3(%arg0: i32, %arg1: i32) -> (i32, i32, i32, i32) {
    %c0_i32 = arith.constant 0 : i32
    %c0_i32_0 = arith.constant 0 : i32
    %c0_i32_1 = arith.constant 0 : i32
    return %arg0, %arg1, %c0_i32, %c0_i32_0 : i32, i32, i32, i32
  }
}

module attributes {stable_mosaic.version = 11 : i64} {
  func.func @_resblock_kernel(%arg0: i32, %arg1: i32, %arg2: memref<1x1x6x128xbf16, #tpu.memory_space<vmem>>, %arg3: memref<1x3x128x128xbf16, #tpu.memory_space<vmem>>, %arg4: memref<1x1x128xf32, #tpu.memory_space<vmem>>, %arg5: memref<1x1x128x128xbf16, #tpu.memory_space<vmem>>, %arg6: memref<1x1x128xf32, #tpu.memory_space<vmem>>, %arg7: memref<1x1x4x128xbf16, #tpu.memory_space<vmem>>) attributes {dimension_semantics = [#tpu.dimension_semantics<parallel>, #tpu.dimension_semantics<parallel>], iteration_bounds = array<i64: 2, 2>, scalar_prefetch = 0 : i64, scratch_operands = 0 : i64, tpu.core_type = #tpu.core_type<tc>, window_params = [{transform_indices = @transform_0, window_bounds = array<i64: 1, 1, 6, 128>}, {transform_indices = @transform_1, window_bounds = array<i64: 1, 3, 128, 128>}, {transform_indices = @transform_2, window_bounds = array<i64: 1, 1, 128>}, {transform_indices = @transform_3, window_bounds = array<i64: 1, 1, 128, 128>}, {transform_indices = @transform_4, window_bounds = array<i64: 1, 1, 128>}, {transform_indices = @transform_5, window_bounds = array<i64: 1, 1, 4, 128>}]} {
    %c0 = arith.constant 0 : index
    %c0_0 = arith.constant 0 : index
    %c0_1 = arith.constant 0 : index
    %c0_2 = arith.constant 0 : index
    %0 = vector.load %arg2[%c0, %c0_0, %c0_1, %c0_2] : memref<1x1x6x128xbf16, #tpu.memory_space<vmem>>, vector<1x1x4x128xbf16>
    %1 = vector.shape_cast %0 : vector<1x1x4x128xbf16> to vector<4x128xbf16>
    %cst = arith.constant 0.000000e+00 : bf16
    %2 = vector.broadcast %cst : bf16 to vector<4x128xbf16>
    %3 = arith.maximumf %1, %2 : vector<4x128xbf16>
    %c0_3 = arith.constant 0 : index
    %c0_4 = arith.constant 0 : index
    %c0_5 = arith.constant 0 : index
    %c0_6 = arith.constant 0 : index
    %4 = vector.load %arg3[%c0_3, %c0_4, %c0_5, %c0_6] : memref<1x3x128x128xbf16, #tpu.memory_space<vmem>>, vector<1x1x128x128xbf16>
    %5 = vector.shape_cast %4 : vector<1x1x128x128xbf16> to vector<128x128xbf16>
    %cst_7 = arith.constant dense<0.000000e+00> : vector<4x128xf32>
    %6 = tpu.matmul %3, %5, %cst_7 {dimension_numbers = #tpu.dot_dimension_numbers<[1], [0], [0], [1], [0, 0, 1, 1], [], []>} : vector<4x128xbf16>, vector<128x128xbf16>, vector<4x128xf32> -> vector<4x128xf32>
    %c0_8 = arith.constant 0 : index
    %c0_9 = arith.constant 0 : index
    %c1 = arith.constant 1 : index
    %c0_10 = arith.constant 0 : index
    %7 = vector.load %arg2[%c0_8, %c0_9, %c1, %c0_10] : memref<1x1x6x128xbf16, #tpu.memory_space<vmem>>, vector<1x1x4x128xbf16>
    %8 = vector.shape_cast %7 : vector<1x1x4x128xbf16> to vector<4x128xbf16>
    %cst_11 = arith.constant 0.000000e+00 : bf16
    %9 = vector.broadcast %cst_11 : bf16 to vector<4x128xbf16>
    %10 = arith.maximumf %8, %9 : vector<4x128xbf16>
    %c0_12 = arith.constant 0 : index
    %c1_13 = arith.constant 1 : index
    %c0_14 = arith.constant 0 : index
    %c0_15 = arith.constant 0 : index
    %11 = vector.load %arg3[%c0_12, %c1_13, %c0_14, %c0_15] : memref<1x3x128x128xbf16, #tpu.memory_space<vmem>>, vector<1x1x128x128xbf16>
    %12 = vector.shape_cast %11 : vector<1x1x128x128xbf16> to vector<128x128xbf16>
    %cst_16 = arith.constant dense<0.000000e+00> : vector<4x128xf32>
    %13 = tpu.matmul %10, %12, %cst_16 {dimension_numbers = #tpu.dot_dimension_numbers<[1], [0], [0], [1], [0, 0, 1, 1], [], []>} : vector<4x128xbf16>, vector<128x128xbf16>, vector<4x128xf32> -> vector<4x128xf32>
    %14 = arith.addf %6, %13 : vector<4x128xf32>
    %c0_17 = arith.constant 0 : index
    %c0_18 = arith.constant 0 : index
    %c2 = arith.constant 2 : index
    %c0_19 = arith.constant 0 : index
    %15 = vector.load %arg2[%c0_17, %c0_18, %c2, %c0_19] : memref<1x1x6x128xbf16, #tpu.memory_space<vmem>>, vector<1x1x4x128xbf16>
    %16 = vector.shape_cast %15 : vector<1x1x4x128xbf16> to vector<4x128xbf16>
    %cst_20 = arith.constant 0.000000e+00 : bf16
    %17 = vector.broadcast %cst_20 : bf16 to vector<4x128xbf16>
    %18 = arith.maximumf %16, %17 : vector<4x128xbf16>
    %c0_21 = arith.constant 0 : index
    %c2_22 = arith.constant 2 : index
    %c0_23 = arith.constant 0 : index
    %c0_24 = arith.constant 0 : index
    %19 = vector.load %arg3[%c0_21, %c2_22, %c0_23, %c0_24] : memref<1x3x128x128xbf16, #tpu.memory_space<vmem>>, vector<1x1x128x128xbf16>
    %20 = vector.shape_cast %19 : vector<1x1x128x128xbf16> to vector<128x128xbf16>
    %cst_25 = arith.constant dense<0.000000e+00> : vector<4x128xf32>
    %21 = tpu.matmul %18, %20, %cst_25 {dimension_numbers = #tpu.dot_dimension_numbers<[1], [0], [0], [1], [0, 0, 1, 1], [], []>} : vector<4x128xbf16>, vector<128x128xbf16>, vector<4x128xf32> -> vector<4x128xf32>
    %22 = arith.addf %14, %21 : vector<4x128xf32>
    %c0_26 = arith.constant 0 : index
    %c0_27 = arith.constant 0 : index
    %c0_28 = arith.constant 0 : index
    %23 = vector.load %arg4[%c0_26, %c0_27, %c0_28] : memref<1x1x128xf32, #tpu.memory_space<vmem>>, vector<1x1x128xf32>
    %24 = vector.shape_cast %23 : vector<1x1x128xf32> to vector<1x128xf32>
    %25 = vector.broadcast %24 : vector<1x128xf32> to vector<4x128xf32>
    %26 = arith.addf %22, %25 : vector<4x128xf32>
    %cst_29 = arith.constant 0.000000e+00 : f32
    %27 = vector.broadcast %cst_29 : f32 to vector<4x128xf32>
    %28 = arith.maximumf %26, %27 : vector<4x128xf32>
    %29 = arith.truncf %28 : vector<4x128xf32> to vector<4x128xbf16>
    %c0_30 = arith.constant 0 : index
    %c0_31 = arith.constant 0 : index
    %c0_32 = arith.constant 0 : index
    %c0_33 = arith.constant 0 : index
    %30 = vector.load %arg5[%c0_30, %c0_31, %c0_32, %c0_33] : memref<1x1x128x128xbf16, #tpu.memory_space<vmem>>, vector<1x1x128x128xbf16>
    %31 = vector.shape_cast %30 : vector<1x1x128x128xbf16> to vector<128x128xbf16>
    %cst_34 = arith.constant dense<0.000000e+00> : vector<4x128xf32>
    %32 = tpu.matmul %29, %31, %cst_34 {dimension_numbers = #tpu.dot_dimension_numbers<[1], [0], [0], [1], [0, 0, 1, 1], [], []>} : vector<4x128xbf16>, vector<128x128xbf16>, vector<4x128xf32> -> vector<4x128xf32>
    %c0_35 = arith.constant 0 : index
    %c0_36 = arith.constant 0 : index
    %c0_37 = arith.constant 0 : index
    %33 = vector.load %arg6[%c0_35, %c0_36, %c0_37] : memref<1x1x128xf32, #tpu.memory_space<vmem>>, vector<1x1x128xf32>
    %34 = vector.shape_cast %33 : vector<1x1x128xf32> to vector<1x128xf32>
    %35 = vector.broadcast %34 : vector<1x128xf32> to vector<4x128xf32>
    %36 = arith.addf %32, %35 : vector<4x128xf32>
    %c0_38 = arith.constant 0 : index
    %c0_39 = arith.constant 0 : index
    %c1_40 = arith.constant 1 : index
    %c0_41 = arith.constant 0 : index
    %37 = vector.load %arg2[%c0_38, %c0_39, %c1_40, %c0_41] : memref<1x1x6x128xbf16, #tpu.memory_space<vmem>>, vector<1x1x4x128xbf16>
    %38 = vector.shape_cast %37 : vector<1x1x4x128xbf16> to vector<4x128xbf16>
    %39 = arith.extf %38 : vector<4x128xbf16> to vector<4x128xf32>
    %40 = arith.addf %39, %36 : vector<4x128xf32>
    %41 = arith.truncf %40 : vector<4x128xf32> to vector<4x128xbf16>
    %c0_42 = arith.constant 0 : index
    %c0_43 = arith.constant 0 : index
    %c0_44 = arith.constant 0 : index
    %c0_45 = arith.constant 0 : index
    %42 = vector.load %arg7[%c0_42, %c0_43, %c0_44, %c0_45] : memref<1x1x4x128xbf16, #tpu.memory_space<vmem>>, vector<1x1x4x128xbf16>
    %43 = vector.shape_cast %42 : vector<1x1x4x128xbf16> to vector<4x128xbf16>
    %44 = vector.shape_cast %41 : vector<4x128xbf16> to vector<1x1x4x128xbf16>
    tpu.vector_store %arg7[%c0_42, %c0_43, %c0_44, %c0_45], %44 {strides = array<i32>} : memref<1x1x4x128xbf16, #tpu.memory_space<vmem>>, vector<1x1x4x128xbf16>,
    return
  }
  func.func @transform_0(%arg0: i32, %arg1: i32) -> (i32, i32, i32, i32) {
    %c0_i32 = arith.constant 0 : i32
    %c0_i32_0 = arith.constant 0 : i32
    %c0_i32_1 = arith.constant 0 : i32
    return %arg0, %arg1, %c0_i32, %c0_i32_0 : i32, i32, i32, i32
  }
  func.func @transform_1(%arg0: i32, %arg1: i32) -> (i32, i32, i32, i32) {
    %c0_i32 = arith.constant 0 : i32
    %c0_i32_0 = arith.constant 0 : i32
    %c0_i32_1 = arith.constant 0 : i32
    %c0_i32_2 = arith.constant 0 : i32
    return %arg0, %c0_i32, %c0_i32_0, %c0_i32_1 : i32, i32, i32, i32
  }
  func.func @transform_2(%arg0: i32, %arg1: i32) -> (i32, i32, i32) {
    %c0_i32 = arith.constant 0 : i32
    %c0_i32_0 = arith.constant 0 : i32
    %c0_i32_1 = arith.constant 0 : i32
    return %arg0, %c0_i32, %c0_i32_0 : i32, i32, i32
  }
  func.func @transform_3(%arg0: i32, %arg1: i32) -> (i32, i32, i32, i32) {
    %c0_i32 = arith.constant 0 : i32
    %c0_i32_0 = arith.constant 0 : i32
    %c0_i32_1 = arith.constant 0 : i32
    %c0_i32_2 = arith.constant 0 : i32
    return %arg0, %c0_i32, %c0_i32_0, %c0_i32_1 : i32, i32, i32, i32
  }
  func.func @transform_4(%arg0: i32, %arg1: i32) -> (i32, i32, i32) {
    %c0_i32 = arith.constant 0 : i32
    %c0_i32_0 = arith.constant 0 : i32
    %c0_i32_1 = arith.constant 0 : i32
    return %arg0, %c0_i32, %c0_i32_0 : i32, i32, i32
  }
  func.func @transform_5(%arg0: i32, %arg1: i32) -> (i32, i32, i32, i32) {
    %c0_i32 = arith.constant 0 : i32
    %c0_i32_0 = arith.constant 0 : i32
    %c0_i32_1 = arith.constant 0 : i32
    return %arg0, %arg1, %c0_i32, %c0_i32_0 : i32, i32, i32, i32
  }
}

module attributes {stable_mosaic.version = 11 : i64} {
  func.func @_resblock_kernel(%arg0: i32, %arg1: i32, %arg2: memref<1x1x10x128xbf16, #tpu.memory_space<vmem>>, %arg3: memref<1x3x128x128xbf16, #tpu.memory_space<vmem>>, %arg4: memref<1x1x128xf32, #tpu.memory_space<vmem>>, %arg5: memref<1x1x128x128xbf16, #tpu.memory_space<vmem>>, %arg6: memref<1x1x128xf32, #tpu.memory_space<vmem>>, %arg7: memref<1x1x4x128xbf16, #tpu.memory_space<vmem>>) attributes {dimension_semantics = [#tpu.dimension_semantics<parallel>, #tpu.dimension_semantics<parallel>], iteration_bounds = array<i64: 2, 2>, scalar_prefetch = 0 : i64, scratch_operands = 0 : i64, tpu.core_type = #tpu.core_type<tc>, window_params = [{transform_indices = @transform_0, window_bounds = array<i64: 1, 1, 10, 128>}, {transform_indices = @transform_1, window_bounds = array<i64: 1, 3, 128, 128>}, {transform_indices = @transform_2, window_bounds = array<i64: 1, 1, 128>}, {transform_indices = @transform_3, window_bounds = array<i64: 1, 1, 128, 128>}, {transform_indices = @transform_4, window_bounds = array<i64: 1, 1, 128>}, {transform_indices = @transform_5, window_bounds = array<i64: 1, 1, 4, 128>}]} {
    %c0 = arith.constant 0 : index
    %c0_0 = arith.constant 0 : index
    %c0_1 = arith.constant 0 : index
    %c0_2 = arith.constant 0 : index
    %0 = vector.load %arg2[%c0, %c0_0, %c0_1, %c0_2] : memref<1x1x10x128xbf16, #tpu.memory_space<vmem>>, vector<1x1x4x128xbf16>
    %1 = vector.shape_cast %0 : vector<1x1x4x128xbf16> to vector<4x128xbf16>
    %cst = arith.constant 0.000000e+00 : bf16
    %2 = vector.broadcast %cst : bf16 to vector<4x128xbf16>
    %3 = arith.maximumf %1, %2 : vector<4x128xbf16>
    %c0_3 = arith.constant 0 : index
    %c0_4 = arith.constant 0 : index
    %c0_5 = arith.constant 0 : index
    %c0_6 = arith.constant 0 : index
    %4 = vector.load %arg3[%c0_3, %c0_4, %c0_5, %c0_6] : memref<1x3x128x128xbf16, #tpu.memory_space<vmem>>, vector<1x1x128x128xbf16>
    %5 = vector.shape_cast %4 : vector<1x1x128x128xbf16> to vector<128x128xbf16>
    %cst_7 = arith.constant dense<0.000000e+00> : vector<4x128xf32>
    %6 = tpu.matmul %3, %5, %cst_7 {dimension_numbers = #tpu.dot_dimension_numbers<[1], [0], [0], [1], [0, 0, 1, 1], [], []>} : vector<4x128xbf16>, vector<128x128xbf16>, vector<4x128xf32> -> vector<4x128xf32>
    %c0_8 = arith.constant 0 : index
    %c0_9 = arith.constant 0 : index
    %c3 = arith.constant 3 : index
    %c0_10 = arith.constant 0 : index
    %7 = vector.load %arg2[%c0_8, %c0_9, %c3, %c0_10] : memref<1x1x10x128xbf16, #tpu.memory_space<vmem>>, vector<1x1x4x128xbf16>
    %8 = vector.shape_cast %7 : vector<1x1x4x128xbf16> to vector<4x128xbf16>
    %cst_11 = arith.constant 0.000000e+00 : bf16
    %9 = vector.broadcast %cst_11 : bf16 to vector<4x128xbf16>
    %10 = arith.maximumf %8, %9 : vector<4x128xbf16>
    %c0_12 = arith.constant 0 : index
    %c1 = arith.constant 1 : index
    %c0_13 = arith.constant 0 : index
    %c0_14 = arith.constant 0 : index
    %11 = vector.load %arg3[%c0_12, %c1, %c0_13, %c0_14] : memref<1x3x128x128xbf16, #tpu.memory_space<vmem>>, vector<1x1x128x128xbf16>
    %12 = vector.shape_cast %11 : vector<1x1x128x128xbf16> to vector<128x128xbf16>
    %cst_15 = arith.constant dense<0.000000e+00> : vector<4x128xf32>
    %13 = tpu.matmul %10, %12, %cst_15 {dimension_numbers = #tpu.dot_dimension_numbers<[1], [0], [0], [1], [0, 0, 1, 1], [], []>} : vector<4x128xbf16>, vector<128x128xbf16>, vector<4x128xf32> -> vector<4x128xf32>
    %14 = arith.addf %6, %13 : vector<4x128xf32>
    %c0_16 = arith.constant 0 : index
    %c0_17 = arith.constant 0 : index
    %c6 = arith.constant 6 : index
    %c0_18 = arith.constant 0 : index
    %15 = vector.load %arg2[%c0_16, %c0_17, %c6, %c0_18] : memref<1x1x10x128xbf16, #tpu.memory_space<vmem>>, vector<1x1x4x128xbf16>
    %16 = vector.shape_cast %15 : vector<1x1x4x128xbf16> to vector<4x128xbf16>
    %cst_19 = arith.constant 0.000000e+00 : bf16
    %17 = vector.broadcast %cst_19 : bf16 to vector<4x128xbf16>
    %18 = arith.maximumf %16, %17 : vector<4x128xbf16>
    %c0_20 = arith.constant 0 : index
    %c2 = arith.constant 2 : index
    %c0_21 = arith.constant 0 : index
    %c0_22 = arith.constant 0 : index
    %19 = vector.load %arg3[%c0_20, %c2, %c0_21, %c0_22] : memref<1x3x128x128xbf16, #tpu.memory_space<vmem>>, vector<1x1x128x128xbf16>
    %20 = vector.shape_cast %19 : vector<1x1x128x128xbf16> to vector<128x128xbf16>
    %cst_23 = arith.constant dense<0.000000e+00> : vector<4x128xf32>
    %21 = tpu.matmul %18, %20, %cst_23 {dimension_numbers = #tpu.dot_dimension_numbers<[1], [0], [0], [1], [0, 0, 1, 1], [], []>} : vector<4x128xbf16>, vector<128x128xbf16>, vector<4x128xf32> -> vector<4x128xf32>
    %22 = arith.addf %14, %21 : vector<4x128xf32>
    %c0_24 = arith.constant 0 : index
    %c0_25 = arith.constant 0 : index
    %c0_26 = arith.constant 0 : index
    %23 = vector.load %arg4[%c0_24, %c0_25, %c0_26] : memref<1x1x128xf32, #tpu.memory_space<vmem>>, vector<1x1x128xf32>
    %24 = vector.shape_cast %23 : vector<1x1x128xf32> to vector<1x128xf32>
    %25 = vector.broadcast %24 : vector<1x128xf32> to vector<4x128xf32>
    %26 = arith.addf %22, %25 : vector<4x128xf32>
    %cst_27 = arith.constant 0.000000e+00 : f32
    %27 = vector.broadcast %cst_27 : f32 to vector<4x128xf32>
    %28 = arith.maximumf %26, %27 : vector<4x128xf32>
    %29 = arith.truncf %28 : vector<4x128xf32> to vector<4x128xbf16>
    %c0_28 = arith.constant 0 : index
    %c0_29 = arith.constant 0 : index
    %c0_30 = arith.constant 0 : index
    %c0_31 = arith.constant 0 : index
    %30 = vector.load %arg5[%c0_28, %c0_29, %c0_30, %c0_31] : memref<1x1x128x128xbf16, #tpu.memory_space<vmem>>, vector<1x1x128x128xbf16>
    %31 = vector.shape_cast %30 : vector<1x1x128x128xbf16> to vector<128x128xbf16>
    %cst_32 = arith.constant dense<0.000000e+00> : vector<4x128xf32>
    %32 = tpu.matmul %29, %31, %cst_32 {dimension_numbers = #tpu.dot_dimension_numbers<[1], [0], [0], [1], [0, 0, 1, 1], [], []>} : vector<4x128xbf16>, vector<128x128xbf16>, vector<4x128xf32> -> vector<4x128xf32>
    %c0_33 = arith.constant 0 : index
    %c0_34 = arith.constant 0 : index
    %c0_35 = arith.constant 0 : index
    %33 = vector.load %arg6[%c0_33, %c0_34, %c0_35] : memref<1x1x128xf32, #tpu.memory_space<vmem>>, vector<1x1x128xf32>
    %34 = vector.shape_cast %33 : vector<1x1x128xf32> to vector<1x128xf32>
    %35 = vector.broadcast %34 : vector<1x128xf32> to vector<4x128xf32>
    %36 = arith.addf %32, %35 : vector<4x128xf32>
    %c0_36 = arith.constant 0 : index
    %c0_37 = arith.constant 0 : index
    %c3_38 = arith.constant 3 : index
    %c0_39 = arith.constant 0 : index
    %37 = vector.load %arg2[%c0_36, %c0_37, %c3_38, %c0_39] : memref<1x1x10x128xbf16, #tpu.memory_space<vmem>>, vector<1x1x4x128xbf16>
    %38 = vector.shape_cast %37 : vector<1x1x4x128xbf16> to vector<4x128xbf16>
    %39 = arith.extf %38 : vector<4x128xbf16> to vector<4x128xf32>
    %40 = arith.addf %39, %36 : vector<4x128xf32>
    %41 = arith.truncf %40 : vector<4x128xf32> to vector<4x128xbf16>
    %c0_40 = arith.constant 0 : index
    %c0_41 = arith.constant 0 : index
    %c0_42 = arith.constant 0 : index
    %c0_43 = arith.constant 0 : index
    %42 = vector.load %arg7[%c0_40, %c0_41, %c0_42, %c0_43] : memref<1x1x4x128xbf16, #tpu.memory_space<vmem>>, vector<1x1x4x128xbf16>
    %43 = vector.shape_cast %42 : vector<1x1x4x128xbf16> to vector<4x128xbf16>
    %44 = vector.shape_cast %41 : vector<4x128xbf16> to vector<1x1x4x128xbf16>
    tpu.vector_store %arg7[%c0_40, %c0_41, %c0_42, %c0_43], %44 {strides = array<i32>} : memref<1x1x4x128xbf16, #tpu.memory_space<vmem>>, vector<1x1x4x128xbf16>,
    return
  }
  func.func @transform_0(%arg0: i32, %arg1: i32) -> (i32, i32, i32, i32) {
    %c0_i32 = arith.constant 0 : i32
    %c0_i32_0 = arith.constant 0 : i32
    %c0_i32_1 = arith.constant 0 : i32
    return %arg0, %arg1, %c0_i32, %c0_i32_0 : i32, i32, i32, i32
  }
  func.func @transform_1(%arg0: i32, %arg1: i32) -> (i32, i32, i32, i32) {
    %c0_i32 = arith.constant 0 : i32
    %c0_i32_0 = arith.constant 0 : i32
    %c0_i32_1 = arith.constant 0 : i32
    %c0_i32_2 = arith.constant 0 : i32
    return %arg0, %c0_i32, %c0_i32_0, %c0_i32_1 : i32, i32, i32, i32
  }
  func.func @transform_2(%arg0: i32, %arg1: i32) -> (i32, i32, i32) {
    %c0_i32 = arith.constant 0 : i32
    %c0_i32_0 = arith.constant 0 : i32
    %c0_i32_1 = arith.constant 0 : i32
    return %arg0, %c0_i32, %c0_i32_0 : i32, i32, i32
  }
  func.func @transform_3(%arg0: i32, %arg1: i32) -> (i32, i32, i32, i32) {
    %c0_i32 = arith.constant 0 : i32
    %c0_i32_0 = arith.constant 0 : i32
    %c0_i32_1 = arith.constant 0 : i32
    %c0_i32_2 = arith.constant 0 : i32
    return %arg0, %c0_i32, %c0_i32_0, %c0_i32_1 : i32, i32, i32, i32
  }
  func.func @transform_4(%arg0: i32, %arg1: i32) -> (i32, i32, i32) {
    %c0_i32 = arith.constant 0 : i32
    %c0_i32_0 = arith.constant 0 : i32
    %c0_i32_1 = arith.constant 0 : i32
    return %arg0, %c0_i32, %c0_i32_0 : i32, i32, i32
  }
  func.func @transform_5(%arg0: i32, %arg1: i32) -> (i32, i32, i32, i32) {
    %c0_i32 = arith.constant 0 : i32
    %c0_i32_0 = arith.constant 0 : i32
    %c0_i32_1 = arith.constant 0 : i32
    return %arg0, %arg1, %c0_i32, %c0_i32_0 : i32, i32, i32, i32
  }
}

module attributes {stable_mosaic.version = 11 : i64} {
  func.func @_vq_kernel(%arg0: i32, %arg1: i32, %arg2: memref<1x8x128xf32, #tpu.memory_space<vmem>>, %arg3: memref<1x128x128xf32, #tpu.memory_space<vmem>>, %arg4: memref<1x1x128xf32, #tpu.memory_space<vmem>>, %arg5: memref<1x8x128xf32, #tpu.memory_space<vmem>>, %arg6: memref<1x1x1xf32, #tpu.memory_space<vmem>>, %arg7: memref<1x128xf32, #tpu.memory_space<vmem>>) attributes {dimension_semantics = [#tpu.dimension_semantics<parallel>, #tpu.dimension_semantics<arbitrary>], iteration_bounds = array<i64: 2, 1>, scalar_prefetch = 0 : i64, scratch_operands = 1 : i64, tpu.core_type = #tpu.core_type<tc>, window_params = [{transform_indices = @transform_0, window_bounds = array<i64: 1, 8, 128>}, {transform_indices = @transform_1, window_bounds = array<i64: 1, 128, 128>}, {transform_indices = @transform_2, window_bounds = array<i64: 1, 1, 128>}, {transform_indices = @transform_3, window_bounds = array<i64: 1, 8, 128>}, {transform_indices = @transform_4, window_bounds = array<i64: 1, 1, 1>}]} {
    %c0_i32 = arith.constant 0 : i32
    %0 = arith.cmpi eq, %arg1, %c0_i32 : i32
    %1 = arith.extui %0 : i1 to i32
    %c0_i32_0 = arith.constant 0 : i32
    %2 = arith.cmpi ne, %1, %c0_i32_0 : i32
    scf.if %2 {
      %cst_25 = arith.constant 0.000000e+00 : f32
      %53 = vector.broadcast %cst_25 : f32 to vector<1x128xf32>
      %c0_26 = arith.constant 0 : index
      %c0_27 = arith.constant 0 : index
      %54 = vector.load %arg7[%c0_26, %c0_27] : memref<1x128xf32, #tpu.memory_space<vmem>>, vector<1x128xf32>
      tpu.vector_store %arg7[%c0_26, %c0_27], %53 {strides = array<i32>} : memref<1x128xf32, #tpu.memory_space<vmem>>, vector<1x128xf32>,
    } else {
    }
    %c0 = arith.constant 0 : index
    %c0_1 = arith.constant 0 : index
    %c0_2 = arith.constant 0 : index
    %3 = vector.load %arg2[%c0, %c0_1, %c0_2] : memref<1x8x128xf32, #tpu.memory_space<vmem>>, vector<1x8x128xf32>
    %4 = vector.shape_cast %3 : vector<1x8x128xf32> to vector<8x128xf32>
    %c0_3 = arith.constant 0 : index
    %c0_4 = arith.constant 0 : index
    %c0_5 = arith.constant 0 : index
    %5 = vector.load %arg3[%c0_3, %c0_4, %c0_5] : memref<1x128x128xf32, #tpu.memory_space<vmem>>, vector<1x128x128xf32>
    %6 = vector.shape_cast %5 : vector<1x128x128xf32> to vector<128x128xf32>
    %7 = arith.mulf %4, %4 : vector<8x128xf32>
    %cst = arith.constant dense<0.000000e+00> : vector<8xf32>
    %8 = vector.multi_reduction <add>, %7, %cst [1] : vector<8x128xf32> to vector<8xf32>
    %9 = vector.shape_cast %8 : vector<8xf32> to vector<8x1xf32>
    %cst_6 = arith.constant dense<0.000000e+00> : vector<8x128xf32>
    %10 = tpu.matmul %4, %6, %cst_6 {dimension_numbers = #tpu.dot_dimension_numbers<[1], [1], [0], [0], [0, 0, 1, 0], [], []>} : vector<8x128xf32>, vector<128x128xf32>, vector<8x128xf32> -> vector<8x128xf32>
    %cst_7 = arith.constant 2.000000e+00 : f32
    %11 = vector.broadcast %cst_7 : f32 to vector<8x128xf32>
    %12 = arith.mulf %11, %10 : vector<8x128xf32>
    %13 = vector.broadcast %9 : vector<8x1xf32> to vector<8x128xf32>
    %14 = arith.subf %13, %12 : vector<8x128xf32>
    %c0_8 = arith.constant 0 : index
    %c0_9 = arith.constant 0 : index
    %c0_10 = arith.constant 0 : index
    %15 = vector.load %arg4[%c0_8, %c0_9, %c0_10] : memref<1x1x128xf32, #tpu.memory_space<vmem>>, vector<1x1x128xf32>
    %16 = vector.shape_cast %15 : vector<1x1x128xf32> to vector<1x128xf32>
    %17 = vector.broadcast %16 : vector<1x128xf32> to vector<8x128xf32>
    %18 = arith.addf %14, %17 : vector<8x128xf32>
    %cst_11 = arith.constant dense<0x7F800000> : vector<8xf32>
    %19 = vector.multi_reduction <minimumf>, %18, %cst_11 [1] : vector<8x128xf32> to vector<8xf32>
    %20 = vector.shape_cast %19 : vector<8xf32> to vector<8x1xf32>
    %21 = tpu.iota {dimensions = array<i32: 1>} : vector<8x128xi32>
    %22 = vector.broadcast %20 : vector<8x1xf32> to vector<8x128xf32>
    %23 = arith.cmpf ole, %18, %22 : vector<8x128xf32>
    %c128_i32 = arith.constant 128 : i32
    %24 = vector.broadcast %c128_i32 : i32 to vector<8x128xi32>
    %25 = arith.select %23, %21, %24 : vector<8x128xi1>, vector<8x128xi32>
    %cst_12 = arith.constant dense<2147483647> : vector<8xi32>
    %26 = vector.multi_reduction <minsi>, %25, %cst_12 [1] : vector<8x128xi32> to vector<8xi32>
    %27 = vector.shape_cast %26 : vector<8xi32> to vector<8x1xi32>
    %28 = vector.broadcast %27 : vector<8x1xi32> to vector<8x128xi32>
    %29 = arith.cmpi eq, %21, %28 : vector<8x128xi32>
    %30 = arith.extui %29 : vector<8x128xi1> to vector<8x128xi32>
    %31 = arith.sitofp %30 : vector<8x128xi32> to vector<8x128xf32>
    %cst_13 = arith.constant dense<0.000000e+00> : vector<8x128xf32>
    %32 = tpu.matmul %31, %6, %cst_13 {dimension_numbers = #tpu.dot_dimension_numbers<[1], [0], [0], [1], [0, 0, 1, 1], [], []>} : vector<8x128xf32>, vector<128x128xf32>, vector<8x128xf32> -> vector<8x128xf32>
    %c0_14 = arith.constant 0 : index
    %c0_15 = arith.constant 0 : index
    %c0_16 = arith.constant 0 : index
    %33 = vector.load %arg5[%c0_14, %c0_15, %c0_16] : memref<1x8x128xf32, #tpu.memory_space<vmem>>, vector<1x8x128xf32>
    %34 = vector.shape_cast %33 : vector<1x8x128xf32> to vector<8x128xf32>
    %35 = vector.shape_cast %32 : vector<8x128xf32> to vector<1x8x128xf32>
    tpu.vector_store %arg5[%c0_14, %c0_15, %c0_16], %35 {strides = array<i32>} : memref<1x8x128xf32, #tpu.memory_space<vmem>>, vector<1x8x128xf32>,
    %c8_i32 = arith.constant 8 : i32
    %36 = arith.muli %arg1, %c8_i32 : i32
    %37 = tpu.iota {dimensions = array<i32: 0>} : vector<8x128xi32>
    %38 = vector.broadcast %36 : i32 to vector<8x128xi32>
    %39 = arith.addi %38, %37 : vector<8x128xi32>
    %c8_i32_17 = arith.constant 8 : i32
    %40 = vector.broadcast %c8_i32_17 : i32 to vector<8x128xi32>
    %41 = arith.cmpi slt, %39, %40 : vector<8x128xi32>
    %42 = arith.extui %41 : vector<8x128xi1> to vector<8x128xi32>
    %43 = arith.sitofp %42 : vector<8x128xi32> to vector<8x128xf32>
    %c0_18 = arith.constant 0 : index
    %c0_19 = arith.constant 0 : index
    %44 = vector.load %arg7[%c0_18, %c0_19] : memref<1x128xf32, #tpu.memory_space<vmem>>, vector<1x128xf32>
    %45 = arith.mulf %31, %43 : vector<8x128xf32>
    %cst_20 = arith.constant dense<0.000000e+00> : vector<128xf32>
    %46 = vector.multi_reduction <add>, %45, %cst_20 [0] : vector<8x128xf32> to vector<128xf32>
    %47 = vector.shape_cast %46 : vector<128xf32> to vector<1x128xf32>
    %48 = arith.addf %44, %47 : vector<1x128xf32>
    %c0_21 = arith.constant 0 : index
    %c0_22 = arith.constant 0 : index
    %49 = vector.load %arg7[%c0_21, %c0_22] : memref<1x128xf32, #tpu.memory_space<vmem>>, vector<1x128xf32>
    tpu.vector_store %arg7[%c0_21, %c0_22], %48 {strides = array<i32>} : memref<1x128xf32, #tpu.memory_space<vmem>>, vector<1x128xf32>,
    %c0_i32_23 = arith.constant 0 : i32
    %50 = arith.cmpi eq, %arg1, %c0_i32_23 : i32
    %51 = arith.extui %50 : i1 to i32
    %c0_i32_24 = arith.constant 0 : i32
    %52 = arith.cmpi ne, %51, %c0_i32_24 : i32
    scf.if %52 {
      %c0_25 = arith.constant 0 : index
      %c0_26 = arith.constant 0 : index
      %53 = vector.load %arg7[%c0_25, %c0_26] : memref<1x128xf32, #tpu.memory_space<vmem>>, vector<1x128xf32>
      %cst_27 = arith.constant 8.000000e+00 : f32
      %54 = vector.broadcast %cst_27 : f32 to vector<1x128xf32>
      %55 = arith.divf %53, %54 : vector<1x128xf32>
      %cst_28 = arith.constant 1.000000e-07 : f32
      %56 = vector.broadcast %cst_28 : f32 to vector<1x128xf32>
      %57 = arith.addf %55, %56 : vector<1x128xf32>
      %58 = math.log %57 : vector<1x128xf32>
      %59 = arith.mulf %55, %58 : vector<1x128xf32>
      %cst_29 = arith.constant dense<0.000000e+00> : vector<1xf32>
      %60 = vector.multi_reduction <add>, %59, %cst_29 [1] : vector<1x128xf32> to vector<1xf32>
      %61 = vector.shape_cast %60 : vector<1xf32> to vector<1x1xf32>
      %cst_30 = arith.constant 0.000000e+00 : f32
      %62 = vector.broadcast %cst_30 : f32 to vector<1x1xf32>
      %63 = arith.subf %62, %61 : vector<1x1xf32>
      %64 = math.exp %63 : vector<1x1xf32>
      %c0_31 = arith.constant 0 : index
      %c0_32 = arith.constant 0 : index
      %c0_33 = arith.constant 0 : index
      %65 = vector.load %arg6[%c0_31, %c0_32, %c0_33] : memref<1x1x1xf32, #tpu.memory_space<vmem>>, vector<1x1x1xf32>
      %66 = vector.shape_cast %65 : vector<1x1x1xf32> to vector<1x1xf32>
      %67 = vector.shape_cast %64 : vector<1x1xf32> to vector<1x1x1xf32>
      tpu.vector_store %arg6[%c0_31, %c0_32, %c0_33], %67 {strides = array<i32>} : memref<1x1x1xf32, #tpu.memory_space<vmem>>, vector<1x1x1xf32>,
    } else {
    }
    return
  }
  func.func @transform_0(%arg0: i32, %arg1: i32) -> (i32, i32, i32) {
    %c0_i32 = arith.constant 0 : i32
    %c0_i32_0 = arith.constant 0 : i32
    return %arg0, %arg1, %c0_i32 : i32, i32, i32
  }
  func.func @transform_1(%arg0: i32, %arg1: i32) -> (i32, i32, i32) {
    %c0_i32 = arith.constant 0 : i32
    %c0_i32_0 = arith.constant 0 : i32
    %c0_i32_1 = arith.constant 0 : i32
    return %arg0, %c0_i32, %c0_i32_0 : i32, i32, i32
  }
  func.func @transform_2(%arg0: i32, %arg1: i32) -> (i32, i32, i32) {
    %c0_i32 = arith.constant 0 : i32
    %c0_i32_0 = arith.constant 0 : i32
    %c0_i32_1 = arith.constant 0 : i32
    return %arg0, %c0_i32, %c0_i32_0 : i32, i32, i32
  }
  func.func @transform_3(%arg0: i32, %arg1: i32) -> (i32, i32, i32) {
    %c0_i32 = arith.constant 0 : i32
    %c0_i32_0 = arith.constant 0 : i32
    return %arg0, %arg1, %c0_i32 : i32, i32, i32
  }
  func.func @transform_4(%arg0: i32, %arg1: i32) -> (i32, i32, i32) {
    %c0_i32 = arith.constant 0 : i32
    %c0_i32_0 = arith.constant 0 : i32
    %c0_i32_1 = arith.constant 0 : i32
    return %arg0, %c0_i32, %c0_i32_0 : i32, i32, i32
  }
}

module attributes {stable_mosaic.version = 11 : i64} {
  func.func @_conv_kernel(%arg0: i32, %arg1: i32, %arg2: memref<1x1x6x128xbf16, #tpu.memory_space<vmem>>, %arg3: memref<1x3x128x128xbf16, #tpu.memory_space<vmem>>, %arg4: memref<1x1x128xf32, #tpu.memory_space<vmem>>, %arg5: memref<1x1x4x128xbf16, #tpu.memory_space<vmem>>) attributes {dimension_semantics = [#tpu.dimension_semantics<parallel>, #tpu.dimension_semantics<parallel>], iteration_bounds = array<i64: 2, 2>, scalar_prefetch = 0 : i64, scratch_operands = 0 : i64, tpu.core_type = #tpu.core_type<tc>, window_params = [{transform_indices = @transform_0, window_bounds = array<i64: 1, 1, 6, 128>}, {transform_indices = @transform_1, window_bounds = array<i64: 1, 3, 128, 128>}, {transform_indices = @transform_2, window_bounds = array<i64: 1, 1, 128>}, {transform_indices = @transform_3, window_bounds = array<i64: 1, 1, 4, 128>}]} {
    %c0 = arith.constant 0 : index
    %c0_0 = arith.constant 0 : index
    %c0_1 = arith.constant 0 : index
    %c0_2 = arith.constant 0 : index
    %0 = vector.load %arg2[%c0, %c0_0, %c0_1, %c0_2] : memref<1x1x6x128xbf16, #tpu.memory_space<vmem>>, vector<1x1x4x128xbf16>
    %1 = vector.shape_cast %0 : vector<1x1x4x128xbf16> to vector<4x128xbf16>
    %c0_3 = arith.constant 0 : index
    %c0_4 = arith.constant 0 : index
    %c0_5 = arith.constant 0 : index
    %c0_6 = arith.constant 0 : index
    %2 = vector.load %arg3[%c0_3, %c0_4, %c0_5, %c0_6] : memref<1x3x128x128xbf16, #tpu.memory_space<vmem>>, vector<1x1x128x128xbf16>
    %3 = vector.shape_cast %2 : vector<1x1x128x128xbf16> to vector<128x128xbf16>
    %cst = arith.constant dense<0.000000e+00> : vector<4x128xf32>
    %4 = tpu.matmul %1, %3, %cst {dimension_numbers = #tpu.dot_dimension_numbers<[1], [0], [0], [1], [0, 0, 1, 1], [], []>} : vector<4x128xbf16>, vector<128x128xbf16>, vector<4x128xf32> -> vector<4x128xf32>
    %c0_7 = arith.constant 0 : index
    %c0_8 = arith.constant 0 : index
    %c1 = arith.constant 1 : index
    %c0_9 = arith.constant 0 : index
    %5 = vector.load %arg2[%c0_7, %c0_8, %c1, %c0_9] : memref<1x1x6x128xbf16, #tpu.memory_space<vmem>>, vector<1x1x4x128xbf16>
    %6 = vector.shape_cast %5 : vector<1x1x4x128xbf16> to vector<4x128xbf16>
    %c0_10 = arith.constant 0 : index
    %c1_11 = arith.constant 1 : index
    %c0_12 = arith.constant 0 : index
    %c0_13 = arith.constant 0 : index
    %7 = vector.load %arg3[%c0_10, %c1_11, %c0_12, %c0_13] : memref<1x3x128x128xbf16, #tpu.memory_space<vmem>>, vector<1x1x128x128xbf16>
    %8 = vector.shape_cast %7 : vector<1x1x128x128xbf16> to vector<128x128xbf16>
    %cst_14 = arith.constant dense<0.000000e+00> : vector<4x128xf32>
    %9 = tpu.matmul %6, %8, %cst_14 {dimension_numbers = #tpu.dot_dimension_numbers<[1], [0], [0], [1], [0, 0, 1, 1], [], []>} : vector<4x128xbf16>, vector<128x128xbf16>, vector<4x128xf32> -> vector<4x128xf32>
    %10 = arith.addf %4, %9 : vector<4x128xf32>
    %c0_15 = arith.constant 0 : index
    %c0_16 = arith.constant 0 : index
    %c2 = arith.constant 2 : index
    %c0_17 = arith.constant 0 : index
    %11 = vector.load %arg2[%c0_15, %c0_16, %c2, %c0_17] : memref<1x1x6x128xbf16, #tpu.memory_space<vmem>>, vector<1x1x4x128xbf16>
    %12 = vector.shape_cast %11 : vector<1x1x4x128xbf16> to vector<4x128xbf16>
    %c0_18 = arith.constant 0 : index
    %c2_19 = arith.constant 2 : index
    %c0_20 = arith.constant 0 : index
    %c0_21 = arith.constant 0 : index
    %13 = vector.load %arg3[%c0_18, %c2_19, %c0_20, %c0_21] : memref<1x3x128x128xbf16, #tpu.memory_space<vmem>>, vector<1x1x128x128xbf16>
    %14 = vector.shape_cast %13 : vector<1x1x128x128xbf16> to vector<128x128xbf16>
    %cst_22 = arith.constant dense<0.000000e+00> : vector<4x128xf32>
    %15 = tpu.matmul %12, %14, %cst_22 {dimension_numbers = #tpu.dot_dimension_numbers<[1], [0], [0], [1], [0, 0, 1, 1], [], []>} : vector<4x128xbf16>, vector<128x128xbf16>, vector<4x128xf32> -> vector<4x128xf32>
    %16 = arith.addf %10, %15 : vector<4x128xf32>
    %c0_23 = arith.constant 0 : index
    %c0_24 = arith.constant 0 : index
    %c0_25 = arith.constant 0 : index
    %17 = vector.load %arg4[%c0_23, %c0_24, %c0_25] : memref<1x1x128xf32, #tpu.memory_space<vmem>>, vector<1x1x128xf32>
    %18 = vector.shape_cast %17 : vector<1x1x128xf32> to vector<1x128xf32>
    %19 = vector.broadcast %18 : vector<1x128xf32> to vector<4x128xf32>
    %20 = arith.addf %16, %19 : vector<4x128xf32>
    %cst_26 = arith.constant 0.000000e+00 : f32
    %21 = vector.broadcast %cst_26 : f32 to vector<4x128xf32>
    %22 = arith.maximumf %20, %21 : vector<4x128xf32>
    %23 = arith.truncf %22 : vector<4x128xf32> to vector<4x128xbf16>
    %c0_27 = arith.constant 0 : index
    %c0_28 = arith.constant 0 : index
    %c0_29 = arith.constant 0 : index
    %c0_30 = arith.constant 0 : index
    %24 = vector.load %arg5[%c0_27, %c0_28, %c0_29, %c0_30] : memref<1x1x4x128xbf16, #tpu.memory_space<vmem>>, vector<1x1x4x128xbf16>
    %25 = vector.shape_cast %24 : vector<1x1x4x128xbf16> to vector<4x128xbf16>
    %26 = vector.shape_cast %23 : vector<4x128xbf16> to vector<1x1x4x128xbf16>
    tpu.vector_store %arg5[%c0_27, %c0_28, %c0_29, %c0_30], %26 {strides = array<i32>} : memref<1x1x4x128xbf16, #tpu.memory_space<vmem>>, vector<1x1x4x128xbf16>,
    return
  }
  func.func @transform_0(%arg0: i32, %arg1: i32) -> (i32, i32, i32, i32) {
    %c0_i32 = arith.constant 0 : i32
    %c0_i32_0 = arith.constant 0 : i32
    %c0_i32_1 = arith.constant 0 : i32
    return %arg0, %arg1, %c0_i32, %c0_i32_0 : i32, i32, i32, i32
  }
  func.func @transform_1(%arg0: i32, %arg1: i32) -> (i32, i32, i32, i32) {
    %c0_i32 = arith.constant 0 : i32
    %c0_i32_0 = arith.constant 0 : i32
    %c0_i32_1 = arith.constant 0 : i32
    %c0_i32_2 = arith.constant 0 : i32
    return %arg0, %c0_i32, %c0_i32_0, %c0_i32_1 : i32, i32, i32, i32
  }
  func.func @transform_2(%arg0: i32, %arg1: i32) -> (i32, i32, i32) {
    %c0_i32 = arith.constant 0 : i32
    %c0_i32_0 = arith.constant 0 : i32
    %c0_i32_1 = arith.constant 0 : i32
    return %arg0, %c0_i32, %c0_i32_0 : i32, i32, i32
  }
  func.func @transform_3(%arg0: i32, %arg1: i32) -> (i32, i32, i32, i32) {
    %c0_i32 = arith.constant 0 : i32
    %c0_i32_0 = arith.constant 0 : i32
    %c0_i32_1 = arith.constant 0 : i32
    return %arg0, %arg1, %c0_i32, %c0_i32_0 : i32, i32, i32, i32
  }
}

module attributes {stable_mosaic.version = 11 : i64} {
  func.func @_resblock_kernel(%arg0: i32, %arg1: i32, %arg2: memref<1x1x10x128xbf16, #tpu.memory_space<vmem>>, %arg3: memref<1x3x128x128xbf16, #tpu.memory_space<vmem>>, %arg4: memref<1x1x128xf32, #tpu.memory_space<vmem>>, %arg5: memref<1x1x128x128xbf16, #tpu.memory_space<vmem>>, %arg6: memref<1x1x128xf32, #tpu.memory_space<vmem>>, %arg7: memref<1x1x4x128xbf16, #tpu.memory_space<vmem>>) attributes {dimension_semantics = [#tpu.dimension_semantics<parallel>, #tpu.dimension_semantics<parallel>], iteration_bounds = array<i64: 2, 2>, scalar_prefetch = 0 : i64, scratch_operands = 0 : i64, tpu.core_type = #tpu.core_type<tc>, window_params = [{transform_indices = @transform_0, window_bounds = array<i64: 1, 1, 10, 128>}, {transform_indices = @transform_1, window_bounds = array<i64: 1, 3, 128, 128>}, {transform_indices = @transform_2, window_bounds = array<i64: 1, 1, 128>}, {transform_indices = @transform_3, window_bounds = array<i64: 1, 1, 128, 128>}, {transform_indices = @transform_4, window_bounds = array<i64: 1, 1, 128>}, {transform_indices = @transform_5, window_bounds = array<i64: 1, 1, 4, 128>}]} {
    %c0 = arith.constant 0 : index
    %c0_0 = arith.constant 0 : index
    %c0_1 = arith.constant 0 : index
    %c0_2 = arith.constant 0 : index
    %0 = vector.load %arg2[%c0, %c0_0, %c0_1, %c0_2] : memref<1x1x10x128xbf16, #tpu.memory_space<vmem>>, vector<1x1x4x128xbf16>
    %1 = vector.shape_cast %0 : vector<1x1x4x128xbf16> to vector<4x128xbf16>
    %cst = arith.constant 0.000000e+00 : bf16
    %2 = vector.broadcast %cst : bf16 to vector<4x128xbf16>
    %3 = arith.maximumf %1, %2 : vector<4x128xbf16>
    %c0_3 = arith.constant 0 : index
    %c0_4 = arith.constant 0 : index
    %c0_5 = arith.constant 0 : index
    %c0_6 = arith.constant 0 : index
    %4 = vector.load %arg3[%c0_3, %c0_4, %c0_5, %c0_6] : memref<1x3x128x128xbf16, #tpu.memory_space<vmem>>, vector<1x1x128x128xbf16>
    %5 = vector.shape_cast %4 : vector<1x1x128x128xbf16> to vector<128x128xbf16>
    %cst_7 = arith.constant dense<0.000000e+00> : vector<4x128xf32>
    %6 = tpu.matmul %3, %5, %cst_7 {dimension_numbers = #tpu.dot_dimension_numbers<[1], [0], [0], [1], [0, 0, 1, 1], [], []>} : vector<4x128xbf16>, vector<128x128xbf16>, vector<4x128xf32> -> vector<4x128xf32>
    %c0_8 = arith.constant 0 : index
    %c0_9 = arith.constant 0 : index
    %c3 = arith.constant 3 : index
    %c0_10 = arith.constant 0 : index
    %7 = vector.load %arg2[%c0_8, %c0_9, %c3, %c0_10] : memref<1x1x10x128xbf16, #tpu.memory_space<vmem>>, vector<1x1x4x128xbf16>
    %8 = vector.shape_cast %7 : vector<1x1x4x128xbf16> to vector<4x128xbf16>
    %cst_11 = arith.constant 0.000000e+00 : bf16
    %9 = vector.broadcast %cst_11 : bf16 to vector<4x128xbf16>
    %10 = arith.maximumf %8, %9 : vector<4x128xbf16>
    %c0_12 = arith.constant 0 : index
    %c1 = arith.constant 1 : index
    %c0_13 = arith.constant 0 : index
    %c0_14 = arith.constant 0 : index
    %11 = vector.load %arg3[%c0_12, %c1, %c0_13, %c0_14] : memref<1x3x128x128xbf16, #tpu.memory_space<vmem>>, vector<1x1x128x128xbf16>
    %12 = vector.shape_cast %11 : vector<1x1x128x128xbf16> to vector<128x128xbf16>
    %cst_15 = arith.constant dense<0.000000e+00> : vector<4x128xf32>
    %13 = tpu.matmul %10, %12, %cst_15 {dimension_numbers = #tpu.dot_dimension_numbers<[1], [0], [0], [1], [0, 0, 1, 1], [], []>} : vector<4x128xbf16>, vector<128x128xbf16>, vector<4x128xf32> -> vector<4x128xf32>
    %14 = arith.addf %6, %13 : vector<4x128xf32>
    %c0_16 = arith.constant 0 : index
    %c0_17 = arith.constant 0 : index
    %c6 = arith.constant 6 : index
    %c0_18 = arith.constant 0 : index
    %15 = vector.load %arg2[%c0_16, %c0_17, %c6, %c0_18] : memref<1x1x10x128xbf16, #tpu.memory_space<vmem>>, vector<1x1x4x128xbf16>
    %16 = vector.shape_cast %15 : vector<1x1x4x128xbf16> to vector<4x128xbf16>
    %cst_19 = arith.constant 0.000000e+00 : bf16
    %17 = vector.broadcast %cst_19 : bf16 to vector<4x128xbf16>
    %18 = arith.maximumf %16, %17 : vector<4x128xbf16>
    %c0_20 = arith.constant 0 : index
    %c2 = arith.constant 2 : index
    %c0_21 = arith.constant 0 : index
    %c0_22 = arith.constant 0 : index
    %19 = vector.load %arg3[%c0_20, %c2, %c0_21, %c0_22] : memref<1x3x128x128xbf16, #tpu.memory_space<vmem>>, vector<1x1x128x128xbf16>
    %20 = vector.shape_cast %19 : vector<1x1x128x128xbf16> to vector<128x128xbf16>
    %cst_23 = arith.constant dense<0.000000e+00> : vector<4x128xf32>
    %21 = tpu.matmul %18, %20, %cst_23 {dimension_numbers = #tpu.dot_dimension_numbers<[1], [0], [0], [1], [0, 0, 1, 1], [], []>} : vector<4x128xbf16>, vector<128x128xbf16>, vector<4x128xf32> -> vector<4x128xf32>
    %22 = arith.addf %14, %21 : vector<4x128xf32>
    %c0_24 = arith.constant 0 : index
    %c0_25 = arith.constant 0 : index
    %c0_26 = arith.constant 0 : index
    %23 = vector.load %arg4[%c0_24, %c0_25, %c0_26] : memref<1x1x128xf32, #tpu.memory_space<vmem>>, vector<1x1x128xf32>
    %24 = vector.shape_cast %23 : vector<1x1x128xf32> to vector<1x128xf32>
    %25 = vector.broadcast %24 : vector<1x128xf32> to vector<4x128xf32>
    %26 = arith.addf %22, %25 : vector<4x128xf32>
    %cst_27 = arith.constant 0.000000e+00 : f32
    %27 = vector.broadcast %cst_27 : f32 to vector<4x128xf32>
    %28 = arith.maximumf %26, %27 : vector<4x128xf32>
    %29 = arith.truncf %28 : vector<4x128xf32> to vector<4x128xbf16>
    %c0_28 = arith.constant 0 : index
    %c0_29 = arith.constant 0 : index
    %c0_30 = arith.constant 0 : index
    %c0_31 = arith.constant 0 : index
    %30 = vector.load %arg5[%c0_28, %c0_29, %c0_30, %c0_31] : memref<1x1x128x128xbf16, #tpu.memory_space<vmem>>, vector<1x1x128x128xbf16>
    %31 = vector.shape_cast %30 : vector<1x1x128x128xbf16> to vector<128x128xbf16>
    %cst_32 = arith.constant dense<0.000000e+00> : vector<4x128xf32>
    %32 = tpu.matmul %29, %31, %cst_32 {dimension_numbers = #tpu.dot_dimension_numbers<[1], [0], [0], [1], [0, 0, 1, 1], [], []>} : vector<4x128xbf16>, vector<128x128xbf16>, vector<4x128xf32> -> vector<4x128xf32>
    %c0_33 = arith.constant 0 : index
    %c0_34 = arith.constant 0 : index
    %c0_35 = arith.constant 0 : index
    %33 = vector.load %arg6[%c0_33, %c0_34, %c0_35] : memref<1x1x128xf32, #tpu.memory_space<vmem>>, vector<1x1x128xf32>
    %34 = vector.shape_cast %33 : vector<1x1x128xf32> to vector<1x128xf32>
    %35 = vector.broadcast %34 : vector<1x128xf32> to vector<4x128xf32>
    %36 = arith.addf %32, %35 : vector<4x128xf32>
    %c0_36 = arith.constant 0 : index
    %c0_37 = arith.constant 0 : index
    %c3_38 = arith.constant 3 : index
    %c0_39 = arith.constant 0 : index
    %37 = vector.load %arg2[%c0_36, %c0_37, %c3_38, %c0_39] : memref<1x1x10x128xbf16, #tpu.memory_space<vmem>>, vector<1x1x4x128xbf16>
    %38 = vector.shape_cast %37 : vector<1x1x4x128xbf16> to vector<4x128xbf16>
    %39 = arith.extf %38 : vector<4x128xbf16> to vector<4x128xf32>
    %40 = arith.addf %39, %36 : vector<4x128xf32>
    %41 = arith.truncf %40 : vector<4x128xf32> to vector<4x128xbf16>
    %c0_40 = arith.constant 0 : index
    %c0_41 = arith.constant 0 : index
    %c0_42 = arith.constant 0 : index
    %c0_43 = arith.constant 0 : index
    %42 = vector.load %arg7[%c0_40, %c0_41, %c0_42, %c0_43] : memref<1x1x4x128xbf16, #tpu.memory_space<vmem>>, vector<1x1x4x128xbf16>
    %43 = vector.shape_cast %42 : vector<1x1x4x128xbf16> to vector<4x128xbf16>
    %44 = vector.shape_cast %41 : vector<4x128xbf16> to vector<1x1x4x128xbf16>
    tpu.vector_store %arg7[%c0_40, %c0_41, %c0_42, %c0_43], %44 {strides = array<i32>} : memref<1x1x4x128xbf16, #tpu.memory_space<vmem>>, vector<1x1x4x128xbf16>,
    return
  }
  func.func @transform_0(%arg0: i32, %arg1: i32) -> (i32, i32, i32, i32) {
    %c0_i32 = arith.constant 0 : i32
    %c0_i32_0 = arith.constant 0 : i32
    %c0_i32_1 = arith.constant 0 : i32
    return %arg0, %arg1, %c0_i32, %c0_i32_0 : i32, i32, i32, i32
  }
  func.func @transform_1(%arg0: i32, %arg1: i32) -> (i32, i32, i32, i32) {
    %c0_i32 = arith.constant 0 : i32
    %c0_i32_0 = arith.constant 0 : i32
    %c0_i32_1 = arith.constant 0 : i32
    %c0_i32_2 = arith.constant 0 : i32
    return %arg0, %c0_i32, %c0_i32_0, %c0_i32_1 : i32, i32, i32, i32
  }
  func.func @transform_2(%arg0: i32, %arg1: i32) -> (i32, i32, i32) {
    %c0_i32 = arith.constant 0 : i32
    %c0_i32_0 = arith.constant 0 : i32
    %c0_i32_1 = arith.constant 0 : i32
    return %arg0, %c0_i32, %c0_i32_0 : i32, i32, i32
  }
  func.func @transform_3(%arg0: i32, %arg1: i32) -> (i32, i32, i32, i32) {
    %c0_i32 = arith.constant 0 : i32
    %c0_i32_0 = arith.constant 0 : i32
    %c0_i32_1 = arith.constant 0 : i32
    %c0_i32_2 = arith.constant 0 : i32
    return %arg0, %c0_i32, %c0_i32_0, %c0_i32_1 : i32, i32, i32, i32
  }
  func.func @transform_4(%arg0: i32, %arg1: i32) -> (i32, i32, i32) {
    %c0_i32 = arith.constant 0 : i32
    %c0_i32_0 = arith.constant 0 : i32
    %c0_i32_1 = arith.constant 0 : i32
    return %arg0, %c0_i32, %c0_i32_0 : i32, i32, i32
  }
  func.func @transform_5(%arg0: i32, %arg1: i32) -> (i32, i32, i32, i32) {
    %c0_i32 = arith.constant 0 : i32
    %c0_i32_0 = arith.constant 0 : i32
    %c0_i32_1 = arith.constant 0 : i32
    return %arg0, %arg1, %c0_i32, %c0_i32_0 : i32, i32, i32, i32
  }
}

module attributes {stable_mosaic.version = 11 : i64} {
  func.func @_resblock_kernel(%arg0: i32, %arg1: i32, %arg2: memref<1x1x6x128xbf16, #tpu.memory_space<vmem>>, %arg3: memref<1x3x128x128xbf16, #tpu.memory_space<vmem>>, %arg4: memref<1x1x128xf32, #tpu.memory_space<vmem>>, %arg5: memref<1x1x128x128xbf16, #tpu.memory_space<vmem>>, %arg6: memref<1x1x128xf32, #tpu.memory_space<vmem>>, %arg7: memref<1x1x4x128xbf16, #tpu.memory_space<vmem>>) attributes {dimension_semantics = [#tpu.dimension_semantics<parallel>, #tpu.dimension_semantics<parallel>], iteration_bounds = array<i64: 2, 2>, scalar_prefetch = 0 : i64, scratch_operands = 0 : i64, tpu.core_type = #tpu.core_type<tc>, window_params = [{transform_indices = @transform_0, window_bounds = array<i64: 1, 1, 6, 128>}, {transform_indices = @transform_1, window_bounds = array<i64: 1, 3, 128, 128>}, {transform_indices = @transform_2, window_bounds = array<i64: 1, 1, 128>}, {transform_indices = @transform_3, window_bounds = array<i64: 1, 1, 128, 128>}, {transform_indices = @transform_4, window_bounds = array<i64: 1, 1, 128>}, {transform_indices = @transform_5, window_bounds = array<i64: 1, 1, 4, 128>}]} {
    %c0 = arith.constant 0 : index
    %c0_0 = arith.constant 0 : index
    %c0_1 = arith.constant 0 : index
    %c0_2 = arith.constant 0 : index
    %0 = vector.load %arg2[%c0, %c0_0, %c0_1, %c0_2] : memref<1x1x6x128xbf16, #tpu.memory_space<vmem>>, vector<1x1x4x128xbf16>
    %1 = vector.shape_cast %0 : vector<1x1x4x128xbf16> to vector<4x128xbf16>
    %cst = arith.constant 0.000000e+00 : bf16
    %2 = vector.broadcast %cst : bf16 to vector<4x128xbf16>
    %3 = arith.maximumf %1, %2 : vector<4x128xbf16>
    %c0_3 = arith.constant 0 : index
    %c0_4 = arith.constant 0 : index
    %c0_5 = arith.constant 0 : index
    %c0_6 = arith.constant 0 : index
    %4 = vector.load %arg3[%c0_3, %c0_4, %c0_5, %c0_6] : memref<1x3x128x128xbf16, #tpu.memory_space<vmem>>, vector<1x1x128x128xbf16>
    %5 = vector.shape_cast %4 : vector<1x1x128x128xbf16> to vector<128x128xbf16>
    %cst_7 = arith.constant dense<0.000000e+00> : vector<4x128xf32>
    %6 = tpu.matmul %3, %5, %cst_7 {dimension_numbers = #tpu.dot_dimension_numbers<[1], [0], [0], [1], [0, 0, 1, 1], [], []>} : vector<4x128xbf16>, vector<128x128xbf16>, vector<4x128xf32> -> vector<4x128xf32>
    %c0_8 = arith.constant 0 : index
    %c0_9 = arith.constant 0 : index
    %c1 = arith.constant 1 : index
    %c0_10 = arith.constant 0 : index
    %7 = vector.load %arg2[%c0_8, %c0_9, %c1, %c0_10] : memref<1x1x6x128xbf16, #tpu.memory_space<vmem>>, vector<1x1x4x128xbf16>
    %8 = vector.shape_cast %7 : vector<1x1x4x128xbf16> to vector<4x128xbf16>
    %cst_11 = arith.constant 0.000000e+00 : bf16
    %9 = vector.broadcast %cst_11 : bf16 to vector<4x128xbf16>
    %10 = arith.maximumf %8, %9 : vector<4x128xbf16>
    %c0_12 = arith.constant 0 : index
    %c1_13 = arith.constant 1 : index
    %c0_14 = arith.constant 0 : index
    %c0_15 = arith.constant 0 : index
    %11 = vector.load %arg3[%c0_12, %c1_13, %c0_14, %c0_15] : memref<1x3x128x128xbf16, #tpu.memory_space<vmem>>, vector<1x1x128x128xbf16>
    %12 = vector.shape_cast %11 : vector<1x1x128x128xbf16> to vector<128x128xbf16>
    %cst_16 = arith.constant dense<0.000000e+00> : vector<4x128xf32>
    %13 = tpu.matmul %10, %12, %cst_16 {dimension_numbers = #tpu.dot_dimension_numbers<[1], [0], [0], [1], [0, 0, 1, 1], [], []>} : vector<4x128xbf16>, vector<128x128xbf16>, vector<4x128xf32> -> vector<4x128xf32>
    %14 = arith.addf %6, %13 : vector<4x128xf32>
    %c0_17 = arith.constant 0 : index
    %c0_18 = arith.constant 0 : index
    %c2 = arith.constant 2 : index
    %c0_19 = arith.constant 0 : index
    %15 = vector.load %arg2[%c0_17, %c0_18, %c2, %c0_19] : memref<1x1x6x128xbf16, #tpu.memory_space<vmem>>, vector<1x1x4x128xbf16>
    %16 = vector.shape_cast %15 : vector<1x1x4x128xbf16> to vector<4x128xbf16>
    %cst_20 = arith.constant 0.000000e+00 : bf16
    %17 = vector.broadcast %cst_20 : bf16 to vector<4x128xbf16>
    %18 = arith.maximumf %16, %17 : vector<4x128xbf16>
    %c0_21 = arith.constant 0 : index
    %c2_22 = arith.constant 2 : index
    %c0_23 = arith.constant 0 : index
    %c0_24 = arith.constant 0 : index
    %19 = vector.load %arg3[%c0_21, %c2_22, %c0_23, %c0_24] : memref<1x3x128x128xbf16, #tpu.memory_space<vmem>>, vector<1x1x128x128xbf16>
    %20 = vector.shape_cast %19 : vector<1x1x128x128xbf16> to vector<128x128xbf16>
    %cst_25 = arith.constant dense<0.000000e+00> : vector<4x128xf32>
    %21 = tpu.matmul %18, %20, %cst_25 {dimension_numbers = #tpu.dot_dimension_numbers<[1], [0], [0], [1], [0, 0, 1, 1], [], []>} : vector<4x128xbf16>, vector<128x128xbf16>, vector<4x128xf32> -> vector<4x128xf32>
    %22 = arith.addf %14, %21 : vector<4x128xf32>
    %c0_26 = arith.constant 0 : index
    %c0_27 = arith.constant 0 : index
    %c0_28 = arith.constant 0 : index
    %23 = vector.load %arg4[%c0_26, %c0_27, %c0_28] : memref<1x1x128xf32, #tpu.memory_space<vmem>>, vector<1x1x128xf32>
    %24 = vector.shape_cast %23 : vector<1x1x128xf32> to vector<1x128xf32>
    %25 = vector.broadcast %24 : vector<1x128xf32> to vector<4x128xf32>
    %26 = arith.addf %22, %25 : vector<4x128xf32>
    %cst_29 = arith.constant 0.000000e+00 : f32
    %27 = vector.broadcast %cst_29 : f32 to vector<4x128xf32>
    %28 = arith.maximumf %26, %27 : vector<4x128xf32>
    %29 = arith.truncf %28 : vector<4x128xf32> to vector<4x128xbf16>
    %c0_30 = arith.constant 0 : index
    %c0_31 = arith.constant 0 : index
    %c0_32 = arith.constant 0 : index
    %c0_33 = arith.constant 0 : index
    %30 = vector.load %arg5[%c0_30, %c0_31, %c0_32, %c0_33] : memref<1x1x128x128xbf16, #tpu.memory_space<vmem>>, vector<1x1x128x128xbf16>
    %31 = vector.shape_cast %30 : vector<1x1x128x128xbf16> to vector<128x128xbf16>
    %cst_34 = arith.constant dense<0.000000e+00> : vector<4x128xf32>
    %32 = tpu.matmul %29, %31, %cst_34 {dimension_numbers = #tpu.dot_dimension_numbers<[1], [0], [0], [1], [0, 0, 1, 1], [], []>} : vector<4x128xbf16>, vector<128x128xbf16>, vector<4x128xf32> -> vector<4x128xf32>
    %c0_35 = arith.constant 0 : index
    %c0_36 = arith.constant 0 : index
    %c0_37 = arith.constant 0 : index
    %33 = vector.load %arg6[%c0_35, %c0_36, %c0_37] : memref<1x1x128xf32, #tpu.memory_space<vmem>>, vector<1x1x128xf32>
    %34 = vector.shape_cast %33 : vector<1x1x128xf32> to vector<1x128xf32>
    %35 = vector.broadcast %34 : vector<1x128xf32> to vector<4x128xf32>
    %36 = arith.addf %32, %35 : vector<4x128xf32>
    %c0_38 = arith.constant 0 : index
    %c0_39 = arith.constant 0 : index
    %c1_40 = arith.constant 1 : index
    %c0_41 = arith.constant 0 : index
    %37 = vector.load %arg2[%c0_38, %c0_39, %c1_40, %c0_41] : memref<1x1x6x128xbf16, #tpu.memory_space<vmem>>, vector<1x1x4x128xbf16>
    %38 = vector.shape_cast %37 : vector<1x1x4x128xbf16> to vector<4x128xbf16>
    %39 = arith.extf %38 : vector<4x128xbf16> to vector<4x128xf32>
    %40 = arith.addf %39, %36 : vector<4x128xf32>
    %41 = arith.truncf %40 : vector<4x128xf32> to vector<4x128xbf16>
    %c0_42 = arith.constant 0 : index
    %c0_43 = arith.constant 0 : index
    %c0_44 = arith.constant 0 : index
    %c0_45 = arith.constant 0 : index
    %42 = vector.load %arg7[%c0_42, %c0_43, %c0_44, %c0_45] : memref<1x1x4x128xbf16, #tpu.memory_space<vmem>>, vector<1x1x4x128xbf16>
    %43 = vector.shape_cast %42 : vector<1x1x4x128xbf16> to vector<4x128xbf16>
    %44 = vector.shape_cast %41 : vector<4x128xbf16> to vector<1x1x4x128xbf16>
    tpu.vector_store %arg7[%c0_42, %c0_43, %c0_44, %c0_45], %44 {strides = array<i32>} : memref<1x1x4x128xbf16, #tpu.memory_space<vmem>>, vector<1x1x4x128xbf16>,
    return
  }
  func.func @transform_0(%arg0: i32, %arg1: i32) -> (i32, i32, i32, i32) {
    %c0_i32 = arith.constant 0 : i32
    %c0_i32_0 = arith.constant 0 : i32
    %c0_i32_1 = arith.constant 0 : i32
    return %arg0, %arg1, %c0_i32, %c0_i32_0 : i32, i32, i32, i32
  }
  func.func @transform_1(%arg0: i32, %arg1: i32) -> (i32, i32, i32, i32) {
    %c0_i32 = arith.constant 0 : i32
    %c0_i32_0 = arith.constant 0 : i32
    %c0_i32_1 = arith.constant 0 : i32
    %c0_i32_2 = arith.constant 0 : i32
    return %arg0, %c0_i32, %c0_i32_0, %c0_i32_1 : i32, i32, i32, i32
  }
  func.func @transform_2(%arg0: i32, %arg1: i32) -> (i32, i32, i32) {
    %c0_i32 = arith.constant 0 : i32
    %c0_i32_0 = arith.constant 0 : i32
    %c0_i32_1 = arith.constant 0 : i32
    return %arg0, %c0_i32, %c0_i32_0 : i32, i32, i32
  }
  func.func @transform_3(%arg0: i32, %arg1: i32) -> (i32, i32, i32, i32) {
    %c0_i32 = arith.constant 0 : i32
    %c0_i32_0 = arith.constant 0 : i32
    %c0_i32_1 = arith.constant 0 : i32
    %c0_i32_2 = arith.constant 0 : i32
    return %arg0, %c0_i32, %c0_i32_0, %c0_i32_1 : i32, i32, i32, i32
  }
  func.func @transform_4(%arg0: i32, %arg1: i32) -> (i32, i32, i32) {
    %c0_i32 = arith.constant 0 : i32
    %c0_i32_0 = arith.constant 0 : i32
    %c0_i32_1 = arith.constant 0 : i32
    return %arg0, %c0_i32, %c0_i32_0 : i32, i32, i32
  }
  func.func @transform_5(%arg0: i32, %arg1: i32) -> (i32, i32, i32, i32) {
    %c0_i32 = arith.constant 0 : i32
    %c0_i32_0 = arith.constant 0 : i32
    %c0_i32_1 = arith.constant 0 : i32
    return %arg0, %arg1, %c0_i32, %c0_i32_0 : i32, i32, i32, i32
  }
}

module attributes {stable_mosaic.version = 11 : i64} {
  func.func @_conv_kernel(%arg0: i32, %arg1: i32, %arg2: memref<1x1x6x128xbf16, #tpu.memory_space<vmem>>, %arg3: memref<1x3x128x256xbf16, #tpu.memory_space<vmem>>, %arg4: memref<1x1x256xf32, #tpu.memory_space<vmem>>, %arg5: memref<1x1x4x256xbf16, #tpu.memory_space<vmem>>) attributes {dimension_semantics = [#tpu.dimension_semantics<parallel>, #tpu.dimension_semantics<parallel>], iteration_bounds = array<i64: 2, 2>, scalar_prefetch = 0 : i64, scratch_operands = 0 : i64, tpu.core_type = #tpu.core_type<tc>, window_params = [{transform_indices = @transform_0, window_bounds = array<i64: 1, 1, 6, 128>}, {transform_indices = @transform_1, window_bounds = array<i64: 1, 3, 128, 256>}, {transform_indices = @transform_2, window_bounds = array<i64: 1, 1, 256>}, {transform_indices = @transform_3, window_bounds = array<i64: 1, 1, 4, 256>}]} {
    %c0 = arith.constant 0 : index
    %c0_0 = arith.constant 0 : index
    %c0_1 = arith.constant 0 : index
    %c0_2 = arith.constant 0 : index
    %0 = vector.load %arg2[%c0, %c0_0, %c0_1, %c0_2] : memref<1x1x6x128xbf16, #tpu.memory_space<vmem>>, vector<1x1x4x128xbf16>
    %1 = vector.shape_cast %0 : vector<1x1x4x128xbf16> to vector<4x128xbf16>
    %c0_3 = arith.constant 0 : index
    %c0_4 = arith.constant 0 : index
    %c0_5 = arith.constant 0 : index
    %c0_6 = arith.constant 0 : index
    %2 = vector.load %arg3[%c0_3, %c0_4, %c0_5, %c0_6] : memref<1x3x128x256xbf16, #tpu.memory_space<vmem>>, vector<1x1x128x256xbf16>
    %3 = vector.shape_cast %2 : vector<1x1x128x256xbf16> to vector<128x256xbf16>
    %cst = arith.constant dense<0.000000e+00> : vector<4x256xf32>
    %4 = tpu.matmul %1, %3, %cst {dimension_numbers = #tpu.dot_dimension_numbers<[1], [0], [0], [1], [0, 0, 1, 1], [], []>} : vector<4x128xbf16>, vector<128x256xbf16>, vector<4x256xf32> -> vector<4x256xf32>
    %c0_7 = arith.constant 0 : index
    %c0_8 = arith.constant 0 : index
    %c1 = arith.constant 1 : index
    %c0_9 = arith.constant 0 : index
    %5 = vector.load %arg2[%c0_7, %c0_8, %c1, %c0_9] : memref<1x1x6x128xbf16, #tpu.memory_space<vmem>>, vector<1x1x4x128xbf16>
    %6 = vector.shape_cast %5 : vector<1x1x4x128xbf16> to vector<4x128xbf16>
    %c0_10 = arith.constant 0 : index
    %c1_11 = arith.constant 1 : index
    %c0_12 = arith.constant 0 : index
    %c0_13 = arith.constant 0 : index
    %7 = vector.load %arg3[%c0_10, %c1_11, %c0_12, %c0_13] : memref<1x3x128x256xbf16, #tpu.memory_space<vmem>>, vector<1x1x128x256xbf16>
    %8 = vector.shape_cast %7 : vector<1x1x128x256xbf16> to vector<128x256xbf16>
    %cst_14 = arith.constant dense<0.000000e+00> : vector<4x256xf32>
    %9 = tpu.matmul %6, %8, %cst_14 {dimension_numbers = #tpu.dot_dimension_numbers<[1], [0], [0], [1], [0, 0, 1, 1], [], []>} : vector<4x128xbf16>, vector<128x256xbf16>, vector<4x256xf32> -> vector<4x256xf32>
    %10 = arith.addf %4, %9 : vector<4x256xf32>
    %c0_15 = arith.constant 0 : index
    %c0_16 = arith.constant 0 : index
    %c2 = arith.constant 2 : index
    %c0_17 = arith.constant 0 : index
    %11 = vector.load %arg2[%c0_15, %c0_16, %c2, %c0_17] : memref<1x1x6x128xbf16, #tpu.memory_space<vmem>>, vector<1x1x4x128xbf16>
    %12 = vector.shape_cast %11 : vector<1x1x4x128xbf16> to vector<4x128xbf16>
    %c0_18 = arith.constant 0 : index
    %c2_19 = arith.constant 2 : index
    %c0_20 = arith.constant 0 : index
    %c0_21 = arith.constant 0 : index
    %13 = vector.load %arg3[%c0_18, %c2_19, %c0_20, %c0_21] : memref<1x3x128x256xbf16, #tpu.memory_space<vmem>>, vector<1x1x128x256xbf16>
    %14 = vector.shape_cast %13 : vector<1x1x128x256xbf16> to vector<128x256xbf16>
    %cst_22 = arith.constant dense<0.000000e+00> : vector<4x256xf32>
    %15 = tpu.matmul %12, %14, %cst_22 {dimension_numbers = #tpu.dot_dimension_numbers<[1], [0], [0], [1], [0, 0, 1, 1], [], []>} : vector<4x128xbf16>, vector<128x256xbf16>, vector<4x256xf32> -> vector<4x256xf32>
    %16 = arith.addf %10, %15 : vector<4x256xf32>
    %c0_23 = arith.constant 0 : index
    %c0_24 = arith.constant 0 : index
    %c0_25 = arith.constant 0 : index
    %17 = vector.load %arg4[%c0_23, %c0_24, %c0_25] : memref<1x1x256xf32, #tpu.memory_space<vmem>>, vector<1x1x256xf32>
    %18 = vector.shape_cast %17 : vector<1x1x256xf32> to vector<1x256xf32>
    %19 = vector.broadcast %18 : vector<1x256xf32> to vector<4x256xf32>
    %20 = arith.addf %16, %19 : vector<4x256xf32>
    %21 = arith.truncf %20 : vector<4x256xf32> to vector<4x256xbf16>
    %c0_26 = arith.constant 0 : index
    %c0_27 = arith.constant 0 : index
    %c0_28 = arith.constant 0 : index
    %c0_29 = arith.constant 0 : index
    %22 = vector.load %arg5[%c0_26, %c0_27, %c0_28, %c0_29] : memref<1x1x4x256xbf16, #tpu.memory_space<vmem>>, vector<1x1x4x256xbf16>
    %23 = vector.shape_cast %22 : vector<1x1x4x256xbf16> to vector<4x256xbf16>
    %24 = vector.shape_cast %21 : vector<4x256xbf16> to vector<1x1x4x256xbf16>
    tpu.vector_store %arg5[%c0_26, %c0_27, %c0_28, %c0_29], %24 {strides = array<i32>} : memref<1x1x4x256xbf16, #tpu.memory_space<vmem>>, vector<1x1x4x256xbf16>,
    return
  }
  func.func @transform_0(%arg0: i32, %arg1: i32) -> (i32, i32, i32, i32) {
    %c0_i32 = arith.constant 0 : i32
    %c0_i32_0 = arith.constant 0 : i32
    %c0_i32_1 = arith.constant 0 : i32
    return %arg0, %arg1, %c0_i32, %c0_i32_0 : i32, i32, i32, i32
  }
  func.func @transform_1(%arg0: i32, %arg1: i32) -> (i32, i32, i32, i32) {
    %c0_i32 = arith.constant 0 : i32
    %c0_i32_0 = arith.constant 0 : i32
    %c0_i32_1 = arith.constant 0 : i32
    %c0_i32_2 = arith.constant 0 : i32
    return %arg0, %c0_i32, %c0_i32_0, %c0_i32_1 : i32, i32, i32, i32
  }
  func.func @transform_2(%arg0: i32, %arg1: i32) -> (i32, i32, i32) {
    %c0_i32 = arith.constant 0 : i32
    %c0_i32_0 = arith.constant 0 : i32
    %c0_i32_1 = arith.constant 0 : i32
    return %arg0, %c0_i32, %c0_i32_0 : i32, i32, i32
  }
  func.func @transform_3(%arg0: i32, %arg1: i32) -> (i32, i32, i32, i32) {
    %c0_i32 = arith.constant 0 : i32
    %c0_i32_0 = arith.constant 0 : i32
    %c0_i32_1 = arith.constant 0 : i32
    return %arg0, %arg1, %c0_i32, %c0_i32_0 : i32, i32, i32, i32
  }
}

module attributes {stable_mosaic.version = 11 : i64} {
  func.func @_resblock_kernel(%arg0: i32, %arg1: i32, %arg2: memref<1x1x10x128xbf16, #tpu.memory_space<vmem>>, %arg3: memref<1x3x128x128xbf16, #tpu.memory_space<vmem>>, %arg4: memref<1x1x128xf32, #tpu.memory_space<vmem>>, %arg5: memref<1x1x128x128xbf16, #tpu.memory_space<vmem>>, %arg6: memref<1x1x128xf32, #tpu.memory_space<vmem>>, %arg7: memref<1x1x8x128xbf16, #tpu.memory_space<vmem>>) attributes {dimension_semantics = [#tpu.dimension_semantics<parallel>, #tpu.dimension_semantics<parallel>], iteration_bounds = array<i64: 2, 2>, scalar_prefetch = 0 : i64, scratch_operands = 0 : i64, tpu.core_type = #tpu.core_type<tc>, window_params = [{transform_indices = @transform_0, window_bounds = array<i64: 1, 1, 10, 128>}, {transform_indices = @transform_1, window_bounds = array<i64: 1, 3, 128, 128>}, {transform_indices = @transform_2, window_bounds = array<i64: 1, 1, 128>}, {transform_indices = @transform_3, window_bounds = array<i64: 1, 1, 128, 128>}, {transform_indices = @transform_4, window_bounds = array<i64: 1, 1, 128>}, {transform_indices = @transform_5, window_bounds = array<i64: 1, 1, 8, 128>}]} {
    %c0 = arith.constant 0 : index
    %c0_0 = arith.constant 0 : index
    %c0_1 = arith.constant 0 : index
    %c0_2 = arith.constant 0 : index
    %0 = vector.load %arg2[%c0, %c0_0, %c0_1, %c0_2] : memref<1x1x10x128xbf16, #tpu.memory_space<vmem>>, vector<1x1x8x128xbf16>
    %1 = vector.shape_cast %0 : vector<1x1x8x128xbf16> to vector<8x128xbf16>
    %cst = arith.constant 0.000000e+00 : bf16
    %2 = vector.broadcast %cst : bf16 to vector<8x128xbf16>
    %3 = arith.maximumf %1, %2 : vector<8x128xbf16>
    %c0_3 = arith.constant 0 : index
    %c0_4 = arith.constant 0 : index
    %c0_5 = arith.constant 0 : index
    %c0_6 = arith.constant 0 : index
    %4 = vector.load %arg3[%c0_3, %c0_4, %c0_5, %c0_6] : memref<1x3x128x128xbf16, #tpu.memory_space<vmem>>, vector<1x1x128x128xbf16>
    %5 = vector.shape_cast %4 : vector<1x1x128x128xbf16> to vector<128x128xbf16>
    %cst_7 = arith.constant dense<0.000000e+00> : vector<8x128xf32>
    %6 = tpu.matmul %3, %5, %cst_7 {dimension_numbers = #tpu.dot_dimension_numbers<[1], [0], [0], [1], [0, 0, 1, 1], [], []>} : vector<8x128xbf16>, vector<128x128xbf16>, vector<8x128xf32> -> vector<8x128xf32>
    %c0_8 = arith.constant 0 : index
    %c0_9 = arith.constant 0 : index
    %c1 = arith.constant 1 : index
    %c0_10 = arith.constant 0 : index
    %7 = vector.load %arg2[%c0_8, %c0_9, %c1, %c0_10] : memref<1x1x10x128xbf16, #tpu.memory_space<vmem>>, vector<1x1x8x128xbf16>
    %8 = vector.shape_cast %7 : vector<1x1x8x128xbf16> to vector<8x128xbf16>
    %cst_11 = arith.constant 0.000000e+00 : bf16
    %9 = vector.broadcast %cst_11 : bf16 to vector<8x128xbf16>
    %10 = arith.maximumf %8, %9 : vector<8x128xbf16>
    %c0_12 = arith.constant 0 : index
    %c1_13 = arith.constant 1 : index
    %c0_14 = arith.constant 0 : index
    %c0_15 = arith.constant 0 : index
    %11 = vector.load %arg3[%c0_12, %c1_13, %c0_14, %c0_15] : memref<1x3x128x128xbf16, #tpu.memory_space<vmem>>, vector<1x1x128x128xbf16>
    %12 = vector.shape_cast %11 : vector<1x1x128x128xbf16> to vector<128x128xbf16>
    %cst_16 = arith.constant dense<0.000000e+00> : vector<8x128xf32>
    %13 = tpu.matmul %10, %12, %cst_16 {dimension_numbers = #tpu.dot_dimension_numbers<[1], [0], [0], [1], [0, 0, 1, 1], [], []>} : vector<8x128xbf16>, vector<128x128xbf16>, vector<8x128xf32> -> vector<8x128xf32>
    %14 = arith.addf %6, %13 : vector<8x128xf32>
    %c0_17 = arith.constant 0 : index
    %c0_18 = arith.constant 0 : index
    %c2 = arith.constant 2 : index
    %c0_19 = arith.constant 0 : index
    %15 = vector.load %arg2[%c0_17, %c0_18, %c2, %c0_19] : memref<1x1x10x128xbf16, #tpu.memory_space<vmem>>, vector<1x1x8x128xbf16>
    %16 = vector.shape_cast %15 : vector<1x1x8x128xbf16> to vector<8x128xbf16>
    %cst_20 = arith.constant 0.000000e+00 : bf16
    %17 = vector.broadcast %cst_20 : bf16 to vector<8x128xbf16>
    %18 = arith.maximumf %16, %17 : vector<8x128xbf16>
    %c0_21 = arith.constant 0 : index
    %c2_22 = arith.constant 2 : index
    %c0_23 = arith.constant 0 : index
    %c0_24 = arith.constant 0 : index
    %19 = vector.load %arg3[%c0_21, %c2_22, %c0_23, %c0_24] : memref<1x3x128x128xbf16, #tpu.memory_space<vmem>>, vector<1x1x128x128xbf16>
    %20 = vector.shape_cast %19 : vector<1x1x128x128xbf16> to vector<128x128xbf16>
    %cst_25 = arith.constant dense<0.000000e+00> : vector<8x128xf32>
    %21 = tpu.matmul %18, %20, %cst_25 {dimension_numbers = #tpu.dot_dimension_numbers<[1], [0], [0], [1], [0, 0, 1, 1], [], []>} : vector<8x128xbf16>, vector<128x128xbf16>, vector<8x128xf32> -> vector<8x128xf32>
    %22 = arith.addf %14, %21 : vector<8x128xf32>
    %c0_26 = arith.constant 0 : index
    %c0_27 = arith.constant 0 : index
    %c0_28 = arith.constant 0 : index
    %23 = vector.load %arg4[%c0_26, %c0_27, %c0_28] : memref<1x1x128xf32, #tpu.memory_space<vmem>>, vector<1x1x128xf32>
    %24 = vector.shape_cast %23 : vector<1x1x128xf32> to vector<1x128xf32>
    %25 = vector.broadcast %24 : vector<1x128xf32> to vector<8x128xf32>
    %26 = arith.addf %22, %25 : vector<8x128xf32>
    %cst_29 = arith.constant 0.000000e+00 : f32
    %27 = vector.broadcast %cst_29 : f32 to vector<8x128xf32>
    %28 = arith.maximumf %26, %27 : vector<8x128xf32>
    %29 = arith.truncf %28 : vector<8x128xf32> to vector<8x128xbf16>
    %c0_30 = arith.constant 0 : index
    %c0_31 = arith.constant 0 : index
    %c0_32 = arith.constant 0 : index
    %c0_33 = arith.constant 0 : index
    %30 = vector.load %arg5[%c0_30, %c0_31, %c0_32, %c0_33] : memref<1x1x128x128xbf16, #tpu.memory_space<vmem>>, vector<1x1x128x128xbf16>
    %31 = vector.shape_cast %30 : vector<1x1x128x128xbf16> to vector<128x128xbf16>
    %cst_34 = arith.constant dense<0.000000e+00> : vector<8x128xf32>
    %32 = tpu.matmul %29, %31, %cst_34 {dimension_numbers = #tpu.dot_dimension_numbers<[1], [0], [0], [1], [0, 0, 1, 1], [], []>} : vector<8x128xbf16>, vector<128x128xbf16>, vector<8x128xf32> -> vector<8x128xf32>
    %c0_35 = arith.constant 0 : index
    %c0_36 = arith.constant 0 : index
    %c0_37 = arith.constant 0 : index
    %33 = vector.load %arg6[%c0_35, %c0_36, %c0_37] : memref<1x1x128xf32, #tpu.memory_space<vmem>>, vector<1x1x128xf32>
    %34 = vector.shape_cast %33 : vector<1x1x128xf32> to vector<1x128xf32>
    %35 = vector.broadcast %34 : vector<1x128xf32> to vector<8x128xf32>
    %36 = arith.addf %32, %35 : vector<8x128xf32>
    %c0_38 = arith.constant 0 : index
    %c0_39 = arith.constant 0 : index
    %c1_40 = arith.constant 1 : index
    %c0_41 = arith.constant 0 : index
    %37 = vector.load %arg2[%c0_38, %c0_39, %c1_40, %c0_41] : memref<1x1x10x128xbf16, #tpu.memory_space<vmem>>, vector<1x1x8x128xbf16>
    %38 = vector.shape_cast %37 : vector<1x1x8x128xbf16> to vector<8x128xbf16>
    %39 = arith.extf %38 : vector<8x128xbf16> to vector<8x128xf32>
    %40 = arith.addf %39, %36 : vector<8x128xf32>
    %41 = arith.truncf %40 : vector<8x128xf32> to vector<8x128xbf16>
    %c0_42 = arith.constant 0 : index
    %c0_43 = arith.constant 0 : index
    %c0_44 = arith.constant 0 : index
    %c0_45 = arith.constant 0 : index
    %42 = vector.load %arg7[%c0_42, %c0_43, %c0_44, %c0_45] : memref<1x1x8x128xbf16, #tpu.memory_space<vmem>>, vector<1x1x8x128xbf16>
    %43 = vector.shape_cast %42 : vector<1x1x8x128xbf16> to vector<8x128xbf16>
    %44 = vector.shape_cast %41 : vector<8x128xbf16> to vector<1x1x8x128xbf16>
    tpu.vector_store %arg7[%c0_42, %c0_43, %c0_44, %c0_45], %44 {strides = array<i32>} : memref<1x1x8x128xbf16, #tpu.memory_space<vmem>>, vector<1x1x8x128xbf16>,
    return
  }
  func.func @transform_0(%arg0: i32, %arg1: i32) -> (i32, i32, i32, i32) {
    %c0_i32 = arith.constant 0 : i32
    %c0_i32_0 = arith.constant 0 : i32
    %c0_i32_1 = arith.constant 0 : i32
    return %arg0, %arg1, %c0_i32, %c0_i32_0 : i32, i32, i32, i32
  }
  func.func @transform_1(%arg0: i32, %arg1: i32) -> (i32, i32, i32, i32) {
    %c0_i32 = arith.constant 0 : i32
    %c0_i32_0 = arith.constant 0 : i32
    %c0_i32_1 = arith.constant 0 : i32
    %c0_i32_2 = arith.constant 0 : i32
    return %arg0, %c0_i32, %c0_i32_0, %c0_i32_1 : i32, i32, i32, i32
  }
  func.func @transform_2(%arg0: i32, %arg1: i32) -> (i32, i32, i32) {
    %c0_i32 = arith.constant 0 : i32
    %c0_i32_0 = arith.constant 0 : i32
    %c0_i32_1 = arith.constant 0 : i32
    return %arg0, %c0_i32, %c0_i32_0 : i32, i32, i32
  }
  func.func @transform_3(%arg0: i32, %arg1: i32) -> (i32, i32, i32, i32) {
    %c0_i32 = arith.constant 0 : i32
    %c0_i32_0 = arith.constant 0 : i32
    %c0_i32_1 = arith.constant 0 : i32
    %c0_i32_2 = arith.constant 0 : i32
    return %arg0, %c0_i32, %c0_i32_0, %c0_i32_1 : i32, i32, i32, i32
  }
  func.func @transform_4(%arg0: i32, %arg1: i32) -> (i32, i32, i32) {
    %c0_i32 = arith.constant 0 : i32
    %c0_i32_0 = arith.constant 0 : i32
    %c0_i32_1 = arith.constant 0 : i32
    return %arg0, %c0_i32, %c0_i32_0 : i32, i32, i32
  }
  func.func @transform_5(%arg0: i32, %arg1: i32) -> (i32, i32, i32, i32) {
    %c0_i32 = arith.constant 0 : i32
    %c0_i32_0 = arith.constant 0 : i32
    %c0_i32_1 = arith.constant 0 : i32
    return %arg0, %arg1, %c0_i32, %c0_i32_0 : i32, i32, i32, i32
  }
}

module attributes {stable_mosaic.version = 11 : i64} {
  func.func @_conv_kernel(%arg0: i32, %arg1: i32, %arg2: memref<1x1x10x128xbf16, #tpu.memory_space<vmem>>, %arg3: memref<1x3x128x256xbf16, #tpu.memory_space<vmem>>, %arg4: memref<1x1x256xf32, #tpu.memory_space<vmem>>, %arg5: memref<1x1x8x256xbf16, #tpu.memory_space<vmem>>) attributes {dimension_semantics = [#tpu.dimension_semantics<parallel>, #tpu.dimension_semantics<parallel>], iteration_bounds = array<i64: 2, 2>, scalar_prefetch = 0 : i64, scratch_operands = 0 : i64, tpu.core_type = #tpu.core_type<tc>, window_params = [{transform_indices = @transform_0, window_bounds = array<i64: 1, 1, 10, 128>}, {transform_indices = @transform_1, window_bounds = array<i64: 1, 3, 128, 256>}, {transform_indices = @transform_2, window_bounds = array<i64: 1, 1, 256>}, {transform_indices = @transform_3, window_bounds = array<i64: 1, 1, 8, 256>}]} {
    %c0 = arith.constant 0 : index
    %c0_0 = arith.constant 0 : index
    %c0_1 = arith.constant 0 : index
    %c0_2 = arith.constant 0 : index
    %0 = vector.load %arg2[%c0, %c0_0, %c0_1, %c0_2] : memref<1x1x10x128xbf16, #tpu.memory_space<vmem>>, vector<1x1x8x128xbf16>
    %1 = vector.shape_cast %0 : vector<1x1x8x128xbf16> to vector<8x128xbf16>
    %c0_3 = arith.constant 0 : index
    %c0_4 = arith.constant 0 : index
    %c0_5 = arith.constant 0 : index
    %c0_6 = arith.constant 0 : index
    %2 = vector.load %arg3[%c0_3, %c0_4, %c0_5, %c0_6] : memref<1x3x128x256xbf16, #tpu.memory_space<vmem>>, vector<1x1x128x256xbf16>
    %3 = vector.shape_cast %2 : vector<1x1x128x256xbf16> to vector<128x256xbf16>
    %cst = arith.constant dense<0.000000e+00> : vector<8x256xf32>
    %4 = tpu.matmul %1, %3, %cst {dimension_numbers = #tpu.dot_dimension_numbers<[1], [0], [0], [1], [0, 0, 1, 1], [], []>} : vector<8x128xbf16>, vector<128x256xbf16>, vector<8x256xf32> -> vector<8x256xf32>
    %c0_7 = arith.constant 0 : index
    %c0_8 = arith.constant 0 : index
    %c1 = arith.constant 1 : index
    %c0_9 = arith.constant 0 : index
    %5 = vector.load %arg2[%c0_7, %c0_8, %c1, %c0_9] : memref<1x1x10x128xbf16, #tpu.memory_space<vmem>>, vector<1x1x8x128xbf16>
    %6 = vector.shape_cast %5 : vector<1x1x8x128xbf16> to vector<8x128xbf16>
    %c0_10 = arith.constant 0 : index
    %c1_11 = arith.constant 1 : index
    %c0_12 = arith.constant 0 : index
    %c0_13 = arith.constant 0 : index
    %7 = vector.load %arg3[%c0_10, %c1_11, %c0_12, %c0_13] : memref<1x3x128x256xbf16, #tpu.memory_space<vmem>>, vector<1x1x128x256xbf16>
    %8 = vector.shape_cast %7 : vector<1x1x128x256xbf16> to vector<128x256xbf16>
    %cst_14 = arith.constant dense<0.000000e+00> : vector<8x256xf32>
    %9 = tpu.matmul %6, %8, %cst_14 {dimension_numbers = #tpu.dot_dimension_numbers<[1], [0], [0], [1], [0, 0, 1, 1], [], []>} : vector<8x128xbf16>, vector<128x256xbf16>, vector<8x256xf32> -> vector<8x256xf32>
    %10 = arith.addf %4, %9 : vector<8x256xf32>
    %c0_15 = arith.constant 0 : index
    %c0_16 = arith.constant 0 : index
    %c2 = arith.constant 2 : index
    %c0_17 = arith.constant 0 : index
    %11 = vector.load %arg2[%c0_15, %c0_16, %c2, %c0_17] : memref<1x1x10x128xbf16, #tpu.memory_space<vmem>>, vector<1x1x8x128xbf16>
    %12 = vector.shape_cast %11 : vector<1x1x8x128xbf16> to vector<8x128xbf16>
    %c0_18 = arith.constant 0 : index
    %c2_19 = arith.constant 2 : index
    %c0_20 = arith.constant 0 : index
    %c0_21 = arith.constant 0 : index
    %13 = vector.load %arg3[%c0_18, %c2_19, %c0_20, %c0_21] : memref<1x3x128x256xbf16, #tpu.memory_space<vmem>>, vector<1x1x128x256xbf16>
    %14 = vector.shape_cast %13 : vector<1x1x128x256xbf16> to vector<128x256xbf16>
    %cst_22 = arith.constant dense<0.000000e+00> : vector<8x256xf32>
    %15 = tpu.matmul %12, %14, %cst_22 {dimension_numbers = #tpu.dot_dimension_numbers<[1], [0], [0], [1], [0, 0, 1, 1], [], []>} : vector<8x128xbf16>, vector<128x256xbf16>, vector<8x256xf32> -> vector<8x256xf32>
    %16 = arith.addf %10, %15 : vector<8x256xf32>
    %c0_23 = arith.constant 0 : index
    %c0_24 = arith.constant 0 : index
    %c0_25 = arith.constant 0 : index
    %17 = vector.load %arg4[%c0_23, %c0_24, %c0_25] : memref<1x1x256xf32, #tpu.memory_space<vmem>>, vector<1x1x256xf32>
    %18 = vector.shape_cast %17 : vector<1x1x256xf32> to vector<1x256xf32>
    %19 = vector.broadcast %18 : vector<1x256xf32> to vector<8x256xf32>
    %20 = arith.addf %16, %19 : vector<8x256xf32>
    %21 = arith.truncf %20 : vector<8x256xf32> to vector<8x256xbf16>
    %c0_26 = arith.constant 0 : index
    %c0_27 = arith.constant 0 : index
    %c0_28 = arith.constant 0 : index
    %c0_29 = arith.constant 0 : index
    %22 = vector.load %arg5[%c0_26, %c0_27, %c0_28, %c0_29] : memref<1x1x8x256xbf16, #tpu.memory_space<vmem>>, vector<1x1x8x256xbf16>
    %23 = vector.shape_cast %22 : vector<1x1x8x256xbf16> to vector<8x256xbf16>
    %24 = vector.shape_cast %21 : vector<8x256xbf16> to vector<1x1x8x256xbf16>
    tpu.vector_store %arg5[%c0_26, %c0_27, %c0_28, %c0_29], %24 {strides = array<i32>} : memref<1x1x8x256xbf16, #tpu.memory_space<vmem>>, vector<1x1x8x256xbf16>,
    return
  }
  func.func @transform_0(%arg0: i32, %arg1: i32) -> (i32, i32, i32, i32) {
    %c0_i32 = arith.constant 0 : i32
    %c0_i32_0 = arith.constant 0 : i32
    %c0_i32_1 = arith.constant 0 : i32
    return %arg0, %arg1, %c0_i32, %c0_i32_0 : i32, i32, i32, i32
  }
  func.func @transform_1(%arg0: i32, %arg1: i32) -> (i32, i32, i32, i32) {
    %c0_i32 = arith.constant 0 : i32
    %c0_i32_0 = arith.constant 0 : i32
    %c0_i32_1 = arith.constant 0 : i32
    %c0_i32_2 = arith.constant 0 : i32
    return %arg0, %c0_i32, %c0_i32_0, %c0_i32_1 : i32, i32, i32, i32
  }
  func.func @transform_2(%arg0: i32, %arg1: i32) -> (i32, i32, i32) {
    %c0_i32 = arith.constant 0 : i32
    %c0_i32_0 = arith.constant 0 : i32
    %c0_i32_1 = arith.constant 0 : i32
    return %arg0, %c0_i32, %c0_i32_0 : i32, i32, i32
  }
  func.func @transform_3(%arg0: i32, %arg1: i32) -> (i32, i32, i32, i32) {
    %c0_i32 = arith.constant 0 : i32
    %c0_i32_0 = arith.constant 0 : i32
    %c0_i32_1 = arith.constant 0 : i32
    return %arg0, %arg1, %c0_i32, %c0_i32_0 : i32, i32, i32, i32
  }
}

module attributes {stable_mosaic.version = 11 : i64} {
  func.func @_conv_kernel(%arg0: i32, %arg1: i32, %arg2: memref<1x1x18x128xbf16, #tpu.memory_space<vmem>>, %arg3: memref<1x3x128x128xbf16, #tpu.memory_space<vmem>>, %arg4: memref<1x1x128xf32, #tpu.memory_space<vmem>>, %arg5: memref<1x1x16x128xbf16, #tpu.memory_space<vmem>>) attributes {dimension_semantics = [#tpu.dimension_semantics<parallel>, #tpu.dimension_semantics<parallel>], iteration_bounds = array<i64: 2, 2>, scalar_prefetch = 0 : i64, scratch_operands = 0 : i64, tpu.core_type = #tpu.core_type<tc>, window_params = [{transform_indices = @transform_0, window_bounds = array<i64: 1, 1, 18, 128>}, {transform_indices = @transform_1, window_bounds = array<i64: 1, 3, 128, 128>}, {transform_indices = @transform_2, window_bounds = array<i64: 1, 1, 128>}, {transform_indices = @transform_3, window_bounds = array<i64: 1, 1, 16, 128>}]} {
    %c0 = arith.constant 0 : index
    %c0_0 = arith.constant 0 : index
    %c0_1 = arith.constant 0 : index
    %c0_2 = arith.constant 0 : index
    %0 = vector.load %arg2[%c0, %c0_0, %c0_1, %c0_2] : memref<1x1x18x128xbf16, #tpu.memory_space<vmem>>, vector<1x1x16x128xbf16>
    %1 = vector.shape_cast %0 : vector<1x1x16x128xbf16> to vector<16x128xbf16>
    %c0_3 = arith.constant 0 : index
    %c0_4 = arith.constant 0 : index
    %c0_5 = arith.constant 0 : index
    %c0_6 = arith.constant 0 : index
    %2 = vector.load %arg3[%c0_3, %c0_4, %c0_5, %c0_6] : memref<1x3x128x128xbf16, #tpu.memory_space<vmem>>, vector<1x1x128x128xbf16>
    %3 = vector.shape_cast %2 : vector<1x1x128x128xbf16> to vector<128x128xbf16>
    %cst = arith.constant dense<0.000000e+00> : vector<16x128xf32>
    %4 = tpu.matmul %1, %3, %cst {dimension_numbers = #tpu.dot_dimension_numbers<[1], [0], [0], [1], [0, 0, 1, 1], [], []>} : vector<16x128xbf16>, vector<128x128xbf16>, vector<16x128xf32> -> vector<16x128xf32>
    %c0_7 = arith.constant 0 : index
    %c0_8 = arith.constant 0 : index
    %c1 = arith.constant 1 : index
    %c0_9 = arith.constant 0 : index
    %5 = vector.load %arg2[%c0_7, %c0_8, %c1, %c0_9] : memref<1x1x18x128xbf16, #tpu.memory_space<vmem>>, vector<1x1x16x128xbf16>
    %6 = vector.shape_cast %5 : vector<1x1x16x128xbf16> to vector<16x128xbf16>
    %c0_10 = arith.constant 0 : index
    %c1_11 = arith.constant 1 : index
    %c0_12 = arith.constant 0 : index
    %c0_13 = arith.constant 0 : index
    %7 = vector.load %arg3[%c0_10, %c1_11, %c0_12, %c0_13] : memref<1x3x128x128xbf16, #tpu.memory_space<vmem>>, vector<1x1x128x128xbf16>
    %8 = vector.shape_cast %7 : vector<1x1x128x128xbf16> to vector<128x128xbf16>
    %cst_14 = arith.constant dense<0.000000e+00> : vector<16x128xf32>
    %9 = tpu.matmul %6, %8, %cst_14 {dimension_numbers = #tpu.dot_dimension_numbers<[1], [0], [0], [1], [0, 0, 1, 1], [], []>} : vector<16x128xbf16>, vector<128x128xbf16>, vector<16x128xf32> -> vector<16x128xf32>
    %10 = arith.addf %4, %9 : vector<16x128xf32>
    %c0_15 = arith.constant 0 : index
    %c0_16 = arith.constant 0 : index
    %c2 = arith.constant 2 : index
    %c0_17 = arith.constant 0 : index
    %11 = vector.load %arg2[%c0_15, %c0_16, %c2, %c0_17] : memref<1x1x18x128xbf16, #tpu.memory_space<vmem>>, vector<1x1x16x128xbf16>
    %12 = vector.shape_cast %11 : vector<1x1x16x128xbf16> to vector<16x128xbf16>
    %c0_18 = arith.constant 0 : index
    %c2_19 = arith.constant 2 : index
    %c0_20 = arith.constant 0 : index
    %c0_21 = arith.constant 0 : index
    %13 = vector.load %arg3[%c0_18, %c2_19, %c0_20, %c0_21] : memref<1x3x128x128xbf16, #tpu.memory_space<vmem>>, vector<1x1x128x128xbf16>
    %14 = vector.shape_cast %13 : vector<1x1x128x128xbf16> to vector<128x128xbf16>
    %cst_22 = arith.constant dense<0.000000e+00> : vector<16x128xf32>
    %15 = tpu.matmul %12, %14, %cst_22 {dimension_numbers = #tpu.dot_dimension_numbers<[1], [0], [0], [1], [0, 0, 1, 1], [], []>} : vector<16x128xbf16>, vector<128x128xbf16>, vector<16x128xf32> -> vector<16x128xf32>
    %16 = arith.addf %10, %15 : vector<16x128xf32>
    %c0_23 = arith.constant 0 : index
    %c0_24 = arith.constant 0 : index
    %c0_25 = arith.constant 0 : index
    %17 = vector.load %arg4[%c0_23, %c0_24, %c0_25] : memref<1x1x128xf32, #tpu.memory_space<vmem>>, vector<1x1x128xf32>
    %18 = vector.shape_cast %17 : vector<1x1x128xf32> to vector<1x128xf32>
    %19 = vector.broadcast %18 : vector<1x128xf32> to vector<16x128xf32>
    %20 = arith.addf %16, %19 : vector<16x128xf32>
    %cst_26 = arith.constant 0.000000e+00 : f32
    %21 = vector.broadcast %cst_26 : f32 to vector<16x128xf32>
    %22 = arith.maximumf %20, %21 : vector<16x128xf32>
    %23 = arith.truncf %22 : vector<16x128xf32> to vector<16x128xbf16>
    %c0_27 = arith.constant 0 : index
    %c0_28 = arith.constant 0 : index
    %c0_29 = arith.constant 0 : index
    %c0_30 = arith.constant 0 : index
    %24 = vector.load %arg5[%c0_27, %c0_28, %c0_29, %c0_30] : memref<1x1x16x128xbf16, #tpu.memory_space<vmem>>, vector<1x1x16x128xbf16>
    %25 = vector.shape_cast %24 : vector<1x1x16x128xbf16> to vector<16x128xbf16>
    %26 = vector.shape_cast %23 : vector<16x128xbf16> to vector<1x1x16x128xbf16>
    tpu.vector_store %arg5[%c0_27, %c0_28, %c0_29, %c0_30], %26 {strides = array<i32>} : memref<1x1x16x128xbf16, #tpu.memory_space<vmem>>, vector<1x1x16x128xbf16>,
    return
  }
  func.func @transform_0(%arg0: i32, %arg1: i32) -> (i32, i32, i32, i32) {
    %c0_i32 = arith.constant 0 : i32
    %c0_i32_0 = arith.constant 0 : i32
    %c0_i32_1 = arith.constant 0 : i32
    return %arg0, %arg1, %c0_i32, %c0_i32_0 : i32, i32, i32, i32
  }
  func.func @transform_1(%arg0: i32, %arg1: i32) -> (i32, i32, i32, i32) {
    %c0_i32 = arith.constant 0 : i32
    %c0_i32_0 = arith.constant 0 : i32
    %c0_i32_1 = arith.constant 0 : i32
    %c0_i32_2 = arith.constant 0 : i32
    return %arg0, %c0_i32, %c0_i32_0, %c0_i32_1 : i32, i32, i32, i32
  }
  func.func @transform_2(%arg0: i32, %arg1: i32) -> (i32, i32, i32) {
    %c0_i32 = arith.constant 0 : i32
    %c0_i32_0 = arith.constant 0 : i32
    %c0_i32_1 = arith.constant 0 : i32
    return %arg0, %c0_i32, %c0_i32_0 : i32, i32, i32
  }
  func.func @transform_3(%arg0: i32, %arg1: i32) -> (i32, i32, i32, i32) {
    %c0_i32 = arith.constant 0 : i32
    %c0_i32_0 = arith.constant 0 : i32
    %c0_i32_1 = arith.constant 0 : i32
    return %arg0, %arg1, %c0_i32, %c0_i32_0 : i32, i32, i32, i32
  }
}

module attributes {stable_mosaic.version = 11 : i64} {
  func.func @_conv_kernel(%arg0: i32, %arg1: i32, %arg2: memref<1x1x18x128xbf16, #tpu.memory_space<vmem>>, %arg3: memref<1x3x128x256xbf16, #tpu.memory_space<vmem>>, %arg4: memref<1x1x256xf32, #tpu.memory_space<vmem>>, %arg5: memref<1x1x16x256xbf16, #tpu.memory_space<vmem>>) attributes {dimension_semantics = [#tpu.dimension_semantics<parallel>, #tpu.dimension_semantics<parallel>], iteration_bounds = array<i64: 2, 2>, scalar_prefetch = 0 : i64, scratch_operands = 0 : i64, tpu.core_type = #tpu.core_type<tc>, window_params = [{transform_indices = @transform_0, window_bounds = array<i64: 1, 1, 18, 128>}, {transform_indices = @transform_1, window_bounds = array<i64: 1, 3, 128, 256>}, {transform_indices = @transform_2, window_bounds = array<i64: 1, 1, 256>}, {transform_indices = @transform_3, window_bounds = array<i64: 1, 1, 16, 256>}]} {
    %c0 = arith.constant 0 : index
    %c0_0 = arith.constant 0 : index
    %c0_1 = arith.constant 0 : index
    %c0_2 = arith.constant 0 : index
    %0 = vector.load %arg2[%c0, %c0_0, %c0_1, %c0_2] : memref<1x1x18x128xbf16, #tpu.memory_space<vmem>>, vector<1x1x16x128xbf16>
    %1 = vector.shape_cast %0 : vector<1x1x16x128xbf16> to vector<16x128xbf16>
    %c0_3 = arith.constant 0 : index
    %c0_4 = arith.constant 0 : index
    %c0_5 = arith.constant 0 : index
    %c0_6 = arith.constant 0 : index
    %2 = vector.load %arg3[%c0_3, %c0_4, %c0_5, %c0_6] : memref<1x3x128x256xbf16, #tpu.memory_space<vmem>>, vector<1x1x128x256xbf16>
    %3 = vector.shape_cast %2 : vector<1x1x128x256xbf16> to vector<128x256xbf16>
    %cst = arith.constant dense<0.000000e+00> : vector<16x256xf32>
    %4 = tpu.matmul %1, %3, %cst {dimension_numbers = #tpu.dot_dimension_numbers<[1], [0], [0], [1], [0, 0, 1, 1], [], []>} : vector<16x128xbf16>, vector<128x256xbf16>, vector<16x256xf32> -> vector<16x256xf32>
    %c0_7 = arith.constant 0 : index
    %c0_8 = arith.constant 0 : index
    %c1 = arith.constant 1 : index
    %c0_9 = arith.constant 0 : index
    %5 = vector.load %arg2[%c0_7, %c0_8, %c1, %c0_9] : memref<1x1x18x128xbf16, #tpu.memory_space<vmem>>, vector<1x1x16x128xbf16>
    %6 = vector.shape_cast %5 : vector<1x1x16x128xbf16> to vector<16x128xbf16>
    %c0_10 = arith.constant 0 : index
    %c1_11 = arith.constant 1 : index
    %c0_12 = arith.constant 0 : index
    %c0_13 = arith.constant 0 : index
    %7 = vector.load %arg3[%c0_10, %c1_11, %c0_12, %c0_13] : memref<1x3x128x256xbf16, #tpu.memory_space<vmem>>, vector<1x1x128x256xbf16>
    %8 = vector.shape_cast %7 : vector<1x1x128x256xbf16> to vector<128x256xbf16>
    %cst_14 = arith.constant dense<0.000000e+00> : vector<16x256xf32>
    %9 = tpu.matmul %6, %8, %cst_14 {dimension_numbers = #tpu.dot_dimension_numbers<[1], [0], [0], [1], [0, 0, 1, 1], [], []>} : vector<16x128xbf16>, vector<128x256xbf16>, vector<16x256xf32> -> vector<16x256xf32>
    %10 = arith.addf %4, %9 : vector<16x256xf32>
    %c0_15 = arith.constant 0 : index
    %c0_16 = arith.constant 0 : index
    %c2 = arith.constant 2 : index
    %c0_17 = arith.constant 0 : index
    %11 = vector.load %arg2[%c0_15, %c0_16, %c2, %c0_17] : memref<1x1x18x128xbf16, #tpu.memory_space<vmem>>, vector<1x1x16x128xbf16>
    %12 = vector.shape_cast %11 : vector<1x1x16x128xbf16> to vector<16x128xbf16>
    %c0_18 = arith.constant 0 : index
    %c2_19 = arith.constant 2 : index
    %c0_20 = arith.constant 0 : index
    %c0_21 = arith.constant 0 : index
    %13 = vector.load %arg3[%c0_18, %c2_19, %c0_20, %c0_21] : memref<1x3x128x256xbf16, #tpu.memory_space<vmem>>, vector<1x1x128x256xbf16>
    %14 = vector.shape_cast %13 : vector<1x1x128x256xbf16> to vector<128x256xbf16>
    %cst_22 = arith.constant dense<0.000000e+00> : vector<16x256xf32>
    %15 = tpu.matmul %12, %14, %cst_22 {dimension_numbers = #tpu.dot_dimension_numbers<[1], [0], [0], [1], [0, 0, 1, 1], [], []>} : vector<16x128xbf16>, vector<128x256xbf16>, vector<16x256xf32> -> vector<16x256xf32>
    %16 = arith.addf %10, %15 : vector<16x256xf32>
    %c0_23 = arith.constant 0 : index
    %c0_24 = arith.constant 0 : index
    %c0_25 = arith.constant 0 : index
    %17 = vector.load %arg4[%c0_23, %c0_24, %c0_25] : memref<1x1x256xf32, #tpu.memory_space<vmem>>, vector<1x1x256xf32>
    %18 = vector.shape_cast %17 : vector<1x1x256xf32> to vector<1x256xf32>
    %19 = vector.broadcast %18 : vector<1x256xf32> to vector<16x256xf32>
    %20 = arith.addf %16, %19 : vector<16x256xf32>
    %21 = arith.truncf %20 : vector<16x256xf32> to vector<16x256xbf16>
    %c0_26 = arith.constant 0 : index
    %c0_27 = arith.constant 0 : index
    %c0_28 = arith.constant 0 : index
    %c0_29 = arith.constant 0 : index
    %22 = vector.load %arg5[%c0_26, %c0_27, %c0_28, %c0_29] : memref<1x1x16x256xbf16, #tpu.memory_space<vmem>>, vector<1x1x16x256xbf16>
    %23 = vector.shape_cast %22 : vector<1x1x16x256xbf16> to vector<16x256xbf16>
    %24 = vector.shape_cast %21 : vector<16x256xbf16> to vector<1x1x16x256xbf16>
    tpu.vector_store %arg5[%c0_26, %c0_27, %c0_28, %c0_29], %24 {strides = array<i32>} : memref<1x1x16x256xbf16, #tpu.memory_space<vmem>>, vector<1x1x16x256xbf16>,
    return
  }
  func.func @transform_0(%arg0: i32, %arg1: i32) -> (i32, i32, i32, i32) {
    %c0_i32 = arith.constant 0 : i32
    %c0_i32_0 = arith.constant 0 : i32
    %c0_i32_1 = arith.constant 0 : i32
    return %arg0, %arg1, %c0_i32, %c0_i32_0 : i32, i32, i32, i32
  }
  func.func @transform_1(%arg0: i32, %arg1: i32) -> (i32, i32, i32, i32) {
    %c0_i32 = arith.constant 0 : i32
    %c0_i32_0 = arith.constant 0 : i32
    %c0_i32_1 = arith.constant 0 : i32
    %c0_i32_2 = arith.constant 0 : i32
    return %arg0, %c0_i32, %c0_i32_0, %c0_i32_1 : i32, i32, i32, i32
  }
  func.func @transform_2(%arg0: i32, %arg1: i32) -> (i32, i32, i32) {
    %c0_i32 = arith.constant 0 : i32
    %c0_i32_0 = arith.constant 0 : i32
    %c0_i32_1 = arith.constant 0 : i32
    return %arg0, %c0_i32, %c0_i32_0 : i32, i32, i32
  }
  func.func @transform_3(%arg0: i32, %arg1: i32) -> (i32, i32, i32, i32) {
    %c0_i32 = arith.constant 0 : i32
    %c0_i32_0 = arith.constant 0 : i32
    %c0_i32_1 = arith.constant 0 : i32
    return %arg0, %arg1, %c0_i32, %c0_i32_0 : i32, i32, i32, i32
  }
}

</mosaic_0001>

<bundles_post_ra>
// kernel: dual_human_vqvae_forward.20
= control target key start
LH: loop header
LB: loop body
LE: loop exit
PB: predicated region body
PF: predicated region fallthrough
CT: control target
= control target key end

     0   :  { %s1569_s0 = inlined_call_operand.vmem [shape: bf16[2,2,14,128], index: 0, kind: input, shape index: {}]   ;;  %s1570_s1 = inlined_call_operand.hbm [shape: bf16[2,3,128,128], index: 1, kind: input, shape index: {}]   ;;  %s1571_s2 = inlined_call_operand.vmem [shape: f32[2,1,128], index: 2, kind: input, shape index: {}]   ;;  %s1572_s3 = inlined_call_operand.hbm [shape: bf16[2,1,128,128], index: 3, kind: input, shape index: {}]   ;;  %s1573_s4 = inlined_call_operand.vmem [shape: f32[2,1,128], index: 4, kind: input, shape index: {}]   ;;  %s1574_s5 = inlined_call_operand.vmem [shape: bf16[2,2,8,128], index: 5, kind: output, shape index: {}]  }
   0x1   :  { %1576 = sst [smem:[#allocation10_spill]] %s1570_s1 }
   0x2   :  { %10 = vsyncpa [#allocation3], 0 }
   0x3   :  { %12 = vsyncpa [#allocation3 + $0x1], 0 }
   0x4   :  { %13 = vsyncpa [#allocation5], 0 }
   0x5   :  { %15 = vsyncpa [#allocation5 + $0x1], 0  ;;  %s1364_s18 = smov 0   ;;  %s1366_s19 = smov 0  }
   0x6   :  { %s1368_s20 = smov 0   ;;  %s1370_s21 = smov 0  }
   0x7   :  { %s1372_s22 = smov 0   ;;  %s1374_s23 = smov 0  }
   0x8   :  { %s1376_s24 = smov 0   ;;  %s1378_s25 = smov 0  }
   0x9 LB: > { %s907_s26 = sadd.s32 4294967295, %s1330_s25   ;;  %s30_s27 = sadd.s32 1, %s1322_s23  ;;  %s1330_s25 = sphi %s1378_s25, %s21_s25   ;;  %s1326_s24 = sphi %s1376_s24, %s1590_s24   ;;  %s1322_s23 = sphi %s1374_s23, %s1589_s23   ;;  %s1318_s22 = sphi %s1372_s22, %s1588_s22   ;;  %s1314_s21 = sphi %s1370_s21, %s1587_s21   ;;  %s1310_s20 = sphi %s1368_s20, %s1586_s20   ;;  %s1306_s19 = sphi %s1366_s19, %s1585_s19   ;;  %s1302_s18 = sphi %s1364_s18, %s1584_s18  }
   0xa   : > { %p31_p0 = scmp.ge.s32.totalorder %s30_s27, 2  ;;  %s33_s28 = sadd.s32 1, %s1326_s24 }
   0xb   : > { %s68_s29 = sadd.s32 1, %s1310_s20  ;;  %p75_p1 = scmp.ne.s32.totalorder %s1310_s20, %s1306_s19 }
   0xc   : > { %s1592_s27 = smov (%p31_p0, %s30_s27), 0  ;;  %s1594_s28 = smov (!%p31_p0, %s33_s28), %s1326_s24 }
   0xd   : > { %1577 = sst [smem:[#allocation8_spill]] %s1592_s27  ;;  %p76_p2 = scmp.eq.s32.totalorder %s1330_s25, 0 }
   0xe   : > { %p81_p3 = scmp.ne.s32.totalorder %s1306_s19, %s1302_s18  ;;  %p35_p4 = scmp.ge.s32.totalorder %s1594_s28, 2 }
   0xf   : > { %p82_p5 = scmp.eq.s32.totalorder %s907_s26, 0  ;;  %p77_p6 = por %p76_p2, %p75_p1 }
  0x10   : > { %s1596_s28 = smov (%p35_p4, %s1594_s28), 0  ;;  %p1131_p8 = scmp.lt.s32.totalorder %s1330_s25, 4 }
  0x11   : > { %1578 = sst [smem:[#allocation9_spill]] %s1596_s28  ;;  %p1415_p7 = por %p82_p5, %p81_p3 }
  0x12   : > { %s65_s6 = ssub.s32 %s1326_s24, %s1596_s28  ;;  %s1423_s7 = sand.u32 1, %s1310_s20  }
  0x13   : > { %p66_p9 = scmp.eq.s32.totalorder %s65_s6, 0  ;;  %s1117_s8 = smul.u32 192, %s1423_s7 }
  0x14   : > { %p1426_p10 = pnand %p1131_p8, %p77_p6  ;;  %s1118_s11 = smul.u32 192, %s1326_s24 }
  0x15   : > { %s1431_s10 = scalar_select %p66_p9, %s1310_s20, %s68_s29  }
  0x16   : > { %s227_s12 = scalar_lea.vmem [#allocation2], %s1117_s8  ;;  %s1581_s1 = sld [smem:[#allocation10_spill]] }
  0x17   : > { %s235_s13 = sshll.u32 %s227_s12, 4  ;;  %s224_s18 = scalar_lea.sflag [#allocation3], %s1423_s7  ;;  %s236_s13 = int_to_ptr.vmem [resolvable:$true] %s235_s13 }
  0x18   : > { %s1332_s26 = smov 64   ;;  %s1333_s6 = smov 4  }
  0x19   : > { %p915_p11 = scmp.ge.s32.totalorder %s1330_s25, 1  ;;  %p277_p12 = scmp.lt.s32.totalorder %s1330_s25, 5 }
  0x1a   : > { %s912_s29 = sshll.u32 %s1423_s7, 6  ;;  %s1084_s8 = sshll.u32 %s1326_s24, 6 }
  0x1b   : > { %p278_p13 = pnand %p915_p11, %p277_p12  ;;  %s255_s12 = scalar_lea.vmem [#allocation4], %s912_s29 }
  0x1c   : > { %s232_s16 = scalar_lea.hbm %s1581_s1, %s1118_s11  ;;  %s263_s28 = sshll.u32 %s255_s12, 4  ;;  %s264_s28 = int_to_ptr.vmem [resolvable:$true] %s263_s28 }
  0x1d   : > { %s233_s17 = sshll.u32 %s232_s16, 4  ;;  %s260_s11 = scalar_lea.hbm %s1572_s3, %s1084_s8  ;;  %s234_s17 = int_to_ptr.hbm [resolvable:$true] %s233_s17 }
  0x1e   : > { %1127 = dma.hbm_to_vmem [thread:$0]  (!%p1426_p10), %s234_s17, 3072, %s236_s13, %s224_s18, %s1332_s26, %s1332_s26, %s1333_s6  }
  0x1f   : > { %s261_s15 = sshll.u32 %s260_s11, 4  ;;  %s252_s16 = scalar_lea.sflag [#allocation5], %s1423_s7  ;;  %s262_s15 = int_to_ptr.hbm [resolvable:$true] %s261_s15 }
  0x20   : > { %1130 = dma.hbm_to_vmem [thread:$0]  (!%p1426_p10), %s262_s15, 1024, %s264_s28, %s252_s16, %s1332_s26, %s1332_s26, %s1333_s6  }
  0x21   : > { %281 = sbr.rel (%p278_p13) target bundleno = 366 (0x16e), region = 40  ;;  %s283_s13 = sand.u32 (!%p278_p13), 1, %s1306_s19  }
  0x22   : > { %s1119_s17 = smul.u32 (!%p278_p13), 192, %s283_s13  ;;  %s284_s18 = scalar_lea.sflag (!%p278_p13), [#allocation3], %s283_s13 }
  0x24   : > { %s1451_s1 = scalar_lea.vmem (!%p278_p13), [#allocation2], %s1119_s17 }
  0x26   : > { %1293 = dma.done.wait (%p1415_p7), %s284_s18, 3072  }
  0x27   : > { %1295 = vsyncadd (%p1415_p7), %s284_s18, 4294964224  ;;  %s916_s27 = sshll.u32 %s283_s13, 6  ;;  %s294_s29 = scalar_lea.sflag [#allocation5], %s283_s13 }
  0x28   : > { %s1457_s8 = scalar_lea.vmem [#allocation4], %s916_s27 }
  0x29   : > { %1297 = dma.done.wait (%p1415_p7), %s294_s29, 1024  }
  0x2a   : > { %1299 = vsyncadd (%p1415_p7), %s294_s29, 4294966272  ;;  %p348_p0 = scmp.lt.s32.totalorder %s1318_s22, 1  ;;  %p350_p1 = scmp.lt.s32.totalorder %s1314_s21, 1  ;;  %v1100_v0 = vld [vmem:[%s1451_s1 + $0x78] sm:$0xff]  ;;  %v1099_v3 = vld [vmem:[%s1451_s1 + $0x70] sm:$0xff] }
  0x2b   : > { %v1092_v1 = vld [vmem:[%s1451_s1 + $0x38] sm:$0xff]  ;;  %472 = vmatpush.bf16.msra.mxu0 %v1100_v0  ;;  %v1091_v4 = vld [vmem:[%s1451_s1 + $0x30] sm:$0xff]  ;;  %v1098_v6 = vld [vmem:[%s1451_s1 + $0x68] sm:$0xff]  ;;  %vm730_vm0 = vsmask.f32 2304 }
  0x2c   : > { %s1598_s22 = smov (!%p348_p0, %s1318_s22), 1  ;;  %s1600_s21 = smov (!%p350_p1, %s1314_s21), 1  ;;  %v1108_v2 = vld [vmem:[%s1451_s1 + $0xb8] sm:$0xff]  ;;  %533 = vmatpush.bf16.msra.mxu1 %v1092_v1  ;;  %v1107_v5 = vld [vmem:[%s1451_s1 + $0xb0] sm:$0xff]  ;;  %v1090_v7 = vld [vmem:[%s1451_s1 + $0x28] sm:$0xff] }
  0x2d   : > { %s918_s28 = sshll.u32 %s1598_s22, 2  ;;  %s917_s30 = sshll.u32 %s1600_s21, 1  ;;  %621 = vmatpush.bf16.msra.mxu2 %v1108_v2  ;;  %v1106_v8 = vld [vmem:[%s1451_s1 + $0xa8] sm:$0xff]  ;;  %v1116_v13 = vld [vmem:[%s1457_s8 + $0x38] sm:$0xff]  ;;  %v1097_v14 = vld [vmem:[%s1451_s1 + $0x60] sm:$0xff] }
  0x2e   : > { %s354_s7 = sadd.s32 %s918_s28, %s917_s30  ;;  %v1089_v15 = vld [vmem:[%s1451_s1 + $0x20] sm:$0xff]  ;;  %710 = vmatpush.bf16.msra.mxu3 %v1116_v13  ;;  %v1115_v17 = vld [vmem:[%s1457_s8 + $0x30] sm:$0xff]  ;;  %v1096_v20 = vld [vmem:[%s1451_s1 + $0x58] sm:$0xff]  ;;  %s359_s15 = scalar_lea.vmem %s1571_s2, %s1598_s22  ;;  %vm731_vm1 = vsmask.f32 6416 }
  0x2f   : > { %s919_s9 = sshll.u32 %s354_s7, 2  ;;  %473 = vmatpush.bf16.msra.mxu0 %v1099_v3  ;;  %v1105_v16 = vld [vmem:[%s1451_s1 + $0xa0] sm:$0xff]  ;;  %v1088_v21 = vld [vmem:[%s1451_s1 + $0x18] sm:$0xff]  ;;  %v1114_v25 = vld [vmem:[%s1457_s8 + $0x28] sm:$0xff]  ;;  %s920_s17 = sshll.u32 %s1598_s22, 1 }
  0x30   : > { %s1482_s12 = scalar_lea.vmem %s1569_s0, %s919_s9  ;;  %534 = vmatpush.bf16.msra.mxu1 %v1091_v4  ;;  %v1104_v22 = vld [vmem:[%s1451_s1 + $0x98] sm:$0xff]  ;;  %v1095_v27 = vld [vmem:[%s1451_s1 + $0x50] sm:$0xff]  ;;  %v1113_v33 = vld [vmem:[%s1457_s8 + $0x20] sm:$0xff]  ;;  %s1531_s18 = sadd.s32 %s920_s17, %s1600_s21 }
  0x31   : > { %622 = vmatpush.bf16.msra.mxu2 %v1107_v5  ;;  %v1488_v9 = vld [vmem:[%s1482_s12] sm:$0xe]  ;;  %v1491_v10 = vld [vmem:[%s1482_s12 + $0x4] sm:$0x3]  ;;  %v1087_v28 = vld [vmem:[%s1451_s1 + $0x10] sm:$0xff]  ;;  %s921_s21 = sshll.u32 %s1531_s18, 2 }
  0x32   : > { %v393_v11 = vunpack.c.l.bf16 %v1488_v9  ;;  %v394_v12 = vunpack.c.l.bf16 %v1491_v10  ;;  %v546_v23 = vld [vmem:[%s1482_s12] sm:$0x8]  ;;  %v547_v24 = vld [vmem:[%s1482_s12 + $0x4] sm:$0x7]  ;;  %711 = vmatpush.bf16.msra.mxu3 %v1115_v17  ;;  %v1103_v32 = vld [vmem:[%s1451_s1 + $0x90] sm:$0xff]  ;;  %s370_s29 = scalar_lea.vmem %s1574_s5, %s921_s21 }
  0x33   : > { %474 = vmatpush.bf16.msra.mxu0 %v1098_v6  ;;  %v371_v29 = vld [vmem:[%s1482_s12] sm:$0xf]  ;;  %v548_v30 = vunpack.c.l.bf16 %v546_v23  ;;  %v549_v31 = vunpack.c.l.bf16 %v547_v24  ;;  %v1094_v37 = vld [vmem:[%s1451_s1 + $0x48] sm:$0xff]  ;;  %v1112_v52 = vld [vmem:[%s1457_s8 + $0x18] sm:$0xff] }
  0x34   : > { %535 = vmatpush.bf16.msra.mxu1 %v1090_v7  ;;  %v395_v18 = vmax.f32 %v393_v11, 0.0  ;;  %v396_v19 = vmax.f32 %v394_v12, 0.0  ;;  %v372_v36 = vunpack.c.l.bf16 %v371_v29  ;;  %v1086_v38 = vld [vmem:[%s1451_s1 + $0x8] sm:$0xff]  ;;  %v1093_v45 = vld [vmem:[%s1451_s1 + $0x40] sm:$0xff]  ;;  %v1111_v53 = vld [vmem:[%s1457_s8 + $0x10] sm:$0xff] }
  0x35   : > { %623 = vmatpush.bf16.msra.mxu2 %v1106_v8  ;;  %v550_v39 = vmax.f32 %v548_v30, 0.0  ;;  %v551_v40 = vmax.f32 %v549_v31, 0.0  ;;  %v1102_v41 = vld [vmem:[%s1451_s1 + $0x88] sm:$0xff]  ;;  %v1085_v46 = vld [vmem:[%s1451_s1] sm:$0xff]  ;;  %vm732_vm2 = vmor %vm730_vm0, %vm731_vm1 }
  0x36   : > { %v397_v26 = vpack.c.bf16 %v396_v19, %v395_v18  ;;  %712 = vmatpush.bf16.msra.mxu3 %v1114_v25  ;;  %v373_v44 = vmax.f32 %v372_v36, 0.0  ;;  %v1101_v48 = vld [vmem:[%s1451_s1 + $0x80] sm:$0xff]  ;;  %s362_s1 = scalar_lea.vmem %s1573_s4, %s1598_s22  ;;  %v1110_v54 = vld [vmem:[%s1457_s8 + $0x8] sm:$0xff] }
  0x37   : > { %475 = vmatpush.bf16.msra.mxu0 %v1097_v14  ;;  %v552_v47 = vpack.c.bf16 %v551_v40, %v550_v39  ;;  %v1109_v55 = vld [vmem:[%s1457_s8] sm:$0xff] }
  0x38   : > { %536 = vmatpush.bf16.msra.mxu1 %v1089_v15  ;;  %v416_v34 = vshrl.u32 %v397_v26, 16  ;;  %v419_v35 = vshll.u32 %v397_v26, 16  ;;  %v374_v50 = vpack.c.bf16 %v373_v44, %v373_v44  ;;  %v1198_v59 = vld [vmem:[%s359_s15] ss:$0 sm:$0xff] }
  0x39   : > { %624 = vmatpush.bf16.msra.mxu2 %v1105_v16  ;;  %v571_v51 = vrot.slane %v552_v47, 3  ;;  %v1199_v4 = vld [vmem:[%s362_s1] ss:$0 sm:$0xff] }
  0x3a   : > { %713 = vmatpush.bf16.msra.mxu3 %v1113_v33  ;;  %v418_v42 = vrot.slane %v416_v34, 1  ;;  %v421_v43 = vrot.slane %v419_v35, 2 }
  0x3b   : > { %476 = vmatpush.bf16.msra.mxu0 %v1096_v20 }
  0x3c   : > { %537 = vmatpush.bf16.msra.mxu1 %v1088_v21  ;;  %v422_v49 = vor.u32 %v421_v43, %v418_v42 }
  0x3d   : > { %625 = vmatpush.bf16.msra.mxu2 %v1104_v22 }
  0x3e   : > { %714 = vmatpush.bf16.msra.mxu3 %v1112_v52 }
  0x3f   : > { %477 = vmatpush.bf16.msra.mxu0 %v1095_v27 }
  0x40   : > { %538 = vmatpush.bf16.msra.mxu1 %v1087_v28 }
  0x41   : > { %626 = vmatpush.bf16.msra.mxu2 %v1103_v32 }
  0x42   : > { %715 = vmatpush.bf16.msra.mxu3 %v1111_v53 }
  0x43   : > { %478 = vmatpush.bf16.msra.mxu0 %v1094_v37 }
  0x44   : > { %539 = vmatpush.bf16.msra.mxu1 %v1086_v38 }
  0x45   : > { %627 = vmatpush.bf16.msra.mxu2 %v1102_v41 }
  0x46   : > { %716 = vmatpush.bf16.msra.mxu3 %v1110_v54 }
  0x47   : > { %479 = vmatpush.bf16.msra.mxu0 %v1093_v45 }
  0x48   : > { %540 = vmatpush.bf16.msra.mxu1 %v1085_v46 }
  0x49   : > { %628 = vmatpush.bf16.msra.mxu2 %v1101_v48 }
  0x4a   : > { %480 = vmatmul.bf16.vlgmr.msra.gmra.mxu0 %v422_v49  ;;  %717 = vmatpush.bf16.msra.mxu3 %v1109_v55 }
  0x4b   : > { %541 = vmatmul.bf16.vlgmr.msra.gmra.mxu1 %v374_v50 }
  0x4c   : > { %629 = vmatmul.bf16.vlgmr.msra.gmra.mxu2 %v571_v51 }
  0xc7   : > { %v481_v56 = vpop.f32.mrf.mxu0 }
  0xc8   : > { %v542_v57 = vpop.f32.mrf.mxu1 }
  0xc9   : > { %v543_v58 = vadd.f32 %v542_v57, %v481_v56 }
  0xcf   : > { %v630_v60 = vpop.f32.mrf.mxu2  ;;  %v483_v62 = vpop.f32.mrf.mxu0 }
  0xd0   : > { %v634_v61 = vadd.f32 %v630_v60, %v543_v58  ;;  %v544_v63 = vpop.f32.mrf.mxu1 }
  0xd2   : > { %v639_v0 = vadd.f32 %v1198_v59, %v634_v61 }
  0xd4   : > { %v640_v1 = vmax.f32 %v639_v0, 0.0 }
  0xd6   : > { %v641_v2 = vpack.c.bf16 %v640_v1, %v640_v1 }
  0xd7   : > { %v632_v3 = vpop.f32.mrf.mxu2 }
  0xd8   : > { %718 = vmatmul.bf16.vlgmr.msra.gmra.mxu3 %v641_v2 }
 0x15b   : > { %v719_v5 = vpop.f32.mrf.mxu3 }
 0x15c   : > { %v720_v6 = vadd.f32 %v1199_v4, %v719_v5 }
 0x15e   : > { %v724_v7 = vrot.slane %v720_v6, 5 }
 0x160   : > { %v726_v8 = vadd.f32 %v724_v7, %v393_v11  ;;  %v727_v13 = vadd.f32 %v724_v7, %v394_v12 }
 0x162   : > { %v728_v14 = vpack.c.bf16 %v726_v8, %v726_v8  ;;  %v729_v15 = vpack.c.bf16 %v727_v13, %v727_v13 }
 0x163   : > { %v721_v16 = vpop.f32.mrf.mxu3 }
 0x164   : > { %v734_v17 = vshrl.u32 %v728_v14, 16  ;;  %v737_v18 = vshll.u32 %v728_v14, 16  ;;  %v743_v19 = vshrl.u32 %v729_v15, 16  ;;  %v746_v20 = vshll.u32 %v729_v15, 16 }
 0x166   : > { %v736_v21 = vrot.slane %v734_v17, 5  ;;  %v739_v22 = vrot.slane %v737_v18, 6  ;;  %v745_v23 = vrot.slane %v743_v19, 5  ;;  %v748_v24 = vrot.slane %v746_v20, 6 }
 0x168   : > { %v740_v9 = vor.u32 %v739_v22, %v736_v21  ;;  %v749_v11 = vor.u32 %v748_v24, %v745_v23 }
 0x16a   : > { %v741_v10 = vrot.slane %v740_v9, 4 }
 0x16c   : > { %v750_v12 = vsel %vm732_vm2, %v741_v10, %v749_v11 }
 0x16d   : > { %752 = vst [vmem:[%s370_s29] sm:$0xf] %v750_v12 }
 0x16e PF: > { %s21_s25 = sadd.s32 1, %s1330_s25   ;;  %s1582_s8 = sld [smem:[#allocation8_spill]] }
 0x16f   : > { %p18_p2 = scmp.ge.s32.totalorder %s21_s25, 6   ;;  %s1583_s28 = sld [smem:[#allocation9_spill]] }
 0x170   : > { %s1584_s18 = smov %s1306_s19  ;;  %s1585_s19 = smov %s1310_s20 }
 0x171   : > { %s1586_s20 = smov %s1431_s10  ;;  %s1587_s21 = smov %s1322_s23 }
 0x172   : > { %s1588_s22 = smov %s1326_s24  ;;  %20 = sbr.rel (!%p18_p2) target bundleno = 9 (0x9), region = 104 }
 0x174   : > { %s1589_s23 = smov %s1582_s8 }
 0x175   : > { %s1590_s24 = smov %s1583_s28 }
 0x177   :  { %780 = vsyncpa [#allocation3], 1 }
 0x178   :  { %782 = vsyncpa [#allocation3 + $0x1], 1 }
 0x179   :  { %783 = vsyncpa [#allocation5], 1 }
 0x17a   :  { %785 = vsyncpa [#allocation5 + $0x1], 1 }

// kernel: dual_human_vqvae_forward.19
= control target key start
LH: loop header
LB: loop body
LE: loop exit
PB: predicated region body
PF: predicated region fallthrough
CT: control target
= control target key end

     0   :  { %8 = vsyncpa [#allocation3], 0  ;;  %s1293_s0 = inlined_call_operand.vmem [shape: bf16[2,2,9,256], index: 0, kind: input, shape index: {}]   ;;  %s1294_s1 = inlined_call_operand.hbm [shape: bf16[2,2,256,128], index: 1, kind: input, shape index: {}]   ;;  %s1295_s2 = inlined_call_operand.vmem [shape: f32[2,1,128], index: 2, kind: input, shape index: {}]   ;;  %s1296_s3 = inlined_call_operand.vmem [shape: bf16[2,2,8,128], index: 3, kind: output, shape index: {}]  }
   0x1   :  { %10 = vsyncpa [#allocation3 + $0x1], 0  ;;  %s1132_s12 = smov 0   ;;  %s1134_s13 = smov 0  }
   0x2   :  { %s1136_s14 = smov 0   ;;  %s1138_s15 = smov 0  }
   0x3   :  { %s1140_s16 = smov 0   ;;  %s1142_s17 = smov 0  }
   0x4   :  { %s1144_s18 = smov 0   ;;  %s1146_s19 = smov 0  }
   0x5 LB: > { %s729_s20 = sadd.s32 4294967295, %s1108_s19   ;;  %s25_s21 = sadd.s32 1, %s1100_s17  ;;  %s1108_s19 = sphi %s1146_s19, %s16_s19   ;;  %s1104_s18 = sphi %s1144_s18, %s1305_s18   ;;  %s1100_s17 = sphi %s1142_s17, %s1304_s17   ;;  %s1096_s16 = sphi %s1140_s16, %s1303_s16   ;;  %s1092_s15 = sphi %s1138_s15, %s1302_s15   ;;  %s1088_s14 = sphi %s1136_s14, %s1301_s14   ;;  %s1084_s13 = sphi %s1134_s13, %s1300_s13   ;;  %s1080_s12 = sphi %s1132_s12, %s1299_s12  }
   0x6   : > { %p26_p0 = scmp.ge.s32.totalorder %s25_s21, 2  ;;  %s28_s22 = sadd.s32 1, %s1104_s18 }
   0x7   : > { %s63_s23 = sadd.s32 1, %s1088_s14  ;;  %p70_p1 = scmp.ne.s32.totalorder %s1088_s14, %s1084_s13 }
   0x8   : > { %s1307_s21 = smov (%p26_p0, %s25_s21), 0  ;;  %s1309_s22 = smov (!%p26_p0, %s28_s22), %s1104_s18 }
   0x9   : > { %p71_p2 = scmp.eq.s32.totalorder %s1108_s19, 0  ;;  %p76_p3 = scmp.ne.s32.totalorder %s1084_s13, %s1080_s12 }
   0xa   : > { %p30_p4 = scmp.ge.s32.totalorder %s1309_s22, 2  ;;  %p77_p5 = scmp.eq.s32.totalorder %s729_s20, 0 }
   0xb   : > { %p1181_p6 = por %p71_p2, %p70_p1  ;;  %p944_p8 = scmp.lt.s32.totalorder %s1108_s19, 4 }
   0xc   : > { %s1311_s22 = smov (%p30_p4, %s1309_s22), 0  ;;  %p1187_p7 = por %p77_p5, %p76_p3 }
   0xd   : > { %s60_s26 = ssub.s32 %s1104_s18, %s1311_s22  ;;  %s166_s27 = sand.u32 1, %s1088_s14  }
   0xe   : > { %p61_p9 = scmp.eq.s32.totalorder %s60_s26, 0  ;;  %s733_s28 = sshll.u32 %s166_s27, 8 }
   0xf   : > { %s905_s29 = sshll.u32 %s1104_s18, 8  ;;  %s170_s8 = scalar_lea.vmem [#allocation2], %s733_s28 }
  0x10   : > { %s1197_s30 = scalar_select %p61_p9, %s1088_s14, %s63_s23  }
  0x11   : > { %s175_s6 = scalar_lea.hbm %s1294_s1, %s905_s29  ;;  %s178_s9 = sshll.u32 %s170_s8, 4  ;;  %s179_s9 = int_to_ptr.vmem [resolvable:$true] %s178_s9 }
  0x12   : > { %s176_s7 = sshll.u32 %s175_s6, 4  ;;  %p941_p10 = pnand %p944_p8, %p1181_p6  ;;  %s177_s7 = int_to_ptr.hbm [resolvable:$true] %s176_s7 }
  0x13   : > { %p736_p11 = scmp.ge.s32.totalorder %s1108_s19, 1  ;;  %p192_p12 = scmp.lt.s32.totalorder %s1108_s19, 5 }
  0x14   : > { %s167_s10 = scalar_lea.sflag [#allocation3], %s166_s27  ;;  %s1110_s11 = smov 64  }
  0x15   : > { %s1111_s12 = smov 4   ;;  %p193_p13 = pnand %p736_p11, %p192_p12 }
  0x16   : > { %943 = dma.hbm_to_vmem [thread:$0]  (!%p941_p10), %s177_s7, 4096, %s179_s9, %s167_s10, %s1110_s11, %s1110_s11, %s1111_s12  }
  0x17   : > { %196 = sbr.rel (%p193_p13) target bundleno = 204 (0xcc), region = 32  ;;  %s198_s20 = sand.u32 (!%p193_p13), 1, %s1084_s13  }
  0x18   : > { %s737_s23 = sshll.u32 (!%p193_p13), %s198_s20, 8  ;;  %s199_s26 = scalar_lea.sflag (!%p193_p13), [#allocation3], %s198_s20 }
  0x19   : > { %s1209_s28 = scalar_lea.vmem (!%p193_p13), [#allocation2], %s737_s23 }
  0x1c   : > { %1075 = dma.done.wait (%p1187_p7), %s199_s26, 4096  }
  0x1d   : > { %1077 = vsyncadd (%p1187_p7), %s199_s26, 4294963200  ;;  %p241_p0 = scmp.lt.s32.totalorder %s1096_s16, 1  ;;  %p243_p1 = scmp.lt.s32.totalorder %s1092_s15, 1  ;;  %v929_v0 = vld [vmem:[%s1209_s28 + $0xb8] sm:$0xff]  ;;  %v928_v4 = vld [vmem:[%s1209_s28 + $0xb0] sm:$0xff] }
  0x1e   : > { %v937_v1 = vld [vmem:[%s1209_s28 + $0xf8] sm:$0xff]  ;;  %448 = vmatpush.bf16.msra.mxu0 %v929_v0  ;;  %v936_v5 = vld [vmem:[%s1209_s28 + $0xf0] sm:$0xff]  ;;  %v927_v8 = vld [vmem:[%s1209_s28 + $0xa8] sm:$0xff] }
  0x1f   : > { %s1313_s16 = smov (!%p241_p0, %s1096_s16), 1  ;;  %s1315_s15 = smov (!%p243_p1, %s1092_s15), 1  ;;  %v913_v2 = vld [vmem:[%s1209_s28 + $0x38] sm:$0xff]  ;;  %461 = vmatpush.bf16.msra.mxu1 %v937_v1  ;;  %v912_v6 = vld [vmem:[%s1209_s28 + $0x30] sm:$0xff]  ;;  %v935_v9 = vld [vmem:[%s1209_s28 + $0xe8] sm:$0xff] }
  0x20   : > { %s738_s24 = sshll.u32 %s1315_s15, 2  ;;  %s739_s25 = sshll.u32 %s1313_s16, 3  ;;  %v921_v3 = vld [vmem:[%s1209_s28 + $0x78] sm:$0xff]  ;;  %574 = vmatpush.bf16.msra.mxu2 %v913_v2  ;;  %v920_v7 = vld [vmem:[%s1209_s28 + $0x70] sm:$0xff]  ;;  %v911_v10 = vld [vmem:[%s1209_s28 + $0x28] sm:$0xff] }
  0x21   : > { %s247_s27 = sadd.s32 %s739_s25, %s738_s24  ;;  %587 = vmatpush.bf16.msra.mxu3 %v921_v3  ;;  %v919_v11 = vld [vmem:[%s1209_s28 + $0x68] sm:$0xff]  ;;  %v926_v12 = vld [vmem:[%s1209_s28 + $0xa0] sm:$0xff]  ;;  %v925_v22 = vld [vmem:[%s1209_s28 + $0x98] sm:$0xff]  ;;  %s252_s9 = scalar_lea.vmem %s1295_s2, %s1313_s16 }
  0x22   : > { %s740_s29 = sshll.u32 %s247_s27, 2  ;;  %449 = vmatpush.bf16.msra.mxu0 %v928_v4  ;;  %v934_v13 = vld [vmem:[%s1209_s28 + $0xe0] sm:$0xff]  ;;  %v933_v23 = vld [vmem:[%s1209_s28 + $0xd8] sm:$0xff]  ;;  %v924_v28 = vld [vmem:[%s1209_s28 + $0x90] sm:$0xff]  ;;  %s741_s10 = sshll.u32 %s1313_s16, 1 }
  0x23   : > { %462 = vmatpush.bf16.msra.mxu1 %v936_v5  ;;  %s249_s6 = scalar_lea.vmem %s1293_s0, %s740_s29  ;;  %v910_v15 = vld [vmem:[%s1209_s28 + $0x20] sm:$0xff]  ;;  %v909_v24 = vld [vmem:[%s1209_s28 + $0x18] sm:$0xff]  ;;  %v932_v29 = vld [vmem:[%s1209_s28 + $0xd0] sm:$0xff]  ;;  %s258_s11 = sadd.s32 %s741_s10, %s1315_s15 }
  0x24   : > { %575 = vmatpush.bf16.msra.mxu2 %v912_v6  ;;  %v261_v14 = vld [vmem:[%s249_s6] sm:$0xff]  ;;  %v294_v17 = vld [vmem:[%s249_s6 + $0x8] sm:$0x11]  ;;  %v917_v25 = vld [vmem:[%s1209_s28 + $0x58] sm:$0xff]  ;;  %s742_s12 = sshll.u32 %s258_s11, 2 }
  0x25   : > { %588 = vmatpush.bf16.msra.mxu3 %v920_v7  ;;  %v918_v16 = vld [vmem:[%s1209_s28 + $0x60] sm:$0xff]  ;;  %v330_v18 = vunpack.c.l.b16 %v261_v14  ;;  %v332_v19 = vunpack.c.l.b16 %v294_v17  ;;  %v331_v20 = vunpack.c.h.b16 %v261_v14  ;;  %v333_v21 = vunpack.c.h.b16 %v294_v17  ;;  %v908_v30 = vld [vmem:[%s1209_s28 + $0x10] sm:$0xff]  ;;  %v923_v34 = vld [vmem:[%s1209_s28 + $0x88] sm:$0xff]  ;;  %s260_s26 = scalar_lea.vmem %s1296_s3, %s742_s12 }
  0x26   : > { %450 = vmatpush.bf16.msra.mxu0 %v927_v8  ;;  %v916_v31 = vld [vmem:[%s1209_s28 + $0x50] sm:$0xff]  ;;  %v931_v35 = vld [vmem:[%s1209_s28 + $0xc8] sm:$0xff]  ;;  %v922_v42 = vld [vmem:[%s1209_s28 + $0x80] sm:$0xff] }
  0x27   : > { %463 = vmatpush.bf16.msra.mxu1 %v935_v9  ;;  %v334_v26 = vpack.c.b16 %v332_v19, %v330_v18  ;;  %v335_v27 = vpack.c.b16 %v333_v21, %v331_v20  ;;  %v907_v36 = vld [vmem:[%s1209_s28 + $0x8] sm:$0xff]  ;;  %v930_v43 = vld [vmem:[%s1209_s28 + $0xc0] sm:$0xff]  ;;  %v474_v48 = vpack.c.b16 %v330_v18, %v330_v18  ;;  %v475_v49 = vpack.c.b16 %v331_v20, %v331_v20 }
  0x28   : > { %576 = vmatpush.bf16.msra.mxu2 %v911_v10  ;;  %v915_v37 = vld [vmem:[%s1209_s28 + $0x48] sm:$0xff]  ;;  %v906_v44 = vld [vmem:[%s1209_s28] sm:$0xff] }
  0x29   : > { %589 = vmatpush.bf16.msra.mxu3 %v919_v11  ;;  %v339_v32 = vshll.u32 %v334_v26, 16  ;;  %v346_v33 = vshll.u32 %v335_v27, 16  ;;  %v337_v38 = vshrl.u32 %v334_v26, 16  ;;  %v344_v40 = vshrl.u32 %v335_v27, 16  ;;  %v914_v45 = vld [vmem:[%s1209_s28 + $0x40] sm:$0xff] }
  0x2a   : > { %451 = vmatpush.bf16.msra.mxu0 %v926_v12  ;;  %v1011_v56 = vld [vmem:[%s252_s9] ss:$0 sm:$0xff] }
  0x2b   : > { %464 = vmatpush.bf16.msra.mxu1 %v934_v13  ;;  %v341_v39 = vrot.slane %v339_v32, 1  ;;  %v348_v41 = vrot.slane %v346_v33, 1 }
  0x2c   : > { %577 = vmatpush.bf16.msra.mxu2 %v910_v15 }
  0x2d   : > { %590 = vmatpush.bf16.msra.mxu3 %v918_v16  ;;  %v342_v46 = vor.u32 %v341_v39, %v337_v38  ;;  %v349_v47 = vor.u32 %v348_v41, %v344_v40 }
  0x2e   : > { %452 = vmatpush.bf16.msra.mxu0 %v925_v22 }
  0x2f   : > { %465 = vmatpush.bf16.msra.mxu1 %v933_v23 }
  0x30   : > { %578 = vmatpush.bf16.msra.mxu2 %v909_v24 }
  0x31   : > { %591 = vmatpush.bf16.msra.mxu3 %v917_v25 }
  0x32   : > { %453 = vmatpush.bf16.msra.mxu0 %v924_v28 }
  0x33   : > { %466 = vmatpush.bf16.msra.mxu1 %v932_v29 }
  0x34   : > { %579 = vmatpush.bf16.msra.mxu2 %v908_v30 }
  0x35   : > { %592 = vmatpush.bf16.msra.mxu3 %v916_v31 }
  0x36   : > { %454 = vmatpush.bf16.msra.mxu0 %v923_v34 }
  0x37   : > { %467 = vmatpush.bf16.msra.mxu1 %v931_v35 }
  0x38   : > { %580 = vmatpush.bf16.msra.mxu2 %v907_v36 }
  0x39   : > { %593 = vmatpush.bf16.msra.mxu3 %v915_v37 }
  0x3a   : > { %455 = vmatpush.bf16.msra.mxu0 %v922_v42 }
  0x3b   : > { %468 = vmatpush.bf16.msra.mxu1 %v930_v43 }
  0x3c   : > { %581 = vmatpush.bf16.msra.mxu2 %v906_v44 }
  0x3d   : > { %594 = vmatpush.bf16.msra.mxu3 %v914_v45  ;;  %456 = vmatmul.bf16.vlgmr.msra.gmra.mxu0 %v342_v46 }
  0x3e   : > { %469 = vmatmul.bf16.vlgmr.msra.gmra.mxu1 %v349_v47 }
  0x3f   : > { %582 = vmatmul.bf16.vlgmr.msra.gmra.mxu2 %v474_v48 }
  0x40   : > { %595 = vmatmul.bf16.vlgmr.msra.gmra.mxu3 %v475_v49 }
  0xba   : > { %v457_v50 = vpop.f32.mrf.mxu0 }
  0xbb   : > { %v470_v51 = vpop.f32.mrf.mxu1 }
  0xbc   : > { %v471_v52 = vadd.f32 %v470_v51, %v457_v50 }
  0xc2   : > { %v583_v53 = vpop.f32.mrf.mxu2  ;;  %v459_v57 = vpop.f32.mrf.mxu0 }
  0xc3   : > { %v596_v54 = vpop.f32.mrf.mxu3  ;;  %v584_v55 = vadd.f32 %v583_v53, %v471_v52  ;;  %v472_v58 = vpop.f32.mrf.mxu1 }
  0xc5   : > { %v597_v59 = vadd.f32 %v596_v54, %v584_v55 }
  0xc7   : > { %v604_v60 = vadd.f32 %v1011_v56, %v597_v59 }
  0xc9   : > { %v605_v61 = vpack.c.bf16 %v604_v60, %v604_v60 }
  0xca   : > { %v585_v62 = vpop.f32.mrf.mxu2 }
  0xcb   : > { %v598_v63 = vpop.f32.mrf.mxu3  ;;  %606 = vst [vmem:[%s260_s26] sm:$0xf] %v605_v61 }
  0xcc PF: > { %s16_s19 = sadd.s32 1, %s1108_s19   ;;  %s1299_s12 = smov %s1084_s13 }
  0xcd   : > { %p13_p2 = scmp.ge.s32.totalorder %s16_s19, 6   ;;  %s1300_s13 = smov %s1088_s14 }
  0xce   : > { %s1301_s14 = smov %s1197_s30  ;;  %s1302_s15 = smov %s1100_s17 }
  0xcf   : > { %s1303_s16 = smov %s1104_s18  ;;  %s1304_s17 = smov %s1307_s21 }
  0xd0   : > { %s1305_s18 = smov %s1311_s22  ;;  %15 = sbr.rel (!%p13_p2) target bundleno = 5 (0x5), region = 79 }
  0xd5   :  { %634 = vsyncpa [#allocation3], 1 }
  0xd6   :  { %636 = vsyncpa [#allocation3 + $0x1], 1 }

// kernel: dual_human_vqvae_forward.18
= control target key start
LH: loop header
LB: loop body
LE: loop exit
PB: predicated region body
PF: predicated region fallthrough
CT: control target
= control target key end

     0   :  { %8 = vsyncpa [#allocation3], 0  ;;  %s1650_s0 = inlined_call_operand.vmem [shape: bf16[2,2,18,256], index: 0, kind: input, shape index: {}]   ;;  %s1651_s1 = inlined_call_operand.hbm [shape: bf16[2,3,256,128], index: 1, kind: input, shape index: {}]   ;;  %s1652_s2 = inlined_call_operand.vmem [shape: f32[2,1,128], index: 2, kind: input, shape index: {}]   ;;  %s1653_s3 = inlined_call_operand.vmem [shape: bf16[2,2,16,128], index: 3, kind: output, shape index: {}]  }
   0x1   :  { %10 = vsyncpa [#allocation3 + $0x1], 0  ;;  %s1455_s12 = smov 0   ;;  %s1457_s13 = smov 0  }
   0x2   :  { %s1459_s14 = smov 0   ;;  %s1461_s15 = smov 0  }
   0x3   :  { %s1463_s16 = smov 0   ;;  %s1465_s17 = smov 0  }
   0x4   :  { %s1467_s18 = smov 0   ;;  %s1469_s19 = smov 0  }
   0x5 LB: > { %s935_s20 = sadd.s32 4294967295, %s1431_s19   ;;  %s25_s21 = sadd.s32 1, %s1423_s17  ;;  %s1431_s19 = sphi %s1469_s19, %s16_s19   ;;  %s1427_s18 = sphi %s1467_s18, %s1661_s18   ;;  %s1423_s17 = sphi %s1465_s17, %s1660_s17   ;;  %s1419_s16 = sphi %s1463_s16, %s1659_s16   ;;  %s1415_s15 = sphi %s1461_s15, %s1658_s15   ;;  %s1411_s14 = sphi %s1459_s14, %s1657_s14   ;;  %s1407_s13 = sphi %s1457_s13, %s1656_s13   ;;  %s1403_s12 = sphi %s1455_s12, %s1655_s12  }
   0x6   : > { %p26_p0 = scmp.ge.s32.totalorder %s25_s21, 2  ;;  %s28_s22 = sadd.s32 1, %s1427_s18 }
   0x7   : > { %s63_s23 = sadd.s32 1, %s1411_s14  ;;  %p70_p1 = scmp.ne.s32.totalorder %s1411_s14, %s1407_s13 }
   0x8   : > { %s1663_s21 = smov (%p26_p0, %s25_s21), 0  ;;  %s1665_s22 = smov (!%p26_p0, %s28_s22), %s1427_s18 }
   0x9   : > { %p71_p2 = scmp.eq.s32.totalorder %s1431_s19, 0  ;;  %p76_p3 = scmp.ne.s32.totalorder %s1407_s13, %s1403_s12 }
   0xa   : > { %p30_p4 = scmp.ge.s32.totalorder %s1665_s22, 2  ;;  %p77_p5 = scmp.eq.s32.totalorder %s935_s20, 0 }
   0xb   : > { %p72_p6 = por %p71_p2, %p70_p1  ;;  %p1267_p8 = scmp.lt.s32.totalorder %s1431_s19, 4 }
   0xc   : > { %s1667_s22 = smov (%p30_p4, %s1665_s22), 0  ;;  %p1506_p7 = por %p77_p5, %p76_p3 }
   0xd   : > { %s60_s25 = ssub.s32 %s1427_s18, %s1667_s22  ;;  %s166_s26 = sand.u32 1, %s1411_s14  }
   0xe   : > { %p61_p9 = scmp.eq.s32.totalorder %s60_s25, 0  ;;  %s1256_s27 = smul.u32 384, %s166_s26 }
   0xf   : > { %p1264_p10 = pnand %p1267_p8, %p72_p6  ;;  %s1257_s29 = smul.u32 384, %s1427_s18 }
  0x10   : > { %s1515_s28 = scalar_select %p61_p9, %s1411_s14, %s63_s23  }
  0x11   : > { %s170_s30 = scalar_lea.vmem [#allocation2], %s1256_s27  ;;  %s175_s7 = scalar_lea.hbm %s1651_s1, %s1257_s29 }
  0x12   : > { %s178_s4 = sshll.u32 %s170_s30, 4  ;;  %s176_s8 = sshll.u32 %s175_s7, 4  ;;  %s179_s4 = int_to_ptr.vmem [resolvable:$true] %s178_s4  ;;  %s177_s8 = int_to_ptr.hbm [resolvable:$true] %s176_s8 }
  0x13   : > { %s167_s9 = scalar_lea.sflag [#allocation3], %s166_s26  ;;  %s1433_s10 = smov 64  }
  0x14   : > { %s1434_s11 = smov 4   ;;  %p940_p11 = scmp.ge.s32.totalorder %s1431_s19, 1 }
  0x15   : > { %1266 = dma.hbm_to_vmem [thread:$0]  (!%p1264_p10), %s177_s8, 6144, %s179_s4, %s167_s9, %s1433_s10, %s1433_s10, %s1434_s11  }
  0x16   : > { %p192_p12 = scmp.lt.s32.totalorder %s1431_s19, 5 }
  0x18   : > { %p193_p13 = pnand %p940_p11, %p192_p12 }
  0x19   : > { %s198_s12 = sand.u32 (!%p193_p13), 1, %s1407_s13  }
  0x1a   : > { %196 = sbr.rel (%p193_p13) target bundleno = 242 (0xf2), region = 32  ;;  %s199_s23 = scalar_lea.sflag (!%p193_p13), [#allocation3], %s198_s12 }
  0x1b   : > { %s1258_s20 = smul.u32 (!%p193_p13), 384, %s198_s12 }
  0x1d   : > { %s1524_s25 = scalar_lea.vmem (!%p193_p13), [#allocation2], %s1258_s20 }
  0x1f   : > { %1398 = dma.done.wait (%p1506_p7), %s199_s23, 6144  }
  0x20   : > { %1400 = vsyncadd (%p1506_p7), %s199_s23, 4294961152  ;;  %p242_p0 = scmp.lt.s32.totalorder %s1419_s16, 1  ;;  %p244_p1 = scmp.lt.s32.totalorder %s1415_s15, 1  ;;  %v1226_v0 = vld [vmem:[%s1524_s25 + $0xb8] sm:$0xff]  ;;  %v1225_v4 = vld [vmem:[%s1524_s25 + $0xb0] sm:$0xff]  ;;  %vm660_vm1 = vcmask 1046528  }
  0x21   : > { %v1234_v1 = vld [vmem:[%s1524_s25 + $0xf8] sm:$0xff]  ;;  %467 = vmatpush.bf16.msra.mxu0 %v1226_v0  ;;  %v1233_v5 = vld [vmem:[%s1524_s25 + $0xf0] sm:$0xff]  ;;  %v1224_v8 = vld [vmem:[%s1524_s25 + $0xa8] sm:$0xff]  ;;  %vm344_vm0 = vsmask.f32 7424 }
  0x22   : > { %s1669_s16 = smov (!%p242_p0, %s1419_s16), 1  ;;  %s1671_s15 = smov (!%p244_p1, %s1415_s15), 1  ;;  %v1210_v2 = vld [vmem:[%s1524_s25 + $0x38] sm:$0xff]  ;;  %481 = vmatpush.bf16.msra.mxu1 %v1234_v1  ;;  %v1209_v6 = vld [vmem:[%s1524_s25 + $0x30] sm:$0xff]  ;;  %v1232_v9 = vld [vmem:[%s1524_s25 + $0xe8] sm:$0xff] }
  0x23   : > { %s1260_s24 = smul.u32 12, %s1669_s16  ;;  %v1218_v3 = vld [vmem:[%s1524_s25 + $0x78] sm:$0xff]  ;;  %593 = vmatpush.bf16.msra.mxu2 %v1210_v2  ;;  %v1217_v7 = vld [vmem:[%s1524_s25 + $0x70] sm:$0xff]  ;;  %v1208_v10 = vld [vmem:[%s1524_s25 + $0x28] sm:$0xff]  ;;  %s253_s8 = scalar_lea.vmem %s1652_s2, %s1669_s16 }
  0x24   : > { %s1259_s26 = smul.u32 6, %s1671_s15  ;;  %607 = vmatpush.bf16.msra.mxu3 %v1218_v3  ;;  %v1216_v11 = vld [vmem:[%s1524_s25 + $0x68] sm:$0xff]  ;;  %v1223_v12 = vld [vmem:[%s1524_s25 + $0xa0] sm:$0xff]  ;;  %v1222_v23 = vld [vmem:[%s1524_s25 + $0x98] sm:$0xff]  ;;  %s942_s9 = sshll.u32 %s1671_s15, 1 }
  0x25   : > { %468 = vmatpush.bf16.msra.mxu0 %v1225_v4  ;;  %v1231_v13 = vld [vmem:[%s1524_s25 + $0xe0] sm:$0xff]  ;;  %v1230_v24 = vld [vmem:[%s1524_s25 + $0xd8] sm:$0xff]  ;;  %v1221_v31 = vld [vmem:[%s1524_s25 + $0x90] sm:$0xff]  ;;  %s943_s10 = sshll.u32 %s1669_s16, 2 }
  0x26   : > { %s248_s27 = sadd.s32 %s1260_s24, %s1259_s26  ;;  %482 = vmatpush.bf16.msra.mxu1 %v1233_v5  ;;  %v1207_v14 = vld [vmem:[%s1524_s25 + $0x20] sm:$0xff]  ;;  %v1206_v29 = vld [vmem:[%s1524_s25 + $0x18] sm:$0xff]  ;;  %v1229_v32 = vld [vmem:[%s1524_s25 + $0xd0] sm:$0xff]  ;;  %s260_s11 = sadd.s32 %s943_s10, %s942_s9 }
  0x27   : > { %s941_s29 = sshll.u32 %s248_s27, 2  ;;  %594 = vmatpush.bf16.msra.mxu2 %v1209_v6  ;;  %v1215_v15 = vld [vmem:[%s1524_s25 + $0x60] sm:$0xff]  ;;  %v1214_v30 = vld [vmem:[%s1524_s25 + $0x58] sm:$0xff]  ;;  %v1205_v37 = vld [vmem:[%s1524_s25 + $0x10] sm:$0xff]  ;;  %s944_s12 = sshll.u32 %s260_s11, 2 }
  0x28   : > { %608 = vmatpush.bf16.msra.mxu3 %v1217_v7  ;;  %s1555_s5 = scalar_lea.vmem %s1650_s0, %s941_s29  ;;  %v1213_v38 = vld [vmem:[%s1524_s25 + $0x50] sm:$0xff]  ;;  %v1220_v41 = vld [vmem:[%s1524_s25 + $0x88] sm:$0xff]  ;;  %v1219_v49 = vld [vmem:[%s1524_s25 + $0x80] sm:$0xff] }
  0x29   : > { %469 = vmatpush.bf16.msra.mxu0 %v1224_v8  ;;  %v263_v16 = vld [vmem:[%s1555_s5] sm:$0xff]  ;;  %v1563_v17 = vld [vmem:[%s1555_s5 + $0x8] sm:$0xff]  ;;  %v297_v22 = vld [vmem:[%s1555_s5 + $0x10] sm:$0x11] }
  0x2a   : > { %483 = vmatpush.bf16.msra.mxu1 %v1232_v9  ;;  %v334_v18 = vunpack.c.l.b16 %v263_v16  ;;  %v336_v19 = vunpack.c.l.b16 %v1563_v17  ;;  %v335_v20 = vunpack.c.h.b16 %v263_v16  ;;  %v337_v21 = vunpack.c.h.b16 %v1563_v17  ;;  %v1228_v42 = vld [vmem:[%s1524_s25 + $0xc8] sm:$0xff]  ;;  %v1227_v50 = vld [vmem:[%s1524_s25 + $0xc0] sm:$0xff]  ;;  %v1242_v56 = vld [vmem:[%s1524_s25 + $0x138] sm:$0xff] }
  0x2b   : > { %595 = vmatpush.bf16.msra.mxu2 %v1208_v10  ;;  %v338_v27 = vunpack.c.l.b16 %v297_v22  ;;  %v339_v28 = vunpack.c.h.b16 %v297_v22  ;;  %v1204_v47 = vld [vmem:[%s1524_s25 + $0x8] sm:$0xff]  ;;  %v1203_v55 = vld [vmem:[%s1524_s25] sm:$0xff]  ;;  %v1250_v57 = vld [vmem:[%s1524_s25 + $0x178] sm:$0xff] }
  0x2c   : > { %609 = vmatpush.bf16.msra.mxu3 %v1216_v11  ;;  %v340_v25 = vpack.c.b16 %v336_v19, %v334_v18  ;;  %v341_v26 = vpack.c.b16 %v337_v21, %v335_v20  ;;  %v1212_v48 = vld [vmem:[%s1524_s25 + $0x48] sm:$0xff]  ;;  %v1211_v58 = vld [vmem:[%s1524_s25 + $0x40] sm:$0xff]  ;;  %v1241_v61 = vld [vmem:[%s1524_s25 + $0x130] sm:$0xff] }
  0x2d   : > { %470 = vmatpush.bf16.msra.mxu0 %v1223_v12  ;;  %v1578_v33 = vpack.c.b16 %v338_v27, %v338_v27  ;;  %v1580_v35 = vpack.c.b16 %v339_v28, %v339_v28  ;;  %v1249_v62 = vld [vmem:[%s1524_s25 + $0x170] sm:$0xff]  ;;  %v1240_v63 = vld [vmem:[%s1524_s25 + $0x128] sm:$0xff]  ;;  %v1239_v1 = vld [vmem:[%s1524_s25 + $0x120] sm:$0xff] }
  0x2e   : > { %484 = vmatpush.bf16.msra.mxu1 %v1231_v13  ;;  %v348_v34 = vshll.u32 %v340_v25, 16  ;;  %v360_v36 = vshll.u32 %v341_v26, 16  ;;  %v346_v39 = vshrl.u32 %v340_v25, 16  ;;  %v358_v40 = vshrl.u32 %v341_v26, 16  ;;  %v1248_v0 = vld [vmem:[%s1524_s25 + $0x168] sm:$0xff]  ;;  %v1247_v2 = vld [vmem:[%s1524_s25 + $0x160] sm:$0xff] }
  0x2f   : > { %596 = vmatpush.bf16.msra.mxu2 %v1207_v14  ;;  %v353_v44 = vshll.u32 %v1578_v33, 16  ;;  %v365_v46 = vshll.u32 %v1580_v35, 16  ;;  %v1238_v3 = vld [vmem:[%s1524_s25 + $0x118] sm:$0xff]  ;;  %v621_v5 = vld [vmem:[%s1555_s5] sm:$0xee]  ;;  %v1237_v6 = vld [vmem:[%s1524_s25 + $0x110] sm:$0xff] }
  0x30   : > { %610 = vmatpush.bf16.msra.mxu3 %v1215_v15  ;;  %v350_v43 = vrot.slane %v348_v34, 1  ;;  %v362_v45 = vrot.slane %v360_v36, 1  ;;  %v1246_v4 = vld [vmem:[%s1524_s25 + $0x158] sm:$0xff]  ;;  %v656_v7 = vunpack.c.l.b16 %v621_v5  ;;  %v1245_v8 = vld [vmem:[%s1524_s25 + $0x150] sm:$0xff]  ;;  %v657_v9 = vunpack.c.h.b16 %v621_v5  ;;  %v1236_v10 = vld [vmem:[%s1524_s25 + $0x108] sm:$0xff] }
  0x31   : > { %471 = vmatpush.bf16.msra.mxu0 %v1222_v23  ;;  %v355_v52 = vrot.slane %v353_v44, 1  ;;  %v367_v54 = vrot.slane %v365_v46, 1  ;;  %v1244_v12 = vld [vmem:[%s1524_s25 + $0x148] sm:$0xff]  ;;  %v1235_v14 = vld [vmem:[%s1524_s25 + $0x100] sm:$0xff]  ;;  %v662_v16 = vrot.slane %v1578_v33, 1  ;;  %v665_v22 = vrot.slane %v1580_v35, 1 }
  0x32   : > { %485 = vmatpush.bf16.msra.mxu1 %v1230_v24  ;;  %v351_v51 = vor.u32 %v350_v43, %v346_v39  ;;  %v363_v53 = vor.u32 %v362_v45, %v358_v40  ;;  %v658_v11 = vpack.c.b16 %v336_v19, %v656_v7  ;;  %v659_v13 = vpack.c.b16 %v337_v21, %v657_v9  ;;  %v1243_v18 = vld [vmem:[%s1524_s25 + $0x140] sm:$0xff]  ;;  %s262_s25 = scalar_lea.vmem %s1653_s3, %s944_s12 }
  0x33   : > { %597 = vmatpush.bf16.msra.mxu2 %v1206_v29  ;;  %v1334_v39 = vld [vmem:[%s253_s8] ss:$0 sm:$0xff] }
  0x34   : > { %611 = vmatpush.bf16.msra.mxu3 %v1214_v30  ;;  %v356_v59 = vsel %vm344_vm0, %v351_v51, %v355_v52  ;;  %v368_v60 = vsel %vm344_vm0, %v363_v53, %v367_v54  ;;  %v661_v15 = vrot.slane %v658_v11, 1  ;;  %v664_v20 = vrot.slane %v659_v13, 1 }
  0x35   : > { %472 = vmatpush.bf16.msra.mxu0 %v1221_v31 }
  0x36   : > { %486 = vmatpush.bf16.msra.mxu1 %v1229_v32  ;;  %v663_v23 = vsel %vm660_vm1, %v661_v15, %v662_v16  ;;  %v666_v17 = vsel %vm660_vm1, %v664_v20, %v665_v22 }
  0x37   : > { %598 = vmatpush.bf16.msra.mxu2 %v1205_v37 }
  0x38   : > { %612 = vmatpush.bf16.msra.mxu3 %v1213_v38 }
  0x39   : > { %473 = vmatpush.bf16.msra.mxu0 %v1220_v41 }
  0x3a   : > { %487 = vmatpush.bf16.msra.mxu1 %v1228_v42 }
  0x3b   : > { %599 = vmatpush.bf16.msra.mxu2 %v1204_v47 }
  0x3c   : > { %613 = vmatpush.bf16.msra.mxu3 %v1212_v48 }
  0x3d   : > { %474 = vmatpush.bf16.msra.mxu0 %v1219_v49 }
  0x3e   : > { %488 = vmatpush.bf16.msra.mxu1 %v1227_v50 }
  0x3f   : > { %600 = vmatpush.bf16.msra.mxu2 %v1203_v55 }
  0x40   : > { %614 = vmatpush.bf16.msra.mxu3 %v1211_v58  ;;  %475 = vmatmul.bf16.vlgmr.msra.gmra.mxu0 %v356_v59 }
  0x41   : > { %765 = vmatpush.bf16.msrb.mxu0 %v1242_v56  ;;  %489 = vmatmul.bf16.vlgmr.msra.gmra.mxu1 %v368_v60 }
  0x42   : > { %779 = vmatpush.bf16.msrb.mxu1 %v1250_v57  ;;  %601 = vmatmul.bf16.vlgmr.msra.gmra.mxu2 %v340_v25 }
  0x43   : > { %615 = vmatmul.bf16.vlgmr.msra.gmra.mxu3 %v341_v26 }
  0x45   : > { %766 = vmatpush.bf16.msrb.mxu0 %v1241_v61 }
  0x46   : > { %780 = vmatpush.bf16.msrb.mxu1 %v1249_v62 }
  0x49   : > { %767 = vmatpush.bf16.msrb.mxu0 %v1240_v63 }
  0x4a   : > { %781 = vmatpush.bf16.msrb.mxu1 %v1248_v0 }
  0x4d   : > { %768 = vmatpush.bf16.msrb.mxu0 %v1239_v1 }
  0x4e   : > { %782 = vmatpush.bf16.msrb.mxu1 %v1247_v2 }
  0x51   : > { %769 = vmatpush.bf16.msrb.mxu0 %v1238_v3 }
  0x52   : > { %783 = vmatpush.bf16.msrb.mxu1 %v1246_v4 }
  0x55   : > { %770 = vmatpush.bf16.msrb.mxu0 %v1237_v6 }
  0x56   : > { %784 = vmatpush.bf16.msrb.mxu1 %v1245_v8 }
  0x59   : > { %771 = vmatpush.bf16.msrb.mxu0 %v1236_v10 }
  0x5a   : > { %785 = vmatpush.bf16.msrb.mxu1 %v1244_v12 }
  0x5d   : > { %772 = vmatpush.bf16.msrb.mxu0 %v1235_v14 }
  0x5e   : > { %786 = vmatpush.bf16.msrb.mxu1 %v1243_v18 }
  0x60   : > { %773 = vmatmul.bf16.vlgmr.msrb.gmra.mxu0 %v663_v23 }
  0x61   : > { %787 = vmatmul.bf16.vlgmr.msrb.gmra.mxu1 %v666_v17 }
  0xbd   : > { %v476_v19 = vpop.f32.mrf.mxu0 }
  0xbe   : > { %v490_v21 = vpop.f32.mrf.mxu1 }
  0xbf   : > { %v491_v28 = vadd.f32 %v490_v21, %v476_v19 }
  0xc5   : > { %v478_v24 = vpop.f32.mrf.mxu0  ;;  %v602_v25 = vpop.f32.mrf.mxu2 }
  0xc6   : > { %v492_v26 = vpop.f32.mrf.mxu1  ;;  %v616_v27 = vpop.f32.mrf.mxu3  ;;  %v603_v31 = vadd.f32 %v602_v25, %v491_v28 }
  0xc7   : > { %v493_v32 = vadd.f32 %v492_v26, %v478_v24 }
  0xc8   : > { %v617_v35 = vadd.f32 %v616_v27, %v603_v31 }
  0xcd   : > { %v604_v33 = vpop.f32.mrf.mxu2 }
  0xce   : > { %v605_v36 = vadd.f32 %v604_v33, %v493_v32  ;;  %v618_v37 = vpop.f32.mrf.mxu3 }
  0xd0   : > { %v619_v42 = vadd.f32 %v618_v37, %v605_v36 }
  0xdd   : > { %v774_v29 = vpop.f32.mrf.mxu0 }
  0xde   : > { %v788_v30 = vpop.f32.mrf.mxu1 }
  0xdf   : > { %v789_v34 = vadd.f32 %v788_v30, %v774_v29 }
  0xe1   : > { %v793_v38 = vadd.f32 %v789_v34, %v617_v35 }
  0xe3   : > { %v799_v44 = vadd.f32 %v1334_v39, %v793_v38 }
  0xe5   : > { %v776_v40 = vpop.f32.mrf.mxu0  ;;  %v801_v47 = vmax.f32 %v799_v44, 0.0 }
  0xe6   : > { %v790_v41 = vpop.f32.mrf.mxu1 }
  0xe7   : > { %v791_v43 = vadd.f32 %v790_v41, %v776_v40 }
  0xe9   : > { %v794_v45 = vadd.f32 %v791_v43, %v619_v42 }
  0xeb   : > { %v800_v46 = vadd.f32 %v1334_v39, %v794_v45 }
  0xed   : > { %v802_v48 = vmax.f32 %v800_v46, 0.0 }
  0xef   : > { %v1254_v49 = vpack.c.bf16 %v802_v48, %v801_v47 }
  0xf1   : > { %1255 = vst [vmem:[%s262_s25] sm:$0xff] %v1254_v49  }
  0xf2 PF: > { %s16_s19 = sadd.s32 1, %s1431_s19   ;;  %s1655_s12 = smov %s1407_s13 }
  0xf3   : > { %p13_p2 = scmp.ge.s32.totalorder %s16_s19, 6   ;;  %s1656_s13 = smov %s1411_s14 }
  0xf4   : > { %s1657_s14 = smov %s1515_s28  ;;  %s1658_s15 = smov %s1423_s17 }
  0xf5   : > { %s1659_s16 = smov %s1427_s18  ;;  %s1660_s17 = smov %s1663_s21 }
  0xf6   : > { %s1661_s18 = smov %s1667_s22  ;;  %15 = sbr.rel (!%p13_p2) target bundleno = 5 (0x5), region = 80 }
  0xfb   :  { %836 = vsyncpa [#allocation3], 1 }
  0xfc   :  { %838 = vsyncpa [#allocation3 + $0x1], 1 }

// kernel: dual_human_vqvae_forward.21
= control target key start
LH: loop header
LB: loop body
LE: loop exit
PB: predicated region body
PF: predicated region fallthrough
CT: control target
= control target key end

     0   :  { %s1551_s0 = inlined_call_operand.vmem [shape: bf16[2,2,10,128], index: 0, kind: input, shape index: {}]   ;;  %s1552_s1 = inlined_call_operand.hbm [shape: bf16[2,3,128,128], index: 1, kind: input, shape index: {}]   ;;  %s1553_s2 = inlined_call_operand.vmem [shape: f32[2,1,128], index: 2, kind: input, shape index: {}]   ;;  %s1554_s3 = inlined_call_operand.hbm [shape: bf16[2,1,128,128], index: 3, kind: input, shape index: {}]   ;;  %s1555_s4 = inlined_call_operand.vmem [shape: f32[2,1,128], index: 4, kind: input, shape index: {}]   ;;  %s1556_s5 = inlined_call_operand.vmem [shape: bf16[2,2,8,128], index: 5, kind: output, shape index: {}]  }
   0x1   :  { %1558 = sst [smem:[#allocation10_spill]] %s1552_s1 }
   0x2   :  { %10 = vsyncpa [#allocation3], 0 }
   0x3   :  { %12 = vsyncpa [#allocation3 + $0x1], 0 }
   0x4   :  { %13 = vsyncpa [#allocation5], 0 }
   0x5   :  { %15 = vsyncpa [#allocation5 + $0x1], 0  ;;  %s1353_s18 = smov 0   ;;  %s1355_s19 = smov 0  }
   0x6   :  { %s1357_s20 = smov 0   ;;  %s1359_s21 = smov 0  }
   0x7   :  { %s1361_s22 = smov 0   ;;  %s1363_s23 = smov 0  }
   0x8   :  { %s1365_s24 = smov 0   ;;  %s1367_s25 = smov 0  }
   0x9 LB: > { %s896_s26 = sadd.s32 4294967295, %s1319_s25   ;;  %s30_s27 = sadd.s32 1, %s1311_s23  ;;  %s1319_s25 = sphi %s1367_s25, %s21_s25   ;;  %s1315_s24 = sphi %s1365_s24, %s1572_s24   ;;  %s1311_s23 = sphi %s1363_s23, %s1571_s23   ;;  %s1307_s22 = sphi %s1361_s22, %s1570_s22   ;;  %s1303_s21 = sphi %s1359_s21, %s1569_s21   ;;  %s1299_s20 = sphi %s1357_s20, %s1568_s20   ;;  %s1295_s19 = sphi %s1355_s19, %s1567_s19   ;;  %s1291_s18 = sphi %s1353_s18, %s1566_s18  }
   0xa   : > { %p31_p0 = scmp.ge.s32.totalorder %s30_s27, 2  ;;  %s33_s28 = sadd.s32 1, %s1315_s24 }
   0xb   : > { %s68_s29 = sadd.s32 1, %s1299_s20  ;;  %p75_p1 = scmp.ne.s32.totalorder %s1299_s20, %s1295_s19 }
   0xc   : > { %s1574_s27 = smov (%p31_p0, %s30_s27), 0  ;;  %s1576_s28 = smov (!%p31_p0, %s33_s28), %s1315_s24 }
   0xd   : > { %1559 = sst [smem:[#allocation8_spill]] %s1574_s27  ;;  %p76_p2 = scmp.eq.s32.totalorder %s1319_s25, 0 }
   0xe   : > { %p81_p3 = scmp.ne.s32.totalorder %s1295_s19, %s1291_s18  ;;  %p35_p4 = scmp.ge.s32.totalorder %s1576_s28, 2 }
   0xf   : > { %p82_p5 = scmp.eq.s32.totalorder %s896_s26, 0  ;;  %p77_p6 = por %p76_p2, %p75_p1 }
  0x10   : > { %s1578_s28 = smov (%p35_p4, %s1576_s28), 0  ;;  %p1120_p8 = scmp.lt.s32.totalorder %s1319_s25, 4 }
  0x11   : > { %1560 = sst [smem:[#allocation9_spill]] %s1578_s28  ;;  %p1404_p7 = por %p82_p5, %p81_p3 }
  0x12   : > { %s65_s6 = ssub.s32 %s1315_s24, %s1578_s28  ;;  %s1412_s7 = sand.u32 1, %s1299_s20  }
  0x13   : > { %p66_p9 = scmp.eq.s32.totalorder %s65_s6, 0  ;;  %s1106_s8 = smul.u32 192, %s1412_s7 }
  0x14   : > { %p1415_p10 = pnand %p1120_p8, %p77_p6  ;;  %s1107_s11 = smul.u32 192, %s1315_s24 }
  0x15   : > { %s1420_s10 = scalar_select %p66_p9, %s1299_s20, %s68_s29  }
  0x16   : > { %s227_s12 = scalar_lea.vmem [#allocation2], %s1106_s8  ;;  %s1563_s1 = sld [smem:[#allocation10_spill]] }
  0x17   : > { %s235_s13 = sshll.u32 %s227_s12, 4  ;;  %s224_s18 = scalar_lea.sflag [#allocation3], %s1412_s7  ;;  %s236_s13 = int_to_ptr.vmem [resolvable:$true] %s235_s13 }
  0x18   : > { %s1321_s26 = smov 64   ;;  %s1322_s6 = smov 4  }
  0x19   : > { %p904_p11 = scmp.ge.s32.totalorder %s1319_s25, 1  ;;  %p277_p12 = scmp.lt.s32.totalorder %s1319_s25, 5 }
  0x1a   : > { %s901_s29 = sshll.u32 %s1412_s7, 6  ;;  %s1073_s8 = sshll.u32 %s1315_s24, 6 }
  0x1b   : > { %p278_p13 = pnand %p904_p11, %p277_p12  ;;  %s255_s12 = scalar_lea.vmem [#allocation4], %s901_s29 }
  0x1c   : > { %s232_s16 = scalar_lea.hbm %s1563_s1, %s1107_s11  ;;  %s263_s28 = sshll.u32 %s255_s12, 4  ;;  %s264_s28 = int_to_ptr.vmem [resolvable:$true] %s263_s28 }
  0x1d   : > { %s233_s17 = sshll.u32 %s232_s16, 4  ;;  %s260_s11 = scalar_lea.hbm %s1554_s3, %s1073_s8  ;;  %s234_s17 = int_to_ptr.hbm [resolvable:$true] %s233_s17 }
  0x1e   : > { %1116 = dma.hbm_to_vmem [thread:$0]  (!%p1415_p10), %s234_s17, 3072, %s236_s13, %s224_s18, %s1321_s26, %s1321_s26, %s1322_s6  }
  0x1f   : > { %s261_s15 = sshll.u32 %s260_s11, 4  ;;  %s252_s16 = scalar_lea.sflag [#allocation5], %s1412_s7  ;;  %s262_s15 = int_to_ptr.hbm [resolvable:$true] %s261_s15 }
  0x20   : > { %1119 = dma.hbm_to_vmem [thread:$0]  (!%p1415_p10), %s262_s15, 1024, %s264_s28, %s252_s16, %s1321_s26, %s1321_s26, %s1322_s6  }
  0x21   : > { %281 = sbr.rel (%p278_p13) target bundleno = 366 (0x16e), region = 40  ;;  %s283_s13 = sand.u32 (!%p278_p13), 1, %s1295_s19  }
  0x22   : > { %s1108_s17 = smul.u32 (!%p278_p13), 192, %s283_s13  ;;  %s284_s18 = scalar_lea.sflag (!%p278_p13), [#allocation3], %s283_s13 }
  0x24   : > { %s1440_s1 = scalar_lea.vmem (!%p278_p13), [#allocation2], %s1108_s17 }
  0x26   : > { %1282 = dma.done.wait (%p1404_p7), %s284_s18, 3072  }
  0x27   : > { %1284 = vsyncadd (%p1404_p7), %s284_s18, 4294964224  ;;  %s905_s27 = sshll.u32 %s283_s13, 6  ;;  %s294_s29 = scalar_lea.sflag [#allocation5], %s283_s13 }
  0x28   : > { %s1446_s8 = scalar_lea.vmem [#allocation4], %s905_s27 }
  0x29   : > { %1286 = dma.done.wait (%p1404_p7), %s294_s29, 1024  }
  0x2a   : > { %1288 = vsyncadd (%p1404_p7), %s294_s29, 4294966272  ;;  %p348_p0 = scmp.lt.s32.totalorder %s1307_s22, 1  ;;  %p350_p1 = scmp.lt.s32.totalorder %s1303_s21, 1  ;;  %v1089_v0 = vld [vmem:[%s1440_s1 + $0x78] sm:$0xff]  ;;  %v1088_v3 = vld [vmem:[%s1440_s1 + $0x70] sm:$0xff] }
  0x2b   : > { %v1081_v1 = vld [vmem:[%s1440_s1 + $0x38] sm:$0xff]  ;;  %468 = vmatpush.bf16.msra.mxu0 %v1089_v0  ;;  %v1080_v4 = vld [vmem:[%s1440_s1 + $0x30] sm:$0xff]  ;;  %v1087_v6 = vld [vmem:[%s1440_s1 + $0x68] sm:$0xff]  ;;  %vm723_vm0 = vsmask.f32 3328 }
  0x2c   : > { %s1580_s22 = smov (!%p348_p0, %s1307_s22), 1  ;;  %s1582_s21 = smov (!%p350_p1, %s1303_s21), 1  ;;  %v1097_v2 = vld [vmem:[%s1440_s1 + $0xb8] sm:$0xff]  ;;  %529 = vmatpush.bf16.msra.mxu1 %v1081_v1  ;;  %v1096_v5 = vld [vmem:[%s1440_s1 + $0xb0] sm:$0xff]  ;;  %v1079_v7 = vld [vmem:[%s1440_s1 + $0x28] sm:$0xff] }
  0x2d   : > { %s907_s28 = sshll.u32 %s1580_s22, 2  ;;  %s906_s30 = sshll.u32 %s1582_s21, 1  ;;  %614 = vmatpush.bf16.msra.mxu2 %v1097_v2  ;;  %v1095_v8 = vld [vmem:[%s1440_s1 + $0xa8] sm:$0xff]  ;;  %v1105_v13 = vld [vmem:[%s1446_s8 + $0x38] sm:$0xff]  ;;  %v1086_v14 = vld [vmem:[%s1440_s1 + $0x60] sm:$0xff] }
  0x2e   : > { %s354_s7 = sadd.s32 %s907_s28, %s906_s30  ;;  %v1078_v15 = vld [vmem:[%s1440_s1 + $0x20] sm:$0xff]  ;;  %703 = vmatpush.bf16.msra.mxu3 %v1105_v13  ;;  %v1104_v17 = vld [vmem:[%s1446_s8 + $0x30] sm:$0xff]  ;;  %v1085_v20 = vld [vmem:[%s1440_s1 + $0x58] sm:$0xff]  ;;  %s359_s15 = scalar_lea.vmem %s1553_s2, %s1580_s22  ;;  %vm724_vm1 = vsmask.f32 7440 }
  0x2f   : > { %s908_s9 = sshll.u32 %s354_s7, 2  ;;  %469 = vmatpush.bf16.msra.mxu0 %v1088_v3  ;;  %v1094_v16 = vld [vmem:[%s1440_s1 + $0xa0] sm:$0xff]  ;;  %v1077_v21 = vld [vmem:[%s1440_s1 + $0x18] sm:$0xff]  ;;  %v1103_v24 = vld [vmem:[%s1446_s8 + $0x28] sm:$0xff]  ;;  %s909_s17 = sshll.u32 %s1580_s22, 1 }
  0x30   : > { %s356_s12 = scalar_lea.vmem %s1551_s0, %s908_s9  ;;  %530 = vmatpush.bf16.msra.mxu1 %v1080_v4  ;;  %v1093_v22 = vld [vmem:[%s1440_s1 + $0x98] sm:$0xff]  ;;  %v1084_v26 = vld [vmem:[%s1440_s1 + $0x50] sm:$0xff]  ;;  %v1102_v30 = vld [vmem:[%s1446_s8 + $0x20] sm:$0xff]  ;;  %s1513_s18 = sadd.s32 %s909_s17, %s1582_s21 }
  0x31   : > { %615 = vmatpush.bf16.msra.mxu2 %v1096_v5  ;;  %v1474_v9 = vld [vmem:[%s356_s12] sm:$0xf]  ;;  %v1476_v10 = vld [vmem:[%s356_s12 + $0x4] sm:$0x1]  ;;  %v1076_v27 = vld [vmem:[%s1440_s1 + $0x10] sm:$0xff]  ;;  %s910_s21 = sshll.u32 %s1513_s18, 2 }
  0x32   : > { %v372_v11 = vunpack.c.l.bf16 %v1474_v9  ;;  %v392_v12 = vunpack.c.l.bf16 %v1476_v10  ;;  %v542_v23 = vld [vmem:[%s356_s12] sm:$0xe]  ;;  %704 = vmatpush.bf16.msra.mxu3 %v1104_v17  ;;  %v1092_v29 = vld [vmem:[%s1440_s1 + $0x90] sm:$0xff]  ;;  %v1083_v32 = vld [vmem:[%s1440_s1 + $0x48] sm:$0xff]  ;;  %s370_s29 = scalar_lea.vmem %s1556_s5, %s910_s21 }
  0x33   : > { %470 = vmatpush.bf16.msra.mxu0 %v1087_v6  ;;  %v543_v28 = vunpack.c.l.bf16 %v542_v23  ;;  %v1075_v33 = vld [vmem:[%s1440_s1 + $0x8] sm:$0xff]  ;;  %v1082_v38 = vld [vmem:[%s1440_s1 + $0x40] sm:$0xff]  ;;  %v1101_v45 = vld [vmem:[%s1446_s8 + $0x18] sm:$0xff] }
  0x34   : > { %531 = vmatpush.bf16.msra.mxu1 %v1079_v7  ;;  %v373_v18 = vmax.f32 %v372_v11, 0.0  ;;  %v393_v19 = vmax.f32 %v392_v12, 0.0  ;;  %v1091_v35 = vld [vmem:[%s1440_s1 + $0x88] sm:$0xff]  ;;  %v1074_v39 = vld [vmem:[%s1440_s1] sm:$0xff]  ;;  %v1100_v46 = vld [vmem:[%s1446_s8 + $0x10] sm:$0xff] }
  0x35   : > { %616 = vmatpush.bf16.msra.mxu2 %v1095_v8  ;;  %v544_v34 = vmax.f32 %v543_v28, 0.0  ;;  %v1090_v41 = vld [vmem:[%s1440_s1 + $0x80] sm:$0xff]  ;;  %s362_s1 = scalar_lea.vmem %s1555_s4, %s1580_s22  ;;  %v1099_v47 = vld [vmem:[%s1446_s8 + $0x8] sm:$0xff]  ;;  %vm725_vm2 = vmor %vm723_vm0, %vm724_vm1 }
  0x36   : > { %v394_v25 = vpack.c.bf16 %v393_v19, %v373_v18  ;;  %705 = vmatpush.bf16.msra.mxu3 %v1103_v24  ;;  %v374_v43 = vpack.c.bf16 %v373_v18, %v373_v18  ;;  %v1098_v48 = vld [vmem:[%s1446_s8] sm:$0xff] }
  0x37   : > { %471 = vmatpush.bf16.msra.mxu0 %v1086_v14  ;;  %v545_v40 = vpack.c.bf16 %v393_v19, %v544_v34  ;;  %v1187_v52 = vld [vmem:[%s359_s15] ss:$0 sm:$0xff] }
  0x38   : > { %532 = vmatpush.bf16.msra.mxu1 %v1078_v15  ;;  %v415_v31 = vshll.u32 %v394_v25, 16  ;;  %v413_v36 = vshrl.u32 %v394_v25, 16  ;;  %v1188_v61 = vld [vmem:[%s362_s1] ss:$0 sm:$0xff] }
  0x39   : > { %617 = vmatpush.bf16.msra.mxu2 %v1094_v16  ;;  %v564_v44 = vrot.slane %v545_v40, 1 }
  0x3a   : > { %706 = vmatpush.bf16.msra.mxu3 %v1102_v30  ;;  %v417_v37 = vrot.slane %v415_v31, 1 }
  0x3b   : > { %472 = vmatpush.bf16.msra.mxu0 %v1085_v20 }
  0x3c   : > { %533 = vmatpush.bf16.msra.mxu1 %v1077_v21  ;;  %v418_v42 = vor.u32 %v417_v37, %v413_v36 }
  0x3d   : > { %618 = vmatpush.bf16.msra.mxu2 %v1093_v22 }
  0x3e   : > { %707 = vmatpush.bf16.msra.mxu3 %v1101_v45 }
  0x3f   : > { %473 = vmatpush.bf16.msra.mxu0 %v1084_v26 }
  0x40   : > { %534 = vmatpush.bf16.msra.mxu1 %v1076_v27 }
  0x41   : > { %619 = vmatpush.bf16.msra.mxu2 %v1092_v29 }
  0x42   : > { %708 = vmatpush.bf16.msra.mxu3 %v1100_v46 }
  0x43   : > { %474 = vmatpush.bf16.msra.mxu0 %v1083_v32 }
  0x44   : > { %535 = vmatpush.bf16.msra.mxu1 %v1075_v33 }
  0x45   : > { %620 = vmatpush.bf16.msra.mxu2 %v1091_v35 }
  0x46   : > { %709 = vmatpush.bf16.msra.mxu3 %v1099_v47 }
  0x47   : > { %475 = vmatpush.bf16.msra.mxu0 %v1082_v38 }
  0x48   : > { %536 = vmatpush.bf16.msra.mxu1 %v1074_v39 }
  0x49   : > { %621 = vmatpush.bf16.msra.mxu2 %v1090_v41 }
  0x4a   : > { %476 = vmatmul.bf16.vlgmr.msra.gmra.mxu0 %v418_v42  ;;  %710 = vmatpush.bf16.msra.mxu3 %v1098_v48 }
  0x4b   : > { %537 = vmatmul.bf16.vlgmr.msra.gmra.mxu1 %v374_v43 }
  0x4c   : > { %622 = vmatmul.bf16.vlgmr.msra.gmra.mxu2 %v564_v44 }
  0xc7   : > { %v477_v49 = vpop.f32.mrf.mxu0 }
  0xc8   : > { %v538_v50 = vpop.f32.mrf.mxu1 }
  0xc9   : > { %v539_v51 = vadd.f32 %v538_v50, %v477_v49 }
  0xcf   : > { %v623_v53 = vpop.f32.mrf.mxu2  ;;  %v479_v55 = vpop.f32.mrf.mxu0 }
  0xd0   : > { %v627_v54 = vadd.f32 %v623_v53, %v539_v51  ;;  %v540_v56 = vpop.f32.mrf.mxu1 }
  0xd2   : > { %v632_v57 = vadd.f32 %v1187_v52, %v627_v54 }
  0xd4   : > { %v633_v58 = vmax.f32 %v632_v57, 0.0 }
  0xd6   : > { %v634_v59 = vpack.c.bf16 %v633_v58, %v633_v58 }
  0xd7   : > { %v625_v60 = vpop.f32.mrf.mxu2 }
  0xd8   : > { %711 = vmatmul.bf16.vlgmr.msra.gmra.mxu3 %v634_v59 }
 0x15b   : > { %v712_v62 = vpop.f32.mrf.mxu3 }
 0x15c   : > { %v713_v63 = vadd.f32 %v1188_v61, %v712_v62 }
 0x15e   : > { %v717_v0 = vrot.slane %v713_v63, 7 }
 0x160   : > { %v719_v1 = vadd.f32 %v717_v0, %v372_v11  ;;  %v720_v2 = vadd.f32 %v717_v0, %v392_v12 }
 0x162   : > { %v721_v3 = vpack.c.bf16 %v719_v1, %v719_v1  ;;  %v722_v4 = vpack.c.bf16 %v720_v2, %v720_v2 }
 0x163   : > { %v714_v5 = vpop.f32.mrf.mxu3 }
 0x164   : > { %v727_v6 = vshrl.u32 %v721_v3, 16  ;;  %v730_v7 = vshll.u32 %v721_v3, 16  ;;  %v736_v14 = vshll.u32 %v722_v4, 16 }
 0x166   : > { %v729_v8 = vrot.slane %v727_v6, 4  ;;  %v732_v13 = vrot.slane %v730_v7, 5  ;;  %v738_v10 = vrot.slane %v736_v14, 5 }
 0x168   : > { %v733_v15 = vor.u32 %v732_v13, %v729_v8 }
 0x16a   : > { %v734_v9 = vrot.slane %v733_v15, 4 }
 0x16c   : > { %v739_v11 = vsel %vm725_vm2, %v734_v9, %v738_v10 }
 0x16d   : > { %741 = vst [vmem:[%s370_s29] sm:$0xf] %v739_v11 }
 0x16e PF: > { %s21_s25 = sadd.s32 1, %s1319_s25   ;;  %s1564_s8 = sld [smem:[#allocation8_spill]] }
 0x16f   : > { %p18_p2 = scmp.ge.s32.totalorder %s21_s25, 6   ;;  %s1565_s28 = sld [smem:[#allocation9_spill]] }
 0x170   : > { %s1566_s18 = smov %s1295_s19  ;;  %s1567_s19 = smov %s1299_s20 }
 0x171   : > { %s1568_s20 = smov %s1420_s10  ;;  %s1569_s21 = smov %s1311_s23 }
 0x172   : > { %s1570_s22 = smov %s1315_s24  ;;  %20 = sbr.rel (!%p18_p2) target bundleno = 9 (0x9), region = 104 }
 0x174   : > { %s1571_s23 = smov %s1564_s8 }
 0x175   : > { %s1572_s24 = smov %s1565_s28 }
 0x177   :  { %769 = vsyncpa [#allocation3], 1 }
 0x178   :  { %771 = vsyncpa [#allocation3 + $0x1], 1 }
 0x179   :  { %772 = vsyncpa [#allocation5], 1 }
 0x17a   :  { %774 = vsyncpa [#allocation5 + $0x1], 1 }

// kernel: dual_human_vqvae_forward.22
= control target key start
LH: loop header
LB: loop body
LE: loop exit
PB: predicated region body
PF: predicated region fallthrough
CT: control target
= control target key end

     0   :  { %8 = vsyncpa [#allocation3], 0  ;;  %s1297_s0 = inlined_call_operand.vmem [shape: bf16[2,2,5,256], index: 0, kind: input, shape index: {}]   ;;  %s1298_s1 = inlined_call_operand.hbm [shape: bf16[2,2,256,128], index: 1, kind: input, shape index: {}]   ;;  %s1299_s2 = inlined_call_operand.vmem [shape: f32[2,1,128], index: 2, kind: input, shape index: {}]   ;;  %s1300_s3 = inlined_call_operand.vmem [shape: bf16[2,2,4,128], index: 3, kind: output, shape index: {}]  }
   0x1   :  { %10 = vsyncpa [#allocation3 + $0x1], 0  ;;  %s1132_s12 = smov 0   ;;  %s1134_s13 = smov 0  }
   0x2   :  { %s1136_s14 = smov 0   ;;  %s1138_s15 = smov 0  }
   0x3   :  { %s1140_s16 = smov 0   ;;  %s1142_s17 = smov 0  }
   0x4   :  { %s1144_s18 = smov 0   ;;  %s1146_s19 = smov 0  }
   0x5 LB: > { %s729_s20 = sadd.s32 4294967295, %s1108_s19   ;;  %s25_s21 = sadd.s32 1, %s1100_s17  ;;  %s1108_s19 = sphi %s1146_s19, %s16_s19   ;;  %s1104_s18 = sphi %s1144_s18, %s1309_s18   ;;  %s1100_s17 = sphi %s1142_s17, %s1308_s17   ;;  %s1096_s16 = sphi %s1140_s16, %s1307_s16   ;;  %s1092_s15 = sphi %s1138_s15, %s1306_s15   ;;  %s1088_s14 = sphi %s1136_s14, %s1305_s14   ;;  %s1084_s13 = sphi %s1134_s13, %s1304_s13   ;;  %s1080_s12 = sphi %s1132_s12, %s1303_s12  }
   0x6   : > { %p26_p0 = scmp.ge.s32.totalorder %s25_s21, 2  ;;  %s28_s22 = sadd.s32 1, %s1104_s18 }
   0x7   : > { %s63_s23 = sadd.s32 1, %s1088_s14  ;;  %p70_p1 = scmp.ne.s32.totalorder %s1088_s14, %s1084_s13 }
   0x8   : > { %s1311_s21 = smov (%p26_p0, %s25_s21), 0  ;;  %s1313_s22 = smov (!%p26_p0, %s28_s22), %s1104_s18 }
   0x9   : > { %p71_p2 = scmp.eq.s32.totalorder %s1108_s19, 0  ;;  %p76_p3 = scmp.ne.s32.totalorder %s1084_s13, %s1080_s12 }
   0xa   : > { %p30_p4 = scmp.ge.s32.totalorder %s1313_s22, 2  ;;  %p77_p5 = scmp.eq.s32.totalorder %s729_s20, 0 }
   0xb   : > { %p1181_p6 = por %p71_p2, %p70_p1  ;;  %p944_p8 = scmp.lt.s32.totalorder %s1108_s19, 4 }
   0xc   : > { %s1315_s22 = smov (%p30_p4, %s1313_s22), 0  ;;  %p1187_p7 = por %p77_p5, %p76_p3 }
   0xd   : > { %s60_s26 = ssub.s32 %s1104_s18, %s1315_s22  ;;  %s166_s27 = sand.u32 1, %s1088_s14  }
   0xe   : > { %p61_p9 = scmp.eq.s32.totalorder %s60_s26, 0  ;;  %s733_s28 = sshll.u32 %s166_s27, 8 }
   0xf   : > { %s905_s29 = sshll.u32 %s1104_s18, 8  ;;  %s170_s8 = scalar_lea.vmem [#allocation2], %s733_s28 }
  0x10   : > { %s1197_s30 = scalar_select %p61_p9, %s1088_s14, %s63_s23  }
  0x11   : > { %s175_s6 = scalar_lea.hbm %s1298_s1, %s905_s29  ;;  %s178_s9 = sshll.u32 %s170_s8, 4  ;;  %s179_s9 = int_to_ptr.vmem [resolvable:$true] %s178_s9 }
  0x12   : > { %s176_s7 = sshll.u32 %s175_s6, 4  ;;  %p941_p10 = pnand %p944_p8, %p1181_p6  ;;  %s177_s7 = int_to_ptr.hbm [resolvable:$true] %s176_s7 }
  0x13   : > { %p736_p11 = scmp.ge.s32.totalorder %s1108_s19, 1  ;;  %p192_p12 = scmp.lt.s32.totalorder %s1108_s19, 5 }
  0x14   : > { %s167_s10 = scalar_lea.sflag [#allocation3], %s166_s27  ;;  %s1110_s11 = smov 64  }
  0x15   : > { %s1111_s12 = smov 4   ;;  %p193_p13 = pnand %p736_p11, %p192_p12 }
  0x16   : > { %943 = dma.hbm_to_vmem [thread:$0]  (!%p941_p10), %s177_s7, 4096, %s179_s9, %s167_s10, %s1110_s11, %s1110_s11, %s1111_s12  }
  0x17   : > { %196 = sbr.rel (%p193_p13) target bundleno = 204 (0xcc), region = 32  ;;  %s198_s20 = sand.u32 (!%p193_p13), 1, %s1084_s13  }
  0x18   : > { %s737_s23 = sshll.u32 (!%p193_p13), %s198_s20, 8  ;;  %s199_s26 = scalar_lea.sflag (!%p193_p13), [#allocation3], %s198_s20 }
  0x19   : > { %s1209_s28 = scalar_lea.vmem (!%p193_p13), [#allocation2], %s737_s23 }
  0x1c   : > { %1075 = dma.done.wait (%p1187_p7), %s199_s26, 4096  }
  0x1d   : > { %1077 = vsyncadd (%p1187_p7), %s199_s26, 4294963200  ;;  %p241_p0 = scmp.lt.s32.totalorder %s1096_s16, 1  ;;  %p243_p1 = scmp.lt.s32.totalorder %s1092_s15, 1  ;;  %v929_v0 = vld [vmem:[%s1209_s28 + $0xb8] sm:$0xff]  ;;  %v928_v4 = vld [vmem:[%s1209_s28 + $0xb0] sm:$0xff] }
  0x1e   : > { %v937_v1 = vld [vmem:[%s1209_s28 + $0xf8] sm:$0xff]  ;;  %445 = vmatpush.bf16.msra.mxu0 %v929_v0  ;;  %v936_v5 = vld [vmem:[%s1209_s28 + $0xf0] sm:$0xff]  ;;  %v927_v8 = vld [vmem:[%s1209_s28 + $0xa8] sm:$0xff] }
  0x1f   : > { %s1317_s16 = smov (!%p241_p0, %s1096_s16), 1  ;;  %s1319_s15 = smov (!%p243_p1, %s1092_s15), 1  ;;  %v913_v2 = vld [vmem:[%s1209_s28 + $0x38] sm:$0xff]  ;;  %458 = vmatpush.bf16.msra.mxu1 %v937_v1  ;;  %v912_v6 = vld [vmem:[%s1209_s28 + $0x30] sm:$0xff]  ;;  %v935_v9 = vld [vmem:[%s1209_s28 + $0xe8] sm:$0xff] }
  0x20   : > { %s738_s24 = sshll.u32 %s1319_s15, 1  ;;  %s739_s25 = sshll.u32 %s1317_s16, 2  ;;  %v921_v3 = vld [vmem:[%s1209_s28 + $0x78] sm:$0xff]  ;;  %574 = vmatpush.bf16.msra.mxu2 %v913_v2  ;;  %v920_v7 = vld [vmem:[%s1209_s28 + $0x70] sm:$0xff]  ;;  %v911_v10 = vld [vmem:[%s1209_s28 + $0x28] sm:$0xff] }
  0x21   : > { %s247_s27 = sadd.s32 %s739_s25, %s738_s24  ;;  %587 = vmatpush.bf16.msra.mxu3 %v921_v3  ;;  %v919_v11 = vld [vmem:[%s1209_s28 + $0x68] sm:$0xff]  ;;  %v926_v12 = vld [vmem:[%s1209_s28 + $0xa0] sm:$0xff]  ;;  %v925_v19 = vld [vmem:[%s1209_s28 + $0x98] sm:$0xff]  ;;  %s252_s9 = scalar_lea.vmem %s1299_s2, %s1317_s16 }
  0x22   : > { %s740_s29 = sshll.u32 %s247_s27, 2  ;;  %446 = vmatpush.bf16.msra.mxu0 %v928_v4  ;;  %v934_v13 = vld [vmem:[%s1209_s28 + $0xe0] sm:$0xff]  ;;  %v933_v20 = vld [vmem:[%s1209_s28 + $0xd8] sm:$0xff]  ;;  %v924_v25 = vld [vmem:[%s1209_s28 + $0x90] sm:$0xff]  ;;  %s741_s10 = sshll.u32 %s1317_s16, 1 }
  0x23   : > { %459 = vmatpush.bf16.msra.mxu1 %v936_v5  ;;  %s1240_s6 = scalar_lea.vmem %s1297_s0, %s740_s29  ;;  %v910_v15 = vld [vmem:[%s1209_s28 + $0x20] sm:$0xff]  ;;  %v909_v21 = vld [vmem:[%s1209_s28 + $0x18] sm:$0xff]  ;;  %v932_v26 = vld [vmem:[%s1209_s28 + $0xd0] sm:$0xff]  ;;  %s258_s11 = sadd.s32 %s741_s10, %s1319_s15 }
  0x24   : > { %575 = vmatpush.bf16.msra.mxu2 %v912_v6  ;;  %v294_v14 = vld [vmem:[%s1240_s6] sm:$0x77]  ;;  %v917_v22 = vld [vmem:[%s1209_s28 + $0x58] sm:$0xff]  ;;  %v908_v27 = vld [vmem:[%s1209_s28 + $0x10] sm:$0xff]  ;;  %s742_s12 = sshll.u32 %s258_s11, 1 }
  0x25   : > { %588 = vmatpush.bf16.msra.mxu3 %v920_v7  ;;  %v918_v16 = vld [vmem:[%s1209_s28 + $0x60] sm:$0xff]  ;;  %v329_v17 = vunpack.c.l.b16 %v294_v14  ;;  %v330_v18 = vunpack.c.h.b16 %v294_v14  ;;  %v916_v28 = vld [vmem:[%s1209_s28 + $0x50] sm:$0xff]  ;;  %v923_v31 = vld [vmem:[%s1209_s28 + $0x88] sm:$0xff]  ;;  %s260_s26 = scalar_lea.vmem %s1300_s3, %s742_s12 }
  0x26   : > { %447 = vmatpush.bf16.msra.mxu0 %v927_v8  ;;  %v931_v32 = vld [vmem:[%s1209_s28 + $0xc8] sm:$0xff]  ;;  %v261_v35 = vld [vmem:[%s1240_s6] sm:$0x33] }
  0x27   : > { %460 = vmatpush.bf16.msra.mxu1 %v935_v9  ;;  %v331_v23 = vpack.c.b16 %v329_v17, %v329_v17  ;;  %v332_v24 = vpack.c.b16 %v330_v18, %v330_v18  ;;  %v907_v33 = vld [vmem:[%s1209_s28 + $0x8] sm:$0xff]  ;;  %v922_v40 = vld [vmem:[%s1209_s28 + $0x80] sm:$0xff]  ;;  %v472_v42 = vunpack.c.l.b16 %v261_v35  ;;  %v473_v43 = vunpack.c.h.b16 %v261_v35 }
  0x28   : > { %576 = vmatpush.bf16.msra.mxu2 %v911_v10  ;;  %v915_v34 = vld [vmem:[%s1209_s28 + $0x48] sm:$0xff]  ;;  %v930_v41 = vld [vmem:[%s1209_s28 + $0xc0] sm:$0xff] }
  0x29   : > { %589 = vmatpush.bf16.msra.mxu3 %v919_v11  ;;  %v336_v29 = vshll.u32 %v331_v23, 16  ;;  %v343_v30 = vshll.u32 %v332_v24, 16  ;;  %v334_v36 = vshrl.u32 %v331_v23, 16  ;;  %v341_v38 = vshrl.u32 %v332_v24, 16  ;;  %v906_v44 = vld [vmem:[%s1209_s28] sm:$0xff] }
  0x2a   : > { %448 = vmatpush.bf16.msra.mxu0 %v926_v12  ;;  %v914_v45 = vld [vmem:[%s1209_s28 + $0x40] sm:$0xff]  ;;  %v474_v48 = vpack.c.b16 %v472_v42, %v472_v42  ;;  %v475_v49 = vpack.c.b16 %v473_v43, %v473_v43 }
  0x2b   : > { %461 = vmatpush.bf16.msra.mxu1 %v934_v13  ;;  %v338_v37 = vrot.slane %v336_v29, 1  ;;  %v345_v39 = vrot.slane %v343_v30, 1  ;;  %v1011_v56 = vld [vmem:[%s252_s9] ss:$0 sm:$0xff] }
  0x2c   : > { %577 = vmatpush.bf16.msra.mxu2 %v910_v15 }
  0x2d   : > { %590 = vmatpush.bf16.msra.mxu3 %v918_v16  ;;  %v339_v46 = vor.u32 %v338_v37, %v334_v36  ;;  %v346_v47 = vor.u32 %v345_v39, %v341_v38 }
  0x2e   : > { %449 = vmatpush.bf16.msra.mxu0 %v925_v19 }
  0x2f   : > { %462 = vmatpush.bf16.msra.mxu1 %v933_v20 }
  0x30   : > { %578 = vmatpush.bf16.msra.mxu2 %v909_v21 }
  0x31   : > { %591 = vmatpush.bf16.msra.mxu3 %v917_v22 }
  0x32   : > { %450 = vmatpush.bf16.msra.mxu0 %v924_v25 }
  0x33   : > { %463 = vmatpush.bf16.msra.mxu1 %v932_v26 }
  0x34   : > { %579 = vmatpush.bf16.msra.mxu2 %v908_v27 }
  0x35   : > { %592 = vmatpush.bf16.msra.mxu3 %v916_v28 }
  0x36   : > { %451 = vmatpush.bf16.msra.mxu0 %v923_v31 }
  0x37   : > { %464 = vmatpush.bf16.msra.mxu1 %v931_v32 }
  0x38   : > { %580 = vmatpush.bf16.msra.mxu2 %v907_v33 }
  0x39   : > { %593 = vmatpush.bf16.msra.mxu3 %v915_v34 }
  0x3a   : > { %452 = vmatpush.bf16.msra.mxu0 %v922_v40 }
  0x3b   : > { %465 = vmatpush.bf16.msra.mxu1 %v930_v41 }
  0x3c   : > { %581 = vmatpush.bf16.msra.mxu2 %v906_v44 }
  0x3d   : > { %594 = vmatpush.bf16.msra.mxu3 %v914_v45  ;;  %453 = vmatmul.bf16.vlgmr.msra.gmra.mxu0 %v339_v46 }
  0x3e   : > { %466 = vmatmul.bf16.vlgmr.msra.gmra.mxu1 %v346_v47 }
  0x3f   : > { %582 = vmatmul.bf16.vlgmr.msra.gmra.mxu2 %v474_v48 }
  0x40   : > { %595 = vmatmul.bf16.vlgmr.msra.gmra.mxu3 %v475_v49 }
  0xba   : > { %v454_v50 = vpop.f32.mrf.mxu0 }
  0xbb   : > { %v467_v51 = vpop.f32.mrf.mxu1 }
  0xbc   : > { %v468_v52 = vadd.f32 %v467_v51, %v454_v50 }
  0xc2   : > { %v583_v53 = vpop.f32.mrf.mxu2  ;;  %v456_v57 = vpop.f32.mrf.mxu0 }
  0xc3   : > { %v596_v54 = vpop.f32.mrf.mxu3  ;;  %v584_v55 = vadd.f32 %v583_v53, %v468_v52  ;;  %v469_v58 = vpop.f32.mrf.mxu1 }
  0xc5   : > { %v597_v59 = vadd.f32 %v596_v54, %v584_v55 }
  0xc7   : > { %v604_v60 = vadd.f32 %v1011_v56, %v597_v59 }
  0xc9   : > { %v605_v61 = vpack.c.bf16 %v604_v60, %v604_v60 }
  0xca   : > { %v585_v62 = vpop.f32.mrf.mxu2 }
  0xcb   : > { %v598_v63 = vpop.f32.mrf.mxu3  ;;  %606 = vst [vmem:[%s260_s26] sm:$0x3] %v605_v61 }
  0xcc PF: > { %s16_s19 = sadd.s32 1, %s1108_s19   ;;  %s1303_s12 = smov %s1084_s13 }
  0xcd   : > { %p13_p2 = scmp.ge.s32.totalorder %s16_s19, 6   ;;  %s1304_s13 = smov %s1088_s14 }
  0xce   : > { %s1305_s14 = smov %s1197_s30  ;;  %s1306_s15 = smov %s1100_s17 }
  0xcf   : > { %s1307_s16 = smov %s1104_s18  ;;  %s1308_s17 = smov %s1311_s21 }
  0xd0   : > { %s1309_s18 = smov %s1315_s22  ;;  %15 = sbr.rel (!%p13_p2) target bundleno = 5 (0x5), region = 79 }
  0xd5   :  { %634 = vsyncpa [#allocation3], 1 }
  0xd6   :  { %636 = vsyncpa [#allocation3 + $0x1], 1 }

// kernel: dual_human_vqvae_forward.25
= control target key start
LH: loop header
LB: loop body
LE: loop exit
PB: predicated region body
PF: predicated region fallthrough
CT: control target
= control target key end

     0   :  { %8 = vsyncpa [#allocation3], 0  ;;  %s1147_s0 = inlined_call_operand.vmem [shape: bf16[2,2,6,128], index: 0, kind: input, shape index: {}]   ;;  %s1148_s1 = inlined_call_operand.hbm [shape: bf16[2,3,128,128], index: 1, kind: input, shape index: {}]   ;;  %s1149_s2 = inlined_call_operand.vmem [shape: f32[2,1,128], index: 2, kind: input, shape index: {}]   ;;  %s1150_s3 = inlined_call_operand.vmem [shape: bf16[2,2,4,128], index: 3, kind: output, shape index: {}]  }
   0x1   :  { %10 = vsyncpa [#allocation3 + $0x1], 0  ;;  %s998_s12 = smov 0   ;;  %s1000_s13 = smov 0  }
   0x2   :  { %s1002_s14 = smov 0   ;;  %s1004_s15 = smov 0  }
   0x3   :  { %s1006_s16 = smov 0   ;;  %s1008_s17 = smov 0  }
   0x4   :  { %s1010_s18 = smov 0   ;;  %s1012_s19 = smov 0  }
   0x5 LB: > { %s637_s20 = sadd.s32 4294967295, %s974_s19   ;;  %s25_s21 = sadd.s32 1, %s966_s17  ;;  %s974_s19 = sphi %s1012_s19, %s16_s19   ;;  %s970_s18 = sphi %s1010_s18, %s1158_s18   ;;  %s966_s17 = sphi %s1008_s17, %s1157_s17   ;;  %s962_s16 = sphi %s1006_s16, %s1156_s16   ;;  %s958_s15 = sphi %s1004_s15, %s1155_s15   ;;  %s954_s14 = sphi %s1002_s14, %s1154_s14   ;;  %s950_s13 = sphi %s1000_s13, %s1153_s13   ;;  %s946_s12 = sphi %s998_s12, %s1152_s12  }
   0x6   : > { %p26_p0 = scmp.ge.s32.totalorder %s25_s21, 2  ;;  %s28_s22 = sadd.s32 1, %s970_s18 }
   0x7   : > { %s63_s23 = sadd.s32 1, %s954_s14  ;;  %p70_p1 = scmp.ne.s32.totalorder %s954_s14, %s950_s13 }
   0x8   : > { %s1160_s21 = smov (%p26_p0, %s25_s21), 0  ;;  %s1162_s22 = smov (!%p26_p0, %s28_s22), %s970_s18 }
   0x9   : > { %p71_p2 = scmp.eq.s32.totalorder %s974_s19, 0  ;;  %p76_p3 = scmp.ne.s32.totalorder %s950_s13, %s946_s12 }
   0xa   : > { %p30_p4 = scmp.ge.s32.totalorder %s1162_s22, 2  ;;  %p77_p5 = scmp.eq.s32.totalorder %s637_s20, 0 }
   0xb   : > { %p72_p6 = por %p71_p2, %p70_p1  ;;  %p810_p8 = scmp.lt.s32.totalorder %s974_s19, 4 }
   0xc   : > { %s1164_s22 = smov (%p30_p4, %s1162_s22), 0  ;;  %p1049_p7 = por %p77_p5, %p76_p3 }
   0xd   : > { %s60_s25 = ssub.s32 %s970_s18, %s1164_s22  ;;  %s165_s26 = sand.u32 1, %s954_s14  }
   0xe   : > { %p61_p9 = scmp.eq.s32.totalorder %s60_s25, 0  ;;  %s801_s27 = smul.u32 192, %s165_s26 }
   0xf   : > { %p807_p10 = pnand %p810_p8, %p72_p6  ;;  %s802_s29 = smul.u32 192, %s970_s18 }
  0x10   : > { %s1058_s28 = scalar_select %p61_p9, %s954_s14, %s63_s23  }
  0x11   : > { %s169_s30 = scalar_lea.vmem [#allocation2], %s801_s27  ;;  %s174_s7 = scalar_lea.hbm %s1148_s1, %s802_s29 }
  0x12   : > { %s177_s4 = sshll.u32 %s169_s30, 4  ;;  %s175_s8 = sshll.u32 %s174_s7, 4  ;;  %s178_s4 = int_to_ptr.vmem [resolvable:$true] %s177_s4  ;;  %s176_s8 = int_to_ptr.hbm [resolvable:$true] %s175_s8 }
  0x13   : > { %s166_s9 = scalar_lea.sflag [#allocation3], %s165_s26  ;;  %s976_s10 = smov 64  }
  0x14   : > { %s977_s11 = smov 4   ;;  %p642_p11 = scmp.ge.s32.totalorder %s974_s19, 1 }
  0x15   : > { %809 = dma.hbm_to_vmem [thread:$0]  (!%p807_p10), %s176_s8, 3072, %s178_s4, %s166_s9, %s976_s10, %s976_s10, %s977_s11  }
  0x16   : > { %p191_p12 = scmp.lt.s32.totalorder %s974_s19, 5 }
  0x18   : > { %p192_p13 = pnand %p642_p11, %p191_p12 }
  0x19   : > { %s197_s12 = sand.u32 (!%p192_p13), 1, %s950_s13  }
  0x1a   : > { %195 = sbr.rel (%p192_p13) target bundleno = 206 (0xce), region = 32  ;;  %s198_s23 = scalar_lea.sflag (!%p192_p13), [#allocation3], %s197_s12 }
  0x1b   : > { %s803_s20 = smul.u32 (!%p192_p13), 192, %s197_s12 }
  0x1d   : > { %s1067_s25 = scalar_lea.vmem (!%p192_p13), [#allocation2], %s803_s20 }
  0x1f   : > { %941 = dma.done.wait (%p1049_p7), %s198_s23, 3072  }
  0x20   : > { %943 = vsyncadd (%p1049_p7), %s198_s23, 4294964224  ;;  %p239_p0 = scmp.lt.s32.totalorder %s962_s16, 1  ;;  %p241_p1 = scmp.lt.s32.totalorder %s958_s15, 1  ;;  %v792_v0 = vld [vmem:[%s1067_s25 + $0x78] sm:$0xff]  ;;  %v791_v3 = vld [vmem:[%s1067_s25 + $0x70] sm:$0xff] }
  0x21   : > { %v784_v1 = vld [vmem:[%s1067_s25 + $0x38] sm:$0xff]  ;;  %352 = vmatpush.bf16.msra.mxu0 %v792_v0  ;;  %v783_v4 = vld [vmem:[%s1067_s25 + $0x30] sm:$0xff]  ;;  %v790_v6 = vld [vmem:[%s1067_s25 + $0x68] sm:$0xff] }
  0x22   : > { %s1166_s16 = smov (!%p239_p0, %s962_s16), 1  ;;  %s1168_s15 = smov (!%p241_p1, %s958_s15), 1  ;;  %v800_v2 = vld [vmem:[%s1067_s25 + $0xb8] sm:$0xff]  ;;  %413 = vmatpush.bf16.msra.mxu1 %v784_v1  ;;  %v799_v5 = vld [vmem:[%s1067_s25 + $0xb0] sm:$0xff]  ;;  %v782_v7 = vld [vmem:[%s1067_s25 + $0x28] sm:$0xff] }
  0x23   : > { %s643_s24 = sshll.u32 %s1166_s16, 1  ;;  %497 = vmatpush.bf16.msra.mxu2 %v800_v2  ;;  %v798_v8 = vld [vmem:[%s1067_s25 + $0xa8] sm:$0xff]  ;;  %v789_v9 = vld [vmem:[%s1067_s25 + $0x60] sm:$0xff]  ;;  %v788_v14 = vld [vmem:[%s1067_s25 + $0x58] sm:$0xff]  ;;  %s249_s6 = scalar_lea.vmem %s1149_s2, %s1166_s16 }
  0x24   : > { %s1083_s26 = sadd.s32 %s643_s24, %s1168_s15  ;;  %v781_v10 = vld [vmem:[%s1067_s25 + $0x20] sm:$0xff]  ;;  %v780_v15 = vld [vmem:[%s1067_s25 + $0x18] sm:$0xff]  ;;  %v787_v18 = vld [vmem:[%s1067_s25 + $0x50] sm:$0xff] }
  0x25   : > { %s644_s27 = sshll.u32 %s1083_s26, 2  ;;  %353 = vmatpush.bf16.msra.mxu0 %v791_v3  ;;  %v797_v12 = vld [vmem:[%s1067_s25 + $0xa0] sm:$0xff]  ;;  %v796_v16 = vld [vmem:[%s1067_s25 + $0x98] sm:$0xff]  ;;  %v779_v19 = vld [vmem:[%s1067_s25 + $0x10] sm:$0xff]  ;;  %s646_s7 = sshll.u32 %s1083_s26, 1 }
  0x26   : > { %414 = vmatpush.bf16.msra.mxu1 %v783_v4  ;;  %s1095_s30 = scalar_lea.vmem %s1147_s0, %s644_s27  ;;  %v795_v20 = vld [vmem:[%s1067_s25 + $0x90] sm:$0xff]  ;;  %v786_v23 = vld [vmem:[%s1067_s25 + $0x48] sm:$0xff]  ;;  %v785_v29 = vld [vmem:[%s1067_s25 + $0x40] sm:$0xff]  ;;  %s257_s10 = scalar_lea.vmem %s1150_s3, %s646_s7 }
  0x27   : > { %498 = vmatpush.bf16.msra.mxu2 %v799_v5  ;;  %v275_v11 = vld [vmem:[%s1095_s30] sm:$0x7]  ;;  %v778_v24 = vld [vmem:[%s1067_s25 + $0x8] sm:$0xff] }
  0x28   : > { %v294_v13 = vunpack.c.l.b16 %v275_v11  ;;  %v426_v21 = vld [vmem:[%s1095_s30] sm:$0x6]  ;;  %v794_v26 = vld [vmem:[%s1067_s25 + $0x88] sm:$0xff]  ;;  %v877_v39 = vld [vmem:[%s249_s6] ss:$0 sm:$0xff] }
  0x29   : > { %354 = vmatpush.bf16.msra.mxu0 %v790_v6  ;;  %v445_v25 = vunpack.c.l.b16 %v426_v21  ;;  %v777_v30 = vld [vmem:[%s1067_s25] sm:$0xff] }
  0x2a   : > { %415 = vmatpush.bf16.msra.mxu1 %v782_v7  ;;  %v295_v17 = vpack.c.b16 %v294_v13, %v294_v13  ;;  %v793_v32 = vld [vmem:[%s1067_s25 + $0x80] sm:$0xff] }
  0x2b   : > { %499 = vmatpush.bf16.msra.mxu2 %v798_v8  ;;  %v446_v31 = vpack.c.b16 %v445_v25, %v445_v25  ;;  %v258_v34 = vld [vmem:[%s1095_s30] sm:$0x3] }
  0x2c   : > { %v299_v22 = vshll.u32 %v295_v17, 16  ;;  %v297_v27 = vshrl.u32 %v295_v17, 16 }
  0x2d   : > { %355 = vmatpush.bf16.msra.mxu0 %v789_v9  ;;  %v447_v35 = vrot.slane %v446_v31, 1 }
  0x2e   : > { %416 = vmatpush.bf16.msra.mxu1 %v781_v10  ;;  %v301_v28 = vrot.slane %v299_v22, 1 }
  0x2f   : > { %500 = vmatpush.bf16.msra.mxu2 %v797_v12 }
  0x30   : > { %v302_v33 = vor.u32 %v301_v28, %v297_v27 }
  0x31   : > { %356 = vmatpush.bf16.msra.mxu0 %v788_v14 }
  0x32   : > { %417 = vmatpush.bf16.msra.mxu1 %v780_v15 }
  0x33   : > { %501 = vmatpush.bf16.msra.mxu2 %v796_v16 }
  0x35   : > { %357 = vmatpush.bf16.msra.mxu0 %v787_v18 }
  0x36   : > { %418 = vmatpush.bf16.msra.mxu1 %v779_v19 }
  0x37   : > { %502 = vmatpush.bf16.msra.mxu2 %v795_v20 }
  0x39   : > { %358 = vmatpush.bf16.msra.mxu0 %v786_v23 }
  0x3a   : > { %419 = vmatpush.bf16.msra.mxu1 %v778_v24 }
  0x3b   : > { %503 = vmatpush.bf16.msra.mxu2 %v794_v26 }
  0x3d   : > { %359 = vmatpush.bf16.msra.mxu0 %v785_v29 }
  0x3e   : > { %420 = vmatpush.bf16.msra.mxu1 %v777_v30 }
  0x3f   : > { %504 = vmatpush.bf16.msra.mxu2 %v793_v32 }
  0x40   : > { %360 = vmatmul.bf16.vlgmr.msra.gmra.mxu0 %v302_v33 }
  0x41   : > { %421 = vmatmul.bf16.vlgmr.msra.gmra.mxu1 %v258_v34 }
  0x42   : > { %505 = vmatmul.bf16.vlgmr.msra.gmra.mxu2 %v447_v35 }
  0xbd   : > { %v361_v36 = vpop.f32.mrf.mxu0 }
  0xbe   : > { %v422_v37 = vpop.f32.mrf.mxu1 }
  0xbf   : > { %v423_v38 = vadd.f32 %v422_v37, %v361_v36 }
  0xc5   : > { %v506_v40 = vpop.f32.mrf.mxu2  ;;  %v363_v42 = vpop.f32.mrf.mxu0 }
  0xc6   : > { %v510_v41 = vadd.f32 %v506_v40, %v423_v38  ;;  %v424_v43 = vpop.f32.mrf.mxu1 }
  0xc8   : > { %v515_v44 = vadd.f32 %v877_v39, %v510_v41 }
  0xca   : > { %v516_v45 = vpack.c.bf16 %v515_v44, %v515_v44 }
  0xcc   : > { %517 = vst [vmem:[%s257_s10] sm:$0x3] %v516_v45 }
  0xcd   : > { %v508_v46 = vpop.f32.mrf.mxu2 }
  0xce PF: > { %s16_s19 = sadd.s32 1, %s974_s19   ;;  %s1152_s12 = smov %s950_s13 }
  0xcf   : > { %p13_p2 = scmp.ge.s32.totalorder %s16_s19, 6   ;;  %s1153_s13 = smov %s954_s14 }
  0xd0   : > { %s1154_s14 = smov %s1058_s28  ;;  %s1155_s15 = smov %s966_s17 }
  0xd1   : > { %s1156_s16 = smov %s970_s18  ;;  %s1157_s17 = smov %s1160_s21 }
  0xd2   : > { %s1158_s18 = smov %s1164_s22  ;;  %15 = sbr.rel (!%p13_p2) target bundleno = 5 (0x5), region = 80 }
  0xd7   :  { %545 = vsyncpa [#allocation3], 1 }
  0xd8   :  { %547 = vsyncpa [#allocation3 + $0x1], 1 }

// kernel: dual_human_vqvae_forward.24
= control target key start
LH: loop header
LB: loop body
LE: loop exit
PB: predicated region body
PF: predicated region fallthrough
CT: control target
= control target key end

     0   :  { %s1549_s0 = inlined_call_operand.vmem [shape: bf16[2,2,6,128], index: 0, kind: input, shape index: {}]   ;;  %s1550_s1 = inlined_call_operand.hbm [shape: bf16[2,3,128,128], index: 1, kind: input, shape index: {}]   ;;  %s1551_s2 = inlined_call_operand.vmem [shape: f32[2,1,128], index: 2, kind: input, shape index: {}]   ;;  %s1552_s3 = inlined_call_operand.hbm [shape: bf16[2,1,128,128], index: 3, kind: input, shape index: {}]   ;;  %s1553_s4 = inlined_call_operand.vmem [shape: f32[2,1,128], index: 4, kind: input, shape index: {}]   ;;  %s1554_s5 = inlined_call_operand.vmem [shape: bf16[2,2,4,128], index: 5, kind: output, shape index: {}]  }
   0x1   :  { %1556 = sst [smem:[#allocation10_spill]] %s1550_s1 }
   0x2   :  { %10 = vsyncpa [#allocation3], 0 }
   0x3   :  { %12 = vsyncpa [#allocation3 + $0x1], 0 }
   0x4   :  { %13 = vsyncpa [#allocation5], 0 }
   0x5   :  { %15 = vsyncpa [#allocation5 + $0x1], 0  ;;  %s1357_s18 = smov 0   ;;  %s1359_s19 = smov 0  }
   0x6   :  { %s1361_s20 = smov 0   ;;  %s1363_s21 = smov 0  }
   0x7   :  { %s1365_s22 = smov 0   ;;  %s1367_s23 = smov 0  }
   0x8   :  { %s1369_s24 = smov 0   ;;  %s1371_s25 = smov 0  }
   0x9 LB: > { %s901_s26 = sadd.s32 4294967295, %s1323_s25   ;;  %s30_s27 = sadd.s32 1, %s1315_s23  ;;  %s1323_s25 = sphi %s1371_s25, %s21_s25   ;;  %s1319_s24 = sphi %s1369_s24, %s1570_s24   ;;  %s1315_s23 = sphi %s1367_s23, %s1569_s23   ;;  %s1311_s22 = sphi %s1365_s22, %s1568_s22   ;;  %s1307_s21 = sphi %s1363_s21, %s1567_s21   ;;  %s1303_s20 = sphi %s1361_s20, %s1566_s20   ;;  %s1299_s19 = sphi %s1359_s19, %s1565_s19   ;;  %s1295_s18 = sphi %s1357_s18, %s1564_s18  }
   0xa   : > { %p31_p0 = scmp.ge.s32.totalorder %s30_s27, 2  ;;  %s33_s28 = sadd.s32 1, %s1319_s24 }
   0xb   : > { %s68_s29 = sadd.s32 1, %s1303_s20  ;;  %p75_p1 = scmp.ne.s32.totalorder %s1303_s20, %s1299_s19 }
   0xc   : > { %s1572_s27 = smov (%p31_p0, %s30_s27), 0  ;;  %s1574_s28 = smov (!%p31_p0, %s33_s28), %s1319_s24 }
   0xd   : > { %1557 = sst [smem:[#allocation8_spill]] %s1572_s27  ;;  %p76_p2 = scmp.eq.s32.totalorder %s1323_s25, 0 }
   0xe   : > { %p81_p3 = scmp.ne.s32.totalorder %s1299_s19, %s1295_s18  ;;  %p35_p4 = scmp.ge.s32.totalorder %s1574_s28, 2 }
   0xf   : > { %p82_p5 = scmp.eq.s32.totalorder %s901_s26, 0  ;;  %p77_p6 = por %p76_p2, %p75_p1 }
  0x10   : > { %s1576_s28 = smov (%p35_p4, %s1574_s28), 0  ;;  %p1124_p8 = scmp.lt.s32.totalorder %s1323_s25, 4 }
  0x11   : > { %1558 = sst [smem:[#allocation9_spill]] %s1576_s28  ;;  %p1408_p7 = por %p82_p5, %p81_p3 }
  0x12   : > { %s65_s6 = ssub.s32 %s1319_s24, %s1576_s28  ;;  %s1416_s7 = sand.u32 1, %s1303_s20  }
  0x13   : > { %p66_p9 = scmp.eq.s32.totalorder %s65_s6, 0  ;;  %s1110_s8 = smul.u32 192, %s1416_s7 }
  0x14   : > { %p1419_p10 = pnand %p1124_p8, %p77_p6  ;;  %s1111_s11 = smul.u32 192, %s1319_s24 }
  0x15   : > { %s1424_s10 = scalar_select %p66_p9, %s1303_s20, %s68_s29  }
  0x16   : > { %s226_s12 = scalar_lea.vmem [#allocation2], %s1110_s8  ;;  %s1561_s1 = sld [smem:[#allocation10_spill]] }
  0x17   : > { %s234_s13 = sshll.u32 %s226_s12, 4  ;;  %s223_s18 = scalar_lea.sflag [#allocation3], %s1416_s7  ;;  %s235_s13 = int_to_ptr.vmem [resolvable:$true] %s234_s13 }
  0x18   : > { %s1325_s26 = smov 64   ;;  %s1326_s6 = smov 4  }
  0x19   : > { %p909_p11 = scmp.ge.s32.totalorder %s1323_s25, 1  ;;  %p276_p12 = scmp.lt.s32.totalorder %s1323_s25, 5 }
  0x1a   : > { %s906_s29 = sshll.u32 %s1416_s7, 6  ;;  %s1077_s8 = sshll.u32 %s1319_s24, 6 }
  0x1b   : > { %p277_p13 = pnand %p909_p11, %p276_p12  ;;  %s254_s12 = scalar_lea.vmem [#allocation4], %s906_s29 }
  0x1c   : > { %s231_s16 = scalar_lea.hbm %s1561_s1, %s1111_s11  ;;  %s262_s28 = sshll.u32 %s254_s12, 4  ;;  %s263_s28 = int_to_ptr.vmem [resolvable:$true] %s262_s28 }
  0x1d   : > { %s232_s17 = sshll.u32 %s231_s16, 4  ;;  %s259_s11 = scalar_lea.hbm %s1552_s3, %s1077_s8  ;;  %s233_s17 = int_to_ptr.hbm [resolvable:$true] %s232_s17 }
  0x1e   : > { %1120 = dma.hbm_to_vmem [thread:$0]  (!%p1419_p10), %s233_s17, 3072, %s235_s13, %s223_s18, %s1325_s26, %s1325_s26, %s1326_s6  }
  0x1f   : > { %s260_s15 = sshll.u32 %s259_s11, 4  ;;  %s251_s16 = scalar_lea.sflag [#allocation5], %s1416_s7  ;;  %s261_s15 = int_to_ptr.hbm [resolvable:$true] %s260_s15 }
  0x20   : > { %1123 = dma.hbm_to_vmem [thread:$0]  (!%p1419_p10), %s261_s15, 1024, %s263_s28, %s251_s16, %s1325_s26, %s1325_s26, %s1326_s6  }
  0x21   : > { %280 = sbr.rel (%p277_p13) target bundleno = 369 (0x171), region = 40  ;;  %s282_s13 = sand.u32 (!%p277_p13), 1, %s1299_s19  }
  0x22   : > { %s1112_s17 = smul.u32 (!%p277_p13), 192, %s282_s13  ;;  %s283_s18 = scalar_lea.sflag (!%p277_p13), [#allocation3], %s282_s13 }
  0x24   : > { %s1444_s1 = scalar_lea.vmem (!%p277_p13), [#allocation2], %s1112_s17 }
  0x26   : > { %1286 = dma.done.wait (%p1408_p7), %s283_s18, 3072  }
  0x27   : > { %1288 = vsyncadd (%p1408_p7), %s283_s18, 4294964224  ;;  %s910_s27 = sshll.u32 %s282_s13, 6  ;;  %s293_s29 = scalar_lea.sflag [#allocation5], %s282_s13 }
  0x28   : > { %s1450_s8 = scalar_lea.vmem [#allocation4], %s910_s27 }
  0x29   : > { %1290 = dma.done.wait (%p1408_p7), %s293_s29, 1024  }
  0x2a   : > { %1292 = vsyncadd (%p1408_p7), %s293_s29, 4294966272  ;;  %p346_p0 = scmp.lt.s32.totalorder %s1311_s22, 1  ;;  %p348_p1 = scmp.lt.s32.totalorder %s1307_s21, 1  ;;  %v1093_v0 = vld [vmem:[%s1444_s1 + $0x78] sm:$0xff]  ;;  %v1092_v3 = vld [vmem:[%s1444_s1 + $0x70] sm:$0xff]  ;;  %vm720_vm0 = vcmask 1041408  }
  0x2b   : > { %v1085_v1 = vld [vmem:[%s1444_s1 + $0x38] sm:$0xff]  ;;  %465 = vmatpush.bf16.msra.mxu0 %v1093_v0  ;;  %v1084_v4 = vld [vmem:[%s1444_s1 + $0x30] sm:$0xff]  ;;  %v1091_v6 = vld [vmem:[%s1444_s1 + $0x68] sm:$0xff]  ;;  %vm724_vm1 = vcmask 1043458   ;;  %vm728_vm2 = vsmask.f32 1280 }
  0x2c   : > { %s1578_s22 = smov (!%p346_p0, %s1311_s22), 1  ;;  %s1580_s21 = smov (!%p348_p1, %s1307_s21), 1  ;;  %v1101_v2 = vld [vmem:[%s1444_s1 + $0xb8] sm:$0xff]  ;;  %526 = vmatpush.bf16.msra.mxu1 %v1085_v1  ;;  %v1100_v5 = vld [vmem:[%s1444_s1 + $0xb0] sm:$0xff]  ;;  %v1083_v7 = vld [vmem:[%s1444_s1 + $0x28] sm:$0xff] }
  0x2d   : > { %s911_s28 = sshll.u32 %s1578_s22, 1  ;;  %611 = vmatpush.bf16.msra.mxu2 %v1101_v2  ;;  %v1099_v8 = vld [vmem:[%s1444_s1 + $0xa8] sm:$0xff]  ;;  %v1109_v11 = vld [vmem:[%s1450_s8 + $0x38] sm:$0xff]  ;;  %v1090_v12 = vld [vmem:[%s1444_s1 + $0x60] sm:$0xff]  ;;  %s356_s14 = scalar_lea.vmem %s1551_s2, %s1578_s22  ;;  %vm729_vm3 = vsmask.f32 3336 }
  0x2e   : > { %s1463_s30 = sadd.s32 %s911_s28, %s1580_s21  ;;  %v1082_v13 = vld [vmem:[%s1444_s1 + $0x20] sm:$0xff]  ;;  %700 = vmatpush.bf16.msra.mxu3 %v1109_v11  ;;  %v1108_v15 = vld [vmem:[%s1450_s8 + $0x30] sm:$0xff]  ;;  %v1089_v17 = vld [vmem:[%s1444_s1 + $0x58] sm:$0xff]  ;;  %s359_s16 = scalar_lea.vmem %s1553_s4, %s1578_s22  ;;  %vm731_vm5 = vsmask.f32 5392 }
  0x2f   : > { %s912_s7 = sshll.u32 %s1463_s30, 2  ;;  %466 = vmatpush.bf16.msra.mxu0 %v1092_v3  ;;  %v1098_v14 = vld [vmem:[%s1444_s1 + $0xa0] sm:$0xff]  ;;  %v1081_v18 = vld [vmem:[%s1444_s1 + $0x18] sm:$0xff]  ;;  %v1107_v21 = vld [vmem:[%s1450_s8 + $0x28] sm:$0xff]  ;;  %vm733_vm7 = vsmask.f32 7448 }
  0x30   : > { %s1475_s21 = scalar_lea.vmem %s1549_s0, %s912_s7  ;;  %527 = vmatpush.bf16.msra.mxu1 %v1084_v4  ;;  %v1097_v19 = vld [vmem:[%s1444_s1 + $0x98] sm:$0xff]  ;;  %v1088_v23 = vld [vmem:[%s1444_s1 + $0x50] sm:$0xff]  ;;  %v1106_v28 = vld [vmem:[%s1450_s8 + $0x20] sm:$0xff] }
  0x31   : > { %612 = vmatpush.bf16.msra.mxu2 %v1100_v5  ;;  %v1481_v9 = vld [vmem:[%s1475_s21] sm:$0x7]  ;;  %v1080_v24 = vld [vmem:[%s1444_s1 + $0x10] sm:$0xff]  ;;  %v1087_v31 = vld [vmem:[%s1444_s1 + $0x48] sm:$0xff] }
  0x32   : > { %v389_v10 = vunpack.c.l.bf16 %v1481_v9  ;;  %v539_v20 = vld [vmem:[%s1475_s21] sm:$0x6]  ;;  %701 = vmatpush.bf16.msra.mxu3 %v1108_v15  ;;  %v1096_v27 = vld [vmem:[%s1444_s1 + $0x90] sm:$0xff]  ;;  %v1079_v32 = vld [vmem:[%s1444_s1 + $0x8] sm:$0xff] }
  0x33   : > { %467 = vmatpush.bf16.msra.mxu0 %v1091_v6  ;;  %v368_v25 = vld [vmem:[%s1475_s21] sm:$0x3]  ;;  %v540_v26 = vunpack.c.l.bf16 %v539_v20  ;;  %v1095_v34 = vld [vmem:[%s1444_s1 + $0x88] sm:$0xff]  ;;  %v1105_v45 = vld [vmem:[%s1450_s8 + $0x18] sm:$0xff] }
  0x34   : > { %528 = vmatpush.bf16.msra.mxu1 %v1083_v7  ;;  %v390_v16 = vmax.f32 %v389_v10, 0.0  ;;  %v369_v30 = vunpack.c.l.bf16 %v368_v25  ;;  %v1086_v38 = vld [vmem:[%s1444_s1 + $0x40] sm:$0xff]  ;;  %v1104_v46 = vld [vmem:[%s1450_s8 + $0x10] sm:$0xff]  ;;  %v1103_v47 = vld [vmem:[%s1450_s8 + $0x8] sm:$0xff] }
  0x35   : > { %613 = vmatpush.bf16.msra.mxu2 %v1099_v8  ;;  %v541_v33 = vmax.f32 %v540_v26, 0.0  ;;  %v1078_v39 = vld [vmem:[%s1444_s1] sm:$0xff]  ;;  %vm730_vm4 = vmor %vm728_vm2, %vm729_vm3 }
  0x36   : > { %v391_v22 = vpack.c.bf16 %v390_v16, %v390_v16  ;;  %702 = vmatpush.bf16.msra.mxu3 %v1107_v21  ;;  %v370_v37 = vmax.f32 %v369_v30, 0.0  ;;  %v1094_v41 = vld [vmem:[%s1444_s1 + $0x80] sm:$0xff]  ;;  %vm732_vm6 = vmor %vm730_vm4, %vm731_vm5  ;;  %s914_s1 = sshll.u32 %s1463_s30, 1 }
  0x37   : > { %468 = vmatpush.bf16.msra.mxu0 %v1090_v12  ;;  %v542_v40 = vpack.c.bf16 %v541_v33, %v541_v33  ;;  %v1102_v48 = vld [vmem:[%s1450_s8] sm:$0xff]  ;;  %vm734_vm8 = vmor %vm732_vm6, %vm733_vm7  ;;  %s367_s17 = scalar_lea.vmem %s1554_s5, %s914_s1 }
  0x38   : > { %529 = vmatpush.bf16.msra.mxu1 %v1082_v13  ;;  %v412_v29 = vshll.u32 %v391_v22, 16  ;;  %v410_v35 = vshrl.u32 %v391_v22, 16  ;;  %v371_v43 = vpack.c.bf16 %v370_v37, %v370_v37  ;;  %v1191_v52 = vld [vmem:[%s356_s14] ss:$0 sm:$0xff] }
  0x39   : > { %614 = vmatpush.bf16.msra.mxu2 %v1098_v14  ;;  %v561_v44 = vrot.slane %v542_v40, 1  ;;  %v1192_v61 = vld [vmem:[%s359_s16] ss:$0 sm:$0xff] }
  0x3a   : > { %703 = vmatpush.bf16.msra.mxu3 %v1106_v28  ;;  %v414_v36 = vrot.slane %v412_v29, 1 }
  0x3b   : > { %469 = vmatpush.bf16.msra.mxu0 %v1089_v17 }
  0x3c   : > { %530 = vmatpush.bf16.msra.mxu1 %v1081_v18  ;;  %v415_v42 = vor.u32 %v414_v36, %v410_v35 }
  0x3d   : > { %615 = vmatpush.bf16.msra.mxu2 %v1097_v19 }
  0x3e   : > { %704 = vmatpush.bf16.msra.mxu3 %v1105_v45 }
  0x3f   : > { %470 = vmatpush.bf16.msra.mxu0 %v1088_v23 }
  0x40   : > { %531 = vmatpush.bf16.msra.mxu1 %v1080_v24 }
  0x41   : > { %616 = vmatpush.bf16.msra.mxu2 %v1096_v27 }
  0x42   : > { %705 = vmatpush.bf16.msra.mxu3 %v1104_v46 }
  0x43   : > { %471 = vmatpush.bf16.msra.mxu0 %v1087_v31 }
  0x44   : > { %532 = vmatpush.bf16.msra.mxu1 %v1079_v32 }
  0x45   : > { %617 = vmatpush.bf16.msra.mxu2 %v1095_v34 }
  0x46   : > { %706 = vmatpush.bf16.msra.mxu3 %v1103_v47 }
  0x47   : > { %472 = vmatpush.bf16.msra.mxu0 %v1086_v38 }
  0x48   : > { %533 = vmatpush.bf16.msra.mxu1 %v1078_v39 }
  0x49   : > { %618 = vmatpush.bf16.msra.mxu2 %v1094_v41 }
  0x4a   : > { %473 = vmatmul.bf16.vlgmr.msra.gmra.mxu0 %v415_v42  ;;  %707 = vmatpush.bf16.msra.mxu3 %v1102_v48 }
  0x4b   : > { %534 = vmatmul.bf16.vlgmr.msra.gmra.mxu1 %v371_v43 }
  0x4c   : > { %619 = vmatmul.bf16.vlgmr.msra.gmra.mxu2 %v561_v44 }
  0xc7   : > { %v474_v49 = vpop.f32.mrf.mxu0 }
  0xc8   : > { %v535_v50 = vpop.f32.mrf.mxu1 }
  0xc9   : > { %v536_v51 = vadd.f32 %v535_v50, %v474_v49 }
  0xcf   : > { %v620_v53 = vpop.f32.mrf.mxu2  ;;  %v476_v55 = vpop.f32.mrf.mxu0 }
  0xd0   : > { %v624_v54 = vadd.f32 %v620_v53, %v536_v51  ;;  %v537_v56 = vpop.f32.mrf.mxu1 }
  0xd2   : > { %v629_v57 = vadd.f32 %v1191_v52, %v624_v54 }
  0xd4   : > { %v630_v58 = vmax.f32 %v629_v57, 0.0 }
  0xd6   : > { %v631_v59 = vpack.c.bf16 %v630_v58, %v630_v58 }
  0xd7   : > { %v622_v60 = vpop.f32.mrf.mxu2 }
  0xd8   : > { %708 = vmatmul.bf16.vlgmr.msra.gmra.mxu3 %v631_v59 }
 0x15b   : > { %v709_v62 = vpop.f32.mrf.mxu3 }
 0x15c   : > { %v710_v63 = vadd.f32 %v1192_v61, %v709_v62 }
 0x15e   : > { %v714_v0 = vrot.slane %v710_v63, 7 }
 0x160   : > { %v716_v1 = vadd.f32 %v714_v0, %v389_v10 }
 0x162   : > { %v717_v2 = vpack.c.bf16 %v716_v1, %v716_v1 }
 0x163   : > { %v711_v3 = vpop.f32.mrf.mxu3 }
 0x164   : > { %v719_v4 = vrot.slane %v717_v2, 2 }
 0x166   : > { %v723_v5 = vsel %vm720_vm0, %v717_v2, %v719_v4  ;;  %v725_v6 = vsel %vm724_vm1, %v717_v2, %v719_v4 }
 0x167   : > { %v727_v7 = vrot.slane %v725_v6, 2  ;;  %v735_v8 = vshrl.u32 %v723_v5, 16  ;;  %v738_v11 = vshll.u32 %v723_v5, 16 }
 0x169   : > { %v737_v12 = vrot.slane %v735_v8, 6  ;;  %v740_v9 = vrot.slane %v738_v11, 7  ;;  %v744_v10 = vshll.u32 %v727_v7, 16 }
 0x16b   : > { %v741_v13 = vor.u32 %v740_v9, %v737_v12  ;;  %v746_v15 = vrot.slane %v744_v10, 7 }
 0x16d   : > { %v742_v14 = vrot.slane %v741_v13, 2 }
 0x16f   : > { %v747_v16 = vsel %vm734_vm8, %v742_v14, %v746_v15 }
 0x170   : > { %749 = vst [vmem:[%s367_s17] sm:$0x3] %v747_v16 }
 0x171 PF: > { %s21_s25 = sadd.s32 1, %s1323_s25   ;;  %s1562_s27 = sld [smem:[#allocation8_spill]] }
 0x172   : > { %p18_p2 = scmp.ge.s32.totalorder %s21_s25, 6   ;;  %s1563_s29 = sld [smem:[#allocation9_spill]] }
 0x173   : > { %s1564_s18 = smov %s1299_s19  ;;  %s1565_s19 = smov %s1303_s20 }
 0x174   : > { %s1566_s20 = smov %s1424_s10  ;;  %s1567_s21 = smov %s1315_s23 }
 0x175   : > { %s1568_s22 = smov %s1319_s24  ;;  %20 = sbr.rel (!%p18_p2) target bundleno = 9 (0x9), region = 104 }
 0x177   : > { %s1569_s23 = smov %s1562_s27 }
 0x178   : > { %s1570_s24 = smov %s1563_s29 }
 0x17a   :  { %777 = vsyncpa [#allocation3], 1 }
 0x17b   :  { %779 = vsyncpa [#allocation3 + $0x1], 1 }
 0x17c   :  { %780 = vsyncpa [#allocation5], 1 }
 0x17d   :  { %782 = vsyncpa [#allocation5 + $0x1], 1 }

// kernel: dual_human_vqvae_forward.23
= control target key start
LH: loop header
LB: loop body
LE: loop exit
PB: predicated region body
PF: predicated region fallthrough
CT: control target
= control target key end

     0   :  { %s1565_s0 = inlined_call_operand.vmem [shape: bf16[2,2,10,128], index: 0, kind: input, shape index: {}]   ;;  %s1566_s1 = inlined_call_operand.hbm [shape: bf16[2,3,128,128], index: 1, kind: input, shape index: {}]   ;;  %s1567_s2 = inlined_call_operand.vmem [shape: f32[2,1,128], index: 2, kind: input, shape index: {}]   ;;  %s1568_s3 = inlined_call_operand.hbm [shape: bf16[2,1,128,128], index: 3, kind: input, shape index: {}]   ;;  %s1569_s4 = inlined_call_operand.vmem [shape: f32[2,1,128], index: 4, kind: input, shape index: {}]   ;;  %s1570_s5 = inlined_call_operand.vmem [shape: bf16[2,2,4,128], index: 5, kind: output, shape index: {}]  }
   0x1   :  { %1572 = sst [smem:[#allocation10_spill]] %s1566_s1 }
   0x2   :  { %10 = vsyncpa [#allocation3], 0 }
   0x3   :  { %12 = vsyncpa [#allocation3 + $0x1], 0 }
   0x4   :  { %13 = vsyncpa [#allocation5], 0 }
   0x5   :  { %15 = vsyncpa [#allocation5 + $0x1], 0  ;;  %s1368_s18 = smov 0   ;;  %s1370_s19 = smov 0  }
   0x6   :  { %s1372_s20 = smov 0   ;;  %s1374_s21 = smov 0  }
   0x7   :  { %s1376_s22 = smov 0   ;;  %s1378_s23 = smov 0  }
   0x8   :  { %s1380_s24 = smov 0   ;;  %s1382_s25 = smov 0  }
   0x9 LB: > { %s910_s26 = sadd.s32 4294967295, %s1334_s25   ;;  %s30_s27 = sadd.s32 1, %s1326_s23  ;;  %s1334_s25 = sphi %s1382_s25, %s21_s25   ;;  %s1330_s24 = sphi %s1380_s24, %s1586_s24   ;;  %s1326_s23 = sphi %s1378_s23, %s1585_s23   ;;  %s1322_s22 = sphi %s1376_s22, %s1584_s22   ;;  %s1318_s21 = sphi %s1374_s21, %s1583_s21   ;;  %s1314_s20 = sphi %s1372_s20, %s1582_s20   ;;  %s1310_s19 = sphi %s1370_s19, %s1581_s19   ;;  %s1306_s18 = sphi %s1368_s18, %s1580_s18  }
   0xa   : > { %p31_p0 = scmp.ge.s32.totalorder %s30_s27, 2  ;;  %s33_s28 = sadd.s32 1, %s1330_s24 }
   0xb   : > { %s68_s29 = sadd.s32 1, %s1314_s20  ;;  %p75_p1 = scmp.ne.s32.totalorder %s1314_s20, %s1310_s19 }
   0xc   : > { %s1588_s27 = smov (%p31_p0, %s30_s27), 0  ;;  %s1590_s28 = smov (!%p31_p0, %s33_s28), %s1330_s24 }
   0xd   : > { %1573 = sst [smem:[#allocation8_spill]] %s1588_s27  ;;  %p76_p2 = scmp.eq.s32.totalorder %s1334_s25, 0 }
   0xe   : > { %p81_p3 = scmp.ne.s32.totalorder %s1310_s19, %s1306_s18  ;;  %p35_p4 = scmp.ge.s32.totalorder %s1590_s28, 2 }
   0xf   : > { %p82_p5 = scmp.eq.s32.totalorder %s910_s26, 0  ;;  %p77_p6 = por %p76_p2, %p75_p1 }
  0x10   : > { %s1592_s28 = smov (%p35_p4, %s1590_s28), 0  ;;  %p1135_p8 = scmp.lt.s32.totalorder %s1334_s25, 4 }
  0x11   : > { %1574 = sst [smem:[#allocation9_spill]] %s1592_s28  ;;  %p1419_p7 = por %p82_p5, %p81_p3 }
  0x12   : > { %s65_s6 = ssub.s32 %s1330_s24, %s1592_s28  ;;  %s1427_s7 = sand.u32 1, %s1314_s20  }
  0x13   : > { %p66_p9 = scmp.eq.s32.totalorder %s65_s6, 0  ;;  %s1121_s8 = smul.u32 192, %s1427_s7 }
  0x14   : > { %p1430_p10 = pnand %p1135_p8, %p77_p6  ;;  %s1122_s11 = smul.u32 192, %s1330_s24 }
  0x15   : > { %s1435_s10 = scalar_select %p66_p9, %s1314_s20, %s68_s29  }
  0x16   : > { %s227_s12 = scalar_lea.vmem [#allocation2], %s1121_s8  ;;  %s1577_s1 = sld [smem:[#allocation10_spill]] }
  0x17   : > { %s235_s13 = sshll.u32 %s227_s12, 4  ;;  %s224_s18 = scalar_lea.sflag [#allocation3], %s1427_s7  ;;  %s236_s13 = int_to_ptr.vmem [resolvable:$true] %s235_s13 }
  0x18   : > { %s1336_s26 = smov 64   ;;  %s1337_s6 = smov 4  }
  0x19   : > { %p918_p11 = scmp.ge.s32.totalorder %s1334_s25, 1  ;;  %p277_p12 = scmp.lt.s32.totalorder %s1334_s25, 5 }
  0x1a   : > { %s915_s29 = sshll.u32 %s1427_s7, 6  ;;  %s1088_s8 = sshll.u32 %s1330_s24, 6 }
  0x1b   : > { %p278_p13 = pnand %p918_p11, %p277_p12  ;;  %s255_s12 = scalar_lea.vmem [#allocation4], %s915_s29 }
  0x1c   : > { %s232_s16 = scalar_lea.hbm %s1577_s1, %s1122_s11  ;;  %s263_s28 = sshll.u32 %s255_s12, 4  ;;  %s264_s28 = int_to_ptr.vmem [resolvable:$true] %s263_s28 }
  0x1d   : > { %s233_s17 = sshll.u32 %s232_s16, 4  ;;  %s260_s11 = scalar_lea.hbm %s1568_s3, %s1088_s8  ;;  %s234_s17 = int_to_ptr.hbm [resolvable:$true] %s233_s17 }
  0x1e   : > { %1131 = dma.hbm_to_vmem [thread:$0]  (!%p1430_p10), %s234_s17, 3072, %s236_s13, %s224_s18, %s1336_s26, %s1336_s26, %s1337_s6  }
  0x1f   : > { %s261_s15 = sshll.u32 %s260_s11, 4  ;;  %s252_s16 = scalar_lea.sflag [#allocation5], %s1427_s7  ;;  %s262_s15 = int_to_ptr.hbm [resolvable:$true] %s261_s15 }
  0x20   : > { %1134 = dma.hbm_to_vmem [thread:$0]  (!%p1430_p10), %s262_s15, 1024, %s264_s28, %s252_s16, %s1336_s26, %s1336_s26, %s1337_s6  }
  0x21   : > { %281 = sbr.rel (%p278_p13) target bundleno = 369 (0x171), region = 40  ;;  %s283_s13 = sand.u32 (!%p278_p13), 1, %s1310_s19  }
  0x22   : > { %s1123_s17 = smul.u32 (!%p278_p13), 192, %s283_s13  ;;  %s284_s18 = scalar_lea.sflag (!%p278_p13), [#allocation3], %s283_s13 }
  0x24   : > { %s1455_s1 = scalar_lea.vmem (!%p278_p13), [#allocation2], %s1123_s17 }
  0x26   : > { %1297 = dma.done.wait (%p1419_p7), %s284_s18, 3072  }
  0x27   : > { %1299 = vsyncadd (%p1419_p7), %s284_s18, 4294964224  ;;  %s919_s27 = sshll.u32 %s283_s13, 6  ;;  %s294_s29 = scalar_lea.sflag [#allocation5], %s283_s13 }
  0x28   : > { %s1461_s8 = scalar_lea.vmem [#allocation4], %s919_s27 }
  0x29   : > { %1301 = dma.done.wait (%p1419_p7), %s294_s29, 1024  }
  0x2a   : > { %1303 = vsyncadd (%p1419_p7), %s294_s29, 4294966272  ;;  %p348_p0 = scmp.lt.s32.totalorder %s1322_s22, 1  ;;  %p350_p1 = scmp.lt.s32.totalorder %s1318_s21, 1  ;;  %v1104_v0 = vld [vmem:[%s1455_s1 + $0x78] sm:$0xff]  ;;  %v1103_v3 = vld [vmem:[%s1455_s1 + $0x70] sm:$0xff]  ;;  %vm727_vm0 = vcmask 1041408  }
  0x2b   : > { %v1096_v1 = vld [vmem:[%s1455_s1 + $0x38] sm:$0xff]  ;;  %469 = vmatpush.bf16.msra.mxu0 %v1104_v0  ;;  %v1095_v4 = vld [vmem:[%s1455_s1 + $0x30] sm:$0xff]  ;;  %v1102_v6 = vld [vmem:[%s1455_s1 + $0x68] sm:$0xff]  ;;  %vm731_vm1 = vcmask 1043458   ;;  %vm735_vm2 = vsmask.f32 256 }
  0x2c   : > { %s1594_s22 = smov (!%p348_p0, %s1322_s22), 1  ;;  %s1596_s21 = smov (!%p350_p1, %s1318_s21), 1  ;;  %v1112_v2 = vld [vmem:[%s1455_s1 + $0xb8] sm:$0xff]  ;;  %530 = vmatpush.bf16.msra.mxu1 %v1096_v1  ;;  %v1111_v5 = vld [vmem:[%s1455_s1 + $0xb0] sm:$0xff]  ;;  %v1094_v7 = vld [vmem:[%s1455_s1 + $0x28] sm:$0xff] }
  0x2d   : > { %s921_s28 = sshll.u32 %s1594_s22, 2  ;;  %s920_s30 = sshll.u32 %s1596_s21, 1  ;;  %618 = vmatpush.bf16.msra.mxu2 %v1112_v2  ;;  %v1110_v8 = vld [vmem:[%s1455_s1 + $0xa8] sm:$0xff]  ;;  %v1120_v11 = vld [vmem:[%s1461_s8 + $0x38] sm:$0xff]  ;;  %v1101_v12 = vld [vmem:[%s1455_s1 + $0x60] sm:$0xff] }
  0x2e   : > { %s354_s7 = sadd.s32 %s921_s28, %s920_s30  ;;  %v1093_v13 = vld [vmem:[%s1455_s1 + $0x20] sm:$0xff]  ;;  %707 = vmatpush.bf16.msra.mxu3 %v1120_v11  ;;  %v1119_v15 = vld [vmem:[%s1461_s8 + $0x30] sm:$0xff]  ;;  %v1100_v17 = vld [vmem:[%s1455_s1 + $0x58] sm:$0xff]  ;;  %s359_s15 = scalar_lea.vmem %s1567_s2, %s1594_s22  ;;  %vm736_vm3 = vsmask.f32 2312 }
  0x2f   : > { %s922_s9 = sshll.u32 %s354_s7, 2  ;;  %470 = vmatpush.bf16.msra.mxu0 %v1103_v3  ;;  %v1109_v14 = vld [vmem:[%s1455_s1 + $0xa0] sm:$0xff]  ;;  %v1092_v18 = vld [vmem:[%s1455_s1 + $0x18] sm:$0xff]  ;;  %v1118_v22 = vld [vmem:[%s1461_s8 + $0x28] sm:$0xff]  ;;  %s923_s17 = sshll.u32 %s1594_s22, 1 }
  0x30   : > { %s1486_s12 = scalar_lea.vmem %s1565_s0, %s922_s9  ;;  %531 = vmatpush.bf16.msra.mxu1 %v1095_v4  ;;  %v1108_v19 = vld [vmem:[%s1455_s1 + $0x98] sm:$0xff]  ;;  %v1099_v24 = vld [vmem:[%s1455_s1 + $0x50] sm:$0xff]  ;;  %v1117_v30 = vld [vmem:[%s1461_s8 + $0x20] sm:$0xff]  ;;  %s1529_s18 = sadd.s32 %s923_s17, %s1596_s21  ;;  %vm738_vm5 = vsmask.f32 4368 }
  0x31   : > { %619 = vmatpush.bf16.msra.mxu2 %v1111_v5  ;;  %v1492_v9 = vld [vmem:[%s1486_s12] sm:$0xe]  ;;  %v544_v21 = vld [vmem:[%s1486_s12 + $0x4] sm:$0x1]  ;;  %v1091_v25 = vld [vmem:[%s1455_s1 + $0x10] sm:$0xff]  ;;  %s924_s21 = sshll.u32 %s1529_s18, 1 }
  0x32   : > { %v392_v10 = vunpack.c.l.bf16 %v1492_v9  ;;  %v543_v20 = vld [vmem:[%s1486_s12] sm:$0x8]  ;;  %708 = vmatpush.bf16.msra.mxu3 %v1119_v15  ;;  %v371_v26 = vld [vmem:[%s1486_s12] sm:$0x3]  ;;  %v546_v28 = vunpack.c.l.bf16 %v544_v21  ;;  %v1107_v29 = vld [vmem:[%s1455_s1 + $0x90] sm:$0xff]  ;;  %s370_s29 = scalar_lea.vmem %s1570_s5, %s924_s21 }
  0x33   : > { %471 = vmatpush.bf16.msra.mxu0 %v1102_v6  ;;  %v545_v27 = vunpack.c.l.bf16 %v543_v20  ;;  %v372_v33 = vunpack.c.l.bf16 %v371_v26  ;;  %v1098_v34 = vld [vmem:[%s1455_s1 + $0x48] sm:$0xff]  ;;  %v1097_v42 = vld [vmem:[%s1455_s1 + $0x40] sm:$0xff]  ;;  %v1116_v49 = vld [vmem:[%s1461_s8 + $0x18] sm:$0xff]  ;;  %vm740_vm7 = vsmask.f32 6424 }
  0x34   : > { %532 = vmatpush.bf16.msra.mxu1 %v1094_v7  ;;  %v393_v16 = vmax.f32 %v392_v10, 0.0  ;;  %v1090_v35 = vld [vmem:[%s1455_s1 + $0x8] sm:$0xff]  ;;  %v548_v37 = vmax.f32 %v546_v28, 0.0  ;;  %v1089_v43 = vld [vmem:[%s1455_s1] sm:$0xff]  ;;  %v1115_v50 = vld [vmem:[%s1461_s8 + $0x10] sm:$0xff] }
  0x35   : > { %620 = vmatpush.bf16.msra.mxu2 %v1110_v8  ;;  %v547_v36 = vmax.f32 %v545_v27, 0.0  ;;  %v1106_v38 = vld [vmem:[%s1455_s1 + $0x88] sm:$0xff]  ;;  %v373_v41 = vmax.f32 %v372_v33, 0.0  ;;  %v1105_v45 = vld [vmem:[%s1455_s1 + $0x80] sm:$0xff]  ;;  %s362_s1 = scalar_lea.vmem %s1569_s4, %s1594_s22  ;;  %vm737_vm4 = vmor %vm735_vm2, %vm736_vm3 }
  0x36   : > { %v394_v23 = vpack.c.bf16 %v393_v16, %v393_v16  ;;  %709 = vmatpush.bf16.msra.mxu3 %v1118_v22  ;;  %v1114_v51 = vld [vmem:[%s1461_s8 + $0x8] sm:$0xff]  ;;  %v1113_v52 = vld [vmem:[%s1461_s8] sm:$0xff]  ;;  %vm739_vm6 = vmor %vm737_vm4, %vm738_vm5 }
  0x37   : > { %472 = vmatpush.bf16.msra.mxu0 %v1101_v12  ;;  %v549_v44 = vpack.c.bf16 %v548_v37, %v547_v36  ;;  %v374_v47 = vpack.c.bf16 %v373_v41, %v373_v41  ;;  %v1202_v56 = vld [vmem:[%s359_s15] ss:$0 sm:$0xff]  ;;  %vm741_vm8 = vmor %vm739_vm6, %vm740_vm7 }
  0x38   : > { %533 = vmatpush.bf16.msra.mxu1 %v1093_v13  ;;  %v413_v31 = vshrl.u32 %v394_v23, 16  ;;  %v416_v32 = vshll.u32 %v394_v23, 16  ;;  %v1203_v1 = vld [vmem:[%s362_s1] ss:$0 sm:$0xff] }
  0x39   : > { %621 = vmatpush.bf16.msra.mxu2 %v1109_v14  ;;  %v568_v48 = vrot.slane %v549_v44, 3 }
  0x3a   : > { %710 = vmatpush.bf16.msra.mxu3 %v1117_v30  ;;  %v415_v39 = vrot.slane %v413_v31, 1  ;;  %v418_v40 = vrot.slane %v416_v32, 2 }
  0x3b   : > { %473 = vmatpush.bf16.msra.mxu0 %v1100_v17 }
  0x3c   : > { %534 = vmatpush.bf16.msra.mxu1 %v1092_v18  ;;  %v419_v46 = vor.u32 %v418_v40, %v415_v39 }
  0x3d   : > { %622 = vmatpush.bf16.msra.mxu2 %v1108_v19 }
  0x3e   : > { %711 = vmatpush.bf16.msra.mxu3 %v1116_v49 }
  0x3f   : > { %474 = vmatpush.bf16.msra.mxu0 %v1099_v24 }
  0x40   : > { %535 = vmatpush.bf16.msra.mxu1 %v1091_v25 }
  0x41   : > { %623 = vmatpush.bf16.msra.mxu2 %v1107_v29 }
  0x42   : > { %712 = vmatpush.bf16.msra.mxu3 %v1115_v50 }
  0x43   : > { %475 = vmatpush.bf16.msra.mxu0 %v1098_v34 }
  0x44   : > { %536 = vmatpush.bf16.msra.mxu1 %v1090_v35 }
  0x45   : > { %624 = vmatpush.bf16.msra.mxu2 %v1106_v38 }
  0x46   : > { %713 = vmatpush.bf16.msra.mxu3 %v1114_v51 }
  0x47   : > { %476 = vmatpush.bf16.msra.mxu0 %v1097_v42 }
  0x48   : > { %537 = vmatpush.bf16.msra.mxu1 %v1089_v43 }
  0x49   : > { %625 = vmatpush.bf16.msra.mxu2 %v1105_v45 }
  0x4a   : > { %477 = vmatmul.bf16.vlgmr.msra.gmra.mxu0 %v419_v46  ;;  %714 = vmatpush.bf16.msra.mxu3 %v1113_v52 }
  0x4b   : > { %538 = vmatmul.bf16.vlgmr.msra.gmra.mxu1 %v374_v47 }
  0x4c   : > { %626 = vmatmul.bf16.vlgmr.msra.gmra.mxu2 %v568_v48 }
  0xc7   : > { %v478_v53 = vpop.f32.mrf.mxu0 }
  0xc8   : > { %v539_v54 = vpop.f32.mrf.mxu1 }
  0xc9   : > { %v540_v55 = vadd.f32 %v539_v54, %v478_v53 }
  0xcf   : > { %v627_v57 = vpop.f32.mrf.mxu2  ;;  %v480_v59 = vpop.f32.mrf.mxu0 }
  0xd0   : > { %v631_v58 = vadd.f32 %v627_v57, %v540_v55  ;;  %v541_v60 = vpop.f32.mrf.mxu1 }
  0xd2   : > { %v636_v61 = vadd.f32 %v1202_v56, %v631_v58 }
  0xd4   : > { %v637_v62 = vmax.f32 %v636_v61, 0.0 }
  0xd6   : > { %v638_v63 = vpack.c.bf16 %v637_v62, %v637_v62 }
  0xd7   : > { %v629_v0 = vpop.f32.mrf.mxu2 }
  0xd8   : > { %715 = vmatmul.bf16.vlgmr.msra.gmra.mxu3 %v638_v63 }
 0x15b   : > { %v716_v2 = vpop.f32.mrf.mxu3 }
 0x15c   : > { %v717_v3 = vadd.f32 %v1203_v1, %v716_v2 }
 0x15e   : > { %v721_v4 = vrot.slane %v717_v3, 5 }
 0x160   : > { %v723_v5 = vadd.f32 %v721_v4, %v392_v10 }
 0x162   : > { %v724_v6 = vpack.c.bf16 %v723_v5, %v723_v5 }
 0x163   : > { %v718_v7 = vpop.f32.mrf.mxu3 }
 0x164   : > { %v726_v8 = vrot.slane %v724_v6, 2 }
 0x166   : > { %v730_v11 = vsel %vm727_vm0, %v724_v6, %v726_v8  ;;  %v732_v12 = vsel %vm731_vm1, %v724_v6, %v726_v8 }
 0x167   : > { %v734_v13 = vrot.slane %v732_v12, 2  ;;  %v742_v14 = vshrl.u32 %v730_v11, 16 }
 0x169   : > { %v747_v15 = vshrl.u32 %v734_v13, 16  ;;  %v750_v10 = vshll.u32 %v734_v13, 16  ;;  %v1085_v16 = vrot.slane %v742_v14, 9 }
 0x16b   : > { %v749_v9 = vrot.slane %v747_v15, 7 }
 0x16d   : > { %v752_v17 = vor.u32 %v750_v10, %v749_v9 }
 0x16f   : > { %v753_v18 = vsel %vm741_vm8, %v1085_v16, %v752_v17 }
 0x170   : > { %755 = vst [vmem:[%s370_s29] sm:$0x3] %v753_v18 }
 0x171 PF: > { %s21_s25 = sadd.s32 1, %s1334_s25   ;;  %s1578_s8 = sld [smem:[#allocation8_spill]] }
 0x172   : > { %p18_p2 = scmp.ge.s32.totalorder %s21_s25, 6   ;;  %s1579_s28 = sld [smem:[#allocation9_spill]] }
 0x173   : > { %s1580_s18 = smov %s1310_s19  ;;  %s1581_s19 = smov %s1314_s20 }
 0x174   : > { %s1582_s20 = smov %s1435_s10  ;;  %s1583_s21 = smov %s1326_s23 }
 0x175   : > { %s1584_s22 = smov %s1330_s24  ;;  %20 = sbr.rel (!%p18_p2) target bundleno = 9 (0x9), region = 104 }
 0x177   : > { %s1585_s23 = smov %s1578_s8 }
 0x178   : > { %s1586_s24 = smov %s1579_s28 }
 0x17a   :  { %783 = vsyncpa [#allocation3], 1 }
 0x17b   :  { %785 = vsyncpa [#allocation3 + $0x1], 1 }
 0x17c   :  { %786 = vsyncpa [#allocation5], 1 }
 0x17d   :  { %788 = vsyncpa [#allocation5 + $0x1], 1 }

// kernel: dual_human_vqvae_forward.26
= control target key start
LH: loop header
LB: loop body
LE: loop exit
PB: predicated region body
PF: predicated region fallthrough
CT: control target
= control target key end

     0   :  { %10 = vsyncpa [#allocation4], 0  ;;  %s874_s0 = inlined_call_operand.vmem [shape: f32[2,8,128], index: 0, kind: input, shape index: {}]   ;;  %s875_s1 = inlined_call_operand.vmem [shape: f32[2,128,128], index: 1, kind: input, shape index: {}]   ;;  %s876_s2 = inlined_call_operand.hbm [shape: f32[2,1,128], index: 2, kind: input, shape index: {}]   ;;  %s877_s3 = inlined_call_operand.vmem [shape: f32[2,8,128], index: 3, kind: output, shape index: {0}]   ;;  %s878_s4 = inlined_call_operand.vmem [shape: f32[2,1,1], index: 4, kind: output, shape index: {1}]  }
   0x1   :  { %12 = vsyncpa [#allocation4 + $0x1], 0  ;;  %s747_s15 = smov 0   ;;  %s749_s16 = smov 0  }
   0x2   :  { %s751_s17 = smov 0   ;;  %s753_s18 = smov 0  }
   0x3   :  { %s755_s19 = smov 0   ;;  %s757_s20 = smov 0  }
   0x4 LB: > { %s558_s21 = sadd.s32 4294967295, %s717_s20   ;;  %s30_s22 = sadd.s32 1, %s713_s19  ;;  %s717_s20 = sphi %s757_s20, %s18_s20   ;;  %s713_s19 = sphi %s755_s19, %s885_s19   ;;  %s709_s18 = sphi %s753_s18, %s884_s18   ;;  %s705_s17 = sphi %s751_s17, %s883_s17   ;;  %s701_s16 = sphi %s749_s16, %s882_s16   ;;  %s697_s15 = sphi %s747_s15, %s881_s15  }
   0x5   : > { %p32_p0 = scmp.ge.s32.totalorder %s30_s22, 2  ;;  %s91_s23 = sadd.s32 1, %s705_s17 }
   0x6   : > { %p98_p1 = scmp.ne.s32.totalorder %s705_s17, %s701_s16  ;;  %p99_p2 = scmp.eq.s32.totalorder %s717_s20, 0 }
   0x7   : > { %s887_s22 = smov (%p32_p0, %s30_s22), 0  ;;  %p104_p4 = scmp.ne.s32.totalorder %s701_s16, %s697_s15 }
   0x8   : > { %p783_p3 = por %p99_p2, %p98_p1  ;;  %s88_s25 = ssub.s32 %s713_s19, %s887_s22 }
   0x9   : > { %p105_p5 = scmp.eq.s32.totalorder %s558_s21, 0  ;;  %p89_p6 = scmp.eq.s32.totalorder %s88_s25, 0 }
   0xa   : > { %p578_p8 = scmp.lt.s32.totalorder %s717_s20, 2  ;;  %s200_s28 = sand.u32 1, %s705_s17  }
   0xb   : > { %p790_p7 = por %p105_p5, %p104_p4  ;;  %s206_s5 = scalar_lea.hbm %s876_s2, %s713_s19 }
   0xc   : > { %s796_s27 = scalar_select %p89_p6, %s705_s17, %s91_s23  }
   0xd   : > { %s208_s6 = sshll.u32 %s206_s5, 4  ;;  %s203_s7 = scalar_lea.vmem [#allocation3], %s200_s28  ;;  %s209_s6 = int_to_ptr.hbm [resolvable:$true] %s208_s6 }
   0xe   : > { %s210_s8 = sshll.u32 %s203_s7, 4  ;;  %p575_p9 = pnand %p578_p8, %p783_p3  ;;  %s211_s8 = int_to_ptr.vmem [resolvable:$true] %s210_s8 }
   0xf   : > { %p562_p10 = scmp.ge.s32.totalorder %s717_s20, 1  ;;  %p215_p11 = scmp.lt.s32.totalorder %s717_s20, 3 }
  0x10   : > { %s201_s9 = scalar_lea.sflag [#allocation4], %s200_s28 }
  0x11   : > { %577 = dma.hbm_to_vmem [thread:$0]  (!%p575_p9), %s209_s6, 16, %s211_s8, %s201_s9  }
  0x12   : > { %p216_p12 = pnand %p562_p10, %p215_p11 }
  0x13   : > { %s221_s10 = sand.u32 (!%p216_p12), 1, %s701_s16  }
  0x14   : > { %219 = sbr.rel (%p216_p12) target bundleno = 755 (0x2f3), region = 32  ;;  %s222_s11 = scalar_lea.sflag (!%p216_p12), [#allocation4], %s221_s10 }
  0x15   : > { %s808_s12 = scalar_lea.vmem (!%p216_p12), [#allocation3], %s221_s10 }
  0x19   : > { %692 = dma.done.wait (%p790_p7), %s222_s11, 16  }
  0x1a   : > { %694 = vsyncadd (%p790_p7), %s222_s11, 4294967280  ;;  %p266_p13 = scmp.lt.s32.totalorder %s709_s18, 1  ;;  %v630_v21 = vld [vmem:[%s808_s12] ss:$0 sm:$0xff]  ;;  %v342_v24 = vlaneseq  ;;  %v719_v34 = vmov 0.0   ;;  %v720_v39 = vmov 8.0  }
  0x1b   : > { %292 = vst [vmem:[#allocation2] sm:$0x1] %v719_v34  ;;  %631 = vrcp.f32 %v720_v39  ;;  %v721_v42 = vmov 1.0   ;;  %vm418_vm4 = vcmask 1040384   ;;  %vm425_vm5 = vcmask 0  }
  0x1c   : > { %s889_s18 = smov (!%p266_p13, %s709_s18), 1  ;;  %v343_v25 = vand.u32 127, %v342_v24 }
  0x1d   : > { %s571_s13 = sshll.u32 %s889_s18, 7  ;;  %s563_s23 = sshll.u32 %s889_s18, 3 }
  0x1e   : > { %s822_s21 = scalar_lea.vmem %s875_s1, %s571_s13  ;;  %s272_s26 = scalar_lea.vmem %s874_s0, %s563_s23 }
  0x1f   : > { %v309_v0 = vld [vmem:[%s822_s21 + $0x78] sm:$0xff]  ;;  %v308_v1 = vld [vmem:[%s822_s21 + $0x70] sm:$0xff]  ;;  %v307_v2 = vld [vmem:[%s822_s21 + $0x68] sm:$0xff]  ;;  %s284_s30 = scalar_lea.vmem %s877_s3, %s563_s23  ;;  %s287_s7 = scalar_lea.vmem %s878_s4, %s889_s18 }
  0x20   : > { %313 = vmatpush.xpose.msra.mxu0 %v309_v0  ;;  %363 = vmatpush.msra.mxu1 %v309_v0  ;;  %v306_v3 = vld [vmem:[%s822_s21 + $0x60] sm:$0xff]  ;;  %v305_v4 = vld [vmem:[%s822_s21 + $0x58] sm:$0xff]  ;;  %v304_v5 = vld [vmem:[%s822_s21 + $0x50] sm:$0xff] }
  0x21   : > { %v303_v6 = vld [vmem:[%s822_s21 + $0x48] sm:$0xff]  ;;  %v302_v7 = vld [vmem:[%s822_s21 + $0x40] sm:$0xff]  ;;  %v301_v8 = vld [vmem:[%s822_s21 + $0x38] sm:$0xff]  ;;  %v632_v43 = vpop.eup %631 }
  0x22   : > { %364 = vmatpush.msra.mxu1 %v308_v1  ;;  %v300_v9 = vld [vmem:[%s822_s21 + $0x30] sm:$0xff]  ;;  %v299_v10 = vld [vmem:[%s822_s21 + $0x28] sm:$0xff]  ;;  %v298_v11 = vld [vmem:[%s822_s21 + $0x20] sm:$0xff]  ;;  %v407_v46 = vmul.f32 8.0, %v632_v43  ;;  %vm411_vm3 = vweird.f32 %v632_v43 }
  0x23   : > { %v297_v12 = vld [vmem:[%s822_s21 + $0x18] sm:$0xff]  ;;  %v296_v13 = vld [vmem:[%s822_s21 + $0x10] sm:$0xff]  ;;  %v295_v14 = vld [vmem:[%s822_s21 + $0x8] sm:$0xff] }
  0x24   : > { %314 = vmatpush.xpose.msra.mxu0 %v308_v1  ;;  %365 = vmatpush.msra.mxu1 %v307_v2  ;;  %v294_v15 = vld [vmem:[%s822_s21] sm:$0xff]  ;;  %v408_v49 = vsub.f32 1.0, %v407_v46 }
  0x25   : > { %v293_v16 = vld [vmem:[%s272_s26] sm:$0xff] }
  0x26   : > { %366 = vmatpush.msra.mxu1 %v306_v3  ;;  %v310_v17 = vmul.f32 %v293_v16, %v293_v16  ;;  %v392_v51 = vld [vmem:[#allocation2] sm:$0x1]  ;;  %v409_v53 = vmul.f32 %v632_v43, %v408_v49 }
  0x28   : > { %315 = vmatpush.xpose.msra.mxu0 %v307_v2  ;;  %367 = vmatpush.msra.mxu1 %v305_v4  ;;  %v410_v55 = vadd.f32 %v632_v43, %v409_v53 }
  0x29   : > { %311 = vadd.xlane.f32.xlu0 %v310_v17 }
  0x2a   : > { %368 = vmatpush.msra.mxu1 %v304_v5  ;;  %v412_v56 = vsel %vm411_vm3, %v632_v43, %v410_v55 }
  0x2c   : > { %316 = vmatpush.xpose.msra.mxu0 %v306_v3  ;;  %369 = vmatpush.msra.mxu1 %v303_v6 }
  0x2e   : > { %370 = vmatpush.msra.mxu1 %v302_v7 }
  0x30   : > { %317 = vmatpush.xpose.msra.mxu0 %v305_v4  ;;  %371 = vmatpush.msra.mxu1 %v301_v8 }
  0x32   : > { %372 = vmatpush.msra.mxu1 %v300_v9 }
  0x34   : > { %318 = vmatpush.xpose.msra.mxu0 %v304_v5  ;;  %373 = vmatpush.msra.mxu1 %v299_v10 }
  0x36   : > { %374 = vmatpush.msra.mxu1 %v298_v11 }
  0x38   : > { %319 = vmatpush.xpose.msra.mxu0 %v303_v6  ;;  %375 = vmatpush.msra.mxu1 %v297_v12 }
  0x3a   : > { %376 = vmatpush.msra.mxu1 %v296_v13 }
  0x3c   : > { %320 = vmatpush.xpose.msra.mxu0 %v302_v7  ;;  %377 = vmatpush.msra.mxu1 %v295_v14 }
  0x3e   : > { %378 = vmatpush.msra.mxu1 %v294_v15 }
  0x40   : > { %321 = vmatpush.xpose.msra.mxu0 %v301_v8 }
  0x44   : > { %322 = vmatpush.xpose.msra.mxu0 %v300_v9 }
  0x48   : > { %323 = vmatpush.xpose.msra.mxu0 %v299_v10 }
  0x4c   : > { %324 = vmatpush.xpose.msra.mxu0 %v298_v11 }
  0x50   : > { %325 = vmatpush.xpose.msra.mxu0 %v297_v12 }
  0x54   : > { %326 = vmatpush.xpose.msra.mxu0 %v296_v13 }
  0x58   : > { %327 = vmatpush.xpose.msra.mxu0 %v295_v14 }
  0x5c   : > { %328 = vmatpush.xpose.msra.mxu0 %v294_v15 }
  0x5f   : > { %329 = vmatmul.f32.vlgmr.msra.gmra.mxu0 %v293_v16 }
  0x9c   : > { %v312_v19 = vpop.xlane.xlu0 %311 }
  0xdc   : > { %v330_v18 = vpop.f32.mrf.mxu0 }
  0xdd   : > { %v333_v20 = vmul.f32 2.0, %v330_v18 }
  0xdf   : > { %v334_v22 = vsub.f32 %v312_v19, %v333_v20 }
  0xe1   : > { %v339_v23 = vadd.f32 %v630_v21, %v334_v22 }
  0xe3   : > { %340 = vmin.xlane.f32.xlu0 %v339_v23 }
 0x156   : > { %v341_v26 = vpop.xlane.xlu0 %340 }
 0x157   : > { %vm344_vm0 = vcmp.le.f32.partialorder %v339_v23, %v341_v26 }
 0x158   : > { %v345_v27 = vsel %vm344_vm0, %v343_v25, 128 }
 0x159   : > { %v347_v28 = vshra.s32 %v345_v27, 16  ;;  %v346_v30 = vand.u32 65535, %v345_v27 }
 0x15b   : > { %v349_v29 = vcvt.s32.f32 %v347_v28  ;;  %v348_v32 = vcvt.s32.f32 %v346_v30 }
 0x15d   : > { %350 = vmin.xlane.f32.xlu1 %v349_v29 }
 0x1d0   : > { %v351_v31 = vpop.xlane.xlu1 %350 }
 0x1d1   : > { %vm352_vm1 = vcmp.eq.f32.partialorder %v349_v29, %v351_v31  ;;  %v357_v35 = vcvt.f32.s32 %v351_v31 }
 0x1d2   : > { %v353_v33 = vsel %vm352_vm1, %v348_v32, inf }
 0x1d3   : > { %354 = vmin.xlane.f32.xlu1 %v353_v33  ;;  %v358_v37 = vshll.u32 %v357_v35, 16 }
 0x246   : > { %v355_v36 = vpop.xlane.xlu1 %354 }
 0x247   : > { %v356_v38 = vcvt.f32.s32 %v355_v36 }
 0x249   : > { %v359_v40 = vadd.s32 %v358_v37, %v356_v38 }
 0x24b   : > { %vm360_vm2 = vcmp.eq.s32.totalorder %v343_v25, %v359_v40 }
 0x24c   : > { %v567_v41 = vsel %vm360_vm2, 1.0, %v719_v34  ;;  %568 = vmatmul.msk.f32.vlgmr.msra.gmra.mxu1 %vm360_vm2, %v721_v42 }
 0x24d   : > { %v394_v44 = vrot.slane %v567_v41, 4 }
 0x24f   : > { %v395_v45 = vadd.f32 %v567_v41, %v394_v44 }
 0x251   : > { %v396_v47 = vrot.slane %v395_v45, 2 }
 0x253   : > { %v397_v48 = vadd.f32 %v396_v47, %v395_v45 }
 0x255   : > { %v398_v50 = vrot.slane %v397_v48, 1 }
 0x257   : > { %v399_v52 = vadd.f32 %v398_v50, %v397_v48 }
 0x259   : > { %v400_v54 = vadd.f32 %v399_v52, %v392_v51 }
 0x25b   : > { %401 = vst [vmem:[#allocation2] sm:$0x1] %v400_v54 }
 0x262   : > { %v405_v57 = vld [vmem:[#allocation2] sm:$0x1] }
 0x263   : > { %v413_v58 = vmul.f32 %v412_v56, %v405_v57 }
 0x265   : > { %v414_v59 = vadd.f32 1e-07, %v413_v58 }
 0x267   : > { %633 = vlog2.f32 %v414_v59 }
 0x26d   : > { %v634_v60 = vpop.eup %633 }
 0x26e   : > { %v416_v61 = vmul.f32 0.6931472, %v634_v60 }
 0x270   : > { %v417_v62 = vmul.f32 %v416_v61, %v413_v58 }
 0x272   : > { %v419_v63 = vsel %vm418_vm4, %v417_v62, 0.0 }
 0x273   : > { %420 = vadd.xlane.f32.xlu2 %v419_v63 }
 0x2c9   : > { %v380_v0 = vpop.f32.mrf.mxu1 }
 0x2ca   : > { %383 = vst [vmem:[%s284_s30] sm:$0xff] %v380_v0 }
 0x2e6   : > { %v421_v1 = vpop.xlane.xlu2 %420 }
 0x2e7   : > { %v422_v2 = vsub.f32 0.0, %v421_v1 }
 0x2e9   : > { %v423_v3 = vmul.f32 1.442695, %v422_v2 }
 0x2eb   : > { %635 = vpow2.f32 %v423_v3 }
 0x2f1   : > { %v636_v4 = vpop.eup %635 }
 0x2f2   : > { %426 = vst.msk [vmem:[%s287_s7] sm:$0x1] %vm425_vm5, %v636_v4 }
 0x2f3 PF: > { %s18_s20 = sadd.s32 1, %s717_s20   ;;  %s881_s15 = smov %s701_s16 }
 0x2f4   : > { %p15_p0 = scmp.ge.s32.totalorder %s18_s20, 4   ;;  %s882_s16 = smov %s705_s17 }
 0x2f5   : > { %s883_s17 = smov %s796_s27  ;;  %s884_s18 = smov %s713_s19 }
 0x2f6   : > { %s885_s19 = smov %s887_s22  ;;  %17 = sbr.rel (!%p15_p0) target bundleno = 4 (0x4), region = 98 }
 0x2fb   :  { %464 = vsyncpa [#allocation4], 1 }
 0x2fc   :  { %466 = vsyncpa [#allocation4 + $0x1], 1 }

// kernel: dual_human_vqvae_forward.27
= control target key start
LH: loop header
LB: loop body
LE: loop exit
PB: predicated region body
PF: predicated region fallthrough
CT: control target
= control target key end

     0   :  { %8 = vsyncpa [#allocation3], 0  ;;  %s1235_s0 = inlined_call_operand.vmem [shape: bf16[2,2,6,128], index: 0, kind: input, shape index: {}]   ;;  %s1236_s1 = inlined_call_operand.hbm [shape: bf16[2,3,128,128], index: 1, kind: input, shape index: {}]   ;;  %s1237_s2 = inlined_call_operand.hbm [shape: f32[2,1,128], index: 2, kind: input, shape index: {}]   ;;  %s1238_s3 = inlined_call_operand.vmem [shape: bf16[2,2,4,128], index: 3, kind: output, shape index: {}]  }
   0x1   :  { %10 = vsyncpa [#allocation3 + $0x1], 0 }
   0x2   :  { %11 = vsyncpa [#allocation5], 0 }
   0x3   :  { %13 = vsyncpa [#allocation5 + $0x1], 0  ;;  %s1069_s12 = smov 0   ;;  %s1071_s13 = smov 0  }
   0x4   :  { %s1073_s14 = smov 0   ;;  %s1075_s15 = smov 0  }
   0x5   :  { %s1077_s16 = smov 0   ;;  %s1079_s17 = smov 0  }
   0x6   :  { %s1081_s18 = smov 0   ;;  %s1083_s19 = smov 0  }
   0x7 LB: > { %s669_s20 = sadd.s32 4294967295, %s1045_s19   ;;  %s28_s21 = sadd.s32 1, %s1037_s17  ;;  %s1045_s19 = sphi %s1083_s19, %s19_s19   ;;  %s1041_s18 = sphi %s1081_s18, %s1247_s18   ;;  %s1037_s17 = sphi %s1079_s17, %s1246_s17   ;;  %s1033_s16 = sphi %s1077_s16, %s1245_s16   ;;  %s1029_s15 = sphi %s1075_s15, %s1244_s15   ;;  %s1025_s14 = sphi %s1073_s14, %s1243_s14   ;;  %s1021_s13 = sphi %s1071_s13, %s1242_s13   ;;  %s1017_s12 = sphi %s1069_s12, %s1241_s12  }
   0x8   : > { %p29_p0 = scmp.ge.s32.totalorder %s28_s21, 2  ;;  %s31_s22 = sadd.s32 1, %s1041_s18 }
   0x9   : > { %s66_s23 = sadd.s32 1, %s1025_s14  ;;  %p73_p1 = scmp.ne.s32.totalorder %s1025_s14, %s1021_s13 }
   0xa   : > { %s1249_s21 = smov (%p29_p0, %s28_s21), 0  ;;  %s1251_s22 = smov (!%p29_p0, %s31_s22), %s1041_s18 }
   0xb   : > { %p74_p2 = scmp.eq.s32.totalorder %s1045_s19, 0  ;;  %p79_p3 = scmp.ne.s32.totalorder %s1021_s13, %s1017_s12 }
   0xc   : > { %p33_p4 = scmp.ge.s32.totalorder %s1251_s22, 2  ;;  %p80_p5 = scmp.eq.s32.totalorder %s669_s20, 0 }
   0xd   : > { %p75_p6 = por %p74_p2, %p73_p1  ;;  %p847_p8 = scmp.lt.s32.totalorder %s1045_s19, 4 }
   0xe   : > { %s1253_s22 = smov (%p33_p4, %s1251_s22), 0  ;;  %p1120_p7 = por %p80_p5, %p79_p3 }
   0xf   : > { %s63_s25 = ssub.s32 %s1041_s18, %s1253_s22  ;;  %s168_s26 = sand.u32 1, %s1025_s14  }
  0x10   : > { %p64_p9 = scmp.eq.s32.totalorder %s63_s25, 0  ;;  %s833_s27 = smul.u32 192, %s168_s26 }
  0x11   : > { %p1128_p10 = pnand %p847_p8, %p75_p6  ;;  %s834_s30 = smul.u32 192, %s1041_s18 }
  0x12   : > { %s1133_s29 = scalar_select %p64_p9, %s1025_s14, %s66_s23  }
  0x13   : > { %s172_s4 = scalar_lea.vmem [#allocation2], %s833_s27  ;;  %s177_s8 = scalar_lea.hbm %s1236_s1, %s834_s30 }
  0x14   : > { %s180_s5 = sshll.u32 %s172_s4, 4  ;;  %s178_s9 = sshll.u32 %s177_s8, 4  ;;  %s181_s5 = int_to_ptr.vmem [resolvable:$true] %s180_s5  ;;  %s179_s9 = int_to_ptr.hbm [resolvable:$true] %s178_s9 }
  0x15   : > { %s169_s10 = scalar_lea.sflag [#allocation3], %s168_s26  ;;  %s1047_s11 = smov 64  }
  0x16   : > { %s1048_s12 = smov 4   ;;  %p674_p11 = scmp.ge.s32.totalorder %s1045_s19, 1 }
  0x17   : > { %843 = dma.hbm_to_vmem [thread:$0]  (!%p1128_p10), %s179_s9, 3072, %s181_s5, %s169_s10, %s1047_s11, %s1047_s11, %s1048_s12  }
  0x18   : > { %p205_p12 = scmp.lt.s32.totalorder %s1045_s19, 5  ;;  %s196_s25 = scalar_lea.hbm %s1237_s2, %s1041_s18 }
  0x19   : > { %s198_s27 = sshll.u32 %s196_s25, 4  ;;  %s193_s4 = scalar_lea.vmem [#allocation4], %s168_s26  ;;  %s199_s27 = int_to_ptr.hbm [resolvable:$true] %s198_s27 }
  0x1a   : > { %p206_p13 = pnand %p674_p11, %p205_p12  ;;  %s200_s6 = sshll.u32 %s193_s4, 4  ;;  %s201_s6 = int_to_ptr.vmem [resolvable:$true] %s200_s6 }
  0x1b   : > { %s191_s30 = scalar_lea.sflag [#allocation5], %s168_s26  ;;  %s1150_s7 = sand.u32 (!%p206_p13), 1, %s1021_s13  }
  0x1c   : > { %846 = dma.hbm_to_vmem [thread:$0]  (!%p1128_p10), %s199_s27, 16, %s201_s6, %s191_s30  }
  0x1d   : > { %209 = sbr.rel (%p206_p13) target bundleno = 212 (0xd4), region = 32  ;;  %s212_s8 = scalar_lea.sflag (!%p206_p13), [#allocation3], %s1150_s7 }
  0x1e   : > { %s835_s5 = smul.u32 (!%p206_p13), 192, %s1150_s7 }
  0x20   : > { %s1154_s9 = scalar_lea.vmem (!%p206_p13), [#allocation2], %s835_s5 }
  0x22   : > { %1008 = dma.done.wait (%p1120_p7), %s212_s8, 3072  }
  0x23   : > { %1010 = vsyncadd (%p1120_p7), %s212_s8, 4294964224  ;;  %s222_s26 = scalar_lea.sflag [#allocation5], %s1150_s7  ;;  %s224_s28 = scalar_lea.vmem [#allocation4], %s1150_s7 }
  0x24   : > { %1012 = dma.done.wait (%p1120_p7), %s222_s26, 16  }
  0x25   : > { %1014 = vsyncadd (%p1120_p7), %s222_s26, 4294967280  ;;  %p263_p0 = scmp.lt.s32.totalorder %s1033_s16, 1  ;;  %p265_p1 = scmp.lt.s32.totalorder %s1029_s15, 1  ;;  %v824_v0 = vld [vmem:[%s1154_s9 + $0x78] sm:$0xff]  ;;  %v823_v3 = vld [vmem:[%s1154_s9 + $0x70] sm:$0xff] }
  0x26   : > { %v816_v1 = vld [vmem:[%s1154_s9 + $0x38] sm:$0xff]  ;;  %373 = vmatpush.bf16.msra.mxu0 %v824_v0  ;;  %v815_v4 = vld [vmem:[%s1154_s9 + $0x30] sm:$0xff]  ;;  %v822_v6 = vld [vmem:[%s1154_s9 + $0x68] sm:$0xff] }
  0x27   : > { %s1255_s16 = smov (!%p263_p0, %s1033_s16), 1  ;;  %s1257_s15 = smov (!%p265_p1, %s1029_s15), 1  ;;  %v832_v2 = vld [vmem:[%s1154_s9 + $0xb8] sm:$0xff]  ;;  %434 = vmatpush.bf16.msra.mxu1 %v816_v1  ;;  %v831_v5 = vld [vmem:[%s1154_s9 + $0xb0] sm:$0xff]  ;;  %v814_v7 = vld [vmem:[%s1154_s9 + $0x28] sm:$0xff] }
  0x28   : > { %s675_s10 = sshll.u32 %s1255_s16, 1  ;;  %518 = vmatpush.bf16.msra.mxu2 %v832_v2  ;;  %v830_v8 = vld [vmem:[%s1154_s9 + $0xa8] sm:$0xff]  ;;  %v821_v9 = vld [vmem:[%s1154_s9 + $0x60] sm:$0xff]  ;;  %v820_v14 = vld [vmem:[%s1154_s9 + $0x58] sm:$0xff] }
  0x29   : > { %s1173_s24 = sadd.s32 %s675_s10, %s1257_s15  ;;  %v813_v10 = vld [vmem:[%s1154_s9 + $0x20] sm:$0xff]  ;;  %v812_v15 = vld [vmem:[%s1154_s9 + $0x18] sm:$0xff]  ;;  %v819_v18 = vld [vmem:[%s1154_s9 + $0x50] sm:$0xff] }
  0x2a   : > { %s676_s11 = sshll.u32 %s1173_s24, 2  ;;  %374 = vmatpush.bf16.msra.mxu0 %v823_v3  ;;  %v829_v12 = vld [vmem:[%s1154_s9 + $0xa0] sm:$0xff]  ;;  %v828_v16 = vld [vmem:[%s1154_s9 + $0x98] sm:$0xff]  ;;  %v811_v19 = vld [vmem:[%s1154_s9 + $0x10] sm:$0xff]  ;;  %s678_s20 = sshll.u32 %s1173_s24, 1 }
  0x2b   : > { %435 = vmatpush.bf16.msra.mxu1 %v815_v4  ;;  %s1185_s12 = scalar_lea.vmem %s1235_s0, %s676_s11  ;;  %v827_v20 = vld [vmem:[%s1154_s9 + $0x90] sm:$0xff]  ;;  %v818_v23 = vld [vmem:[%s1154_s9 + $0x48] sm:$0xff]  ;;  %v817_v29 = vld [vmem:[%s1154_s9 + $0x40] sm:$0xff]  ;;  %s278_s27 = scalar_lea.vmem %s1238_s3, %s678_s20 }
  0x2c   : > { %519 = vmatpush.bf16.msra.mxu2 %v831_v5  ;;  %v296_v11 = vld [vmem:[%s1185_s12] sm:$0x7]  ;;  %v810_v24 = vld [vmem:[%s1154_s9 + $0x8] sm:$0xff] }
  0x2d   : > { %v315_v13 = vunpack.c.l.b16 %v296_v11  ;;  %v447_v21 = vld [vmem:[%s1185_s12] sm:$0x6]  ;;  %v826_v26 = vld [vmem:[%s1154_s9 + $0x88] sm:$0xff]  ;;  %v914_v39 = vld [vmem:[%s224_s28] ss:$0 sm:$0xff] }
  0x2e   : > { %375 = vmatpush.bf16.msra.mxu0 %v822_v6  ;;  %v466_v25 = vunpack.c.l.b16 %v447_v21  ;;  %v809_v30 = vld [vmem:[%s1154_s9] sm:$0xff] }
  0x2f   : > { %436 = vmatpush.bf16.msra.mxu1 %v814_v7  ;;  %v316_v17 = vpack.c.b16 %v315_v13, %v315_v13  ;;  %v825_v32 = vld [vmem:[%s1154_s9 + $0x80] sm:$0xff] }
  0x30   : > { %520 = vmatpush.bf16.msra.mxu2 %v830_v8  ;;  %v467_v31 = vpack.c.b16 %v466_v25, %v466_v25  ;;  %v279_v34 = vld [vmem:[%s1185_s12] sm:$0x3] }
  0x31   : > { %v320_v22 = vshll.u32 %v316_v17, 16  ;;  %v318_v27 = vshrl.u32 %v316_v17, 16 }
  0x32   : > { %376 = vmatpush.bf16.msra.mxu0 %v821_v9  ;;  %v468_v35 = vrot.slane %v467_v31, 1 }
  0x33   : > { %437 = vmatpush.bf16.msra.mxu1 %v813_v10  ;;  %v322_v28 = vrot.slane %v320_v22, 1 }
  0x34   : > { %521 = vmatpush.bf16.msra.mxu2 %v829_v12 }
  0x35   : > { %v323_v33 = vor.u32 %v322_v28, %v318_v27 }
  0x36   : > { %377 = vmatpush.bf16.msra.mxu0 %v820_v14 }
  0x37   : > { %438 = vmatpush.bf16.msra.mxu1 %v812_v15 }
  0x38   : > { %522 = vmatpush.bf16.msra.mxu2 %v828_v16 }
  0x3a   : > { %378 = vmatpush.bf16.msra.mxu0 %v819_v18 }
  0x3b   : > { %439 = vmatpush.bf16.msra.mxu1 %v811_v19 }
  0x3c   : > { %523 = vmatpush.bf16.msra.mxu2 %v827_v20 }
  0x3e   : > { %379 = vmatpush.bf16.msra.mxu0 %v818_v23 }
  0x3f   : > { %440 = vmatpush.bf16.msra.mxu1 %v810_v24 }
  0x40   : > { %524 = vmatpush.bf16.msra.mxu2 %v826_v26 }
  0x42   : > { %380 = vmatpush.bf16.msra.mxu0 %v817_v29 }
  0x43   : > { %441 = vmatpush.bf16.msra.mxu1 %v809_v30 }
  0x44   : > { %525 = vmatpush.bf16.msra.mxu2 %v825_v32 }
  0x45   : > { %381 = vmatmul.bf16.vlgmr.msra.gmra.mxu0 %v323_v33 }
  0x46   : > { %442 = vmatmul.bf16.vlgmr.msra.gmra.mxu1 %v279_v34 }
  0x47   : > { %526 = vmatmul.bf16.vlgmr.msra.gmra.mxu2 %v468_v35 }
  0xc2   : > { %v382_v36 = vpop.f32.mrf.mxu0 }
  0xc3   : > { %v443_v37 = vpop.f32.mrf.mxu1 }
  0xc4   : > { %v444_v38 = vadd.f32 %v443_v37, %v382_v36 }
  0xca   : > { %v527_v40 = vpop.f32.mrf.mxu2  ;;  %v384_v42 = vpop.f32.mrf.mxu0 }
  0xcb   : > { %v531_v41 = vadd.f32 %v527_v40, %v444_v38  ;;  %v445_v43 = vpop.f32.mrf.mxu1 }
  0xcd   : > { %v536_v44 = vadd.f32 %v914_v39, %v531_v41 }
  0xcf   : > { %v537_v45 = vmax.f32 %v536_v44, 0.0 }
  0xd1   : > { %v538_v46 = vpack.c.bf16 %v537_v45, %v537_v45 }
  0xd2   : > { %v529_v47 = vpop.f32.mrf.mxu2 }
  0xd3   : > { %539 = vst [vmem:[%s278_s27] sm:$0x3] %v538_v46 }
  0xd4 PF: > { %s19_s19 = sadd.s32 1, %s1045_s19   ;;  %s1241_s12 = smov %s1021_s13 }
  0xd5   : > { %p16_p2 = scmp.ge.s32.totalorder %s19_s19, 6   ;;  %s1242_s13 = smov %s1025_s14 }
  0xd6   : > { %s1243_s14 = smov %s1133_s29  ;;  %s1244_s15 = smov %s1037_s17 }
  0xd7   : > { %s1245_s16 = smov %s1041_s18  ;;  %s1246_s17 = smov %s1249_s21 }
  0xd8   : > { %s1247_s18 = smov %s1253_s22  ;;  %18 = sbr.rel (!%p16_p2) target bundleno = 7 (0x7), region = 90 }
  0xdd   :  { %567 = vsyncpa [#allocation3], 1 }
  0xde   :  { %569 = vsyncpa [#allocation3 + $0x1], 1 }
  0xdf   :  { %570 = vsyncpa [#allocation5], 1 }
  0xe0   :  { %572 = vsyncpa [#allocation5 + $0x1], 1 }

// kernel: dual_human_vqvae_forward.28
= control target key start
LH: loop header
LB: loop body
LE: loop exit
PB: predicated region body
PF: predicated region fallthrough
CT: control target
= control target key end

     0   :  { %s1728_s0 = inlined_call_operand.vmem [shape: bf16[2,2,10,128], index: 0, kind: input, shape index: {}]   ;;  %s1729_s1 = inlined_call_operand.hbm [shape: bf16[2,3,128,128], index: 1, kind: input, shape index: {}]   ;;  %s1730_s2 = inlined_call_operand.hbm [shape: f32[2,1,128], index: 2, kind: input, shape index: {}]   ;;  %s1731_s3 = inlined_call_operand.hbm [shape: bf16[2,1,128,128], index: 3, kind: input, shape index: {}]   ;;  %s1732_s4 = inlined_call_operand.hbm [shape: f32[2,1,128], index: 4, kind: input, shape index: {}]   ;;  %s1733_s5 = inlined_call_operand.vmem [shape: bf16[2,2,4,128], index: 5, kind: output, shape index: {}]  }
   0x1   :  { %1738 = sst [smem:[#allocation17_spill]] %s1729_s1 }
   0x2   :  { %1739 = sst [smem:[#allocation18_spill]] %s1730_s2 }
   0x3   :  { %1740 = sst [smem:[#allocation19_spill]] %s1733_s5 }
   0x4   :  { %10 = vsyncpa [#allocation3], 0 }
   0x5   :  { %12 = vsyncpa [#allocation3 + $0x1], 0 }
   0x6   :  { %13 = vsyncpa [#allocation5], 0 }
   0x7   :  { %15 = vsyncpa [#allocation5 + $0x1], 0 }
   0x8   :  { %16 = vsyncpa [#allocation8], 0 }
   0x9   :  { %18 = vsyncpa [#allocation8 + $0x1], 0  ;;  %s1498_s18 = smov 0   ;;  %s1500_s19 = smov 0  }
   0xa   :  { %s1502_s20 = smov 0   ;;  %s1504_s21 = smov 0  }
   0xb   :  { %s1506_s22 = smov 0   ;;  %s1508_s23 = smov 0  }
   0xc   :  { %s1510_s24 = smov 0   ;;  %s1512_s25 = smov 0  }
   0xd LB: > { %1741 = sst [smem:[#allocation12_spill]] %s1444_s20  ;;  %s1734_s26 = sadd.s32 4294967295, %s1464_s25   ;;  %s1464_s25 = sphi %s1512_s25, %s24_s25   ;;  %s1460_s24 = sphi %s1510_s24, %s1761_s24   ;;  %s1456_s23 = sphi %s1508_s23, %s1756_s23   ;;  %s1452_s22 = sphi %s1506_s22, %s1760_s22   ;;  %s1448_s21 = sphi %s1504_s21, %s1755_s21   ;;  %s1444_s20 = sphi %s1502_s20, %s1754_s20   ;;  %s1440_s19 = sphi %s1500_s19, %s1759_s19   ;;  %s1436_s18 = sphi %s1498_s18, %s1758_s18  }
   0xe   : > { %1742 = sst [smem:[#allocation13_spill]] %s1456_s23  ;;  %s33_s27 = sadd.s32 1, %s1456_s23 }
   0xf   : > { %p34_p0 = scmp.ge.s32.totalorder %s33_s27, 2  ;;  %s36_s28 = sadd.s32 1, %s1460_s24 }
  0x10   : > { %s71_s29 = sadd.s32 1, %s1444_s20  ;;  %p78_p1 = scmp.ne.s32.totalorder %s1444_s20, %s1440_s19 }
  0x11   : > { %s1763_s27 = smov (%p34_p0, %s33_s27), 0  ;;  %s1765_s28 = smov (!%p34_p0, %s36_s28), %s1460_s24 }
  0x12   : > { %1743 = sst [smem:[#allocation14_spill]] %s1763_s27  ;;  %p79_p2 = scmp.eq.s32.totalorder %s1464_s25, 0 }
  0x13   : > { %p84_p3 = scmp.ne.s32.totalorder %s1440_s19, %s1436_s18  ;;  %p38_p4 = scmp.ge.s32.totalorder %s1765_s28, 2 }
  0x14   : > { %p85_p5 = scmp.eq.s32.totalorder %s1734_s26, 0  ;;  %p80_p6 = por %p79_p2, %p78_p1 }
  0x15   : > { %s1767_s28 = smov (%p38_p4, %s1765_s28), 0  ;;  %p1201_p8 = scmp.lt.s32.totalorder %s1464_s25, 4 }
  0x16   : > { %1744 = sst [smem:[#allocation15_spill]] %s1767_s28  ;;  %p1551_p7 = por %p85_p5, %p84_p3 }
  0x17   : > { %s68_s6 = ssub.s32 %s1460_s24, %s1767_s28  ;;  %s1559_s7 = sand.u32 1, %s1444_s20  }
  0x18   : > { %p69_p9 = scmp.eq.s32.totalorder %s68_s6, 0  ;;  %p1561_p10 = pnand %p1201_p8, %p80_p6 }
  0x19   : > { %s248_s9 = sand.u32 1, %s1464_s25   ;;  %s1748_s2 = sld [smem:[#allocation18_spill]] }
  0x1a   : > { %s1567_s10 = scalar_select %p69_p9, %s1444_s20, %s71_s29  }
  0x1b   : > { %s251_s14 = scalar_lea.vmem [#allocation4], %s1559_s7  ;;  %p974_p11 = scmp.ge.s32.totalorder %s1464_s25, 1 }
  0x1c   : > { %1747 = sst [smem:[#allocation16_spill]] %s1567_s10  ;;  %s258_s15 = sshll.u32 %s251_s14, 4  ;;  %s259_s15 = int_to_ptr.vmem [resolvable:$true] %s258_s15 }
  0x1d   : > { %s249_s17 = scalar_lea.sflag [#allocation5], %s248_s9  ;;  %p302_p12 = scmp.lt.s32.totalorder %s1464_s25, 5 }
  0x1e   : > { %s1177_s29 = smul.u32 192, %s1559_s7  ;;  %s1750_s1 = sld [smem:[#allocation17_spill]] }
  0x1f   : > { %s254_s13 = scalar_lea.hbm %s1748_s2, %s1460_s24  ;;  %p1578_p13 = pnand %p974_p11, %p302_p12 }
  0x20   : > { %s256_s16 = sshll.u32 %s254_s13, 4  ;;  %s1178_s6 = smul.u32 192, %s1460_s24  ;;  %s257_s16 = int_to_ptr.hbm [resolvable:$true] %s256_s16 }
  0x21   : > { %1194 = dma.hbm_to_vmem [thread:$0]  (!%p1561_p10), %s257_s16, 16, %s259_s15, %s249_s17  }
  0x22   : > { %s230_s14 = scalar_lea.vmem [#allocation2], %s1177_s29  ;;  %s971_s9 = sshll.u32 %s1559_s7, 6 }
  0x23   : > { %s238_s26 = sshll.u32 %s230_s14, 4  ;;  %s227_s15 = scalar_lea.sflag [#allocation3], %s1559_s7  ;;  %s239_s26 = int_to_ptr.vmem [resolvable:$true] %s238_s26 }
  0x24   : > { %s235_s13 = scalar_lea.hbm %s1750_s1, %s1178_s6  ;;  %s1466_s16 = smov 64  }
  0x25   : > { %s236_s2 = sshll.u32 %s235_s13, 4  ;;  %s1467_s28 = smov 4   ;;  %s237_s2 = int_to_ptr.hbm [resolvable:$true] %s236_s2 }
  0x26   : > { %1191 = dma.hbm_to_vmem [thread:$0]  (!%p1561_p10), %s237_s2, 3072, %s239_s26, %s227_s15, %s1466_s16, %s1466_s16, %s1467_s28  }
  0x27   : > { %s1144_s27 = sshll.u32 %s1460_s24, 6  ;;  %s269_s6 = scalar_lea.vmem [#allocation6], %s971_s9 }
  0x28   : > { %s274_s29 = scalar_lea.hbm %s1731_s3, %s1144_s27  ;;  %s277_s12 = sshll.u32 %s269_s6, 4  ;;  %s278_s12 = int_to_ptr.vmem [resolvable:$true] %s277_s12 }
  0x29   : > { %s275_s13 = sshll.u32 %s274_s29, 4  ;;  %s293_s10 = scalar_lea.hbm %s1732_s4, %s1460_s24  ;;  %s276_s13 = int_to_ptr.hbm [resolvable:$true] %s275_s13 }
  0x2a   : > { %1197 = dma.hbm_to_vmem [thread:$0]  (!%p1561_p10), %s276_s13, 1024, %s278_s12, %s249_s17, %s1466_s16, %s1466_s16, %s1467_s28  }
  0x2b   : > { %s295_s20 = sshll.u32 %s293_s10, 4  ;;  %s290_s5 = scalar_lea.vmem [#allocation7], %s1559_s7  ;;  %s296_s20 = int_to_ptr.hbm [resolvable:$true] %s295_s20 }
  0x2c   : > { %s297_s2 = sshll.u32 %s290_s5, 4  ;;  %s288_s26 = scalar_lea.sflag [#allocation8], %s1559_s7  ;;  %s298_s2 = int_to_ptr.vmem [resolvable:$true] %s297_s2 }
  0x2d   : > { %1200 = dma.hbm_to_vmem [thread:$0]  (!%p1561_p10), %s296_s20, 16, %s298_s2, %s288_s26  }
  0x2e   : > { %306 = sbr.rel (%p1578_p13) target bundleno = 386 (0x182), region = 40  ;;  %s1608_s23 = sand.u32 (!%p1578_p13), 1, %s1440_s19  }
  0x2f   : > { %s1179_s27 = smul.u32 (!%p1578_p13), 192, %s1608_s23  ;;  %s309_s1 = scalar_lea.sflag (!%p1578_p13), [#allocation3], %s1608_s23 }
  0x31   : > { %s1612_s28 = scalar_lea.vmem (!%p1578_p13), [#allocation2], %s1179_s27 }
  0x33   : > { %1423 = dma.done.wait (%p1551_p7), %s309_s1, 3072  }
  0x34   : > { %1425 = vsyncadd (%p1551_p7), %s309_s1, 4294964224  ;;  %s1751_s5 = sadd.s32 4294967295, %s1464_s25   ;;  %s321_s8 = scalar_lea.vmem [#allocation4], %s1608_s23 }
  0x35   : > { %s318_s20 = sand.u32 1, %s1751_s5  }
  0x36   : > { %s319_s7 = scalar_lea.sflag [#allocation5], %s318_s20 }
  0x37   : > { %1427 = dma.done.wait (%p1551_p7), %s319_s7, 1040  }
  0x38   : > { %1429 = vsyncadd (%p1551_p7), %s319_s7, 4294966256  ;;  %s975_s10 = sshll.u32 %s1608_s23, 6  ;;  %s338_s18 = scalar_lea.sflag [#allocation8], %s1608_s23 }
  0x39   : > { %s1626_s17 = scalar_lea.vmem [#allocation6], %s975_s10  ;;  %s340_s9 = scalar_lea.vmem [#allocation7], %s1608_s23 }
  0x3a   : > { %1431 = dma.done.wait (%p1551_p7), %s338_s18, 16  }
  0x3b   : > { %1433 = vsyncadd (%p1551_p7), %s338_s18, 4294967280  ;;  %p393_p0 = scmp.lt.s32.totalorder %s1452_s22, 1  ;;  %p395_p1 = scmp.lt.s32.totalorder %s1448_s21, 1  ;;  %v1160_v0 = vld [vmem:[%s1612_s28 + $0x78] sm:$0xff]  ;;  %v1159_v3 = vld [vmem:[%s1612_s28 + $0x70] sm:$0xff]  ;;  %vm766_vm0 = vcmask 1041408  }
  0x3c   : > { %v1152_v1 = vld [vmem:[%s1612_s28 + $0x38] sm:$0xff]  ;;  %508 = vmatpush.bf16.msra.mxu0 %v1160_v0  ;;  %v1151_v4 = vld [vmem:[%s1612_s28 + $0x30] sm:$0xff]  ;;  %v1158_v6 = vld [vmem:[%s1612_s28 + $0x68] sm:$0xff]  ;;  %vm770_vm1 = vcmask 1043458   ;;  %vm774_vm2 = vsmask.f32 256 }
  0x3d   : > { %s1769_s22 = smov (!%p393_p0, %s1452_s22), 1  ;;  %s1771_s21 = smov (!%p395_p1, %s1448_s21), 1  ;;  %v1168_v2 = vld [vmem:[%s1612_s28 + $0xb8] sm:$0xff]  ;;  %569 = vmatpush.bf16.msra.mxu1 %v1152_v1  ;;  %v1167_v5 = vld [vmem:[%s1612_s28 + $0xb0] sm:$0xff]  ;;  %v1150_v7 = vld [vmem:[%s1612_s28 + $0x28] sm:$0xff] }
  0x3e   : > { %s977_s30 = sshll.u32 %s1769_s22, 2  ;;  %s976_s15 = sshll.u32 %s1771_s21, 1  ;;  %657 = vmatpush.bf16.msra.mxu2 %v1168_v2  ;;  %v1166_v8 = vld [vmem:[%s1612_s28 + $0xa8] sm:$0xff]  ;;  %v1176_v11 = vld [vmem:[%s1626_s17 + $0x38] sm:$0xff]  ;;  %v1175_v15 = vld [vmem:[%s1626_s17 + $0x30] sm:$0xff] }
  0x3f   : > { %s399_s16 = sadd.s32 %s977_s30, %s976_s15  ;;  %v1157_v12 = vld [vmem:[%s1612_s28 + $0x60] sm:$0xff]  ;;  %746 = vmatpush.bf16.msra.mxu3 %v1176_v11  ;;  %v1156_v17 = vld [vmem:[%s1612_s28 + $0x58] sm:$0xff]  ;;  %v1174_v22 = vld [vmem:[%s1626_s17 + $0x28] sm:$0xff]  ;;  %s979_s13 = sshll.u32 %s1769_s22, 1  ;;  %vm775_vm3 = vsmask.f32 2312 }
  0x40   : > { %s978_s11 = sshll.u32 %s399_s16, 2  ;;  %509 = vmatpush.bf16.msra.mxu0 %v1159_v3  ;;  %v1149_v13 = vld [vmem:[%s1612_s28 + $0x20] sm:$0xff]  ;;  %v1148_v18 = vld [vmem:[%s1612_s28 + $0x18] sm:$0xff]  ;;  %v1155_v24 = vld [vmem:[%s1612_s28 + $0x50] sm:$0xff]  ;;  %s1688_s14 = sadd.s32 %s979_s13, %s1771_s21  ;;  %vm777_vm5 = vsmask.f32 4368 }
  0x41   : > { %s1653_s12 = scalar_lea.vmem %s1728_s0, %s978_s11  ;;  %570 = vmatpush.bf16.msra.mxu1 %v1151_v4  ;;  %v1165_v14 = vld [vmem:[%s1612_s28 + $0xa0] sm:$0xff]  ;;  %v1164_v19 = vld [vmem:[%s1612_s28 + $0x98] sm:$0xff]  ;;  %v1147_v25 = vld [vmem:[%s1612_s28 + $0x10] sm:$0xff]  ;;  %vm779_vm7 = vsmask.f32 6424  ;;  %s980_s21 = sshll.u32 %s1688_s14, 1 }
  0x42   : > { %658 = vmatpush.bf16.msra.mxu2 %v1167_v5  ;;  %v1659_v9 = vld [vmem:[%s1653_s12] sm:$0xe]  ;;  %v583_v21 = vld [vmem:[%s1653_s12 + $0x4] sm:$0x1]  ;;  %v1163_v29 = vld [vmem:[%s1612_s28 + $0x90] sm:$0xff]  ;;  %s1752_s26 = sld [smem:[#allocation19_spill]] }
  0x43   : > { %v431_v10 = vunpack.c.l.bf16 %v1659_v9  ;;  %v582_v20 = vld [vmem:[%s1653_s12] sm:$0x8]  ;;  %747 = vmatpush.bf16.msra.mxu3 %v1175_v15  ;;  %v410_v26 = vld [vmem:[%s1653_s12] sm:$0x3]  ;;  %v585_v28 = vunpack.c.l.bf16 %v583_v21  ;;  %v1154_v34 = vld [vmem:[%s1612_s28 + $0x48] sm:$0xff] }
  0x44   : > { %510 = vmatpush.bf16.msra.mxu0 %v1158_v6  ;;  %v584_v27 = vunpack.c.l.bf16 %v582_v20  ;;  %v1173_v30 = vld [vmem:[%s1626_s17 + $0x20] sm:$0xff]  ;;  %v411_v33 = vunpack.c.l.bf16 %v410_v26  ;;  %v1172_v49 = vld [vmem:[%s1626_s17 + $0x18] sm:$0xff]  ;;  %v1171_v50 = vld [vmem:[%s1626_s17 + $0x10] sm:$0xff] }
  0x45   : > { %571 = vmatpush.bf16.msra.mxu1 %v1150_v7  ;;  %v432_v16 = vmax.f32 %v431_v10, 0.0  ;;  %v1146_v35 = vld [vmem:[%s1612_s28 + $0x8] sm:$0xff]  ;;  %v587_v37 = vmax.f32 %v585_v28, 0.0  ;;  %v1153_v42 = vld [vmem:[%s1612_s28 + $0x40] sm:$0xff]  ;;  %vm776_vm4 = vmor %vm774_vm2, %vm775_vm3 }
  0x46   : > { %659 = vmatpush.bf16.msra.mxu2 %v1166_v8  ;;  %v586_v36 = vmax.f32 %v584_v27, 0.0  ;;  %v1162_v38 = vld [vmem:[%s1612_s28 + $0x88] sm:$0xff]  ;;  %v412_v41 = vmax.f32 %v411_v33, 0.0  ;;  %v1145_v43 = vld [vmem:[%s1612_s28] sm:$0xff]  ;;  %vm778_vm6 = vmor %vm776_vm4, %vm777_vm5 }
  0x47   : > { %v433_v23 = vpack.c.bf16 %v432_v16, %v432_v16  ;;  %748 = vmatpush.bf16.msra.mxu3 %v1174_v22  ;;  %v1161_v45 = vld [vmem:[%s1612_s28 + $0x80] sm:$0xff]  ;;  %v1170_v51 = vld [vmem:[%s1626_s17 + $0x8] sm:$0xff]  ;;  %vm780_vm8 = vmor %vm778_vm6, %vm779_vm7 }
  0x48   : > { %511 = vmatpush.bf16.msra.mxu0 %v1157_v12  ;;  %v588_v44 = vpack.c.bf16 %v587_v37, %v586_v36  ;;  %v413_v47 = vpack.c.bf16 %v412_v41, %v412_v41  ;;  %v1169_v52 = vld [vmem:[%s1626_s17] sm:$0xff]  ;;  %v1268_v56 = vld [vmem:[%s321_s8] ss:$0 sm:$0xff]  ;;  %s409_s23 = scalar_lea.vmem %s1752_s26, %s980_s21 }
  0x49   : > { %572 = vmatpush.bf16.msra.mxu1 %v1149_v13  ;;  %v452_v31 = vshrl.u32 %v433_v23, 16  ;;  %v455_v32 = vshll.u32 %v433_v23, 16  ;;  %v1269_v1 = vld [vmem:[%s340_s9] ss:$0 sm:$0xff] }
  0x4a   : > { %660 = vmatpush.bf16.msra.mxu2 %v1165_v14  ;;  %v607_v48 = vrot.slane %v588_v44, 3 }
  0x4b   : > { %749 = vmatpush.bf16.msra.mxu3 %v1173_v30  ;;  %v454_v39 = vrot.slane %v452_v31, 1  ;;  %v457_v40 = vrot.slane %v455_v32, 2 }
  0x4c   : > { %512 = vmatpush.bf16.msra.mxu0 %v1156_v17 }
  0x4d   : > { %573 = vmatpush.bf16.msra.mxu1 %v1148_v18  ;;  %v458_v46 = vor.u32 %v457_v40, %v454_v39 }
  0x4e   : > { %661 = vmatpush.bf16.msra.mxu2 %v1164_v19 }
  0x4f   : > { %750 = vmatpush.bf16.msra.mxu3 %v1172_v49 }
  0x50   : > { %513 = vmatpush.bf16.msra.mxu0 %v1155_v24 }
  0x51   : > { %574 = vmatpush.bf16.msra.mxu1 %v1147_v25 }
  0x52   : > { %662 = vmatpush.bf16.msra.mxu2 %v1163_v29 }
  0x53   : > { %751 = vmatpush.bf16.msra.mxu3 %v1171_v50 }
  0x54   : > { %514 = vmatpush.bf16.msra.mxu0 %v1154_v34 }
  0x55   : > { %575 = vmatpush.bf16.msra.mxu1 %v1146_v35 }
  0x56   : > { %663 = vmatpush.bf16.msra.mxu2 %v1162_v38 }
  0x57   : > { %752 = vmatpush.bf16.msra.mxu3 %v1170_v51 }
  0x58   : > { %515 = vmatpush.bf16.msra.mxu0 %v1153_v42 }
  0x59   : > { %576 = vmatpush.bf16.msra.mxu1 %v1145_v43 }
  0x5a   : > { %664 = vmatpush.bf16.msra.mxu2 %v1161_v45 }
  0x5b   : > { %516 = vmatmul.bf16.vlgmr.msra.gmra.mxu0 %v458_v46  ;;  %753 = vmatpush.bf16.msra.mxu3 %v1169_v52 }
  0x5c   : > { %577 = vmatmul.bf16.vlgmr.msra.gmra.mxu1 %v413_v47 }
  0x5d   : > { %665 = vmatmul.bf16.vlgmr.msra.gmra.mxu2 %v607_v48 }
  0xd8   : > { %v517_v53 = vpop.f32.mrf.mxu0 }
  0xd9   : > { %v578_v54 = vpop.f32.mrf.mxu1 }
  0xda   : > { %v579_v55 = vadd.f32 %v578_v54, %v517_v53 }
  0xe0   : > { %v666_v57 = vpop.f32.mrf.mxu2  ;;  %v519_v59 = vpop.f32.mrf.mxu0 }
  0xe1   : > { %v670_v58 = vadd.f32 %v666_v57, %v579_v55  ;;  %v580_v60 = vpop.f32.mrf.mxu1 }
  0xe3   : > { %v675_v61 = vadd.f32 %v1268_v56, %v670_v58 }
  0xe5   : > { %v676_v62 = vmax.f32 %v675_v61, 0.0 }
  0xe7   : > { %v677_v63 = vpack.c.bf16 %v676_v62, %v676_v62 }
  0xe8   : > { %v668_v0 = vpop.f32.mrf.mxu2 }
  0xe9   : > { %754 = vmatmul.bf16.vlgmr.msra.gmra.mxu3 %v677_v63 }
 0x16c   : > { %v755_v2 = vpop.f32.mrf.mxu3 }
 0x16d   : > { %v756_v3 = vadd.f32 %v1269_v1, %v755_v2 }
 0x16f   : > { %v760_v4 = vrot.slane %v756_v3, 5 }
 0x171   : > { %v762_v5 = vadd.f32 %v760_v4, %v431_v10 }
 0x173   : > { %v763_v6 = vpack.c.bf16 %v762_v5, %v762_v5 }
 0x174   : > { %v757_v7 = vpop.f32.mrf.mxu3 }
 0x175   : > { %v765_v8 = vrot.slane %v763_v6, 2 }
 0x177   : > { %v769_v11 = vsel %vm766_vm0, %v763_v6, %v765_v8  ;;  %v771_v12 = vsel %vm770_vm1, %v763_v6, %v765_v8 }
 0x178   : > { %v773_v13 = vrot.slane %v771_v12, 2  ;;  %v781_v14 = vshrl.u32 %v769_v11, 16 }
 0x17a   : > { %v786_v15 = vshrl.u32 %v773_v13, 16  ;;  %v789_v10 = vshll.u32 %v773_v13, 16  ;;  %v1141_v16 = vrot.slane %v781_v14, 9 }
 0x17c   : > { %v788_v9 = vrot.slane %v786_v15, 7 }
 0x17e   : > { %v791_v17 = vor.u32 %v789_v10, %v788_v9 }
 0x180   : > { %v792_v18 = vsel %vm780_vm8, %v1141_v16, %v791_v17 }
 0x181   : > { %794 = vst [vmem:[%s409_s23] sm:$0x3] %v792_v18 }
 0x182 PF: > { %s24_s25 = sadd.s32 1, %s1464_s25   ;;  %s1753_s27 = sld [smem:[#allocation12_spill]] }
 0x183   : > { %p21_p2 = scmp.ge.s32.totalorder %s24_s25, 6   ;;  %s1754_s20 = sld [smem:[#allocation16_spill]] }
 0x184   : > { %s1755_s21 = sld [smem:[#allocation13_spill]]  ;;  %s1758_s18 = smov %s1440_s19 }
 0x185   : > { %s1756_s23 = sld [smem:[#allocation14_spill]]  ;;  %s1760_s22 = smov %s1460_s24 }
 0x186   : > { %s1757_s1 = sld [smem:[#allocation15_spill]] }
 0x188   : > { %s1759_s19 = smov %s1753_s27  ;;  %23 = sbr.rel (!%p21_p2) target bundleno = 13 (0xd), region = 122 }
 0x18c   : > { %s1761_s24 = smov %s1757_s1 }
 0x18d   :  { %822 = vsyncpa [#allocation3], 1 }
 0x18e   :  { %824 = vsyncpa [#allocation3 + $0x1], 1 }
 0x18f   :  { %825 = vsyncpa [#allocation5], 1 }
 0x190   :  { %827 = vsyncpa [#allocation5 + $0x1], 1 }
 0x191   :  { %828 = vsyncpa [#allocation8], 1 }
 0x192   :  { %830 = vsyncpa [#allocation8 + $0x1], 1 }

// kernel: dual_human_vqvae_forward.30
= control target key start
LH: loop header
LB: loop body
LE: loop exit
PB: predicated region body
PF: predicated region fallthrough
CT: control target
= control target key end

     0   :  { %s1150_s12 = smov 0   ;;  %s1152_s13 = smov 0   ;;  %s1329_s0 = inlined_call_operand.vmem [shape: bf16[2,2,6,128], index: 0, kind: input, shape index: {}]   ;;  %s1330_s1 = inlined_call_operand.vmem [shape: bf16[2,3,128,256], index: 1, kind: input, shape index: {}]   ;;  %s1331_s2 = inlined_call_operand.vmem [shape: f32[2,1,256], index: 2, kind: input, shape index: {}]   ;;  %s1332_s3 = inlined_call_operand.vmem [shape: bf16[2,2,4,256], index: 3, kind: output, shape index: {}]  }
   0x1   :  { %s1154_s14 = smov 0   ;;  %s1156_s15 = smov 0  }
   0x2   :  { %s1158_s16 = smov 0  }
   0x3 LB: > { %s22_s17 = sadd.s32 1, %s1120_s14  ;;  %s25_s18 = sadd.s32 1, %s1124_s15  ;;  %s1128_s16 = sphi %s1158_s16, %s13_s16   ;;  %s1124_s15 = sphi %s1156_s15, %s1336_s15   ;;  %s1120_s14 = sphi %s1154_s14, %s1335_s14   ;;  %s1116_s13 = sphi %s1152_s13, %s1334_s13   ;;  %s1112_s12 = sphi %s1150_s12, %s1333_s12  }
   0x4   : > { %p23_p0 = scmp.ge.s32.totalorder %s22_s17, 2  ;;  %p767_p1 = scmp.ge.s32.totalorder %s1128_s16, 1 }
   0x5   : > { %p175_p2 = scmp.lt.s32.totalorder %s1128_s16, 5 }
   0x6   : > { %s1338_s17 = smov (%p23_p0, %s22_s17), 0  ;;  %s1340_s18 = smov (!%p23_p0, %s25_s18), %s1124_s15 }
   0x7   : > { %p176_p3 = pnand %p767_p1, %p175_p2  ;;  %p27_p4 = scmp.ge.s32.totalorder %s1340_s18, 2 }
   0x8   : > { %p215_p5 = scmp.lt.s32.totalorder (!%p176_p3), %s1116_s13, 1  ;;  %p217_p6 = scmp.lt.s32.totalorder (!%p176_p3), %s1112_s12, 1 }
   0x9   : > { %s1342_s18 = smov (%p27_p4, %s1340_s18), 0  ;;  %179 = sbr.rel (%p176_p3) target bundleno = 221 (0xdd), region = 32 }
   0xe   : > { %s1344_s13 = smov (!%p215_p5, %s1116_s13), 1  ;;  %s1346_s12 = smov (!%p217_p6, %s1112_s12), 1  ;;  %vm641_vm0 = vcmask 1041408  }
   0xf   : > { %s1049_s19 = smul.u32 384, %s1344_s13  ;;  %s768_s23 = sshll.u32 %s1344_s13, 1 }
  0x10   : > { %s220_s24 = sadd.s32 %s768_s23, %s1346_s12  ;;  %s231_s4 = scalar_lea.vmem %s1331_s2, %s768_s23 }
  0x11   : > { %s1188_s22 = scalar_lea.vmem %s1330_s1, %s1049_s19  ;;  %s769_s25 = sshll.u32 %s220_s24, 2 }
  0x12   : > { %v849_v0 = vld [vmem:[%s1188_s22 + $0xf0] sm:$0xf]  ;;  %v1032_v1 = vld [vmem:[%s1188_s22 + $0xf4] sm:$0xf0]  ;;  %v1031_v2 = vld [vmem:[%s1188_s22 + $0xf4] sm:$0xf]  ;;  %s1255_s28 = scalar_lea.vmem %s1329_s0, %s769_s25 }
  0x13   : > { %v850_v3 = vor.u32 %v1032_v1, %v849_v0  ;;  %v851_v4 = vld [vmem:[%s1188_s22 + $0xf8] sm:$0xf0]  ;;  %v841_v5 = vld [vmem:[%s1188_s22 + $0xe0] sm:$0xf]  ;;  %v1030_v6 = vld [vmem:[%s1188_s22 + $0xe4] sm:$0xf0] }
  0x14   : > { %v854_v7 = vor.u32 %v1031_v2, %v851_v4  ;;  %v1029_v8 = vld [vmem:[%s1188_s22 + $0xe4] sm:$0xf]  ;;  %v843_v9 = vld [vmem:[%s1188_s22 + $0xe8] sm:$0xf0]  ;;  %v913_v10 = vld [vmem:[%s1188_s22 + $0x70] sm:$0xf]  ;;  %v842_v11 = vor.u32 %v1030_v6, %v841_v5 }
  0x15   : > { %367 = vmatpush.bf16.msra.mxu0 %v850_v3  ;;  %v1016_v12 = vld [vmem:[%s1188_s22 + $0x74] sm:$0xf0]  ;;  %v1015_v13 = vld [vmem:[%s1188_s22 + $0x74] sm:$0xf]  ;;  %v915_v14 = vld [vmem:[%s1188_s22 + $0x78] sm:$0xf0]  ;;  %v846_v15 = vor.u32 %v1029_v8, %v843_v9 }
  0x16   : > { %380 = vmatpush.bf16.msra.mxu1 %v854_v7  ;;  %v914_v16 = vor.u32 %v1016_v12, %v913_v10  ;;  %v918_v17 = vor.u32 %v1015_v13, %v915_v14  ;;  %v833_v18 = vld [vmem:[%s1188_s22 + $0xd0] sm:$0xf]  ;;  %v1028_v19 = vld [vmem:[%s1188_s22 + $0xd4] sm:$0xf0]  ;;  %v1027_v20 = vld [vmem:[%s1188_s22 + $0xd4] sm:$0xf] }
  0x17   : > { %v835_v21 = vld [vmem:[%s1188_s22 + $0xd8] sm:$0xf0]  ;;  %v905_v22 = vld [vmem:[%s1188_s22 + $0x60] sm:$0xf]  ;;  %v1014_v23 = vld [vmem:[%s1188_s22 + $0x64] sm:$0xf0]  ;;  %v834_v27 = vor.u32 %v1028_v19, %v833_v18 }
  0x18   : > { %473 = vmatpush.bf16.msra.mxu2 %v914_v16  ;;  %486 = vmatpush.bf16.msra.mxu3 %v918_v17  ;;  %v906_v24 = vor.u32 %v1014_v23, %v905_v22  ;;  %v1013_v25 = vld [vmem:[%s1188_s22 + $0x64] sm:$0xf]  ;;  %v907_v26 = vld [vmem:[%s1188_s22 + $0x68] sm:$0xf0]  ;;  %v825_v29 = vld [vmem:[%s1188_s22 + $0xc0] sm:$0xf]  ;;  %v838_v31 = vor.u32 %v1027_v20, %v835_v21 }
  0x19   : > { %368 = vmatpush.bf16.msra.mxu0 %v842_v11  ;;  %v910_v28 = vor.u32 %v1013_v25, %v907_v26  ;;  %v1026_v30 = vld [vmem:[%s1188_s22 + $0xc4] sm:$0xf0]  ;;  %v897_v32 = vld [vmem:[%s1188_s22 + $0x50] sm:$0xf]  ;;  %v1012_v33 = vld [vmem:[%s1188_s22 + $0x54] sm:$0xf0] }
  0x1a   : > { %381 = vmatpush.bf16.msra.mxu1 %v846_v15  ;;  %v1011_v34 = vld [vmem:[%s1188_s22 + $0x54] sm:$0xf]  ;;  %v1025_v35 = vld [vmem:[%s1188_s22 + $0xc4] sm:$0xf]  ;;  %v827_v36 = vld [vmem:[%s1188_s22 + $0xc8] sm:$0xf0]  ;;  %v898_v38 = vor.u32 %v1012_v33, %v897_v32  ;;  %v826_v41 = vor.u32 %v1026_v30, %v825_v29 }
  0x1b   : > { %v899_v37 = vld [vmem:[%s1188_s22 + $0x58] sm:$0xf0]  ;;  %v889_v40 = vld [vmem:[%s1188_s22 + $0x40] sm:$0xf]  ;;  %v1010_v42 = vld [vmem:[%s1188_s22 + $0x44] sm:$0xf0]  ;;  %v830_v45 = vor.u32 %v1025_v35, %v827_v36 }
  0x1c   : > { %474 = vmatpush.bf16.msra.mxu2 %v906_v24  ;;  %487 = vmatpush.bf16.msra.mxu3 %v910_v28  ;;  %v902_v39 = vor.u32 %v1011_v34, %v899_v37  ;;  %v1009_v43 = vld [vmem:[%s1188_s22 + $0x44] sm:$0xf]  ;;  %v891_v44 = vld [vmem:[%s1188_s22 + $0x48] sm:$0xf0]  ;;  %v817_v46 = vld [vmem:[%s1188_s22 + $0xb0] sm:$0xf]  ;;  %v890_v50 = vor.u32 %v1010_v42, %v889_v40 }
  0x1d   : > { %369 = vmatpush.bf16.msra.mxu0 %v834_v27  ;;  %v1024_v47 = vld [vmem:[%s1188_s22 + $0xb4] sm:$0xf0]  ;;  %v1023_v48 = vld [vmem:[%s1188_s22 + $0xb4] sm:$0xf]  ;;  %v819_v49 = vld [vmem:[%s1188_s22 + $0xb8] sm:$0xf0]  ;;  %v894_v51 = vor.u32 %v1009_v43, %v891_v44 }
  0x1e   : > { %382 = vmatpush.bf16.msra.mxu1 %v838_v31  ;;  %v881_v52 = vld [vmem:[%s1188_s22 + $0x30] sm:$0xf]  ;;  %v818_v53 = vor.u32 %v1024_v47, %v817_v46  ;;  %v1008_v54 = vld [vmem:[%s1188_s22 + $0x34] sm:$0xf0]  ;;  %v1007_v55 = vld [vmem:[%s1188_s22 + $0x34] sm:$0xf]  ;;  %v822_v57 = vor.u32 %v1023_v48, %v819_v49 }
  0x1f   : > { %v883_v56 = vld [vmem:[%s1188_s22 + $0x38] sm:$0xf0]  ;;  %v809_v58 = vld [vmem:[%s1188_s22 + $0xa0] sm:$0xf]  ;;  %v1022_v59 = vld [vmem:[%s1188_s22 + $0xa4] sm:$0xf0]  ;;  %v882_v62 = vor.u32 %v1008_v54, %v881_v52 }
  0x20   : > { %475 = vmatpush.bf16.msra.mxu2 %v898_v38  ;;  %488 = vmatpush.bf16.msra.mxu3 %v902_v39  ;;  %v1021_v60 = vld [vmem:[%s1188_s22 + $0xa4] sm:$0xf]  ;;  %v811_v61 = vld [vmem:[%s1188_s22 + $0xa8] sm:$0xf0]  ;;  %v886_v63 = vor.u32 %v1007_v55, %v883_v56  ;;  %v873_v0 = vld [vmem:[%s1188_s22 + $0x20] sm:$0xf]  ;;  %v810_v1 = vor.u32 %v1022_v59, %v809_v58 }
  0x21   : > { %370 = vmatpush.bf16.msra.mxu0 %v826_v41  ;;  %v1006_v2 = vld [vmem:[%s1188_s22 + $0x24] sm:$0xf0]  ;;  %v1005_v3 = vld [vmem:[%s1188_s22 + $0x24] sm:$0xf]  ;;  %v875_v4 = vld [vmem:[%s1188_s22 + $0x28] sm:$0xf0]  ;;  %v814_v5 = vor.u32 %v1021_v60, %v811_v61 }
  0x22   : > { %383 = vmatpush.bf16.msra.mxu1 %v830_v45  ;;  %v801_v6 = vld [vmem:[%s1188_s22 + $0x90] sm:$0xf]  ;;  %v1020_v7 = vld [vmem:[%s1188_s22 + $0x94] sm:$0xf0]  ;;  %v1019_v8 = vld [vmem:[%s1188_s22 + $0x94] sm:$0xf]  ;;  %v874_v10 = vor.u32 %v1006_v2, %v873_v0  ;;  %v878_v11 = vor.u32 %v1005_v3, %v875_v4 }
  0x23   : > { %v803_v9 = vld [vmem:[%s1188_s22 + $0x98] sm:$0xf0]  ;;  %v793_v12 = vld [vmem:[%s1188_s22 + $0x80] sm:$0xf]  ;;  %v865_v13 = vld [vmem:[%s1188_s22 + $0x10] sm:$0xf]  ;;  %v802_v14 = vor.u32 %v1020_v7, %v801_v6 }
  0x24   : > { %476 = vmatpush.bf16.msra.mxu2 %v890_v50  ;;  %489 = vmatpush.bf16.msra.mxu3 %v894_v51  ;;  %v1004_v15 = vld [vmem:[%s1188_s22 + $0x14] sm:$0xf0]  ;;  %v1003_v16 = vld [vmem:[%s1188_s22 + $0x14] sm:$0xf]  ;;  %v867_v17 = vld [vmem:[%s1188_s22 + $0x18] sm:$0xf0]  ;;  %v806_v18 = vor.u32 %v1019_v8, %v803_v9 }
  0x25   : > { %371 = vmatpush.bf16.msra.mxu0 %v818_v53  ;;  %v1018_v19 = vld [vmem:[%s1188_s22 + $0x84] sm:$0xf0]  ;;  %v1017_v20 = vld [vmem:[%s1188_s22 + $0x84] sm:$0xf]  ;;  %v258_v21 = vld [vmem:[%s1255_s28] sm:$0x7]  ;;  %v866_v28 = vor.u32 %v1004_v15, %v865_v13  ;;  %v870_v29 = vor.u32 %v1003_v16, %v867_v17 }
  0x26   : > { %384 = vmatpush.bf16.msra.mxu1 %v822_v57  ;;  %v795_v22 = vld [vmem:[%s1188_s22 + $0x88] sm:$0xf0]  ;;  %v993_v23 = vld [vmem:[%s1188_s22 + $0x170] sm:$0xf]  ;;  %v1048_v24 = vld [vmem:[%s1188_s22 + $0x174] sm:$0xf0]  ;;  %v277_v25 = vunpack.c.l.b16 %v258_v21  ;;  %v794_v31 = vor.u32 %v1018_v19, %v793_v12 }
  0x27   : > { %v1047_v26 = vld [vmem:[%s1188_s22 + $0x174] sm:$0xf]  ;;  %v995_v27 = vld [vmem:[%s1188_s22 + $0x178] sm:$0xf0]  ;;  %v857_v30 = vld [vmem:[%s1188_s22] sm:$0xf]  ;;  %v798_v36 = vor.u32 %v1017_v20, %v795_v22  ;;  %v994_v37 = vor.u32 %v1048_v24, %v993_v23 }
  0x28   : > { %477 = vmatpush.bf16.msra.mxu2 %v882_v62  ;;  %490 = vmatpush.bf16.msra.mxu3 %v886_v63  ;;  %v1002_v32 = vld [vmem:[%s1188_s22 + $0x4] sm:$0xf0]  ;;  %v1001_v33 = vld [vmem:[%s1188_s22 + $0x4] sm:$0xf]  ;;  %v859_v34 = vld [vmem:[%s1188_s22 + $0x8] sm:$0xf0]  ;;  %v278_v35 = vpack.c.b16 %v277_v25, %v277_v25  ;;  %v998_v38 = vor.u32 %v1047_v26, %v995_v27 }
  0x29   : > { %372 = vmatpush.bf16.msra.mxu0 %v810_v1  ;;  %v985_v39 = vld [vmem:[%s1188_s22 + $0x160] sm:$0xf]  ;;  %v1046_v40 = vld [vmem:[%s1188_s22 + $0x164] sm:$0xf0]  ;;  %v1045_v43 = vld [vmem:[%s1188_s22 + $0x164] sm:$0xf]  ;;  %v858_v45 = vor.u32 %v1002_v32, %v857_v30  ;;  %v862_v46 = vor.u32 %v1001_v33, %v859_v34 }
  0x2a   : > { %385 = vmatpush.bf16.msra.mxu1 %v814_v5  ;;  %v280_v41 = vshrl.u32 %v278_v35, 16  ;;  %v282_v42 = vshll.u32 %v278_v35, 16  ;;  %v987_v44 = vld [vmem:[%s1188_s22 + $0x168] sm:$0xf0]  ;;  %v986_v48 = vor.u32 %v1046_v40, %v985_v39  ;;  %v977_v51 = vld [vmem:[%s1188_s22 + $0x150] sm:$0xf] }
  0x2b   : > { %v990_v49 = vor.u32 %v1045_v43, %v987_v44  ;;  %v1044_v52 = vld [vmem:[%s1188_s22 + $0x154] sm:$0xf0]  ;;  %v1043_v53 = vld [vmem:[%s1188_s22 + $0x154] sm:$0xf]  ;;  %v979_v54 = vld [vmem:[%s1188_s22 + $0x158] sm:$0xf0] }
  0x2c   : > { %478 = vmatpush.bf16.msra.mxu2 %v874_v10  ;;  %491 = vmatpush.bf16.msra.mxu3 %v878_v11  ;;  %v284_v47 = vrot.slane %v282_v42, 1  ;;  %v241_v55 = vld [vmem:[%s1255_s28] sm:$0x3]  ;;  %v978_v56 = vor.u32 %v1044_v52, %v977_v51  ;;  %v982_v57 = vor.u32 %v1043_v53, %v979_v54  ;;  %v1042_v59 = vld [vmem:[%s1188_s22 + $0x144] sm:$0xf0]  ;;  %s772_s5 = sshll.u32 %s1346_s12, 1 }
  0x2d   : > { %373 = vmatpush.bf16.msra.mxu0 %v802_v14  ;;  %v969_v58 = vld [vmem:[%s1188_s22 + $0x140] sm:$0xf]  ;;  %v1041_v60 = vld [vmem:[%s1188_s22 + $0x144] sm:$0xf]  ;;  %v971_v61 = vld [vmem:[%s1188_s22 + $0x148] sm:$0xf0] }
  0x2e   : > { %386 = vmatpush.bf16.msra.mxu1 %v806_v18  ;;  %v285_v50 = vor.u32 %v284_v47, %v280_v41  ;;  %v970_v62 = vor.u32 %v1042_v59, %v969_v58  ;;  %v974_v63 = vor.u32 %v1041_v60, %v971_v61  ;;  %v961_v0 = vld [vmem:[%s1188_s22 + $0x130] sm:$0xf]  ;;  %v1040_v1 = vld [vmem:[%s1188_s22 + $0x134] sm:$0xf0]  ;;  %v1039_v2 = vld [vmem:[%s1188_s22 + $0x134] sm:$0xf] }
  0x2f   : > { %v963_v3 = vld [vmem:[%s1188_s22 + $0x138] sm:$0xf0]  ;;  %v962_v4 = vor.u32 %v1040_v1, %v961_v0  ;;  %v953_v6 = vld [vmem:[%s1188_s22 + $0x120] sm:$0xf]  ;;  %v1038_v7 = vld [vmem:[%s1188_s22 + $0x124] sm:$0xf0] }
  0x30   : > { %479 = vmatpush.bf16.msra.mxu2 %v866_v28  ;;  %492 = vmatpush.bf16.msra.mxu3 %v870_v29  ;;  %v966_v5 = vor.u32 %v1039_v2, %v963_v3  ;;  %v1037_v8 = vld [vmem:[%s1188_s22 + $0x124] sm:$0xf]  ;;  %v955_v9 = vld [vmem:[%s1188_s22 + $0x128] sm:$0xf0]  ;;  %v954_v10 = vor.u32 %v1038_v7, %v953_v6  ;;  %v499_v11 = vld [vmem:[%s1255_s28] sm:$0x6] }
  0x31   : > { %374 = vmatpush.bf16.msra.mxu0 %v794_v31  ;;  %v958_v12 = vor.u32 %v1037_v8, %v955_v9  ;;  %v945_v13 = vld [vmem:[%s1188_s22 + $0x110] sm:$0xf]  ;;  %v1036_v14 = vld [vmem:[%s1188_s22 + $0x114] sm:$0xf0]  ;;  %v1035_v15 = vld [vmem:[%s1188_s22 + $0x114] sm:$0xf]  ;;  %v518_v17 = vunpack.c.l.b16 %v499_v11 }
  0x32   : > { %387 = vmatpush.bf16.msra.mxu1 %v798_v36  ;;  %v947_v16 = vld [vmem:[%s1188_s22 + $0x118] sm:$0xf0]  ;;  %v946_v18 = vor.u32 %v1036_v14, %v945_v13  ;;  %v937_v20 = vld [vmem:[%s1188_s22 + $0x100] sm:$0xf]  ;;  %v1034_v21 = vld [vmem:[%s1188_s22 + $0x104] sm:$0xf0] }
  0x33   : > { %v950_v19 = vor.u32 %v1035_v15, %v947_v16  ;;  %v1033_v22 = vld [vmem:[%s1188_s22 + $0x104] sm:$0xf]  ;;  %v939_v23 = vld [vmem:[%s1188_s22 + $0x108] sm:$0xf0]  ;;  %v519_v24 = vpack.c.b16 %v518_v17, %v518_v17  ;;  %v938_v25 = vor.u32 %v1034_v21, %v937_v20  ;;  %v630_v36 = vld [vmem:[%s231_s4] sm:$0x3] }
  0x34   : > { %480 = vmatpush.bf16.msra.mxu2 %v858_v45  ;;  %493 = vmatpush.bf16.msra.mxu3 %v862_v46  ;;  %v942_v26 = vor.u32 %v1033_v22, %v939_v23  ;;  %s773_s6 = sshll.u32 %s1344_s13, 2  ;;  %v633_v41 = vperm.slane %v630_v36, 1 }
  0x35   : > { %602 = vmatpush.bf16.msrb.mxu0 %v994_v37  ;;  %388 = vmatmul.bf16.vlgmr.msra.gmra.mxu1 %v285_v50  ;;  %v520_v27 = vrot.slane %v519_v24, 1  ;;  %s238_s7 = sadd.s32 %s773_s6, %s772_s5 }
  0x36   : > { %615 = vmatpush.bf16.msrb.mxu1 %v998_v38  ;;  %375 = vmatmul.bf16.vlgmr.msra.gmra.mxu0 %v285_v50  ;;  %v632_v38 = vperm.slane %v630_v36, 0  ;;  %s774_s8 = sshll.u32 %s238_s7, 1 }
  0x37   : > { %481 = vmatmul.bf16.vlgmr.msra.gmra.mxu2 %v241_v55  ;;  %494 = vmatmul.bf16.vlgmr.msra.gmra.mxu3 %v241_v55  ;;  %s240_s11 = scalar_lea.vmem %s1332_s3, %s774_s8 }
  0x39   : > { %603 = vmatpush.bf16.msrb.mxu0 %v986_v48 }
  0x3a   : > { %616 = vmatpush.bf16.msrb.mxu1 %v990_v49 }
  0x3d   : > { %604 = vmatpush.bf16.msrb.mxu0 %v978_v56 }
  0x3e   : > { %617 = vmatpush.bf16.msrb.mxu1 %v982_v57 }
  0x41   : > { %605 = vmatpush.bf16.msrb.mxu0 %v970_v62 }
  0x42   : > { %618 = vmatpush.bf16.msrb.mxu1 %v974_v63 }
  0x45   : > { %606 = vmatpush.bf16.msrb.mxu0 %v962_v4 }
  0x46   : > { %619 = vmatpush.bf16.msrb.mxu1 %v966_v5 }
  0x49   : > { %607 = vmatpush.bf16.msrb.mxu0 %v954_v10 }
  0x4a   : > { %620 = vmatpush.bf16.msrb.mxu1 %v958_v12 }
  0x4d   : > { %608 = vmatpush.bf16.msrb.mxu0 %v946_v18 }
  0x4e   : > { %621 = vmatpush.bf16.msrb.mxu1 %v950_v19 }
  0x51   : > { %609 = vmatpush.bf16.msrb.mxu0 %v938_v25 }
  0x52   : > { %622 = vmatpush.bf16.msrb.mxu1 %v942_v26 }
  0x54   : > { %610 = vmatmul.bf16.vlgmr.msrb.gmra.mxu0 %v520_v27 }
  0x55   : > { %623 = vmatmul.bf16.vlgmr.msrb.gmra.mxu1 %v520_v27 }
  0xb2   : > { %v389_v29 = vpop.f32.mrf.mxu1 }
  0xb3   : > { %v376_v28 = vpop.f32.mrf.mxu0 }
  0xba   : > { %v391_v31 = vpop.f32.mrf.mxu1  ;;  %v482_v32 = vpop.f32.mrf.mxu2 }
  0xbb   : > { %v378_v30 = vpop.f32.mrf.mxu0  ;;  %v495_v33 = vpop.f32.mrf.mxu3  ;;  %v483_v37 = vadd.f32 %v482_v32, %v376_v28 }
  0xbc   : > { %v496_v39 = vadd.f32 %v495_v33, %v389_v29 }
  0xc2   : > { %v484_v34 = vpop.f32.mrf.mxu2 }
  0xc3   : > { %v497_v35 = vpop.f32.mrf.mxu3 }
  0xd1   : > { %v611_v40 = vpop.f32.mrf.mxu0 }
  0xd2   : > { %v628_v42 = vadd.f32 %v611_v40, %v483_v37  ;;  %v624_v43 = vpop.f32.mrf.mxu1 }
  0xd3   : > { %v629_v44 = vadd.f32 %v624_v43, %v496_v39 }
  0xd4   : > { %v636_v45 = vadd.f32 %v632_v38, %v628_v42 }
  0xd5   : > { %v637_v46 = vadd.f32 %v633_v41, %v629_v44 }
  0xd7   : > { %v638_v47 = vpack.c.bf16 %v637_v46, %v636_v45 }
  0xd9   : > { %v640_v48 = vrot.slane %v638_v47, 2  ;;  %v613_v49 = vpop.f32.mrf.mxu0 }
  0xda   : > { %v626_v50 = vpop.f32.mrf.mxu1 }
  0xdb   : > { %v644_v51 = vsel %vm641_vm0, %v638_v47, %v640_v48 }
  0xdc   : > { %646 = vst [vmem:[%s240_s11] sm:$0xf] %v644_v51 }
  0xdd PF: > { %s13_s16 = sadd.s32 1, %s1128_s16   ;;  %s1333_s12 = smov %s1120_s14 }
  0xde   : > { %p10_p7 = scmp.ge.s32.totalorder %s13_s16, 6   ;;  %s1334_s13 = smov %s1124_s15 }
  0xdf   : > { %s1335_s14 = smov %s1338_s17  ;;  %s1336_s15 = smov %s1342_s18 }
  0xe0   :  { %12 = sbr.rel (!%p10_p7) target bundleno = 3 (0x3), region = 70 }

// kernel: dual_human_vqvae_forward.29
= control target key start
LH: loop header
LB: loop body
LE: loop exit
PB: predicated region body
PF: predicated region fallthrough
CT: control target
= control target key end

     0   :  { %s1709_s0 = inlined_call_operand.vmem [shape: bf16[2,2,6,128], index: 0, kind: input, shape index: {}]   ;;  %s1710_s1 = inlined_call_operand.hbm [shape: bf16[2,3,128,128], index: 1, kind: input, shape index: {}]   ;;  %s1711_s2 = inlined_call_operand.hbm [shape: f32[2,1,128], index: 2, kind: input, shape index: {}]   ;;  %s1712_s3 = inlined_call_operand.hbm [shape: bf16[2,1,128,128], index: 3, kind: input, shape index: {}]   ;;  %s1713_s4 = inlined_call_operand.hbm [shape: f32[2,1,128], index: 4, kind: input, shape index: {}]   ;;  %s1714_s5 = inlined_call_operand.vmem [shape: bf16[2,2,4,128], index: 5, kind: output, shape index: {}]  }
   0x1   :  { %1719 = sst [smem:[#allocation17_spill]] %s1710_s1 }
   0x2   :  { %1720 = sst [smem:[#allocation18_spill]] %s1711_s2 }
   0x3   :  { %1721 = sst [smem:[#allocation19_spill]] %s1714_s5 }
   0x4   :  { %10 = vsyncpa [#allocation3], 0 }
   0x5   :  { %12 = vsyncpa [#allocation3 + $0x1], 0 }
   0x6   :  { %13 = vsyncpa [#allocation5], 0 }
   0x7   :  { %15 = vsyncpa [#allocation5 + $0x1], 0 }
   0x8   :  { %16 = vsyncpa [#allocation8], 0 }
   0x9   :  { %18 = vsyncpa [#allocation8 + $0x1], 0  ;;  %s1487_s18 = smov 0   ;;  %s1489_s19 = smov 0  }
   0xa   :  { %s1491_s20 = smov 0   ;;  %s1493_s21 = smov 0  }
   0xb   :  { %s1495_s22 = smov 0   ;;  %s1497_s23 = smov 0  }
   0xc   :  { %s1499_s24 = smov 0   ;;  %s1501_s25 = smov 0  }
   0xd LB: > { %1722 = sst [smem:[#allocation12_spill]] %s1433_s20  ;;  %s1715_s26 = sadd.s32 4294967295, %s1453_s25   ;;  %s1453_s25 = sphi %s1501_s25, %s24_s25   ;;  %s1449_s24 = sphi %s1499_s24, %s1742_s24   ;;  %s1445_s23 = sphi %s1497_s23, %s1737_s23   ;;  %s1441_s22 = sphi %s1495_s22, %s1741_s22   ;;  %s1437_s21 = sphi %s1493_s21, %s1736_s21   ;;  %s1433_s20 = sphi %s1491_s20, %s1735_s20   ;;  %s1429_s19 = sphi %s1489_s19, %s1740_s19   ;;  %s1425_s18 = sphi %s1487_s18, %s1739_s18  }
   0xe   : > { %1723 = sst [smem:[#allocation13_spill]] %s1445_s23  ;;  %s33_s27 = sadd.s32 1, %s1445_s23 }
   0xf   : > { %p34_p0 = scmp.ge.s32.totalorder %s33_s27, 2  ;;  %s36_s28 = sadd.s32 1, %s1449_s24 }
  0x10   : > { %s71_s29 = sadd.s32 1, %s1433_s20  ;;  %p78_p1 = scmp.ne.s32.totalorder %s1433_s20, %s1429_s19 }
  0x11   : > { %s1744_s27 = smov (%p34_p0, %s33_s27), 0  ;;  %s1746_s28 = smov (!%p34_p0, %s36_s28), %s1449_s24 }
  0x12   : > { %1724 = sst [smem:[#allocation14_spill]] %s1744_s27  ;;  %p79_p2 = scmp.eq.s32.totalorder %s1453_s25, 0 }
  0x13   : > { %p84_p3 = scmp.ne.s32.totalorder %s1429_s19, %s1425_s18  ;;  %p38_p4 = scmp.ge.s32.totalorder %s1746_s28, 2 }
  0x14   : > { %p85_p5 = scmp.eq.s32.totalorder %s1715_s26, 0  ;;  %p80_p6 = por %p79_p2, %p78_p1 }
  0x15   : > { %s1748_s28 = smov (%p38_p4, %s1746_s28), 0  ;;  %p1190_p8 = scmp.lt.s32.totalorder %s1453_s25, 4 }
  0x16   : > { %1725 = sst [smem:[#allocation15_spill]] %s1748_s28  ;;  %p1540_p7 = por %p85_p5, %p84_p3 }
  0x17   : > { %s68_s6 = ssub.s32 %s1449_s24, %s1748_s28  ;;  %s1548_s7 = sand.u32 1, %s1433_s20  }
  0x18   : > { %p69_p9 = scmp.eq.s32.totalorder %s68_s6, 0  ;;  %p1550_p10 = pnand %p1190_p8, %p80_p6 }
  0x19   : > { %s247_s9 = sand.u32 1, %s1453_s25   ;;  %s1729_s2 = sld [smem:[#allocation18_spill]] }
  0x1a   : > { %s1556_s10 = scalar_select %p69_p9, %s1433_s20, %s71_s29  }
  0x1b   : > { %s250_s14 = scalar_lea.vmem [#allocation4], %s1548_s7  ;;  %p965_p11 = scmp.ge.s32.totalorder %s1453_s25, 1 }
  0x1c   : > { %1728 = sst [smem:[#allocation16_spill]] %s1556_s10  ;;  %s257_s15 = sshll.u32 %s250_s14, 4  ;;  %s258_s15 = int_to_ptr.vmem [resolvable:$true] %s257_s15 }
  0x1d   : > { %s248_s17 = scalar_lea.sflag [#allocation5], %s247_s9  ;;  %p301_p12 = scmp.lt.s32.totalorder %s1453_s25, 5 }
  0x1e   : > { %s1166_s29 = smul.u32 192, %s1548_s7  ;;  %s1731_s1 = sld [smem:[#allocation17_spill]] }
  0x1f   : > { %s253_s13 = scalar_lea.hbm %s1729_s2, %s1449_s24  ;;  %p1567_p13 = pnand %p965_p11, %p301_p12 }
  0x20   : > { %s255_s16 = sshll.u32 %s253_s13, 4  ;;  %s1167_s6 = smul.u32 192, %s1449_s24  ;;  %s256_s16 = int_to_ptr.hbm [resolvable:$true] %s255_s16 }
  0x21   : > { %1183 = dma.hbm_to_vmem [thread:$0]  (!%p1550_p10), %s256_s16, 16, %s258_s15, %s248_s17  }
  0x22   : > { %s229_s14 = scalar_lea.vmem [#allocation2], %s1166_s29  ;;  %s962_s9 = sshll.u32 %s1548_s7, 6 }
  0x23   : > { %s237_s26 = sshll.u32 %s229_s14, 4  ;;  %s226_s15 = scalar_lea.sflag [#allocation3], %s1548_s7  ;;  %s238_s26 = int_to_ptr.vmem [resolvable:$true] %s237_s26 }
  0x24   : > { %s234_s13 = scalar_lea.hbm %s1731_s1, %s1167_s6  ;;  %s1455_s16 = smov 64  }
  0x25   : > { %s235_s2 = sshll.u32 %s234_s13, 4  ;;  %s1456_s28 = smov 4   ;;  %s236_s2 = int_to_ptr.hbm [resolvable:$true] %s235_s2 }
  0x26   : > { %1180 = dma.hbm_to_vmem [thread:$0]  (!%p1550_p10), %s236_s2, 3072, %s238_s26, %s226_s15, %s1455_s16, %s1455_s16, %s1456_s28  }
  0x27   : > { %s1133_s27 = sshll.u32 %s1449_s24, 6  ;;  %s268_s6 = scalar_lea.vmem [#allocation6], %s962_s9 }
  0x28   : > { %s273_s29 = scalar_lea.hbm %s1712_s3, %s1133_s27  ;;  %s276_s12 = sshll.u32 %s268_s6, 4  ;;  %s277_s12 = int_to_ptr.vmem [resolvable:$true] %s276_s12 }
  0x29   : > { %s274_s13 = sshll.u32 %s273_s29, 4  ;;  %s292_s10 = scalar_lea.hbm %s1713_s4, %s1449_s24  ;;  %s275_s13 = int_to_ptr.hbm [resolvable:$true] %s274_s13 }
  0x2a   : > { %1186 = dma.hbm_to_vmem [thread:$0]  (!%p1550_p10), %s275_s13, 1024, %s277_s12, %s248_s17, %s1455_s16, %s1455_s16, %s1456_s28  }
  0x2b   : > { %s294_s20 = sshll.u32 %s292_s10, 4  ;;  %s289_s5 = scalar_lea.vmem [#allocation7], %s1548_s7  ;;  %s295_s20 = int_to_ptr.hbm [resolvable:$true] %s294_s20 }
  0x2c   : > { %s296_s2 = sshll.u32 %s289_s5, 4  ;;  %s287_s26 = scalar_lea.sflag [#allocation8], %s1548_s7  ;;  %s297_s2 = int_to_ptr.vmem [resolvable:$true] %s296_s2 }
  0x2d   : > { %1189 = dma.hbm_to_vmem [thread:$0]  (!%p1550_p10), %s295_s20, 16, %s297_s2, %s287_s26  }
  0x2e   : > { %305 = sbr.rel (%p1567_p13) target bundleno = 386 (0x182), region = 40  ;;  %s1597_s23 = sand.u32 (!%p1567_p13), 1, %s1429_s19  }
  0x2f   : > { %s1168_s27 = smul.u32 (!%p1567_p13), 192, %s1597_s23  ;;  %s308_s1 = scalar_lea.sflag (!%p1567_p13), [#allocation3], %s1597_s23 }
  0x31   : > { %s1601_s28 = scalar_lea.vmem (!%p1567_p13), [#allocation2], %s1168_s27 }
  0x33   : > { %1412 = dma.done.wait (%p1540_p7), %s308_s1, 3072  }
  0x34   : > { %1414 = vsyncadd (%p1540_p7), %s308_s1, 4294964224  ;;  %s1732_s5 = sadd.s32 4294967295, %s1453_s25   ;;  %s320_s8 = scalar_lea.vmem [#allocation4], %s1597_s23 }
  0x35   : > { %s317_s20 = sand.u32 1, %s1732_s5  }
  0x36   : > { %s318_s7 = scalar_lea.sflag [#allocation5], %s317_s20 }
  0x37   : > { %1416 = dma.done.wait (%p1540_p7), %s318_s7, 1040  }
  0x38   : > { %1418 = vsyncadd (%p1540_p7), %s318_s7, 4294966256  ;;  %s966_s10 = sshll.u32 %s1597_s23, 6  ;;  %s337_s18 = scalar_lea.sflag [#allocation8], %s1597_s23 }
  0x39   : > { %s1615_s17 = scalar_lea.vmem [#allocation6], %s966_s10  ;;  %s339_s9 = scalar_lea.vmem [#allocation7], %s1597_s23 }
  0x3a   : > { %1420 = dma.done.wait (%p1540_p7), %s337_s18, 16  }
  0x3b   : > { %1422 = vsyncadd (%p1540_p7), %s337_s18, 4294967280  ;;  %p391_p0 = scmp.lt.s32.totalorder %s1441_s22, 1  ;;  %p393_p1 = scmp.lt.s32.totalorder %s1437_s21, 1  ;;  %v1149_v0 = vld [vmem:[%s1601_s28 + $0x78] sm:$0xff]  ;;  %v1148_v3 = vld [vmem:[%s1601_s28 + $0x70] sm:$0xff]  ;;  %vm759_vm0 = vcmask 1041408  }
  0x3c   : > { %v1141_v1 = vld [vmem:[%s1601_s28 + $0x38] sm:$0xff]  ;;  %504 = vmatpush.bf16.msra.mxu0 %v1149_v0  ;;  %v1140_v4 = vld [vmem:[%s1601_s28 + $0x30] sm:$0xff]  ;;  %v1147_v6 = vld [vmem:[%s1601_s28 + $0x68] sm:$0xff]  ;;  %vm763_vm1 = vcmask 1043458   ;;  %vm767_vm2 = vsmask.f32 1280 }
  0x3d   : > { %s1750_s22 = smov (!%p391_p0, %s1441_s22), 1  ;;  %s1752_s21 = smov (!%p393_p1, %s1437_s21), 1  ;;  %v1157_v2 = vld [vmem:[%s1601_s28 + $0xb8] sm:$0xff]  ;;  %565 = vmatpush.bf16.msra.mxu1 %v1141_v1  ;;  %v1156_v5 = vld [vmem:[%s1601_s28 + $0xb0] sm:$0xff]  ;;  %v1139_v7 = vld [vmem:[%s1601_s28 + $0x28] sm:$0xff] }
  0x3e   : > { %s967_s15 = sshll.u32 %s1750_s22, 1  ;;  %650 = vmatpush.bf16.msra.mxu2 %v1157_v2  ;;  %v1155_v8 = vld [vmem:[%s1601_s28 + $0xa8] sm:$0xff]  ;;  %v1146_v10 = vld [vmem:[%s1601_s28 + $0x60] sm:$0xff]  ;;  %v1164_v15 = vld [vmem:[%s1615_s17 + $0x30] sm:$0xff]  ;;  %vm768_vm3 = vsmask.f32 3336 }
  0x3f   : > { %s1627_s16 = sadd.s32 %s967_s15, %s1752_s21  ;;  %v1165_v12 = vld [vmem:[%s1615_s17 + $0x38] sm:$0xff]  ;;  %v1163_v21 = vld [vmem:[%s1615_s17 + $0x28] sm:$0xff]  ;;  %v1162_v28 = vld [vmem:[%s1615_s17 + $0x20] sm:$0xff]  ;;  %vm770_vm5 = vsmask.f32 5392  ;;  %s1733_s13 = sld [smem:[#allocation19_spill]] }
  0x40   : > { %s968_s30 = sshll.u32 %s1627_s16, 2  ;;  %505 = vmatpush.bf16.msra.mxu0 %v1148_v3  ;;  %v1138_v13 = vld [vmem:[%s1601_s28 + $0x20] sm:$0xff]  ;;  %739 = vmatpush.bf16.msra.mxu3 %v1165_v12  ;;  %v1145_v17 = vld [vmem:[%s1601_s28 + $0x58] sm:$0xff]  ;;  %v1144_v23 = vld [vmem:[%s1601_s28 + $0x50] sm:$0xff]  ;;  %vm772_vm7 = vsmask.f32 7448 }
  0x41   : > { %s1639_s21 = scalar_lea.vmem %s1709_s0, %s968_s30  ;;  %566 = vmatpush.bf16.msra.mxu1 %v1140_v4  ;;  %v1154_v14 = vld [vmem:[%s1601_s28 + $0xa0] sm:$0xff]  ;;  %v1137_v18 = vld [vmem:[%s1601_s28 + $0x18] sm:$0xff]  ;;  %v1136_v24 = vld [vmem:[%s1601_s28 + $0x10] sm:$0xff]  ;;  %s970_s29 = sshll.u32 %s1627_s16, 1 }
  0x42   : > { %651 = vmatpush.bf16.msra.mxu2 %v1156_v5  ;;  %v1645_v9 = vld [vmem:[%s1639_s21] sm:$0x7]  ;;  %v1153_v19 = vld [vmem:[%s1601_s28 + $0x98] sm:$0xff]  ;;  %v1152_v27 = vld [vmem:[%s1601_s28 + $0x90] sm:$0xff] }
  0x43   : > { %v428_v11 = vunpack.c.l.bf16 %v1645_v9  ;;  %v578_v20 = vld [vmem:[%s1639_s21] sm:$0x6]  ;;  %v1143_v31 = vld [vmem:[%s1601_s28 + $0x48] sm:$0xff]  ;;  %v1160_v46 = vld [vmem:[%s1615_s17 + $0x10] sm:$0xff] }
  0x44   : > { %506 = vmatpush.bf16.msra.mxu0 %v1147_v6  ;;  %740 = vmatpush.bf16.msra.mxu3 %v1164_v15  ;;  %v407_v25 = vld [vmem:[%s1639_s21] sm:$0x3]  ;;  %v579_v26 = vunpack.c.l.bf16 %v578_v20  ;;  %v1135_v32 = vld [vmem:[%s1601_s28 + $0x8] sm:$0xff]  ;;  %vm769_vm4 = vmor %vm767_vm2, %vm768_vm3 }
  0x45   : > { %567 = vmatpush.bf16.msra.mxu1 %v1139_v7  ;;  %v429_v16 = vmax.f32 %v428_v11, 0.0  ;;  %v408_v30 = vunpack.c.l.bf16 %v407_v25  ;;  %v1151_v34 = vld [vmem:[%s1601_s28 + $0x88] sm:$0xff]  ;;  %v1142_v38 = vld [vmem:[%s1601_s28 + $0x40] sm:$0xff]  ;;  %vm771_vm6 = vmor %vm769_vm4, %vm770_vm5  ;;  %s406_s14 = scalar_lea.vmem %s1733_s13, %s970_s29 }
  0x46   : > { %652 = vmatpush.bf16.msra.mxu2 %v1155_v8  ;;  %v580_v33 = vmax.f32 %v579_v26, 0.0  ;;  %v1134_v39 = vld [vmem:[%s1601_s28] sm:$0xff]  ;;  %v1159_v47 = vld [vmem:[%s1615_s17 + $0x8] sm:$0xff]  ;;  %vm773_vm8 = vmor %vm771_vm6, %vm772_vm7 }
  0x47   : > { %v430_v22 = vpack.c.bf16 %v429_v16, %v429_v16  ;;  %v409_v37 = vmax.f32 %v408_v30, 0.0  ;;  %v1150_v41 = vld [vmem:[%s1601_s28 + $0x80] sm:$0xff] }
  0x48   : > { %507 = vmatpush.bf16.msra.mxu0 %v1146_v10  ;;  %741 = vmatpush.bf16.msra.mxu3 %v1163_v21  ;;  %v581_v40 = vpack.c.bf16 %v580_v33, %v580_v33  ;;  %v1161_v45 = vld [vmem:[%s1615_s17 + $0x18] sm:$0xff]  ;;  %v1158_v48 = vld [vmem:[%s1615_s17] sm:$0xff] }
  0x49   : > { %568 = vmatpush.bf16.msra.mxu1 %v1138_v13  ;;  %v451_v29 = vshll.u32 %v430_v22, 16  ;;  %v449_v35 = vshrl.u32 %v430_v22, 16  ;;  %v410_v43 = vpack.c.bf16 %v409_v37, %v409_v37  ;;  %v1257_v52 = vld [vmem:[%s320_s8] ss:$0 sm:$0xff] }
  0x4a   : > { %653 = vmatpush.bf16.msra.mxu2 %v1154_v14  ;;  %v600_v44 = vrot.slane %v581_v40, 1  ;;  %v1258_v61 = vld [vmem:[%s339_s9] ss:$0 sm:$0xff] }
  0x4b   : > { %v453_v36 = vrot.slane %v451_v29, 1 }
  0x4c   : > { %508 = vmatpush.bf16.msra.mxu0 %v1145_v17  ;;  %742 = vmatpush.bf16.msra.mxu3 %v1162_v28 }
  0x4d   : > { %569 = vmatpush.bf16.msra.mxu1 %v1137_v18  ;;  %v454_v42 = vor.u32 %v453_v36, %v449_v35 }
  0x4e   : > { %654 = vmatpush.bf16.msra.mxu2 %v1153_v19 }
  0x50   : > { %509 = vmatpush.bf16.msra.mxu0 %v1144_v23  ;;  %743 = vmatpush.bf16.msra.mxu3 %v1161_v45 }
  0x51   : > { %570 = vmatpush.bf16.msra.mxu1 %v1136_v24 }
  0x52   : > { %655 = vmatpush.bf16.msra.mxu2 %v1152_v27 }
  0x54   : > { %510 = vmatpush.bf16.msra.mxu0 %v1143_v31  ;;  %744 = vmatpush.bf16.msra.mxu3 %v1160_v46 }
  0x55   : > { %571 = vmatpush.bf16.msra.mxu1 %v1135_v32 }
  0x56   : > { %656 = vmatpush.bf16.msra.mxu2 %v1151_v34 }
  0x58   : > { %511 = vmatpush.bf16.msra.mxu0 %v1142_v38  ;;  %745 = vmatpush.bf16.msra.mxu3 %v1159_v47 }
  0x59   : > { %572 = vmatpush.bf16.msra.mxu1 %v1134_v39 }
  0x5a   : > { %657 = vmatpush.bf16.msra.mxu2 %v1150_v41 }
  0x5b   : > { %512 = vmatmul.bf16.vlgmr.msra.gmra.mxu0 %v454_v42 }
  0x5c   : > { %573 = vmatmul.bf16.vlgmr.msra.gmra.mxu1 %v410_v43  ;;  %746 = vmatpush.bf16.msra.mxu3 %v1158_v48 }
  0x5d   : > { %658 = vmatmul.bf16.vlgmr.msra.gmra.mxu2 %v600_v44 }
  0xd8   : > { %v513_v49 = vpop.f32.mrf.mxu0 }
  0xd9   : > { %v574_v50 = vpop.f32.mrf.mxu1 }
  0xda   : > { %v575_v51 = vadd.f32 %v574_v50, %v513_v49 }
  0xe0   : > { %v659_v53 = vpop.f32.mrf.mxu2  ;;  %v515_v55 = vpop.f32.mrf.mxu0 }
  0xe1   : > { %v663_v54 = vadd.f32 %v659_v53, %v575_v51  ;;  %v576_v56 = vpop.f32.mrf.mxu1 }
  0xe3   : > { %v668_v57 = vadd.f32 %v1257_v52, %v663_v54 }
  0xe5   : > { %v669_v58 = vmax.f32 %v668_v57, 0.0 }
  0xe7   : > { %v670_v59 = vpack.c.bf16 %v669_v58, %v669_v58 }
  0xe8   : > { %v661_v60 = vpop.f32.mrf.mxu2 }
  0xe9   : > { %747 = vmatmul.bf16.vlgmr.msra.gmra.mxu3 %v670_v59 }
 0x16c   : > { %v748_v62 = vpop.f32.mrf.mxu3 }
 0x16d   : > { %v749_v63 = vadd.f32 %v1258_v61, %v748_v62 }
 0x16f   : > { %v753_v0 = vrot.slane %v749_v63, 7 }
 0x171   : > { %v755_v1 = vadd.f32 %v753_v0, %v428_v11 }
 0x173   : > { %v756_v2 = vpack.c.bf16 %v755_v1, %v755_v1 }
 0x174   : > { %v750_v3 = vpop.f32.mrf.mxu3 }
 0x175   : > { %v758_v4 = vrot.slane %v756_v2, 2 }
 0x177   : > { %v762_v5 = vsel %vm759_vm0, %v756_v2, %v758_v4  ;;  %v764_v6 = vsel %vm763_vm1, %v756_v2, %v758_v4 }
 0x178   : > { %v766_v7 = vrot.slane %v764_v6, 2  ;;  %v774_v8 = vshrl.u32 %v762_v5, 16  ;;  %v777_v10 = vshll.u32 %v762_v5, 16 }
 0x17a   : > { %v776_v12 = vrot.slane %v774_v8, 6  ;;  %v779_v9 = vrot.slane %v777_v10, 7  ;;  %v783_v11 = vshll.u32 %v766_v7, 16 }
 0x17c   : > { %v780_v13 = vor.u32 %v779_v9, %v776_v12  ;;  %v785_v15 = vrot.slane %v783_v11, 7 }
 0x17e   : > { %v781_v14 = vrot.slane %v780_v13, 2 }
 0x180   : > { %v786_v16 = vsel %vm773_vm8, %v781_v14, %v785_v15 }
 0x181   : > { %788 = vst [vmem:[%s406_s14] sm:$0x3] %v786_v16 }
 0x182 PF: > { %s24_s25 = sadd.s32 1, %s1453_s25   ;;  %s1734_s2 = sld [smem:[#allocation12_spill]] }
 0x183   : > { %p21_p2 = scmp.ge.s32.totalorder %s24_s25, 6   ;;  %s1735_s20 = sld [smem:[#allocation16_spill]] }
 0x184   : > { %s1736_s21 = sld [smem:[#allocation13_spill]]  ;;  %s1739_s18 = smov %s1429_s19 }
 0x185   : > { %s1737_s23 = sld [smem:[#allocation14_spill]]  ;;  %s1741_s22 = smov %s1449_s24 }
 0x186   : > { %s1738_s26 = sld [smem:[#allocation15_spill]] }
 0x188   : > { %s1740_s19 = smov %s1734_s2  ;;  %23 = sbr.rel (!%p21_p2) target bundleno = 13 (0xd), region = 122 }
 0x18c   : > { %s1742_s24 = smov %s1738_s26 }
 0x18d   :  { %816 = vsyncpa [#allocation3], 1 }
 0x18e   :  { %818 = vsyncpa [#allocation3 + $0x1], 1 }
 0x18f   :  { %819 = vsyncpa [#allocation5], 1 }
 0x190   :  { %821 = vsyncpa [#allocation5 + $0x1], 1 }
 0x191   :  { %822 = vsyncpa [#allocation8], 1 }
 0x192   :  { %824 = vsyncpa [#allocation8 + $0x1], 1 }

// kernel: dual_human_vqvae_forward.32
= control target key start
LH: loop header
LB: loop body
LE: loop exit
PB: predicated region body
PF: predicated region fallthrough
CT: control target
= control target key end

     0   :  { %10 = vsyncpa [#allocation3], 0  ;;  %s1467_s0 = inlined_call_operand.vmem [shape: bf16[2,2,10,128], index: 0, kind: input, shape index: {}]   ;;  %s1468_s1 = inlined_call_operand.vmem [shape: bf16[2,3,128,128], index: 1, kind: input, shape index: {}]   ;;  %s1469_s2 = inlined_call_operand.vmem [shape: f32[2,1,128], index: 2, kind: input, shape index: {}]   ;;  %s1470_s3 = inlined_call_operand.hbm [shape: bf16[2,1,128,128], index: 3, kind: input, shape index: {}]   ;;  %s1471_s4 = inlined_call_operand.vmem [shape: f32[2,1,128], index: 4, kind: input, shape index: {}]   ;;  %s1472_s5 = inlined_call_operand.vmem [shape: bf16[2,2,8,128], index: 5, kind: output, shape index: {}]  }
   0x1   :  { %12 = vsyncpa [#allocation3 + $0x1], 0  ;;  %s1279_s18 = smov 0   ;;  %s1281_s19 = smov 0  }
   0x2   :  { %s1283_s20 = smov 0   ;;  %s1285_s21 = smov 0  }
   0x3   :  { %s1287_s22 = smov 0   ;;  %s1289_s23 = smov 0  }
   0x4   :  { %s1291_s24 = smov 0   ;;  %s1293_s25 = smov 0  }
   0x5 LB: > { %s863_s26 = sadd.s32 4294967295, %s1245_s25   ;;  %s27_s27 = sadd.s32 1, %s1237_s23  ;;  %s1245_s25 = sphi %s1293_s25, %s18_s25   ;;  %s1241_s24 = sphi %s1291_s24, %s1481_s24   ;;  %s1237_s23 = sphi %s1289_s23, %s1480_s23   ;;  %s1233_s22 = sphi %s1287_s22, %s1479_s22   ;;  %s1229_s21 = sphi %s1285_s21, %s1478_s21   ;;  %s1225_s20 = sphi %s1283_s20, %s1477_s20   ;;  %s1221_s19 = sphi %s1281_s19, %s1476_s19   ;;  %s1217_s18 = sphi %s1279_s18, %s1475_s18  }
   0x6   : > { %p28_p0 = scmp.ge.s32.totalorder %s27_s27, 2  ;;  %s30_s28 = sadd.s32 1, %s1241_s24 }
   0x7   : > { %s117_s29 = sadd.s32 1, %s1225_s20  ;;  %p124_p1 = scmp.ne.s32.totalorder %s1225_s20, %s1221_s19 }
   0x8   : > { %s1483_s27 = smov (%p28_p0, %s27_s27), 0  ;;  %s1485_s28 = smov (!%p28_p0, %s30_s28), %s1241_s24 }
   0x9   : > { %p125_p2 = scmp.eq.s32.totalorder %s1245_s25, 0  ;;  %p130_p3 = scmp.ne.s32.totalorder %s1221_s19, %s1217_s18 }
   0xa   : > { %p32_p4 = scmp.ge.s32.totalorder %s1485_s28, 2  ;;  %p131_p5 = scmp.eq.s32.totalorder %s863_s26, 0 }
   0xb   : > { %p1328_p6 = por %p125_p2, %p124_p1  ;;  %p1080_p8 = scmp.lt.s32.totalorder %s1245_s25, 4 }
   0xc   : > { %s1487_s28 = smov (%p32_p4, %s1485_s28), 0  ;;  %p1334_p7 = por %p131_p5, %p130_p3 }
   0xd   : > { %s114_s7 = ssub.s32 %s1241_s24, %s1487_s28  ;;  %s234_s8 = sand.u32 1, %s1225_s20  }
   0xe   : > { %p115_p9 = scmp.eq.s32.totalorder %s114_s7, 0  ;;  %s867_s9 = sshll.u32 %s234_s8, 6 }
   0xf   : > { %s1040_s10 = sshll.u32 %s1241_s24, 6  ;;  %s238_s16 = scalar_lea.vmem [#allocation2], %s867_s9 }
  0x10   : > { %s1344_s11 = scalar_select %p115_p9, %s1225_s20, %s117_s29  }
  0x11   : > { %s243_s14 = scalar_lea.hbm %s1470_s3, %s1040_s10  ;;  %s246_s17 = sshll.u32 %s238_s16, 4  ;;  %s247_s17 = int_to_ptr.vmem [resolvable:$true] %s246_s17 }
  0x12   : > { %s244_s15 = sshll.u32 %s243_s14, 4  ;;  %p1077_p10 = pnand %p1080_p8, %p1328_p6  ;;  %s245_s15 = int_to_ptr.hbm [resolvable:$true] %s244_s15 }
  0x13   : > { %p870_p11 = scmp.ge.s32.totalorder %s1245_s25, 1  ;;  %p260_p12 = scmp.lt.s32.totalorder %s1245_s25, 5 }
  0x14   : > { %s235_s18 = scalar_lea.sflag [#allocation3], %s234_s8  ;;  %s1247_s26 = smov 64  }
  0x15   : > { %s1248_s7 = smov 4   ;;  %p261_p13 = pnand %p870_p11, %p260_p12 }
  0x16   : > { %1079 = dma.hbm_to_vmem [thread:$0]  (!%p1077_p10), %s245_s15, 1024, %s247_s17, %s235_s18, %s1247_s26, %s1247_s26, %s1248_s7  }
  0x17   : > { %264 = sbr.rel (%p261_p13) target bundleno = 359 (0x167), region = 40  ;;  %s266_s29 = sand.u32 (!%p261_p13), 1, %s1221_s19  }
  0x18   : > { %s871_s10 = sshll.u32 (!%p261_p13), %s266_s29, 6  ;;  %s267_s12 = scalar_lea.sflag (!%p261_p13), [#allocation3], %s266_s29 }
  0x19   : > { %s1356_s9 = scalar_lea.vmem (!%p261_p13), [#allocation2], %s871_s10 }
  0x1c   : > { %1212 = dma.done.wait (%p1334_p7), %s267_s12, 1024  }
  0x1d   : > { %1214 = vsyncadd (%p1334_p7), %s267_s12, 4294966272  ;;  %p321_p0 = scmp.lt.s32.totalorder %s1233_s22, 1  ;;  %p323_p1 = scmp.lt.s32.totalorder %s1229_s21, 1  ;;  %v1072_v13 = vld [vmem:[%s1356_s9 + $0x38] sm:$0xff]  ;;  %v1071_v17 = vld [vmem:[%s1356_s9 + $0x30] sm:$0xff] }
  0x1e   : > { %681 = vmatpush.bf16.msra.mxu3 %v1072_v13  ;;  %v1070_v24 = vld [vmem:[%s1356_s9 + $0x28] sm:$0xff]  ;;  %v1069_v30 = vld [vmem:[%s1356_s9 + $0x20] sm:$0xff]  ;;  %v1068_v45 = vld [vmem:[%s1356_s9 + $0x18] sm:$0xff]  ;;  %vm701_vm0 = vsmask.f32 3328 }
  0x1f   : > { %s1489_s22 = smov (!%p321_p0, %s1233_s22), 1  ;;  %s1491_s21 = smov (!%p323_p1, %s1229_s21), 1  ;;  %v1067_v46 = vld [vmem:[%s1356_s9 + $0x10] sm:$0xff]  ;;  %v1066_v47 = vld [vmem:[%s1356_s9 + $0x8] sm:$0xff]  ;;  %v1065_v48 = vld [vmem:[%s1356_s9] sm:$0xff] }
  0x20   : > { %s1073_s30 = smul.u32 192, %s1489_s22  ;;  %s873_s8 = sshll.u32 %s1489_s22, 2  ;;  %vm702_vm1 = vsmask.f32 7440 }
  0x21   : > { %s872_s13 = sshll.u32 %s1491_s21, 1  ;;  %s337_s12 = scalar_lea.vmem %s1469_s2, %s1489_s22  ;;  %vm703_vm2 = vmor %vm701_vm0, %vm702_vm1 }
  0x22   : > { %s1376_s6 = scalar_lea.vmem %s1468_s1, %s1073_s30  ;;  %s327_s16 = sadd.s32 %s873_s8, %s872_s13  ;;  %682 = vmatpush.bf16.msra.mxu3 %v1071_v17  ;;  %v1147_v52 = vld [vmem:[%s337_s12] ss:$0 sm:$0xff] }
  0x23   : > { %v1056_v0 = vld [vmem:[%s1376_s6 + $0x78] sm:$0xff]  ;;  %v1055_v3 = vld [vmem:[%s1376_s6 + $0x70] sm:$0xff]  ;;  %s874_s17 = sshll.u32 %s327_s16, 2  ;;  %v1054_v6 = vld [vmem:[%s1376_s6 + $0x68] sm:$0xff]  ;;  %s340_s13 = scalar_lea.vmem %s1471_s4, %s1489_s22 }
  0x24   : > { %v1048_v1 = vld [vmem:[%s1376_s6 + $0x38] sm:$0xff]  ;;  %446 = vmatpush.bf16.msra.mxu0 %v1056_v0  ;;  %v1047_v4 = vld [vmem:[%s1376_s6 + $0x30] sm:$0xff]  ;;  %s329_s7 = scalar_lea.vmem %s1467_s0, %s874_s17  ;;  %v1046_v7 = vld [vmem:[%s1376_s6 + $0x28] sm:$0xff]  ;;  %s876_s14 = sshll.u32 %s1489_s22, 1 }
  0x25   : > { %v1064_v2 = vld [vmem:[%s1376_s6 + $0xb8] sm:$0xff]  ;;  %507 = vmatpush.bf16.msra.mxu1 %v1048_v1  ;;  %v1063_v5 = vld [vmem:[%s1376_s6 + $0xb0] sm:$0xff]  ;;  %v1062_v8 = vld [vmem:[%s1376_s6 + $0xa8] sm:$0xff]  ;;  %s1429_s15 = sadd.s32 %s876_s14, %s1491_s21 }
  0x26   : > { %592 = vmatpush.bf16.msra.mxu2 %v1064_v2  ;;  %v1390_v9 = vld [vmem:[%s329_s7] sm:$0xf]  ;;  %v1392_v10 = vld [vmem:[%s329_s7 + $0x4] sm:$0x1]  ;;  %v1052_v20 = vld [vmem:[%s1376_s6 + $0x58] sm:$0xff]  ;;  %683 = vmatpush.bf16.msra.mxu3 %v1070_v24  ;;  %s877_s21 = sshll.u32 %s1429_s15, 2 }
  0x27   : > { %v350_v11 = vunpack.c.l.bf16 %v1390_v9  ;;  %v370_v12 = vunpack.c.l.bf16 %v1392_v10  ;;  %v1053_v14 = vld [vmem:[%s1376_s6 + $0x60] sm:$0xff]  ;;  %v1044_v21 = vld [vmem:[%s1376_s6 + $0x18] sm:$0xff]  ;;  %v1051_v26 = vld [vmem:[%s1376_s6 + $0x50] sm:$0xff] }
  0x28   : > { %447 = vmatpush.bf16.msra.mxu0 %v1055_v3  ;;  %v1045_v15 = vld [vmem:[%s1376_s6 + $0x20] sm:$0xff]  ;;  %v1060_v22 = vld [vmem:[%s1376_s6 + $0x98] sm:$0xff]  ;;  %v1043_v27 = vld [vmem:[%s1376_s6 + $0x10] sm:$0xff] }
  0x29   : > { %508 = vmatpush.bf16.msra.mxu1 %v1047_v4  ;;  %v1061_v16 = vld [vmem:[%s1376_s6 + $0xa0] sm:$0xff]  ;;  %v351_v18 = vmax.f32 %v350_v11, 0.0  ;;  %v371_v19 = vmax.f32 %v370_v12, 0.0  ;;  %v1059_v29 = vld [vmem:[%s1376_s6 + $0x90] sm:$0xff]  ;;  %v1050_v32 = vld [vmem:[%s1376_s6 + $0x48] sm:$0xff] }
  0x2a   : > { %593 = vmatpush.bf16.msra.mxu2 %v1063_v5  ;;  %v520_v23 = vld [vmem:[%s329_s7] sm:$0xe]  ;;  %v1042_v33 = vld [vmem:[%s1376_s6 + $0x8] sm:$0xff]  ;;  %684 = vmatpush.bf16.msra.mxu3 %v1069_v30  ;;  %v1148_v61 = vld [vmem:[%s340_s13] ss:$0 sm:$0xff] }
  0x2b   : > { %v372_v25 = vpack.c.bf16 %v371_v19, %v351_v18  ;;  %v521_v28 = vunpack.c.l.bf16 %v520_v23  ;;  %v1058_v35 = vld [vmem:[%s1376_s6 + $0x88] sm:$0xff]  ;;  %v1049_v38 = vld [vmem:[%s1376_s6 + $0x40] sm:$0xff]  ;;  %v352_v43 = vpack.c.bf16 %v351_v18, %v351_v18 }
  0x2c   : > { %448 = vmatpush.bf16.msra.mxu0 %v1054_v6  ;;  %v1041_v39 = vld [vmem:[%s1376_s6] sm:$0xff] }
  0x2d   : > { %509 = vmatpush.bf16.msra.mxu1 %v1046_v7  ;;  %v393_v31 = vshll.u32 %v372_v25, 16  ;;  %v522_v34 = vmax.f32 %v521_v28, 0.0  ;;  %v391_v36 = vshrl.u32 %v372_v25, 16  ;;  %v1057_v41 = vld [vmem:[%s1376_s6 + $0x80] sm:$0xff]  ;;  %s348_s6 = scalar_lea.vmem %s1472_s5, %s877_s21 }
  0x2e   : > { %594 = vmatpush.bf16.msra.mxu2 %v1062_v8  ;;  %685 = vmatpush.bf16.msra.mxu3 %v1068_v45 }
  0x2f   : > { %v395_v37 = vrot.slane %v393_v31, 1  ;;  %v523_v40 = vpack.c.bf16 %v371_v19, %v522_v34 }
  0x30   : > { %449 = vmatpush.bf16.msra.mxu0 %v1053_v14 }
  0x31   : > { %510 = vmatpush.bf16.msra.mxu1 %v1045_v15  ;;  %v396_v42 = vor.u32 %v395_v37, %v391_v36  ;;  %v542_v44 = vrot.slane %v523_v40, 1 }
  0x32   : > { %595 = vmatpush.bf16.msra.mxu2 %v1061_v16  ;;  %686 = vmatpush.bf16.msra.mxu3 %v1067_v46 }
  0x34   : > { %450 = vmatpush.bf16.msra.mxu0 %v1052_v20 }
  0x35   : > { %511 = vmatpush.bf16.msra.mxu1 %v1044_v21 }
  0x36   : > { %596 = vmatpush.bf16.msra.mxu2 %v1060_v22  ;;  %687 = vmatpush.bf16.msra.mxu3 %v1066_v47 }
  0x38   : > { %451 = vmatpush.bf16.msra.mxu0 %v1051_v26 }
  0x39   : > { %512 = vmatpush.bf16.msra.mxu1 %v1043_v27 }
  0x3a   : > { %597 = vmatpush.bf16.msra.mxu2 %v1059_v29  ;;  %688 = vmatpush.bf16.msra.mxu3 %v1065_v48 }
  0x3c   : > { %452 = vmatpush.bf16.msra.mxu0 %v1050_v32 }
  0x3d   : > { %513 = vmatpush.bf16.msra.mxu1 %v1042_v33 }
  0x3e   : > { %598 = vmatpush.bf16.msra.mxu2 %v1058_v35 }
  0x40   : > { %453 = vmatpush.bf16.msra.mxu0 %v1049_v38 }
  0x41   : > { %514 = vmatpush.bf16.msra.mxu1 %v1041_v39 }
  0x42   : > { %599 = vmatpush.bf16.msra.mxu2 %v1057_v41 }
  0x43   : > { %454 = vmatmul.bf16.vlgmr.msra.gmra.mxu0 %v396_v42 }
  0x44   : > { %515 = vmatmul.bf16.vlgmr.msra.gmra.mxu1 %v352_v43 }
  0x45   : > { %600 = vmatmul.bf16.vlgmr.msra.gmra.mxu2 %v542_v44 }
  0xc0   : > { %v455_v49 = vpop.f32.mrf.mxu0 }
  0xc1   : > { %v516_v50 = vpop.f32.mrf.mxu1 }
  0xc2   : > { %v517_v51 = vadd.f32 %v516_v50, %v455_v49 }
  0xc8   : > { %v601_v53 = vpop.f32.mrf.mxu2  ;;  %v457_v55 = vpop.f32.mrf.mxu0 }
  0xc9   : > { %v605_v54 = vadd.f32 %v601_v53, %v517_v51  ;;  %v518_v56 = vpop.f32.mrf.mxu1 }
  0xcb   : > { %v610_v57 = vadd.f32 %v1147_v52, %v605_v54 }
  0xcd   : > { %v611_v58 = vmax.f32 %v610_v57, 0.0 }
  0xcf   : > { %v612_v59 = vpack.c.bf16 %v611_v58, %v611_v58 }
  0xd0   : > { %v603_v60 = vpop.f32.mrf.mxu2 }
  0xd1   : > { %689 = vmatmul.bf16.vlgmr.msra.gmra.mxu3 %v612_v59 }
 0x154   : > { %v690_v62 = vpop.f32.mrf.mxu3 }
 0x155   : > { %v691_v63 = vadd.f32 %v1148_v61, %v690_v62 }
 0x157   : > { %v695_v0 = vrot.slane %v691_v63, 7 }
 0x159   : > { %v697_v1 = vadd.f32 %v695_v0, %v350_v11  ;;  %v698_v2 = vadd.f32 %v695_v0, %v370_v12 }
 0x15b   : > { %v699_v3 = vpack.c.bf16 %v697_v1, %v697_v1  ;;  %v700_v4 = vpack.c.bf16 %v698_v2, %v698_v2 }
 0x15c   : > { %v692_v5 = vpop.f32.mrf.mxu3 }
 0x15d   : > { %v705_v6 = vshrl.u32 %v699_v3, 16  ;;  %v708_v7 = vshll.u32 %v699_v3, 16  ;;  %v714_v14 = vshll.u32 %v700_v4, 16 }
 0x15f   : > { %v707_v8 = vrot.slane %v705_v6, 4  ;;  %v710_v13 = vrot.slane %v708_v7, 5  ;;  %v716_v10 = vrot.slane %v714_v14, 5 }
 0x161   : > { %v711_v15 = vor.u32 %v710_v13, %v707_v8 }
 0x163   : > { %v712_v9 = vrot.slane %v711_v15, 4 }
 0x165   : > { %v717_v11 = vsel %vm703_vm2, %v712_v9, %v716_v10 }
 0x166   : > { %719 = vst [vmem:[%s348_s6] sm:$0xf] %v717_v11 }
 0x167 PF: > { %s18_s25 = sadd.s32 1, %s1245_s25   ;;  %s1475_s18 = smov %s1221_s19 }
 0x168   : > { %p15_p2 = scmp.ge.s32.totalorder %s18_s25, 6   ;;  %s1476_s19 = smov %s1225_s20 }
 0x169   : > { %s1477_s20 = smov %s1344_s11  ;;  %s1478_s21 = smov %s1237_s23 }
 0x16a   : > { %s1479_s22 = smov %s1241_s24  ;;  %s1480_s23 = smov %s1483_s27 }
 0x16b   : > { %s1481_s24 = smov %s1487_s28  ;;  %17 = sbr.rel (!%p15_p2) target bundleno = 5 (0x5), region = 94 }
 0x170   :  { %747 = vsyncpa [#allocation3], 1 }
 0x171   :  { %749 = vsyncpa [#allocation3 + $0x1], 1 }

// kernel: dual_human_vqvae_forward.33
= control target key start
LH: loop header
LB: loop body
LE: loop exit
PB: predicated region body
PF: predicated region fallthrough
CT: control target
= control target key end

     0   :  { %8 = vsyncpa [#allocation3], 0  ;;  %s1519_s0 = inlined_call_operand.vmem [shape: bf16[2,2,10,128], index: 0, kind: input, shape index: {}]   ;;  %s1520_s1 = inlined_call_operand.hbm [shape: bf16[2,3,128,256], index: 1, kind: input, shape index: {}]   ;;  %s1521_s2 = inlined_call_operand.vmem [shape: f32[2,1,256], index: 2, kind: input, shape index: {}]   ;;  %s1522_s3 = inlined_call_operand.vmem [shape: bf16[2,2,8,256], index: 3, kind: output, shape index: {}]  }
   0x1   :  { %10 = vsyncpa [#allocation3 + $0x1], 0  ;;  %s1281_s12 = smov 0   ;;  %s1283_s13 = smov 0  }
   0x2   :  { %s1285_s14 = smov 0   ;;  %s1287_s15 = smov 0  }
   0x3   :  { %s1289_s16 = smov 0   ;;  %s1291_s17 = smov 0  }
   0x4   :  { %s1293_s18 = smov 0   ;;  %s1295_s19 = smov 0  }
   0x5 LB: > { %s798_s20 = sadd.s32 4294967295, %s1257_s19   ;;  %s25_s21 = sadd.s32 1, %s1249_s17  ;;  %s1257_s19 = sphi %s1295_s19, %s16_s19   ;;  %s1253_s18 = sphi %s1293_s18, %s1530_s18   ;;  %s1249_s17 = sphi %s1291_s17, %s1529_s17   ;;  %s1245_s16 = sphi %s1289_s16, %s1528_s16   ;;  %s1241_s15 = sphi %s1287_s15, %s1527_s15   ;;  %s1237_s14 = sphi %s1285_s14, %s1526_s14   ;;  %s1233_s13 = sphi %s1283_s13, %s1525_s13   ;;  %s1229_s12 = sphi %s1281_s12, %s1524_s12  }
   0x6   : > { %p26_p0 = scmp.ge.s32.totalorder %s25_s21, 2  ;;  %s28_s22 = sadd.s32 1, %s1253_s18 }
   0x7   : > { %s63_s23 = sadd.s32 1, %s1237_s14  ;;  %p70_p1 = scmp.ne.s32.totalorder %s1237_s14, %s1233_s13 }
   0x8   : > { %s1532_s21 = smov (%p26_p0, %s25_s21), 0  ;;  %s1534_s22 = smov (!%p26_p0, %s28_s22), %s1253_s18 }
   0x9   : > { %p71_p2 = scmp.eq.s32.totalorder %s1257_s19, 0  ;;  %p76_p3 = scmp.ne.s32.totalorder %s1233_s13, %s1229_s12 }
   0xa   : > { %p30_p4 = scmp.ge.s32.totalorder %s1534_s22, 2  ;;  %p77_p5 = scmp.eq.s32.totalorder %s798_s20, 0 }
   0xb   : > { %p72_p6 = por %p71_p2, %p70_p1  ;;  %p1094_p8 = scmp.lt.s32.totalorder %s1257_s19, 4 }
   0xc   : > { %s1536_s22 = smov (%p30_p4, %s1534_s22), 0  ;;  %p1332_p7 = por %p77_p5, %p76_p3 }
   0xd   : > { %s60_s25 = ssub.s32 %s1253_s18, %s1536_s22  ;;  %s166_s26 = sand.u32 1, %s1237_s14  }
   0xe   : > { %p61_p9 = scmp.eq.s32.totalorder %s60_s25, 0  ;;  %s1085_s27 = smul.u32 384, %s166_s26 }
   0xf   : > { %p1091_p10 = pnand %p1094_p8, %p72_p6  ;;  %s1086_s29 = smul.u32 384, %s1253_s18 }
  0x10   : > { %s1341_s28 = scalar_select %p61_p9, %s1237_s14, %s63_s23  }
  0x11   : > { %s170_s30 = scalar_lea.vmem [#allocation2], %s1085_s27  ;;  %s175_s7 = scalar_lea.hbm %s1520_s1, %s1086_s29 }
  0x12   : > { %s178_s4 = sshll.u32 %s170_s30, 4  ;;  %s176_s8 = sshll.u32 %s175_s7, 4  ;;  %s179_s4 = int_to_ptr.vmem [resolvable:$true] %s178_s4  ;;  %s177_s8 = int_to_ptr.hbm [resolvable:$true] %s176_s8 }
  0x13   : > { %s167_s9 = scalar_lea.sflag [#allocation3], %s166_s26  ;;  %s1259_s10 = smov 128  }
  0x14   : > { %s1260_s11 = smov 8   ;;  %p803_p11 = scmp.ge.s32.totalorder %s1257_s19, 1 }
  0x15   : > { %1093 = dma.hbm_to_vmem [thread:$0]  (!%p1091_p10), %s177_s8, 6144, %s179_s4, %s167_s9, %s1259_s10, %s1259_s10, %s1260_s11  }
  0x16   : > { %p193_p12 = scmp.lt.s32.totalorder %s1257_s19, 5 }
  0x18   : > { %p194_p13 = pnand %p803_p11, %p193_p12 }
  0x19   : > { %s199_s12 = sand.u32 (!%p194_p13), 1, %s1233_s13  }
  0x1a   : > { %197 = sbr.rel (%p194_p13) target bundleno = 233 (0xe9), region = 32  ;;  %s200_s23 = scalar_lea.sflag (!%p194_p13), [#allocation3], %s199_s12 }
  0x1b   : > { %s1087_s20 = smul.u32 (!%p194_p13), 384, %s199_s12 }
  0x1d   : > { %s1350_s25 = scalar_lea.vmem (!%p194_p13), [#allocation2], %s1087_s20 }
  0x1f   : > { %1224 = dma.done.wait (%p1332_p7), %s200_s23, 6144  }
  0x20   : > { %1226 = vsyncadd (%p1332_p7), %s200_s23, 4294961152  ;;  %v885_v0 = vld [vmem:[%s1350_s25 + $0xf0] sm:$0xf]  ;;  %v1068_v1 = vld [vmem:[%s1350_s25 + $0xf4] sm:$0xf0]  ;;  %p244_p0 = scmp.lt.s32.totalorder %s1245_s16, 1 }
  0x21   : > { %v1067_v2 = vld [vmem:[%s1350_s25 + $0xf4] sm:$0xf]  ;;  %v886_v3 = vor.u32 %v1068_v1, %v885_v0  ;;  %v887_v4 = vld [vmem:[%s1350_s25 + $0xf8] sm:$0xf0]  ;;  %v877_v5 = vld [vmem:[%s1350_s25 + $0xe0] sm:$0xf] }
  0x22   : > { %v1066_v6 = vld [vmem:[%s1350_s25 + $0xe4] sm:$0xf0]  ;;  %v890_v7 = vor.u32 %v1067_v2, %v887_v4  ;;  %v1065_v8 = vld [vmem:[%s1350_s25 + $0xe4] sm:$0xf]  ;;  %v879_v9 = vld [vmem:[%s1350_s25 + $0xe8] sm:$0xf0] }
  0x23   : > { %v949_v10 = vld [vmem:[%s1350_s25 + $0x70] sm:$0xf]  ;;  %394 = vmatpush.bf16.msra.mxu0 %v886_v3  ;;  %v878_v11 = vor.u32 %v1066_v6, %v877_v5  ;;  %v1052_v12 = vld [vmem:[%s1350_s25 + $0x74] sm:$0xf0]  ;;  %v1051_v13 = vld [vmem:[%s1350_s25 + $0x74] sm:$0xf]  ;;  %v882_v15 = vor.u32 %v1065_v8, %v879_v9 }
  0x24   : > { %v951_v14 = vld [vmem:[%s1350_s25 + $0x78] sm:$0xf0]  ;;  %407 = vmatpush.bf16.msra.mxu1 %v890_v7  ;;  %v950_v16 = vor.u32 %v1052_v12, %v949_v10  ;;  %v869_v18 = vld [vmem:[%s1350_s25 + $0xd0] sm:$0xf]  ;;  %v1064_v19 = vld [vmem:[%s1350_s25 + $0xd4] sm:$0xf0] }
  0x25   : > { %v954_v17 = vor.u32 %v1051_v13, %v951_v14  ;;  %v1063_v20 = vld [vmem:[%s1350_s25 + $0xd4] sm:$0xf]  ;;  %v871_v21 = vld [vmem:[%s1350_s25 + $0xd8] sm:$0xf0]  ;;  %v941_v22 = vld [vmem:[%s1350_s25 + $0x60] sm:$0xf]  ;;  %v870_v27 = vor.u32 %v1064_v19, %v869_v18 }
  0x26   : > { %v1050_v23 = vld [vmem:[%s1350_s25 + $0x64] sm:$0xf0]  ;;  %500 = vmatpush.bf16.msra.mxu2 %v950_v16  ;;  %v1049_v25 = vld [vmem:[%s1350_s25 + $0x64] sm:$0xf]  ;;  %v943_v26 = vld [vmem:[%s1350_s25 + $0x68] sm:$0xf0]  ;;  %v874_v31 = vor.u32 %v1063_v20, %v871_v21 }
  0x27   : > { %513 = vmatpush.bf16.msra.mxu3 %v954_v17  ;;  %v942_v24 = vor.u32 %v1050_v23, %v941_v22  ;;  %395 = vmatpush.bf16.msra.mxu0 %v878_v11  ;;  %v946_v28 = vor.u32 %v1049_v25, %v943_v26  ;;  %v861_v29 = vld [vmem:[%s1350_s25 + $0xc0] sm:$0xf]  ;;  %v1062_v30 = vld [vmem:[%s1350_s25 + $0xc4] sm:$0xf0]  ;;  %v933_v32 = vld [vmem:[%s1350_s25 + $0x50] sm:$0xf] }
  0x28   : > { %408 = vmatpush.bf16.msra.mxu1 %v882_v15  ;;  %v1048_v33 = vld [vmem:[%s1350_s25 + $0x54] sm:$0xf0]  ;;  %v1047_v34 = vld [vmem:[%s1350_s25 + $0x54] sm:$0xf]  ;;  %v1061_v35 = vld [vmem:[%s1350_s25 + $0xc4] sm:$0xf]  ;;  %v862_v41 = vor.u32 %v1062_v30, %v861_v29 }
  0x29   : > { %v863_v36 = vld [vmem:[%s1350_s25 + $0xc8] sm:$0xf0]  ;;  %v935_v37 = vld [vmem:[%s1350_s25 + $0x58] sm:$0xf0]  ;;  %v934_v38 = vor.u32 %v1048_v33, %v933_v32  ;;  %v925_v40 = vld [vmem:[%s1350_s25 + $0x40] sm:$0xf] }
  0x2a   : > { %501 = vmatpush.bf16.msra.mxu2 %v942_v24  ;;  %v938_v39 = vor.u32 %v1047_v34, %v935_v37  ;;  %p246_p1 = scmp.lt.s32.totalorder %s1241_s15, 1  ;;  %v1046_v42 = vld [vmem:[%s1350_s25 + $0x44] sm:$0xf0]  ;;  %v1045_v43 = vld [vmem:[%s1350_s25 + $0x44] sm:$0xf]  ;;  %v866_v45 = vor.u32 %v1061_v35, %v863_v36  ;;  %s1538_s16 = smov (!%p244_p0, %s1245_s16), 1 }
  0x2b   : > { %514 = vmatpush.bf16.msra.mxu3 %v946_v28  ;;  %396 = vmatpush.bf16.msra.mxu0 %v870_v27  ;;  %v927_v44 = vld [vmem:[%s1350_s25 + $0x48] sm:$0xf0]  ;;  %v853_v46 = vld [vmem:[%s1350_s25 + $0xb0] sm:$0xf]  ;;  %v1060_v47 = vld [vmem:[%s1350_s25 + $0xb4] sm:$0xf0]  ;;  %v926_v50 = vor.u32 %v1046_v42, %v925_v40 }
  0x2c   : > { %409 = vmatpush.bf16.msra.mxu1 %v874_v31  ;;  %v1059_v48 = vld [vmem:[%s1350_s25 + $0xb4] sm:$0xf]  ;;  %v855_v49 = vld [vmem:[%s1350_s25 + $0xb8] sm:$0xf0]  ;;  %v930_v51 = vor.u32 %v1045_v43, %v927_v44  ;;  %v917_v52 = vld [vmem:[%s1350_s25 + $0x30] sm:$0xf]  ;;  %v854_v53 = vor.u32 %v1060_v47, %v853_v46 }
  0x2d   : > { %s1540_s15 = smov (!%p246_p1, %s1241_s15), 1  ;;  %v1044_v54 = vld [vmem:[%s1350_s25 + $0x34] sm:$0xf0]  ;;  %v1043_v55 = vld [vmem:[%s1350_s25 + $0x34] sm:$0xf]  ;;  %v858_v57 = vor.u32 %v1059_v48, %v855_v49  ;;  %s805_s26 = sshll.u32 %s1538_s16, 2 }
  0x2e   : > { %502 = vmatpush.bf16.msra.mxu2 %v934_v38  ;;  %v919_v56 = vld [vmem:[%s1350_s25 + $0x38] sm:$0xf0]  ;;  %v845_v58 = vld [vmem:[%s1350_s25 + $0xa0] sm:$0xf]  ;;  %v1058_v59 = vld [vmem:[%s1350_s25 + $0xa4] sm:$0xf0]  ;;  %v918_v62 = vor.u32 %v1044_v54, %v917_v52 }
  0x2f   : > { %515 = vmatpush.bf16.msra.mxu3 %v938_v39  ;;  %397 = vmatpush.bf16.msra.mxu0 %v862_v41  ;;  %v1057_v60 = vld [vmem:[%s1350_s25 + $0xa4] sm:$0xf]  ;;  %v847_v61 = vld [vmem:[%s1350_s25 + $0xa8] sm:$0xf0]  ;;  %v922_v63 = vor.u32 %v1043_v55, %v919_v56  ;;  %v909_v0 = vld [vmem:[%s1350_s25 + $0x20] sm:$0xf]  ;;  %v846_v1 = vor.u32 %v1058_v59, %v845_v58 }
  0x30   : > { %410 = vmatpush.bf16.msra.mxu1 %v866_v45  ;;  %s804_s24 = sshll.u32 %s1540_s15, 1  ;;  %v1042_v2 = vld [vmem:[%s1350_s25 + $0x24] sm:$0xf0]  ;;  %v1041_v3 = vld [vmem:[%s1350_s25 + $0x24] sm:$0xf]  ;;  %v850_v5 = vor.u32 %v1057_v60, %v847_v61  ;;  %s807_s5 = sshll.u32 %s1538_s16, 1 }
  0x31   : > { %v911_v4 = vld [vmem:[%s1350_s25 + $0x28] sm:$0xf0]  ;;  %v837_v6 = vld [vmem:[%s1350_s25 + $0x90] sm:$0xf]  ;;  %v1056_v7 = vld [vmem:[%s1350_s25 + $0x94] sm:$0xf0]  ;;  %s1422_s15 = sadd.s32 %s805_s26, %s804_s24  ;;  %v910_v10 = vor.u32 %v1042_v2, %v909_v0  ;;  %s256_s8 = scalar_lea.vmem %s1521_s2, %s807_s5 }
  0x32   : > { %503 = vmatpush.bf16.msra.mxu2 %v926_v50  ;;  %v1055_v8 = vld [vmem:[%s1350_s25 + $0x94] sm:$0xf]  ;;  %v839_v9 = vld [vmem:[%s1350_s25 + $0x98] sm:$0xf0]  ;;  %v914_v11 = vor.u32 %v1041_v3, %v911_v4  ;;  %v829_v12 = vld [vmem:[%s1350_s25 + $0x80] sm:$0xf]  ;;  %v838_v15 = vor.u32 %v1056_v7, %v837_v6 }
  0x33   : > { %516 = vmatpush.bf16.msra.mxu3 %v930_v51  ;;  %398 = vmatpush.bf16.msra.mxu0 %v854_v53  ;;  %v1054_v13 = vld [vmem:[%s1350_s25 + $0x84] sm:$0xf0]  ;;  %v901_v14 = vld [vmem:[%s1350_s25 + $0x10] sm:$0xf]  ;;  %v1053_v16 = vld [vmem:[%s1350_s25 + $0x84] sm:$0xf]  ;;  %v842_v20 = vor.u32 %v1055_v8, %v839_v9 }
  0x34   : > { %411 = vmatpush.bf16.msra.mxu1 %v858_v57  ;;  %v1040_v17 = vld [vmem:[%s1350_s25 + $0x14] sm:$0xf0]  ;;  %v1039_v18 = vld [vmem:[%s1350_s25 + $0x14] sm:$0xf]  ;;  %v903_v19 = vld [vmem:[%s1350_s25 + $0x18] sm:$0xf0]  ;;  %v830_v31 = vor.u32 %v1054_v13, %v829_v12 }
  0x35   : > { %v831_v21 = vld [vmem:[%s1350_s25 + $0x88] sm:$0xf0]  ;;  %v1029_v22 = vld [vmem:[%s1350_s25 + $0x170] sm:$0xf]  ;;  %s806_s27 = sshll.u32 %s1422_s15, 2  ;;  %v902_v26 = vor.u32 %v1040_v17, %v901_v14  ;;  %v906_v27 = vor.u32 %v1039_v18, %v903_v19 }
  0x36   : > { %504 = vmatpush.bf16.msra.mxu2 %v918_v62  ;;  %v1084_v23 = vld [vmem:[%s1350_s25 + $0x174] sm:$0xf0]  ;;  %v1083_v24 = vld [vmem:[%s1350_s25 + $0x174] sm:$0xf]  ;;  %v1031_v25 = vld [vmem:[%s1350_s25 + $0x178] sm:$0xf0]  ;;  %s1442_s4 = scalar_lea.vmem %s1519_s0, %s806_s27  ;;  %v834_v37 = vor.u32 %v1053_v16, %v831_v21  ;;  %s265_s16 = scalar_lea.vmem %s1522_s3, %s806_s27 }
  0x37   : > { %517 = vmatpush.bf16.msra.mxu3 %v922_v63  ;;  %399 = vmatpush.bf16.msra.mxu0 %v846_v1  ;;  %v893_v28 = vld [vmem:[%s1350_s25] sm:$0xf]  ;;  %v1447_v30 = vld [vmem:[%s1442_s4 + $0x4] sm:$0x1]  ;;  %v1038_v32 = vld [vmem:[%s1350_s25 + $0x4] sm:$0xf0]  ;;  %v1030_v38 = vor.u32 %v1084_v23, %v1029_v22  ;;  %v1034_v39 = vor.u32 %v1083_v24, %v1031_v25 }
  0x38   : > { %412 = vmatpush.bf16.msra.mxu1 %v850_v5  ;;  %v266_v29 = vld [vmem:[%s1442_s4] sm:$0xf]  ;;  %v1037_v33 = vld [vmem:[%s1350_s25 + $0x4] sm:$0xf]  ;;  %v895_v34 = vld [vmem:[%s1350_s25 + $0x8] sm:$0xf0]  ;;  %v304_v36 = vunpack.c.l.b16 %v1447_v30  ;;  %v894_v45 = vor.u32 %v1038_v32, %v893_v28 }
  0x39   : > { %v303_v35 = vunpack.c.l.b16 %v266_v29  ;;  %v1021_v40 = vld [vmem:[%s1350_s25 + $0x160] sm:$0xf]  ;;  %v1082_v41 = vld [vmem:[%s1350_s25 + $0x164] sm:$0xf0]  ;;  %v1081_v43 = vld [vmem:[%s1350_s25 + $0x164] sm:$0xf]  ;;  %v898_v46 = vor.u32 %v1037_v33, %v895_v34 }
  0x3a   : > { %505 = vmatpush.bf16.msra.mxu2 %v910_v10  ;;  %v1023_v44 = vld [vmem:[%s1350_s25 + $0x168] sm:$0xf0]  ;;  %v1022_v49 = vor.u32 %v1082_v41, %v1021_v40  ;;  %v1013_v52 = vld [vmem:[%s1350_s25 + $0x150] sm:$0xf]  ;;  %v1080_v53 = vld [vmem:[%s1350_s25 + $0x154] sm:$0xf0] }
  0x3b   : > { %518 = vmatpush.bf16.msra.mxu3 %v914_v11  ;;  %400 = vmatpush.bf16.msra.mxu0 %v838_v15  ;;  %v305_v42 = vpack.c.b16 %v304_v36, %v303_v35  ;;  %v1026_v50 = vor.u32 %v1081_v43, %v1023_v44  ;;  %v1079_v54 = vld [vmem:[%s1350_s25 + $0x154] sm:$0xf]  ;;  %v1015_v55 = vld [vmem:[%s1350_s25 + $0x158] sm:$0xf0]  ;;  %v1014_v57 = vor.u32 %v1080_v53, %v1013_v52  ;;  %v1005_v59 = vld [vmem:[%s1350_s25 + $0x140] sm:$0xf] }
  0x3c   : > { %413 = vmatpush.bf16.msra.mxu1 %v842_v20  ;;  %v1018_v58 = vor.u32 %v1079_v54, %v1015_v55  ;;  %v1078_v60 = vld [vmem:[%s1350_s25 + $0x144] sm:$0xf0]  ;;  %v1077_v61 = vld [vmem:[%s1350_s25 + $0x144] sm:$0xf]  ;;  %v1007_v62 = vld [vmem:[%s1350_s25 + $0x148] sm:$0xf0] }
  0x3d   : > { %v307_v47 = vshrl.u32 %v305_v42, 16  ;;  %v309_v48 = vshll.u32 %v305_v42, 16  ;;  %v1006_v63 = vor.u32 %v1078_v60, %v1005_v59  ;;  %v1010_v0 = vor.u32 %v1077_v61, %v1007_v62  ;;  %v997_v1 = vld [vmem:[%s1350_s25 + $0x130] sm:$0xf]  ;;  %v1076_v2 = vld [vmem:[%s1350_s25 + $0x134] sm:$0xf0] }
  0x3e   : > { %506 = vmatpush.bf16.msra.mxu2 %v902_v26  ;;  %v1075_v3 = vld [vmem:[%s1350_s25 + $0x134] sm:$0xf]  ;;  %v999_v4 = vld [vmem:[%s1350_s25 + $0x138] sm:$0xf0]  ;;  %v998_v5 = vor.u32 %v1076_v2, %v997_v1  ;;  %v989_v7 = vld [vmem:[%s1350_s25 + $0x120] sm:$0xf] }
  0x3f   : > { %519 = vmatpush.bf16.msra.mxu3 %v906_v27  ;;  %401 = vmatpush.bf16.msra.mxu0 %v830_v31  ;;  %v311_v51 = vrot.slane %v309_v48, 1  ;;  %v1002_v6 = vor.u32 %v1075_v3, %v999_v4  ;;  %v1074_v8 = vld [vmem:[%s1350_s25 + $0x124] sm:$0xf0]  ;;  %v1073_v9 = vld [vmem:[%s1350_s25 + $0x124] sm:$0xf] }
  0x40   : > { %414 = vmatpush.bf16.msra.mxu1 %v834_v37  ;;  %v991_v10 = vld [vmem:[%s1350_s25 + $0x128] sm:$0xf0]  ;;  %v990_v11 = vor.u32 %v1074_v8, %v989_v7  ;;  %v526_v12 = vld [vmem:[%s1442_s4] sm:$0xe]  ;;  %v981_v14 = vld [vmem:[%s1350_s25 + $0x110] sm:$0xf] }
  0x41   : > { %v312_v56 = vor.u32 %v311_v51, %v307_v47  ;;  %v994_v13 = vor.u32 %v1073_v9, %v991_v10  ;;  %v1072_v15 = vld [vmem:[%s1350_s25 + $0x114] sm:$0xf0]  ;;  %v1071_v16 = vld [vmem:[%s1350_s25 + $0x114] sm:$0xf]  ;;  %v983_v17 = vld [vmem:[%s1350_s25 + $0x118] sm:$0xf0]  ;;  %v545_v18 = vunpack.c.l.b16 %v526_v12 }
  0x42   : > { %507 = vmatpush.bf16.msra.mxu2 %v894_v45  ;;  %v982_v19 = vor.u32 %v1072_v15, %v981_v14  ;;  %v986_v20 = vor.u32 %v1071_v16, %v983_v17  ;;  %v973_v21 = vld [vmem:[%s1350_s25 + $0x100] sm:$0xf]  ;;  %v1070_v22 = vld [vmem:[%s1350_s25 + $0x104] sm:$0xf0]  ;;  %v1069_v23 = vld [vmem:[%s1350_s25 + $0x104] sm:$0xf] }
  0x43   : > { %629 = vmatpush.bf16.msrb.mxu0 %v1030_v38  ;;  %520 = vmatpush.bf16.msra.mxu3 %v898_v46  ;;  %v975_v24 = vld [vmem:[%s1350_s25 + $0x108] sm:$0xf0]  ;;  %v546_v25 = vpack.c.b16 %v304_v36, %v545_v18  ;;  %v974_v26 = vor.u32 %v1070_v22, %v973_v21  ;;  %v657_v36 = vld [vmem:[%s256_s8] sm:$0x3] }
  0x44   : > { %642 = vmatpush.bf16.msrb.mxu1 %v1034_v39  ;;  %402 = vmatmul.bf16.vlgmr.msra.gmra.mxu0 %v312_v56  ;;  %v978_v27 = vor.u32 %v1069_v23, %v975_v24  ;;  %v659_v39 = vperm.slane %v657_v36, 0  ;;  %v660_v42 = vperm.slane %v657_v36, 1 }
  0x45   : > { %415 = vmatmul.bf16.vlgmr.msra.gmra.mxu1 %v312_v56  ;;  %508 = vmatmul.bf16.vlgmr.msra.gmra.mxu2 %v266_v29  ;;  %v547_v28 = vrot.slane %v546_v25, 1 }
  0x46   : > { %521 = vmatmul.bf16.vlgmr.msra.gmra.mxu3 %v266_v29 }
  0x47   : > { %630 = vmatpush.bf16.msrb.mxu0 %v1022_v49 }
  0x48   : > { %643 = vmatpush.bf16.msrb.mxu1 %v1026_v50 }
  0x4b   : > { %631 = vmatpush.bf16.msrb.mxu0 %v1014_v57 }
  0x4c   : > { %644 = vmatpush.bf16.msrb.mxu1 %v1018_v58 }
  0x4f   : > { %632 = vmatpush.bf16.msrb.mxu0 %v1006_v63 }
  0x50   : > { %645 = vmatpush.bf16.msrb.mxu1 %v1010_v0 }
  0x53   : > { %633 = vmatpush.bf16.msrb.mxu0 %v998_v5 }
  0x54   : > { %646 = vmatpush.bf16.msrb.mxu1 %v1002_v6 }
  0x57   : > { %634 = vmatpush.bf16.msrb.mxu0 %v990_v11 }
  0x58   : > { %647 = vmatpush.bf16.msrb.mxu1 %v994_v13 }
  0x5b   : > { %635 = vmatpush.bf16.msrb.mxu0 %v982_v19 }
  0x5c   : > { %648 = vmatpush.bf16.msrb.mxu1 %v986_v20 }
  0x5f   : > { %636 = vmatpush.bf16.msrb.mxu0 %v974_v26 }
  0x60   : > { %649 = vmatpush.bf16.msrb.mxu1 %v978_v27 }
  0x62   : > { %637 = vmatmul.bf16.vlgmr.msrb.gmra.mxu0 %v547_v28 }
  0x63   : > { %650 = vmatmul.bf16.vlgmr.msrb.gmra.mxu1 %v547_v28 }
  0xc1   : > { %v403_v29 = vpop.f32.mrf.mxu0 }
  0xc2   : > { %v416_v31 = vpop.f32.mrf.mxu1 }
  0xc8   : > { %v509_v32 = vpop.f32.mrf.mxu2 }
  0xc9   : > { %v405_v33 = vpop.f32.mrf.mxu0  ;;  %v522_v34 = vpop.f32.mrf.mxu3  ;;  %v510_v38 = vadd.f32 %v509_v32, %v403_v29 }
  0xca   : > { %v418_v35 = vpop.f32.mrf.mxu1  ;;  %v523_v40 = vadd.f32 %v522_v34, %v416_v31 }
  0xd0   : > { %v511_v37 = vpop.f32.mrf.mxu2 }
  0xd1   : > { %v524_v30 = vpop.f32.mrf.mxu3 }
  0xdf   : > { %v638_v41 = vpop.f32.mrf.mxu0 }
  0xe0   : > { %v655_v43 = vadd.f32 %v638_v41, %v510_v38  ;;  %v651_v44 = vpop.f32.mrf.mxu1 }
  0xe1   : > { %v656_v45 = vadd.f32 %v651_v44, %v523_v40 }
  0xe2   : > { %v663_v46 = vadd.f32 %v659_v39, %v655_v43 }
  0xe3   : > { %v664_v47 = vadd.f32 %v660_v42, %v656_v45 }
  0xe5   : > { %v665_v48 = vpack.c.bf16 %v664_v47, %v663_v46 }
  0xe7   : > { %666 = vst [vmem:[%s265_s16] sm:$0xff] %v665_v48  ;;  %v640_v49 = vpop.f32.mrf.mxu0 }
  0xe8   : > { %v653_v50 = vpop.f32.mrf.mxu1 }
  0xe9 PF: > { %s16_s19 = sadd.s32 1, %s1257_s19   ;;  %s1524_s12 = smov %s1233_s13 }
  0xea   : > { %p13_p2 = scmp.ge.s32.totalorder %s16_s19, 6   ;;  %s1525_s13 = smov %s1237_s14 }
  0xeb   : > { %s1526_s14 = smov %s1341_s28  ;;  %s1527_s15 = smov %s1249_s17 }
  0xec   : > { %s1528_s16 = smov %s1253_s18  ;;  %s1529_s17 = smov %s1532_s21 }
  0xed   : > { %s1530_s18 = smov %s1536_s22  ;;  %15 = sbr.rel (!%p13_p2) target bundleno = 5 (0x5), region = 80 }
  0xf2   :  { %696 = vsyncpa [#allocation3], 1 }
  0xf3   :  { %698 = vsyncpa [#allocation3 + $0x1], 1 }

// kernel: dual_human_vqvae_forward.34
= control target key start
LH: loop header
LB: loop body
LE: loop exit
PB: predicated region body
PF: predicated region fallthrough
CT: control target
= control target key end

     0   :  { %8 = vsyncpa [#allocation3], 0  ;;  %s1196_s0 = inlined_call_operand.vmem [shape: bf16[2,2,18,128], index: 0, kind: input, shape index: {}]   ;;  %s1197_s1 = inlined_call_operand.hbm [shape: bf16[2,3,128,128], index: 1, kind: input, shape index: {}]   ;;  %s1198_s2 = inlined_call_operand.vmem [shape: f32[2,1,128], index: 2, kind: input, shape index: {}]   ;;  %s1199_s3 = inlined_call_operand.vmem [shape: bf16[2,2,16,128], index: 3, kind: output, shape index: {}]  }
   0x1   :  { %10 = vsyncpa [#allocation3 + $0x1], 0  ;;  %s1051_s12 = smov 0   ;;  %s1053_s13 = smov 0  }
   0x2   :  { %s1055_s14 = smov 0   ;;  %s1057_s15 = smov 0  }
   0x3   :  { %s1059_s16 = smov 0   ;;  %s1061_s17 = smov 0  }
   0x4   :  { %s1063_s18 = smov 0   ;;  %s1065_s19 = smov 0  }
   0x5 LB: > { %s676_s20 = sadd.s32 4294967295, %s1027_s19   ;;  %s25_s21 = sadd.s32 1, %s1019_s17  ;;  %s1027_s19 = sphi %s1065_s19, %s16_s19   ;;  %s1023_s18 = sphi %s1063_s18, %s1207_s18   ;;  %s1019_s17 = sphi %s1061_s17, %s1206_s17   ;;  %s1015_s16 = sphi %s1059_s16, %s1205_s16   ;;  %s1011_s15 = sphi %s1057_s15, %s1204_s15   ;;  %s1007_s14 = sphi %s1055_s14, %s1203_s14   ;;  %s1003_s13 = sphi %s1053_s13, %s1202_s13   ;;  %s999_s12 = sphi %s1051_s12, %s1201_s12  }
   0x6   : > { %p26_p0 = scmp.ge.s32.totalorder %s25_s21, 2  ;;  %s28_s22 = sadd.s32 1, %s1023_s18 }
   0x7   : > { %s63_s23 = sadd.s32 1, %s1007_s14  ;;  %p70_p1 = scmp.ne.s32.totalorder %s1007_s14, %s1003_s13 }
   0x8   : > { %s1209_s21 = smov (%p26_p0, %s25_s21), 0  ;;  %s1211_s22 = smov (!%p26_p0, %s28_s22), %s1023_s18 }
   0x9   : > { %p71_p2 = scmp.eq.s32.totalorder %s1027_s19, 0  ;;  %p76_p3 = scmp.ne.s32.totalorder %s1003_s13, %s999_s12 }
   0xa   : > { %p30_p4 = scmp.ge.s32.totalorder %s1211_s22, 2  ;;  %p77_p5 = scmp.eq.s32.totalorder %s676_s20, 0 }
   0xb   : > { %p72_p6 = por %p71_p2, %p70_p1  ;;  %p863_p8 = scmp.lt.s32.totalorder %s1027_s19, 4 }
   0xc   : > { %s1213_s22 = smov (%p30_p4, %s1211_s22), 0  ;;  %p1102_p7 = por %p77_p5, %p76_p3 }
   0xd   : > { %s60_s25 = ssub.s32 %s1023_s18, %s1213_s22  ;;  %s166_s26 = sand.u32 1, %s1007_s14  }
   0xe   : > { %p61_p9 = scmp.eq.s32.totalorder %s60_s25, 0  ;;  %s852_s27 = smul.u32 192, %s166_s26 }
   0xf   : > { %p860_p10 = pnand %p863_p8, %p72_p6  ;;  %s853_s29 = smul.u32 192, %s1023_s18 }
  0x10   : > { %s1111_s28 = scalar_select %p61_p9, %s1007_s14, %s63_s23  }
  0x11   : > { %s170_s30 = scalar_lea.vmem [#allocation2], %s852_s27  ;;  %s175_s7 = scalar_lea.hbm %s1197_s1, %s853_s29 }
  0x12   : > { %s178_s4 = sshll.u32 %s170_s30, 4  ;;  %s176_s8 = sshll.u32 %s175_s7, 4  ;;  %s179_s4 = int_to_ptr.vmem [resolvable:$true] %s178_s4  ;;  %s177_s8 = int_to_ptr.hbm [resolvable:$true] %s176_s8 }
  0x13   : > { %s167_s9 = scalar_lea.sflag [#allocation3], %s166_s26  ;;  %s1029_s10 = smov 64  }
  0x14   : > { %s1030_s11 = smov 4   ;;  %p681_p11 = scmp.ge.s32.totalorder %s1027_s19, 1 }
  0x15   : > { %862 = dma.hbm_to_vmem [thread:$0]  (!%p860_p10), %s177_s8, 3072, %s179_s4, %s167_s9, %s1029_s10, %s1029_s10, %s1030_s11  }
  0x16   : > { %p192_p12 = scmp.lt.s32.totalorder %s1027_s19, 5 }
  0x18   : > { %p193_p13 = pnand %p681_p11, %p192_p12 }
  0x19   : > { %s198_s12 = sand.u32 (!%p193_p13), 1, %s1003_s13  }
  0x1a   : > { %196 = sbr.rel (%p193_p13) target bundleno = 215 (0xd7), region = 32  ;;  %s199_s23 = scalar_lea.sflag (!%p193_p13), [#allocation3], %s198_s12 }
  0x1b   : > { %s854_s20 = smul.u32 (!%p193_p13), 192, %s198_s12 }
  0x1d   : > { %s1120_s25 = scalar_lea.vmem (!%p193_p13), [#allocation2], %s854_s20 }
  0x1f   : > { %994 = dma.done.wait (%p1102_p7), %s199_s23, 3072  }
  0x20   : > { %996 = vsyncadd (%p1102_p7), %s199_s23, 4294964224  ;;  %p242_p0 = scmp.lt.s32.totalorder %s1015_s16, 1  ;;  %p244_p1 = scmp.lt.s32.totalorder %s1011_s15, 1  ;;  %v831_v0 = vld [vmem:[%s1120_s25 + $0x78] sm:$0xff]  ;;  %v830_v3 = vld [vmem:[%s1120_s25 + $0x70] sm:$0xff]  ;;  %vm467_vm1 = vcmask 1046528  }
  0x21   : > { %v823_v1 = vld [vmem:[%s1120_s25 + $0x38] sm:$0xff]  ;;  %369 = vmatpush.bf16.msra.mxu0 %v831_v0  ;;  %v822_v4 = vld [vmem:[%s1120_s25 + $0x30] sm:$0xff]  ;;  %v829_v6 = vld [vmem:[%s1120_s25 + $0x68] sm:$0xff]  ;;  %vm307_vm0 = vsmask.f32 7424 }
  0x22   : > { %s1215_s16 = smov (!%p242_p0, %s1015_s16), 1  ;;  %s1217_s15 = smov (!%p244_p1, %s1011_s15), 1  ;;  %v839_v2 = vld [vmem:[%s1120_s25 + $0xb8] sm:$0xff]  ;;  %432 = vmatpush.bf16.msra.mxu1 %v823_v1  ;;  %v838_v5 = vld [vmem:[%s1120_s25 + $0xb0] sm:$0xff]  ;;  %v821_v7 = vld [vmem:[%s1120_s25 + $0x28] sm:$0xff] }
  0x23   : > { %s856_s24 = smul.u32 6, %s1215_s16  ;;  %520 = vmatpush.bf16.msra.mxu2 %v839_v2  ;;  %v837_v8 = vld [vmem:[%s1120_s25 + $0xa8] sm:$0xff]  ;;  %v828_v9 = vld [vmem:[%s1120_s25 + $0x60] sm:$0xff]  ;;  %v827_v13 = vld [vmem:[%s1120_s25 + $0x58] sm:$0xff]  ;;  %s253_s8 = scalar_lea.vmem %s1198_s2, %s1215_s16 }
  0x24   : > { %s855_s26 = smul.u32 3, %s1217_s15  ;;  %v820_v10 = vld [vmem:[%s1120_s25 + $0x20] sm:$0xff]  ;;  %v819_v14 = vld [vmem:[%s1120_s25 + $0x18] sm:$0xff]  ;;  %v826_v18 = vld [vmem:[%s1120_s25 + $0x50] sm:$0xff]  ;;  %s683_s9 = sshll.u32 %s1217_s15, 1 }
  0x25   : > { %370 = vmatpush.bf16.msra.mxu0 %v830_v3  ;;  %v836_v11 = vld [vmem:[%s1120_s25 + $0xa0] sm:$0xff]  ;;  %v835_v16 = vld [vmem:[%s1120_s25 + $0x98] sm:$0xff]  ;;  %v818_v19 = vld [vmem:[%s1120_s25 + $0x10] sm:$0xff]  ;;  %s684_s10 = sshll.u32 %s1215_s16, 2 }
  0x26   : > { %s248_s27 = sadd.s32 %s856_s24, %s855_s26  ;;  %433 = vmatpush.bf16.msra.mxu1 %v822_v4  ;;  %v834_v22 = vld [vmem:[%s1120_s25 + $0x90] sm:$0xff]  ;;  %v825_v25 = vld [vmem:[%s1120_s25 + $0x48] sm:$0xff]  ;;  %v824_v32 = vld [vmem:[%s1120_s25 + $0x40] sm:$0xff]  ;;  %s260_s11 = sadd.s32 %s684_s10, %s683_s9 }
  0x27   : > { %s682_s29 = sshll.u32 %s248_s27, 2  ;;  %521 = vmatpush.bf16.msra.mxu2 %v838_v5  ;;  %v817_v26 = vld [vmem:[%s1120_s25 + $0x8] sm:$0xff]  ;;  %v816_v33 = vld [vmem:[%s1120_s25] sm:$0xff]  ;;  %s685_s12 = sshll.u32 %s260_s11, 2 }
  0x28   : > { %s250_s5 = scalar_lea.vmem %s1196_s0, %s682_s29  ;;  %v833_v30 = vld [vmem:[%s1120_s25 + $0x88] sm:$0xff]  ;;  %v832_v36 = vld [vmem:[%s1120_s25 + $0x80] sm:$0xff]  ;;  %s262_s16 = scalar_lea.vmem %s1199_s3, %s685_s12 }
  0x29   : > { %371 = vmatpush.bf16.msra.mxu0 %v829_v6  ;;  %v281_v12 = vld [vmem:[%s250_s5 + $0x8] sm:$0x1]  ;;  %v841_v17 = vld [vmem:[%s250_s5] sm:$0xff]  }
  0x2a   : > { %434 = vmatpush.bf16.msra.mxu1 %v821_v7  ;;  %v304_v15 = vunpack.c.l.b16 %v281_v12  ;;  %v311_v21 = vshll.u32 %v841_v17, 16  ;;  %v849_v23 = vld [vmem:[%s250_s5] sm:$0xf0]  ;;  %v850_v24 = vld [vmem:[%s250_s5] sm:$0xe]  ;;  %v309_v27 = vshrl.u32 %v841_v17, 16 }
  0x2b   : > { %522 = vmatpush.bf16.msra.mxu2 %v837_v8  ;;  %v851_v31 = vor.u32 %v850_v24, %v849_v23  ;;  %v930_v48 = vld [vmem:[%s253_s8] ss:$0 sm:$0xff] }
  0x2c   : > { %v306_v20 = vpack.c.b16 %v304_v15, %v304_v15  ;;  %v313_v28 = vrot.slane %v311_v21, 1 }
  0x2d   : > { %372 = vmatpush.bf16.msra.mxu0 %v828_v9  ;;  %v468_v37 = vrot.slane %v851_v31, 1 }
  0x2e   : > { %435 = vmatpush.bf16.msra.mxu1 %v820_v10  ;;  %v316_v29 = vshll.u32 %v306_v20, 16  ;;  %v314_v34 = vor.u32 %v313_v28, %v309_v27  ;;  %v469_v38 = vrot.slane %v306_v20, 1 }
  0x2f   : > { %523 = vmatpush.bf16.msra.mxu2 %v836_v11 }
  0x30   : > { %v318_v35 = vrot.slane %v316_v29, 1  ;;  %v470_v40 = vsel %vm467_vm1, %v468_v37, %v469_v38 }
  0x31   : > { %373 = vmatpush.bf16.msra.mxu0 %v827_v13 }
  0x32   : > { %436 = vmatpush.bf16.msra.mxu1 %v819_v14  ;;  %v319_v39 = vsel %vm307_vm0, %v314_v34, %v318_v35 }
  0x33   : > { %524 = vmatpush.bf16.msra.mxu2 %v835_v16 }
  0x35   : > { %374 = vmatpush.bf16.msra.mxu0 %v826_v18 }
  0x36   : > { %437 = vmatpush.bf16.msra.mxu1 %v818_v19 }
  0x37   : > { %525 = vmatpush.bf16.msra.mxu2 %v834_v22 }
  0x39   : > { %375 = vmatpush.bf16.msra.mxu0 %v825_v25 }
  0x3a   : > { %438 = vmatpush.bf16.msra.mxu1 %v817_v26 }
  0x3b   : > { %526 = vmatpush.bf16.msra.mxu2 %v833_v30 }
  0x3d   : > { %376 = vmatpush.bf16.msra.mxu0 %v824_v32 }
  0x3e   : > { %439 = vmatpush.bf16.msra.mxu1 %v816_v33 }
  0x3f   : > { %527 = vmatpush.bf16.msra.mxu2 %v832_v36 }
  0x40   : > { %377 = vmatmul.bf16.vlgmr.msra.gmra.mxu0 %v319_v39 }
  0x41   : > { %440 = vmatmul.bf16.vlgmr.msra.gmra.mxu1 %v841_v17 }
  0x42   : > { %528 = vmatmul.bf16.vlgmr.msra.gmra.mxu2 %v470_v40 }
  0xbd   : > { %v378_v41 = vpop.f32.mrf.mxu0 }
  0xbe   : > { %v441_v42 = vpop.f32.mrf.mxu1 }
  0xbf   : > { %v442_v44 = vadd.f32 %v441_v42, %v378_v41 }
  0xc5   : > { %v529_v43 = vpop.f32.mrf.mxu2  ;;  %v380_v45 = vpop.f32.mrf.mxu0 }
  0xc6   : > { %v443_v46 = vpop.f32.mrf.mxu1  ;;  %v534_v47 = vadd.f32 %v529_v43, %v442_v44 }
  0xc7   : > { %v444_v49 = vadd.f32 %v443_v46, %v380_v45 }
  0xc8   : > { %v540_v51 = vadd.f32 %v930_v48, %v534_v47 }
  0xca   : > { %v542_v54 = vmax.f32 %v540_v51, 0.0 }
  0xcd   : > { %v531_v50 = vpop.f32.mrf.mxu2 }
  0xce   : > { %v535_v52 = vadd.f32 %v531_v50, %v444_v49 }
  0xd0   : > { %v541_v53 = vadd.f32 %v930_v48, %v535_v52 }
  0xd2   : > { %v543_v55 = vmax.f32 %v541_v53, 0.0 }
  0xd4   : > { %v847_v56 = vpack.c.bf16 %v543_v55, %v542_v54 }
  0xd6   : > { %848 = vst [vmem:[%s262_s16] sm:$0xff] %v847_v56  }
  0xd7 PF: > { %s16_s19 = sadd.s32 1, %s1027_s19   ;;  %s1201_s12 = smov %s1003_s13 }
  0xd8   : > { %p13_p2 = scmp.ge.s32.totalorder %s16_s19, 6   ;;  %s1202_s13 = smov %s1007_s14 }
  0xd9   : > { %s1203_s14 = smov %s1111_s28  ;;  %s1204_s15 = smov %s1019_s17 }
  0xda   : > { %s1205_s16 = smov %s1023_s18  ;;  %s1206_s17 = smov %s1209_s21 }
  0xdb   : > { %s1207_s18 = smov %s1213_s22  ;;  %15 = sbr.rel (!%p13_p2) target bundleno = 5 (0x5), region = 80 }
  0xe0   :  { %577 = vsyncpa [#allocation3], 1 }
  0xe1   :  { %579 = vsyncpa [#allocation3 + $0x1], 1 }

// kernel: dual_human_vqvae_forward.35
= control target key start
LH: loop header
LB: loop body
LE: loop exit
PB: predicated region body
PF: predicated region fallthrough
CT: control target
= control target key end

     0   :  { %8 = vsyncpa [#allocation3], 0  ;;  %s1545_s0 = inlined_call_operand.vmem [shape: bf16[2,2,18,128], index: 0, kind: input, shape index: {}]   ;;  %s1546_s1 = inlined_call_operand.hbm [shape: bf16[2,3,128,256], index: 1, kind: input, shape index: {}]   ;;  %s1547_s2 = inlined_call_operand.vmem [shape: f32[2,1,256], index: 2, kind: input, shape index: {}]   ;;  %s1548_s3 = inlined_call_operand.vmem [shape: bf16[2,2,16,256], index: 3, kind: output, shape index: {}]  }
   0x1   :  { %10 = vsyncpa [#allocation3 + $0x1], 0  ;;  %s1314_s12 = smov 0   ;;  %s1316_s13 = smov 0  }
   0x2   :  { %s1318_s14 = smov 0   ;;  %s1320_s15 = smov 0  }
   0x3   :  { %s1322_s16 = smov 0   ;;  %s1324_s17 = smov 0  }
   0x4   :  { %s1326_s18 = smov 0   ;;  %s1328_s19 = smov 0  }
   0x5 LB: > { %s824_s20 = sadd.s32 4294967295, %s1290_s19   ;;  %s25_s21 = sadd.s32 1, %s1282_s17  ;;  %s1290_s19 = sphi %s1328_s19, %s16_s19   ;;  %s1286_s18 = sphi %s1326_s18, %s1556_s18   ;;  %s1282_s17 = sphi %s1324_s17, %s1555_s17   ;;  %s1278_s16 = sphi %s1322_s16, %s1554_s16   ;;  %s1274_s15 = sphi %s1320_s15, %s1553_s15   ;;  %s1270_s14 = sphi %s1318_s14, %s1552_s14   ;;  %s1266_s13 = sphi %s1316_s13, %s1551_s13   ;;  %s1262_s12 = sphi %s1314_s12, %s1550_s12  }
   0x6   : > { %p26_p0 = scmp.ge.s32.totalorder %s25_s21, 2  ;;  %s28_s22 = sadd.s32 1, %s1286_s18 }
   0x7   : > { %s63_s23 = sadd.s32 1, %s1270_s14  ;;  %p70_p1 = scmp.ne.s32.totalorder %s1270_s14, %s1266_s13 }
   0x8   : > { %s1558_s21 = smov (%p26_p0, %s25_s21), 0  ;;  %s1560_s22 = smov (!%p26_p0, %s28_s22), %s1286_s18 }
   0x9   : > { %p71_p2 = scmp.eq.s32.totalorder %s1290_s19, 0  ;;  %p76_p3 = scmp.ne.s32.totalorder %s1266_s13, %s1262_s12 }
   0xa   : > { %p30_p4 = scmp.ge.s32.totalorder %s1560_s22, 2  ;;  %p77_p5 = scmp.eq.s32.totalorder %s824_s20, 0 }
   0xb   : > { %p72_p6 = por %p71_p2, %p70_p1  ;;  %p1127_p8 = scmp.lt.s32.totalorder %s1290_s19, 4 }
   0xc   : > { %s1562_s22 = smov (%p30_p4, %s1560_s22), 0  ;;  %p1365_p7 = por %p77_p5, %p76_p3 }
   0xd   : > { %s60_s25 = ssub.s32 %s1286_s18, %s1562_s22  ;;  %s166_s26 = sand.u32 1, %s1270_s14  }
   0xe   : > { %p61_p9 = scmp.eq.s32.totalorder %s60_s25, 0  ;;  %s1116_s27 = smul.u32 384, %s166_s26 }
   0xf   : > { %p1124_p10 = pnand %p1127_p8, %p72_p6  ;;  %s1117_s29 = smul.u32 384, %s1286_s18 }
  0x10   : > { %s1374_s28 = scalar_select %p61_p9, %s1270_s14, %s63_s23  }
  0x11   : > { %s170_s30 = scalar_lea.vmem [#allocation2], %s1116_s27  ;;  %s175_s7 = scalar_lea.hbm %s1546_s1, %s1117_s29 }
  0x12   : > { %s178_s4 = sshll.u32 %s170_s30, 4  ;;  %s176_s8 = sshll.u32 %s175_s7, 4  ;;  %s179_s4 = int_to_ptr.vmem [resolvable:$true] %s178_s4  ;;  %s177_s8 = int_to_ptr.hbm [resolvable:$true] %s176_s8 }
  0x13   : > { %s167_s9 = scalar_lea.sflag [#allocation3], %s166_s26  ;;  %s1292_s10 = smov 128  }
  0x14   : > { %s1293_s11 = smov 8   ;;  %p829_p11 = scmp.ge.s32.totalorder %s1290_s19, 1 }
  0x15   : > { %1126 = dma.hbm_to_vmem [thread:$0]  (!%p1124_p10), %s177_s8, 6144, %s179_s4, %s167_s9, %s1292_s10, %s1292_s10, %s1293_s11  }
  0x16   : > { %p193_p12 = scmp.lt.s32.totalorder %s1290_s19, 5 }
  0x18   : > { %p194_p13 = pnand %p829_p11, %p193_p12 }
  0x19   : > { %s199_s12 = sand.u32 (!%p194_p13), 1, %s1266_s13  }
  0x1a   : > { %197 = sbr.rel (%p194_p13) target bundleno = 240 (0xf0), region = 32  ;;  %s200_s23 = scalar_lea.sflag (!%p194_p13), [#allocation3], %s199_s12 }
  0x1b   : > { %s1118_s20 = smul.u32 (!%p194_p13), 384, %s199_s12 }
  0x1d   : > { %s1383_s25 = scalar_lea.vmem (!%p194_p13), [#allocation2], %s1118_s20 }
  0x1f   : > { %1257 = dma.done.wait (%p1365_p7), %s200_s23, 6144  }
  0x20   : > { %1259 = vsyncadd (%p1365_p7), %s200_s23, 4294961152  ;;  %p244_p0 = scmp.lt.s32.totalorder %s1278_s16, 1  ;;  %p246_p1 = scmp.lt.s32.totalorder %s1274_s15, 1  ;;  %v909_v0 = vld [vmem:[%s1383_s25 + $0xf0] sm:$0xf]  ;;  %vm562_vm1 = vcmask 1046528  }
  0x21   : > { %v1092_v1 = vld [vmem:[%s1383_s25 + $0xf4] sm:$0xf0]  ;;  %v1091_v2 = vld [vmem:[%s1383_s25 + $0xf4] sm:$0xf]  ;;  %v911_v4 = vld [vmem:[%s1383_s25 + $0xf8] sm:$0xf0] }
  0x22   : > { %v910_v3 = vor.u32 %v1092_v1, %v909_v0  ;;  %v973_v5 = vld [vmem:[%s1383_s25 + $0x70] sm:$0xf]  ;;  %v1076_v6 = vld [vmem:[%s1383_s25 + $0x74] sm:$0xf0]  ;;  %v914_v7 = vor.u32 %v1091_v2, %v911_v4  ;;  %v1075_v9 = vld [vmem:[%s1383_s25 + $0x74] sm:$0xf] }
  0x23   : > { %v974_v8 = vor.u32 %v1076_v6, %v973_v5  ;;  %v975_v10 = vld [vmem:[%s1383_s25 + $0x78] sm:$0xf0]  ;;  %v901_v11 = vld [vmem:[%s1383_s25 + $0xe0] sm:$0xf]  ;;  %v1090_v13 = vld [vmem:[%s1383_s25 + $0xe4] sm:$0xf0] }
  0x24   : > { %404 = vmatpush.bf16.msra.mxu0 %v910_v3  ;;  %v978_v12 = vor.u32 %v1075_v9, %v975_v10  ;;  %v1089_v14 = vld [vmem:[%s1383_s25 + $0xe4] sm:$0xf]  ;;  %v903_v15 = vld [vmem:[%s1383_s25 + $0xe8] sm:$0xf0]  ;;  %418 = vmatpush.bf16.msra.mxu1 %v914_v7  ;;  %v902_v16 = vor.u32 %v1090_v13, %v901_v11  ;;  %v965_v18 = vld [vmem:[%s1383_s25 + $0x60] sm:$0xf] }
  0x25   : > { %513 = vmatpush.bf16.msra.mxu2 %v974_v8  ;;  %v906_v17 = vor.u32 %v1089_v14, %v903_v15  ;;  %v1074_v19 = vld [vmem:[%s1383_s25 + $0x64] sm:$0xf0]  ;;  %v1073_v20 = vld [vmem:[%s1383_s25 + $0x64] sm:$0xf]  ;;  %v967_v22 = vld [vmem:[%s1383_s25 + $0x68] sm:$0xf0] }
  0x26   : > { %527 = vmatpush.bf16.msra.mxu3 %v978_v12  ;;  %v966_v21 = vor.u32 %v1074_v19, %v965_v18  ;;  %v893_v23 = vld [vmem:[%s1383_s25 + $0xd0] sm:$0xf]  ;;  %v1088_v24 = vld [vmem:[%s1383_s25 + $0xd4] sm:$0xf0]  ;;  %v970_v25 = vor.u32 %v1073_v20, %v967_v22  ;;  %v1087_v26 = vld [vmem:[%s1383_s25 + $0xd4] sm:$0xf] }
  0x27   : > { %v895_v27 = vld [vmem:[%s1383_s25 + $0xd8] sm:$0xf0]  ;;  %v957_v28 = vld [vmem:[%s1383_s25 + $0x50] sm:$0xf]  ;;  %v894_v29 = vor.u32 %v1088_v24, %v893_v23  ;;  %v1072_v30 = vld [vmem:[%s1383_s25 + $0x54] sm:$0xf0] }
  0x28   : > { %405 = vmatpush.bf16.msra.mxu0 %v902_v16  ;;  %v1071_v31 = vld [vmem:[%s1383_s25 + $0x54] sm:$0xf]  ;;  %v959_v32 = vld [vmem:[%s1383_s25 + $0x58] sm:$0xf0]  ;;  %419 = vmatpush.bf16.msra.mxu1 %v906_v17  ;;  %v898_v33 = vor.u32 %v1087_v26, %v895_v27  ;;  %v958_v34 = vor.u32 %v1072_v30, %v957_v28  ;;  %v885_v35 = vld [vmem:[%s1383_s25 + $0xc0] sm:$0xf] }
  0x29   : > { %514 = vmatpush.bf16.msra.mxu2 %v966_v21  ;;  %v1086_v36 = vld [vmem:[%s1383_s25 + $0xc4] sm:$0xf0]  ;;  %v1085_v37 = vld [vmem:[%s1383_s25 + $0xc4] sm:$0xf]  ;;  %v962_v38 = vor.u32 %v1071_v31, %v959_v32  ;;  %v887_v39 = vld [vmem:[%s1383_s25 + $0xc8] sm:$0xf0] }
  0x2a   : > { %528 = vmatpush.bf16.msra.mxu3 %v970_v25  ;;  %v949_v40 = vld [vmem:[%s1383_s25 + $0x40] sm:$0xf]  ;;  %v1070_v41 = vld [vmem:[%s1383_s25 + $0x44] sm:$0xf0]  ;;  %v1069_v42 = vld [vmem:[%s1383_s25 + $0x44] sm:$0xf]  ;;  %v886_v44 = vor.u32 %v1086_v36, %v885_v35  ;;  %v890_v45 = vor.u32 %v1085_v37, %v887_v39 }
  0x2b   : > { %v951_v43 = vld [vmem:[%s1383_s25 + $0x48] sm:$0xf0]  ;;  %s1564_s16 = smov (!%p244_p0, %s1278_s16), 1  ;;  %s1566_s15 = smov (!%p246_p1, %s1274_s15), 1  ;;  %v950_v46 = vor.u32 %v1070_v41, %v949_v40  ;;  %v877_v47 = vld [vmem:[%s1383_s25 + $0xb0] sm:$0xf] }
  0x2c   : > { %406 = vmatpush.bf16.msra.mxu0 %v894_v29  ;;  %420 = vmatpush.bf16.msra.mxu1 %v898_v33  ;;  %v1084_v48 = vld [vmem:[%s1383_s25 + $0xb4] sm:$0xf0]  ;;  %v1083_v49 = vld [vmem:[%s1383_s25 + $0xb4] sm:$0xf]  ;;  %v954_v50 = vor.u32 %v1069_v42, %v951_v43  ;;  %v879_v51 = vld [vmem:[%s1383_s25 + $0xb8] sm:$0xf0] }
  0x2d   : > { %515 = vmatpush.bf16.msra.mxu2 %v958_v34  ;;  %v941_v52 = vld [vmem:[%s1383_s25 + $0x30] sm:$0xf]  ;;  %v1068_v53 = vld [vmem:[%s1383_s25 + $0x34] sm:$0xf0]  ;;  %v1067_v54 = vld [vmem:[%s1383_s25 + $0x34] sm:$0xf]  ;;  %v878_v56 = vor.u32 %v1084_v48, %v877_v47  ;;  %v882_v57 = vor.u32 %v1083_v49, %v879_v51 }
  0x2e   : > { %529 = vmatpush.bf16.msra.mxu3 %v962_v38  ;;  %v943_v55 = vld [vmem:[%s1383_s25 + $0x38] sm:$0xf0]  ;;  %s1120_s24 = smul.u32 6, %s1564_s16  ;;  %v942_v58 = vor.u32 %v1068_v53, %v941_v52  ;;  %v869_v59 = vld [vmem:[%s1383_s25 + $0xa0] sm:$0xf]  ;;  %s831_s6 = sshll.u32 %s1564_s16, 1 }
  0x2f   : > { %s1119_s26 = smul.u32 3, %s1566_s15  ;;  %v1082_v60 = vld [vmem:[%s1383_s25 + $0xa4] sm:$0xf0]  ;;  %v1081_v61 = vld [vmem:[%s1383_s25 + $0xa4] sm:$0xf]  ;;  %v946_v62 = vor.u32 %v1067_v54, %v943_v55  ;;  %s256_s9 = scalar_lea.vmem %s1547_s2, %s831_s6 }
  0x30   : > { %407 = vmatpush.bf16.msra.mxu0 %v886_v44  ;;  %421 = vmatpush.bf16.msra.mxu1 %v890_v45  ;;  %v871_v63 = vld [vmem:[%s1383_s25 + $0xa8] sm:$0xf0]  ;;  %v933_v0 = vld [vmem:[%s1383_s25 + $0x20] sm:$0xf]  ;;  %v1066_v1 = vld [vmem:[%s1383_s25 + $0x24] sm:$0xf0]  ;;  %v870_v4 = vor.u32 %v1082_v60, %v869_v59 }
  0x31   : > { %516 = vmatpush.bf16.msra.mxu2 %v950_v46  ;;  %v1065_v2 = vld [vmem:[%s1383_s25 + $0x24] sm:$0xf]  ;;  %v935_v3 = vld [vmem:[%s1383_s25 + $0x28] sm:$0xf0]  ;;  %v861_v5 = vld [vmem:[%s1383_s25 + $0x90] sm:$0xf]  ;;  %s250_s27 = sadd.s32 %s1120_s24, %s1119_s26  ;;  %v874_v6 = vor.u32 %v1081_v61, %v871_v63  ;;  %v934_v7 = vor.u32 %v1066_v1, %v933_v0 }
  0x32   : > { %530 = vmatpush.bf16.msra.mxu3 %v954_v50  ;;  %v1080_v8 = vld [vmem:[%s1383_s25 + $0x94] sm:$0xf0]  ;;  %v1079_v9 = vld [vmem:[%s1383_s25 + $0x94] sm:$0xf]  ;;  %v863_v10 = vld [vmem:[%s1383_s25 + $0x98] sm:$0xf0]  ;;  %v938_v11 = vor.u32 %v1065_v2, %v935_v3 }
  0x33   : > { %v925_v12 = vld [vmem:[%s1383_s25 + $0x10] sm:$0xf]  ;;  %v1064_v13 = vld [vmem:[%s1383_s25 + $0x14] sm:$0xf0]  ;;  %v1063_v14 = vld [vmem:[%s1383_s25 + $0x14] sm:$0xf]  ;;  %v862_v17 = vor.u32 %v1080_v8, %v861_v5  ;;  %v866_v21 = vor.u32 %v1079_v9, %v863_v10 }
  0x34   : > { %408 = vmatpush.bf16.msra.mxu0 %v878_v56  ;;  %422 = vmatpush.bf16.msra.mxu1 %v882_v57  ;;  %v927_v15 = vld [vmem:[%s1383_s25 + $0x18] sm:$0xf0]  ;;  %v853_v16 = vld [vmem:[%s1383_s25 + $0x80] sm:$0xf]  ;;  %s830_s29 = sshll.u32 %s250_s27, 2  ;;  %v926_v22 = vor.u32 %v1064_v13, %v925_v12  ;;  %s832_s10 = sshll.u32 %s1566_s15, 2 }
  0x35   : > { %517 = vmatpush.bf16.msra.mxu2 %v942_v58  ;;  %v1078_v18 = vld [vmem:[%s1383_s25 + $0x84] sm:$0xf0]  ;;  %v1077_v19 = vld [vmem:[%s1383_s25 + $0x84] sm:$0xf]  ;;  %v855_v20 = vld [vmem:[%s1383_s25 + $0x88] sm:$0xf0]  ;;  %s1466_s5 = scalar_lea.vmem %s1545_s0, %s830_s29  ;;  %v930_v26 = vor.u32 %v1063_v14, %v927_v15 }
  0x36   : > { %531 = vmatpush.bf16.msra.mxu3 %v946_v62  ;;  %v917_v23 = vld [vmem:[%s1383_s25] sm:$0xf]  ;;  %v284_v25 = vld [vmem:[%s1466_s5 + $0x8] sm:$0x1]  ;;  %v1061_v28 = vld [vmem:[%s1383_s25 + $0x4] sm:$0xf]  ;;  %v854_v35 = vor.u32 %v1078_v18, %v853_v16  ;;  %v858_v39 = vor.u32 %v1077_v19, %v855_v20 }
  0x37   : > { %v1110_v24 = vld [vmem:[%s1466_s5] sm:$0xff]   ;;  %v1062_v27 = vld [vmem:[%s1383_s25 + $0x4] sm:$0xf0]  ;;  %v919_v29 = vld [vmem:[%s1383_s25 + $0x8] sm:$0xf0]  ;;  %v307_v30 = vunpack.c.l.b16 %v284_v25  ;;  %s833_s11 = sshll.u32 %s1564_s16, 3 }
  0x38   : > { %409 = vmatpush.bf16.msra.mxu0 %v870_v4  ;;  %423 = vmatpush.bf16.msra.mxu1 %v874_v6  ;;  %v1053_v31 = vld [vmem:[%s1383_s25 + $0x170] sm:$0xf]  ;;  %v1108_v32 = vld [vmem:[%s1383_s25 + $0x174] sm:$0xf0]  ;;  %v312_v33 = vshrl.u32 %v1110_v24, 16  ;;  %v314_v34 = vshll.u32 %v1110_v24, 16  ;;  %v918_v40 = vor.u32 %v1062_v27, %v917_v23  ;;  %v922_v42 = vor.u32 %v1061_v28, %v919_v29  ;;  %s263_s12 = sadd.s32 %s833_s11, %s832_s10 }
  0x39   : > { %518 = vmatpush.bf16.msra.mxu2 %v934_v7  ;;  %v1107_v36 = vld [vmem:[%s1383_s25 + $0x174] sm:$0xf]  ;;  %v1055_v37 = vld [vmem:[%s1383_s25 + $0x178] sm:$0xf0]  ;;  %v1478_v38 = vpack.c.b16 %v307_v30, %v307_v30  ;;  %v1054_v43 = vor.u32 %v1108_v32, %v1053_v31  ;;  %v1045_v46 = vld [vmem:[%s1383_s25 + $0x160] sm:$0xf] }
  0x3a   : > { %532 = vmatpush.bf16.msra.mxu3 %v938_v11  ;;  %v316_v41 = vrot.slane %v314_v34, 1  ;;  %v1058_v45 = vor.u32 %v1107_v36, %v1055_v37  ;;  %v1106_v47 = vld [vmem:[%s1383_s25 + $0x164] sm:$0xf0]  ;;  %vm310_vm0 = vsmask.f32 7424  ;;  %s834_s20 = sshll.u32 %s263_s12, 2 }
  0x3b   : > { %v319_v44 = vshll.u32 %v1478_v38, 16  ;;  %v1105_v49 = vld [vmem:[%s1383_s25 + $0x164] sm:$0xf]  ;;  %v1047_v50 = vld [vmem:[%s1383_s25 + $0x168] sm:$0xf0]  ;;  %v1046_v52 = vor.u32 %v1106_v47, %v1045_v46  ;;  %v564_v30 = vrot.slane %v1478_v38, 1  ;;  %s265_s24 = scalar_lea.vmem %s1548_s3, %s834_s20 }
  0x3c   : > { %410 = vmatpush.bf16.msra.mxu0 %v862_v17  ;;  %424 = vmatpush.bf16.msra.mxu1 %v866_v21  ;;  %v317_v48 = vor.u32 %v316_v41, %v312_v33  ;;  %v1050_v54 = vor.u32 %v1105_v49, %v1047_v50  ;;  %v1037_v55 = vld [vmem:[%s1383_s25 + $0x150] sm:$0xf]  ;;  %v1104_v56 = vld [vmem:[%s1383_s25 + $0x154] sm:$0xf0]  ;;  %v1103_v57 = vld [vmem:[%s1383_s25 + $0x154] sm:$0xf] }
  0x3d   : > { %519 = vmatpush.bf16.msra.mxu2 %v926_v22  ;;  %v321_v51 = vrot.slane %v319_v44, 1  ;;  %v1039_v58 = vld [vmem:[%s1383_s25 + $0x158] sm:$0xf0]  ;;  %v1038_v59 = vor.u32 %v1104_v56, %v1037_v55  ;;  %v1029_v61 = vld [vmem:[%s1383_s25 + $0x140] sm:$0xf] }
  0x3e   : > { %533 = vmatpush.bf16.msra.mxu3 %v930_v26  ;;  %v1042_v60 = vor.u32 %v1103_v57, %v1039_v58  ;;  %v1102_v62 = vld [vmem:[%s1383_s25 + $0x144] sm:$0xf0]  ;;  %v1101_v63 = vld [vmem:[%s1383_s25 + $0x144] sm:$0xf]  ;;  %v1031_v0 = vld [vmem:[%s1383_s25 + $0x148] sm:$0xf0] }
  0x3f   : > { %v322_v53 = vsel %vm310_vm0, %v317_v48, %v321_v51  ;;  %v1030_v1 = vor.u32 %v1102_v62, %v1029_v61  ;;  %v1034_v2 = vor.u32 %v1101_v63, %v1031_v0  ;;  %v1021_v3 = vld [vmem:[%s1383_s25 + $0x130] sm:$0xf]  ;;  %v1100_v4 = vld [vmem:[%s1383_s25 + $0x134] sm:$0xf0]  ;;  %v1099_v5 = vld [vmem:[%s1383_s25 + $0x134] sm:$0xf] }
  0x40   : > { %411 = vmatpush.bf16.msra.mxu0 %v854_v35  ;;  %425 = vmatpush.bf16.msra.mxu1 %v858_v39  ;;  %v1023_v6 = vld [vmem:[%s1383_s25 + $0x138] sm:$0xf0]  ;;  %v1022_v7 = vor.u32 %v1100_v4, %v1021_v3  ;;  %v1013_v9 = vld [vmem:[%s1383_s25 + $0x120] sm:$0xf]  ;;  %v1098_v10 = vld [vmem:[%s1383_s25 + $0x124] sm:$0xf0] }
  0x41   : > { %520 = vmatpush.bf16.msra.mxu2 %v918_v40  ;;  %v1026_v8 = vor.u32 %v1099_v5, %v1023_v6  ;;  %v1097_v11 = vld [vmem:[%s1383_s25 + $0x124] sm:$0xf]  ;;  %v1015_v12 = vld [vmem:[%s1383_s25 + $0x128] sm:$0xf0]  ;;  %v1014_v13 = vor.u32 %v1098_v10, %v1013_v9  ;;  %v1005_v14 = vld [vmem:[%s1383_s25 + $0x110] sm:$0xf] }
  0x42   : > { %534 = vmatpush.bf16.msra.mxu3 %v922_v42  ;;  %v1018_v15 = vor.u32 %v1097_v11, %v1015_v12  ;;  %v1096_v16 = vld [vmem:[%s1383_s25 + $0x114] sm:$0xf0]  ;;  %v1113_v17 = vld [vmem:[%s1466_s5] sm:$0xf0]  ;;  %v1114_v18 = vld [vmem:[%s1466_s5] sm:$0xe] }
  0x43   : > { %412 = vmatmul.bf16.vlgmr.msra.gmra.mxu0 %v322_v53  ;;  %426 = vmatmul.bf16.vlgmr.msra.gmra.mxu1 %v322_v53  ;;  %v1095_v19 = vld [vmem:[%s1383_s25 + $0x114] sm:$0xf]  ;;  %v1007_v20 = vld [vmem:[%s1383_s25 + $0x118] sm:$0xf0]  ;;  %v1006_v21 = vor.u32 %v1096_v16, %v1005_v14  ;;  %v1115_v22 = vor.u32 %v1114_v18, %v1113_v17  ;;  %v1094_v25 = vld [vmem:[%s1383_s25 + $0x104] sm:$0xf0] }
  0x44   : > { %647 = vmatpush.bf16.msrb.mxu0 %v1054_v43  ;;  %661 = vmatpush.bf16.msrb.mxu1 %v1058_v45  ;;  %v1010_v23 = vor.u32 %v1095_v19, %v1007_v20  ;;  %v1093_v26 = vld [vmem:[%s1383_s25 + $0x104] sm:$0xf]  ;;  %v999_v27 = vld [vmem:[%s1383_s25 + $0x108] sm:$0xf0]  ;;  %v679_v39 = vld [vmem:[%s256_s9] sm:$0x3] }
  0x45   : > { %521 = vmatmul.bf16.vlgmr.msra.gmra.mxu2 %v1110_v24  ;;  %535 = vmatmul.bf16.vlgmr.msra.gmra.mxu3 %v1110_v24  ;;  %v997_v24 = vld [vmem:[%s1383_s25 + $0x100] sm:$0xf]  ;;  %v563_v29 = vrot.slane %v1115_v22, 1  ;;  %v1002_v31 = vor.u32 %v1093_v26, %v999_v27  ;;  %v681_v41 = vperm.slane %v679_v39, 0  ;;  %v682_v44 = vperm.slane %v679_v39, 1 }
  0x46   : > { %v998_v28 = vor.u32 %v1094_v25, %v997_v24 }
  0x47   : > { %v565_v32 = vsel %vm562_vm1, %v563_v29, %v564_v30 }
  0x48   : > { %648 = vmatpush.bf16.msrb.mxu0 %v1046_v52  ;;  %662 = vmatpush.bf16.msrb.mxu1 %v1050_v54 }
  0x4c   : > { %649 = vmatpush.bf16.msrb.mxu0 %v1038_v59  ;;  %663 = vmatpush.bf16.msrb.mxu1 %v1042_v60 }
  0x50   : > { %650 = vmatpush.bf16.msrb.mxu0 %v1030_v1  ;;  %664 = vmatpush.bf16.msrb.mxu1 %v1034_v2 }
  0x54   : > { %651 = vmatpush.bf16.msrb.mxu0 %v1022_v7  ;;  %665 = vmatpush.bf16.msrb.mxu1 %v1026_v8 }
  0x58   : > { %652 = vmatpush.bf16.msrb.mxu0 %v1014_v13  ;;  %666 = vmatpush.bf16.msrb.mxu1 %v1018_v15 }
  0x5c   : > { %653 = vmatpush.bf16.msrb.mxu0 %v1006_v21  ;;  %667 = vmatpush.bf16.msrb.mxu1 %v1010_v23 }
  0x60   : > { %654 = vmatpush.bf16.msrb.mxu0 %v998_v28  ;;  %668 = vmatpush.bf16.msrb.mxu1 %v1002_v31 }
  0x63   : > { %655 = vmatmul.bf16.vlgmr.msrb.gmra.mxu0 %v565_v32  ;;  %669 = vmatmul.bf16.vlgmr.msrb.gmra.mxu1 %v565_v32 }
  0xc0   : > { %v413_v33 = vpop.f32.mrf.mxu0  ;;  %v427_v34 = vpop.f32.mrf.mxu1 }
  0xc8   : > { %v415_v35 = vpop.f32.mrf.mxu0  ;;  %v429_v36 = vpop.f32.mrf.mxu1 }
  0xc9   : > { %v522_v37 = vpop.f32.mrf.mxu2  ;;  %v536_v38 = vpop.f32.mrf.mxu3 }
  0xca   : > { %v523_v40 = vadd.f32 %v522_v37, %v413_v33  ;;  %v537_v42 = vadd.f32 %v536_v38, %v427_v34 }
  0xd1   : > { %v524_v49 = vpop.f32.mrf.mxu2  ;;  %v538_v51 = vpop.f32.mrf.mxu3 }
  0xd2   : > { %v525_v53 = vadd.f32 %v524_v49, %v415_v35  ;;  %v539_v54 = vadd.f32 %v538_v51, %v429_v36 }
  0xe0   : > { %v656_v43 = vpop.f32.mrf.mxu0  ;;  %v670_v46 = vpop.f32.mrf.mxu1 }
  0xe1   : > { %v675_v45 = vadd.f32 %v656_v43, %v523_v40  ;;  %v676_v47 = vadd.f32 %v670_v46, %v537_v42 }
  0xe3   : > { %v685_v48 = vadd.f32 %v681_v41, %v675_v45  ;;  %v686_v50 = vadd.f32 %v682_v44, %v676_v47 }
  0xe5   : > { %v689_v52 = vpack.c.bf16 %v686_v50, %v685_v48 }
  0xe7   : > { %691 = vst [vmem:[%s265_s24] sm:$0xff] %v689_v52 }
  0xe8   : > { %v658_v55 = vpop.f32.mrf.mxu0  ;;  %v672_v57 = vpop.f32.mrf.mxu1 }
  0xe9   : > { %v677_v56 = vadd.f32 %v658_v55, %v525_v53  ;;  %v678_v58 = vadd.f32 %v672_v57, %v539_v54 }
  0xeb   : > { %v687_v59 = vadd.f32 %v681_v41, %v677_v56  ;;  %v688_v60 = vadd.f32 %v682_v44, %v678_v58 }
  0xed   : > { %v690_v61 = vpack.c.bf16 %v688_v60, %v687_v59 }
  0xef   : > { %692 = vst [vmem:[%s265_s24 + $0x8] sm:$0xff] %v690_v61 }
  0xf0 PF: > { %s16_s19 = sadd.s32 1, %s1290_s19   ;;  %s1550_s12 = smov %s1266_s13 }
  0xf1   : > { %p13_p2 = scmp.ge.s32.totalorder %s16_s19, 6   ;;  %s1551_s13 = smov %s1270_s14 }
  0xf2   : > { %s1552_s14 = smov %s1374_s28  ;;  %s1553_s15 = smov %s1282_s17 }
  0xf3   : > { %s1554_s16 = smov %s1286_s18  ;;  %s1555_s17 = smov %s1558_s21 }
  0xf4   : > { %s1556_s18 = smov %s1562_s22  ;;  %15 = sbr.rel (!%p13_p2) target bundleno = 5 (0x5), region = 80 }
  0xf9   :  { %722 = vsyncpa [#allocation3], 1 }
  0xfa   :  { %724 = vsyncpa [#allocation3 + $0x1], 1 }

</bundles_post_ra>
